<compile_context>
chip_gen: v5e
topology: v5e:2x2
jax: 0.10.0
libtpu: 0.0.40
codegen_flags: <defaults>
</compile_context>

<pallas_src>
import numpy as np

import jax
import jax.numpy as jnp
from jax import lax
from jax.experimental import pallas as pl
from jax.experimental.pallas import tpu as pltpu


# Static sizes implied by the module (fc1 expects 400 = 16*5*5 -> 3x32x32 input).
_H0, _W0, _CIN = 32, 32, 3
_K = 5
_C1, _C2 = 6, 16
_H1 = _H0 - _K + 1          # 28  (conv1 output spatial size)
_P1 = _H1 // 2              # 14  (pool1 output)
_H2 = _P1 - _K + 1          # 10  (conv2 output)
_P2 = _H2 // 2              # 5   (pool2 output)
_FLAT = _C2 * _P2 * _P2     # 400
_F1, _F2, _F3 = 120, 84, 10
_PITCH = _H0                # every image occupies 32 stacked rows at every stage


# ----------------------- constant helper matrices (numpy) -----------------------

def _pool_right_selectors(n, c):
    """Exact 0/1 matrices implementing the w-direction half of a 2x2/stride-2
    max-pool on an (rows, n*c) tile whose columns are (w, channel)-interleaved:
    pooled = max(X @ R[0], X @ R[1])."""
    p = n // 2
    pe = np.zeros((n, p), np.float32)
    po = np.zeros((n, p), np.float32)
    pe[2 * np.arange(p), np.arange(p)] = 1.0
    po[2 * np.arange(p) + 1, np.arange(p)] = 1.0
    eye = np.eye(c, dtype=np.float32)
    return np.stack([np.kron(pe, eye), np.kron(po, eye)])     # (2, n*c, p*c)


def _flatten_perm():
    """Permutation blocks mapping the pooled tile row r / column (j*C2 + c) to
    torch's NCHW .view order h[c*25 + r*5 + j]."""
    q = np.zeros((_P2, _P2 * _C2, _FLAT), np.float32)
    for r in range(_P2):
        for j in range(_P2):
            for c in range(_C2):
                q[r, j * _C2 + c, c * _P2 * _P2 + r * _P2 + j] = 1.0
    return q


def _row_select_matrix(bt):
    """One-hot (5*bt, 32*bt) matrix: row r*bt+b selects stacked row 32*b + 4*r,
    i.e. pooled spatial row r of image b (rows stay at stride 4 after pool2)."""
    sel = np.zeros((_P2 * bt, _PITCH * bt), np.float32)
    for r in range(_P2):
        for b in range(bt):
            sel[r * bt + b, _PITCH * b + 4 * r] = 1.0
    return sel


_R1_NP = _pool_right_selectors(_H1, _C1)    # (2, 168, 84)
_R2_NP = _pool_right_selectors(_H2, _C2)    # (2, 160, 80)
_Q_NP = _flatten_perm()                     # (5, 80, 400)


def _fused_conv_weight(w, width):
    """Torch conv weight (Cout, Cin, K, K) -> fused banded matrix
    (K*width*Cin, (width-K+1)*Cout).  Row block di corresponds to the input
    slab shifted down by di rows; output columns are laid out as (ow, cout)."""
    cout, cin, k, _ = w.shape
    ow = width - k + 1
    bands = []
    for di in range(k):
        blk = jnp.zeros((width * cin, ow * cout), jnp.float32)
        for dj in range(k):
            sh = np.zeros((width, ow), np.float32)
            sh[np.arange(ow) + dj, np.arange(ow)] = 1.0
            blk = blk + jnp.kron(jnp.asarray(sh), w[:, :, di, dj].T)
        bands.append(blk)
    return jnp.concatenate(bands, axis=0)


# --------------------------------- the kernel ----------------------------------

def _lenet_kernel(x_ref, w1_ref, b1_ref, r1_ref, w2_ref, b2_ref, r2_ref,
                  sel_ref, q_ref, wf1_ref, bf1_ref, wf2_ref, bf2_ref,
                  wf3_ref, bf3_ref, h_ref, proj_ref, pred_ref):
    f32, bf16 = jnp.float32, jnp.bfloat16
    m = x_ref.shape[0]                      # B_TILE * 32 stacked image rows
    bt = m // _PITCH

    def pad8(a):                            # 8 zero rows so shifted slices stay in-bounds
        return jnp.concatenate([a, jnp.zeros((8, a.shape[1]), a.dtype)], axis=0)

    # ---- conv1 + bias + ReLU : one fused banded bf16 matmul (5 taps in lanes) ----
    x2d = pad8(x_ref[...])                                                # (m+8, 96)
    lhs1 = jnp.concatenate([x2d[di:di + m, :] for di in range(_K)],
                           axis=1).astype(bf16)                           # (m, 480)
    y1 = jnp.dot(lhs1, w1_ref[...], preferred_element_type=f32) + b1_ref[...]
    y1 = jnp.maximum(y1, 0.0).astype(bf16)                                # (m, 168)

    # ---- pool1 : w on the MXU (exact selectors), h on the VPU (shift + max).
    #      Pooled rows stay in place at per-image row stride 2. ----
    mw1 = pad8(jnp.maximum(jnp.dot(y1, r1_ref[0], preferred_element_type=f32),
                           jnp.dot(y1, r1_ref[1], preferred_element_type=f32)))
    z1 = jnp.maximum(mw1[0:m, :], mw1[1:m + 1, :])                        # (m, 84)

    # ---- conv2 + bias + ReLU (input rows live at stride 2) ----
    z1p = pad8(z1)
    lhs2 = jnp.concatenate([z1p[2 * di:2 * di + m, :] for di in range(_K)],
                           axis=1).astype(bf16)                           # (m, 420)
    y2 = jnp.dot(lhs2, w2_ref[...], preferred_element_type=f32) + b2_ref[...]
    y2 = jnp.maximum(y2, 0.0).astype(bf16)                                # (m, 160)

    # ---- pool2 (valid rows end up at per-image offsets 0, 4, 8, 12, 16) ----
    mw2 = pad8(jnp.maximum(jnp.dot(y2, r2_ref[0], preferred_element_type=f32),
                           jnp.dot(y2, r2_ref[1], preferred_element_type=f32)))
    z2 = jnp.maximum(mw2[0:m, :], mw2[2:m + 2, :]).astype(bf16)           # (m, 80)

    # ---- gather the 5 pooled rows of every image with one exact one-hot matmul ----
    rows = jnp.dot(sel_ref[...], z2, preferred_element_type=f32)          # (5*bt, 80)

    # ---- flatten to torch NCHW .view order via exact permutation matmuls ----
    h = jnp.dot(rows[0:bt, :].astype(bf16), q_ref[0], preferred_element_type=f32)
    for r in range(1, _P2):
        h = h + jnp.dot(rows[r * bt:(r + 1) * bt, :].astype(bf16), q_ref[r],
                        preferred_element_type=f32)                       # (bt, 400)

    # ---- fc1 -> relu -> fc2 (proj) ; relu -> fc3 -> relu (pred), batched ----
    t = jnp.maximum(jnp.dot(h.astype(bf16), wf1_ref[...],
                            preferred_element_type=f32) + bf1_ref[...], 0.0)
    proj = jnp.dot(t.astype(bf16), wf2_ref[...],
                   preferred_element_type=f32) + bf2_ref[...]
    pred = jnp.maximum(
        jnp.dot(jnp.maximum(proj, 0.0).astype(bf16), wf3_ref[...],
                preferred_element_type=f32) + bf3_ref[...], 0.0)

    h_ref[...] = h                                                        # (bt, 400)
    proj_ref[...] = proj                                                  # (bt, 84)
    pred_ref[...] = pred                                                  # (bt, 10)


# --------------------------------- the wrapper ----------------------------------

def lenet_forward(params, x, b_tile=128):
    """Returns (h, proj, pred) exactly like LeNet.forward."""
    B = x.shape[0]
    f32, bf16 = jnp.float32, jnp.bfloat16
    x = x.astype(f32)

    bt = max(8, min((int(b_tile) // 8) * 8, ((B + 7) // 8) * 8))
    b_pad = ((B + bt - 1) // bt) * bt
    n_blocks = b_pad // bt

    # ---- parameter / helper packing (plain XLA + numpy; hoisted by jit) ----
    w1 = _fused_conv_weight(params["conv1_w"].astype(f32), _W0).astype(bf16)  # (480,168)
    w2 = _fused_conv_weight(params["conv2_w"].astype(f32), _P1).astype(bf16)  # (420,160)
    b1 = jnp.tile(params["conv1_b"].astype(f32), _H1).reshape(1, _H1 * _C1)
    b2 = jnp.tile(params["conv2_b"].astype(f32), _H2).reshape(1, _H2 * _C2)
    r1 = jnp.asarray(_R1_NP, dtype=bf16)
    r2 = jnp.asarray(_R2_NP, dtype=bf16)
    sel = jnp.asarray(_row_select_matrix(bt), dtype=bf16)                     # (5bt,32bt)
    q = jnp.asarray(_Q_NP, dtype=bf16)                                        # (5,80,400)
    wf1 = params["fc1_w"].astype(f32).T.astype(bf16)                          # (400,120)
    wf2 = params["fc2_w"].astype(f32).T.astype(bf16)                          # (120,84)
    wf3 = params["fc3_w"].astype(f32).T.astype(bf16)                          # (84,10)
    bf1 = params["fc1_b"].astype(f32).reshape(1, _F1)
    bf2 = params["fc2_b"].astype(f32).reshape(1, _F2)
    bf3 = params["fc3_b"].astype(f32).reshape(1, _F3)

    # Channels-minor, batch-stacked 2-D slab: (B_pad*32, 96); image b owns rows
    # [b*32, b*32+32).  Batch is padded with zero images (sliced off at the end).
    x2 = x.transpose(0, 2, 3, 1).reshape(B, _H0, _W0 * _CIN)
    x2 = jnp.pad(x2, ((0, b_pad - B), (0, 0), (0, 0)))
    x2 = x2.reshape(b_pad * _PITCH, _W0 * _CIN)

    resident = (w1, b1, r1, w2, b2, r2, sel, q, wf1, bf1, wf2, bf2, wf3, bf3)
    in_specs = [pl.BlockSpec((bt * _PITCH, _W0 * _CIN), lambda n: (n, 0))]
    in_specs += [pl.BlockSpec(a.shape, lambda n, _nd=a.ndim: (0,) * _nd)
                 for a in resident]

    out_shape = (jax.ShapeDtypeStruct((b_pad, _FLAT), f32),
                 jax.ShapeDtypeStruct((b_pad, _F2), f32),
                 jax.ShapeDtypeStruct((b_pad, _F3), f32))
    out_specs = (pl.BlockSpec((bt, _FLAT), lambda n: (n, 0)),
                 pl.BlockSpec((bt, _F2), lambda n: (n, 0)),
                 pl.BlockSpec((bt, _F3), lambda n: (n, 0)))

    h, proj, pred = pl.pallas_call(
        _lenet_kernel,
        out_shape=out_shape,
        grid=(n_blocks,),
        in_specs=in_specs,
        out_specs=out_specs,
        compiler_params=pltpu.CompilerParams(
            dimension_semantics=("parallel",),
            vmem_limit_bytes=48 * 1024 * 1024),
    )(x2, *resident)

    return h[:B], proj[:B], pred[:B]


# -------------------------- params / reference / main ---------------------------

def init_params(key):
    """Deterministic PyTorch-style uniform(+-1/sqrt(fan_in)) initialization."""
    def u(k, shape, fan_in):
        bound = 1.0 / jnp.sqrt(jnp.float32(fan_in))
        return jax.random.uniform(k, shape, jnp.float32, -bound, bound)

    ks = jax.random.split(key, 10)
    return {
        "conv1_w": u(ks[0], (6, 3, 5, 5), 3 * 25),
        "conv1_b": u(ks[1], (6,), 3 * 25),
        "conv2_w": u(ks[2], (16, 6, 5, 5), 6 * 25),
        "conv2_b": u(ks[3], (16,), 6 * 25),
        "fc1_w": u(ks[4], (120, 400), 400),
        "fc1_b": u(ks[5], (120,), 400),
        "fc2_w": u(ks[6], (84, 120), 120),
        "fc2_b": u(ks[7], (84,), 120),
        "fc3_w": u(ks[8], (10, 84), 84),
        "fc3_b": u(ks[9], (10,), 84),
    }


def _reference(params, x):
    """Pure-XLA reference mirroring LeNet.forward, for a numerical sanity check."""
    dn = ("NCHW", "OIHW", "NCHW")
    y = lax.conv_general_dilated(x, params["conv1_w"], (1, 1), "VALID",
                                 dimension_numbers=dn)
    y = jax.nn.relu(y + params["conv1_b"][None, :, None, None])
    y = lax.reduce_window(y, -jnp.inf, lax.max, (1, 1, 2, 2), (1, 1, 2, 2), "VALID")
    y = lax.conv_general_dilated(y, params["conv2_w"], (1, 1), "VALID",
                                 dimension_numbers=dn)
    y = jax.nn.relu(y + params["conv2_b"][None, :, None, None])
    y = lax.reduce_window(y, -jnp.inf, lax.max, (1, 1, 2, 2), (1, 1, 2, 2), "VALID")
    h = y.reshape(y.shape[0], -1)
    proj = jax.nn.relu(h @ params["fc1_w"].T + params["fc1_b"])
    proj = proj @ params["fc2_w"].T + params["fc2_b"]
    pred = jax.nn.relu(jax.nn.relu(proj) @ params["fc3_w"].T + params["fc3_b"])
    return h, proj, pred


if __name__ == "__main__":
    key = jax.random.PRNGKey(0)
    pkey, xkey = jax.random.split(key)
    params = init_params(pkey)
    # Input implied by the module: 3 channels, 32x32 spatial (400 = 16*5*5 flatten).
    x = jax.random.normal(xkey, (2, 3, 32, 32), jnp.float32)

    h, proj, pred = jax.jit(lenet_forward)(params, x)
    jax.block_until_ready((h, proj, pred))

    assert h.shape == (2, 400)
    assert proj.shape == (2, 84)
    assert pred.shape == (2, 10)

    # Numerical sanity check against a plain-XLA reference (tolerance sized for
    # the single-pass bf16 MXU operands used inside the kernel).
    h_r, proj_r, pred_r = jax.jit(_reference)(params, x)
    for got, ref in ((h, h_r), (proj, proj_r), (pred, pred_r)):
        err = float(jnp.max(jnp.abs(got - ref)))
        tol = 2e-2 * (1.0 + float(jnp.max(jnp.abs(ref))))
        assert err < tol, f"mismatch: max|diff|={err} tol={tol}"

    print("KERNEL_OK")
</pallas_src>

<mosaic_0001>
module attributes {stable_mosaic.version = 11 : i64} {
  func.func @_lenet_kernel(%arg0: i32, %arg1: memref<256x96xf32, #tpu.memory_space<vmem>>, %arg2: memref<480x168xbf16, #tpu.memory_space<vmem>>, %arg3: memref<1x168xf32, #tpu.memory_space<vmem>>, %arg4: memref<2x168x84xbf16, #tpu.memory_space<vmem>>, %arg5: memref<420x160xbf16, #tpu.memory_space<vmem>>, %arg6: memref<1x160xf32, #tpu.memory_space<vmem>>, %arg7: memref<2x160x80xbf16, #tpu.memory_space<vmem>>, %arg8: memref<40x256xbf16, #tpu.memory_space<vmem>>, %arg9: memref<5x80x400xbf16, #tpu.memory_space<vmem>>, %arg10: memref<400x120xbf16, #tpu.memory_space<vmem>>, %arg11: memref<1x120xf32, #tpu.memory_space<vmem>>, %arg12: memref<120x84xbf16, #tpu.memory_space<vmem>>, %arg13: memref<1x84xf32, #tpu.memory_space<vmem>>, %arg14: memref<84x10xbf16, #tpu.memory_space<vmem>>, %arg15: memref<1x10xf32, #tpu.memory_space<vmem>>, %arg16: memref<8x400xf32, #tpu.memory_space<vmem>>, %arg17: memref<8x84xf32, #tpu.memory_space<vmem>>, %arg18: memref<8x10xf32, #tpu.memory_space<vmem>>) attributes {dimension_semantics = [#tpu.dimension_semantics<parallel>], iteration_bounds = array<i64: 1>, scalar_prefetch = 0 : i64, scratch_operands = 0 : i64, tpu.core_type = #tpu.core_type<tc>, window_params = [{transform_indices = @transform_0, window_bounds = array<i64: 256, 96>}, {pipeline_mode = #tpu.pipeline_mode<synchronous>, transform_indices = @transform_1, window_bounds = array<i64: 480, 168>}, {pipeline_mode = #tpu.pipeline_mode<synchronous>, transform_indices = @transform_2, window_bounds = array<i64: 1, 168>}, {pipeline_mode = #tpu.pipeline_mode<synchronous>, transform_indices = @transform_3, window_bounds = array<i64: 2, 168, 84>}, {pipeline_mode = #tpu.pipeline_mode<synchronous>, transform_indices = @transform_4, window_bounds = array<i64: 420, 160>}, {pipeline_mode = #tpu.pipeline_mode<synchronous>, transform_indices = @transform_5, window_bounds = array<i64: 1, 160>}, {pipeline_mode = #tpu.pipeline_mode<synchronous>, transform_indices = @transform_6, window_bounds = array<i64: 2, 160, 80>}, {pipeline_mode = #tpu.pipeline_mode<synchronous>, transform_indices = @transform_7, window_bounds = array<i64: 40, 256>}, {pipeline_mode = #tpu.pipeline_mode<synchronous>, transform_indices = @transform_8, window_bounds = array<i64: 5, 80, 400>}, {pipeline_mode = #tpu.pipeline_mode<synchronous>, transform_indices = @transform_9, window_bounds = array<i64: 400, 120>}, {pipeline_mode = #tpu.pipeline_mode<synchronous>, transform_indices = @transform_10, window_bounds = array<i64: 1, 120>}, {pipeline_mode = #tpu.pipeline_mode<synchronous>, transform_indices = @transform_11, window_bounds = array<i64: 120, 84>}, {pipeline_mode = #tpu.pipeline_mode<synchronous>, transform_indices = @transform_12, window_bounds = array<i64: 1, 84>}, {pipeline_mode = #tpu.pipeline_mode<synchronous>, transform_indices = @transform_13, window_bounds = array<i64: 84, 10>}, {pipeline_mode = #tpu.pipeline_mode<synchronous>, transform_indices = @transform_14, window_bounds = array<i64: 1, 10>}, {transform_indices = @transform_15, window_bounds = array<i64: 8, 400>}, {transform_indices = @transform_16, window_bounds = array<i64: 8, 84>}, {transform_indices = @transform_17, window_bounds = array<i64: 8, 10>}]} {
    %c0 = arith.constant 0 : index
    %c0_0 = arith.constant 0 : index
    %0 = vector.load %arg1[%c0, %c0_0] : memref<256x96xf32, #tpu.memory_space<vmem>>, vector<256x96xf32>
    %cst = arith.constant 0.000000e+00 : f32
    %1 = vector.broadcast %cst : f32 to vector<8x96xf32>
    %2 = tpu.concatenate %0, %1 in 0 : vector<256x96xf32>, vector<8x96xf32> -> vector<264x96xf32>
    %3 = vector.extract_strided_slice %2 {offsets = [0, 0], sizes = [256, 96], strides = [1, 1]} : vector<264x96xf32> to vector<256x96xf32>
    %4 = vector.extract_strided_slice %2 {offsets = [1, 0], sizes = [256, 96], strides = [1, 1]} : vector<264x96xf32> to vector<256x96xf32>
    %5 = vector.extract_strided_slice %2 {offsets = [2, 0], sizes = [256, 96], strides = [1, 1]} : vector<264x96xf32> to vector<256x96xf32>
    %6 = vector.extract_strided_slice %2 {offsets = [3, 0], sizes = [256, 96], strides = [1, 1]} : vector<264x96xf32> to vector<256x96xf32>
    %7 = vector.extract_strided_slice %2 {offsets = [4, 0], sizes = [256, 96], strides = [1, 1]} : vector<264x96xf32> to vector<256x96xf32>
    %8 = tpu.concatenate %3, %4, %5, %6, %7 in 1 : vector<256x96xf32>, vector<256x96xf32>, vector<256x96xf32>, vector<256x96xf32>, vector<256x96xf32> -> vector<256x480xf32>
    %9 = arith.truncf %8 : vector<256x480xf32> to vector<256x480xbf16>
    %c0_1 = arith.constant 0 : index
    %c0_2 = arith.constant 0 : index
    %10 = vector.load %arg2[%c0_1, %c0_2] : memref<480x168xbf16, #tpu.memory_space<vmem>>, vector<480x168xbf16>
    %cst_3 = arith.constant dense<0.000000e+00> : vector<256x168xf32>
    %11 = tpu.matmul %9, %10, %cst_3 {dimension_numbers = #tpu.dot_dimension_numbers<[1], [0], [0], [1], [0, 0, 1, 1], [], []>} : vector<256x480xbf16>, vector<480x168xbf16>, vector<256x168xf32> -> vector<256x168xf32>
    %c0_4 = arith.constant 0 : index
    %c0_5 = arith.constant 0 : index
    %12 = vector.load %arg3[%c0_4, %c0_5] : memref<1x168xf32, #tpu.memory_space<vmem>>, vector<1x168xf32>
    %13 = vector.broadcast %12 : vector<1x168xf32> to vector<256x168xf32>
    %14 = arith.addf %11, %13 : vector<256x168xf32>
    %cst_6 = arith.constant 0.000000e+00 : f32
    %15 = vector.broadcast %cst_6 : f32 to vector<256x168xf32>
    %16 = arith.maximumf %14, %15 : vector<256x168xf32>
    %17 = arith.truncf %16 : vector<256x168xf32> to vector<256x168xbf16>
    %c0_7 = arith.constant 0 : index
    %c0_8 = arith.constant 0 : index
    %c0_9 = arith.constant 0 : index
    %18 = vector.load %arg4[%c0_7, %c0_8, %c0_9] : memref<2x168x84xbf16, #tpu.memory_space<vmem>>, vector<1x168x84xbf16>
    %19 = vector.shape_cast %18 : vector<1x168x84xbf16> to vector<168x84xbf16>
    %cst_10 = arith.constant dense<0.000000e+00> : vector<256x84xf32>
    %20 = tpu.matmul %17, %19, %cst_10 {dimension_numbers = #tpu.dot_dimension_numbers<[1], [0], [0], [1], [0, 0, 1, 1], [], []>} : vector<256x168xbf16>, vector<168x84xbf16>, vector<256x84xf32> -> vector<256x84xf32>
    %c1 = arith.constant 1 : index
    %c0_11 = arith.constant 0 : index
    %c0_12 = arith.constant 0 : index
    %21 = vector.load %arg4[%c1, %c0_11, %c0_12] : memref<2x168x84xbf16, #tpu.memory_space<vmem>>, vector<1x168x84xbf16>
    %22 = vector.shape_cast %21 : vector<1x168x84xbf16> to vector<168x84xbf16>
    %cst_13 = arith.constant dense<0.000000e+00> : vector<256x84xf32>
    %23 = tpu.matmul %17, %22, %cst_13 {dimension_numbers = #tpu.dot_dimension_numbers<[1], [0], [0], [1], [0, 0, 1, 1], [], []>} : vector<256x168xbf16>, vector<168x84xbf16>, vector<256x84xf32> -> vector<256x84xf32>
    %24 = arith.maximumf %20, %23 : vector<256x84xf32>
    %cst_14 = arith.constant 0.000000e+00 : f32
    %25 = vector.broadcast %cst_14 : f32 to vector<8x84xf32>
    %26 = tpu.concatenate %24, %25 in 0 : vector<256x84xf32>, vector<8x84xf32> -> vector<264x84xf32>
    %27 = vector.extract_strided_slice %26 {offsets = [0, 0], sizes = [256, 84], strides = [1, 1]} : vector<264x84xf32> to vector<256x84xf32>
    %28 = vector.extract_strided_slice %26 {offsets = [1, 0], sizes = [256, 84], strides = [1, 1]} : vector<264x84xf32> to vector<256x84xf32>
    %29 = arith.maximumf %27, %28 : vector<256x84xf32>
    %cst_15 = arith.constant 0.000000e+00 : f32
    %30 = vector.broadcast %cst_15 : f32 to vector<8x84xf32>
    %31 = tpu.concatenate %29, %30 in 0 : vector<256x84xf32>, vector<8x84xf32> -> vector<264x84xf32>
    %32 = vector.extract_strided_slice %31 {offsets = [0, 0], sizes = [256, 84], strides = [1, 1]} : vector<264x84xf32> to vector<256x84xf32>
    %33 = vector.extract_strided_slice %31 {offsets = [2, 0], sizes = [256, 84], strides = [1, 1]} : vector<264x84xf32> to vector<256x84xf32>
    %34 = vector.extract_strided_slice %31 {offsets = [4, 0], sizes = [256, 84], strides = [1, 1]} : vector<264x84xf32> to vector<256x84xf32>
    %35 = vector.extract_strided_slice %31 {offsets = [6, 0], sizes = [256, 84], strides = [1, 1]} : vector<264x84xf32> to vector<256x84xf32>
    %36 = vector.extract_strided_slice %31 {offsets = [8, 0], sizes = [256, 84], strides = [1, 1]} : vector<264x84xf32> to vector<256x84xf32>
    %37 = tpu.concatenate %32, %33, %34, %35, %36 in 1 : vector<256x84xf32>, vector<256x84xf32>, vector<256x84xf32>, vector<256x84xf32>, vector<256x84xf32> -> vector<256x420xf32>
    %38 = arith.truncf %37 : vector<256x420xf32> to vector<256x420xbf16>
    %c0_16 = arith.constant 0 : index
    %c0_17 = arith.constant 0 : index
    %39 = vector.load %arg5[%c0_16, %c0_17] : memref<420x160xbf16, #tpu.memory_space<vmem>>, vector<420x160xbf16>
    %cst_18 = arith.constant dense<0.000000e+00> : vector<256x160xf32>
    %40 = tpu.matmul %38, %39, %cst_18 {dimension_numbers = #tpu.dot_dimension_numbers<[1], [0], [0], [1], [0, 0, 1, 1], [], []>} : vector<256x420xbf16>, vector<420x160xbf16>, vector<256x160xf32> -> vector<256x160xf32>
    %c0_19 = arith.constant 0 : index
    %c0_20 = arith.constant 0 : index
    %41 = vector.load %arg6[%c0_19, %c0_20] : memref<1x160xf32, #tpu.memory_space<vmem>>, vector<1x160xf32>
    %42 = vector.broadcast %41 : vector<1x160xf32> to vector<256x160xf32>
    %43 = arith.addf %40, %42 : vector<256x160xf32>
    %cst_21 = arith.constant 0.000000e+00 : f32
    %44 = vector.broadcast %cst_21 : f32 to vector<256x160xf32>
    %45 = arith.maximumf %43, %44 : vector<256x160xf32>
    %46 = arith.truncf %45 : vector<256x160xf32> to vector<256x160xbf16>
    %c0_22 = arith.constant 0 : index
    %c0_23 = arith.constant 0 : index
    %c0_24 = arith.constant 0 : index
    %47 = vector.load %arg7[%c0_22, %c0_23, %c0_24] : memref<2x160x80xbf16, #tpu.memory_space<vmem>>, vector<1x160x80xbf16>
    %48 = vector.shape_cast %47 : vector<1x160x80xbf16> to vector<160x80xbf16>
    %cst_25 = arith.constant dense<0.000000e+00> : vector<256x80xf32>
    %49 = tpu.matmul %46, %48, %cst_25 {dimension_numbers = #tpu.dot_dimension_numbers<[1], [0], [0], [1], [0, 0, 1, 1], [], []>} : vector<256x160xbf16>, vector<160x80xbf16>, vector<256x80xf32> -> vector<256x80xf32>
    %c1_26 = arith.constant 1 : index
    %c0_27 = arith.constant 0 : index
    %c0_28 = arith.constant 0 : index
    %50 = vector.load %arg7[%c1_26, %c0_27, %c0_28] : memref<2x160x80xbf16, #tpu.memory_space<vmem>>, vector<1x160x80xbf16>
    %51 = vector.shape_cast %50 : vector<1x160x80xbf16> to vector<160x80xbf16>
    %cst_29 = arith.constant dense<0.000000e+00> : vector<256x80xf32>
    %52 = tpu.matmul %46, %51, %cst_29 {dimension_numbers = #tpu.dot_dimension_numbers<[1], [0], [0], [1], [0, 0, 1, 1], [], []>} : vector<256x160xbf16>, vector<160x80xbf16>, vector<256x80xf32> -> vector<256x80xf32>
    %53 = arith.maximumf %49, %52 : vector<256x80xf32>
    %cst_30 = arith.constant 0.000000e+00 : f32
    %54 = vector.broadcast %cst_30 : f32 to vector<8x80xf32>
    %55 = tpu.concatenate %53, %54 in 0 : vector<256x80xf32>, vector<8x80xf32> -> vector<264x80xf32>
    %56 = vector.extract_strided_slice %55 {offsets = [0, 0], sizes = [256, 80], strides = [1, 1]} : vector<264x80xf32> to vector<256x80xf32>
    %57 = vector.extract_strided_slice %55 {offsets = [2, 0], sizes = [256, 80], strides = [1, 1]} : vector<264x80xf32> to vector<256x80xf32>
    %58 = arith.maximumf %56, %57 : vector<256x80xf32>
    %59 = arith.truncf %58 : vector<256x80xf32> to vector<256x80xbf16>
    %c0_31 = arith.constant 0 : index
    %c0_32 = arith.constant 0 : index
    %60 = vector.load %arg8[%c0_31, %c0_32] : memref<40x256xbf16, #tpu.memory_space<vmem>>, vector<40x256xbf16>
    %cst_33 = arith.constant dense<0.000000e+00> : vector<40x80xf32>
    %61 = tpu.matmul %60, %59, %cst_33 {dimension_numbers = #tpu.dot_dimension_numbers<[1], [0], [0], [1], [0, 0, 1, 1], [], []>} : vector<40x256xbf16>, vector<256x80xbf16>, vector<40x80xf32> -> vector<40x80xf32>
    %62 = vector.extract_strided_slice %61 {offsets = [0, 0], sizes = [8, 80], strides = [1, 1]} : vector<40x80xf32> to vector<8x80xf32>
    %63 = arith.truncf %62 : vector<8x80xf32> to vector<8x80xbf16>
    %c0_34 = arith.constant 0 : index
    %c0_35 = arith.constant 0 : index
    %c0_36 = arith.constant 0 : index
    %64 = vector.load %arg9[%c0_34, %c0_35, %c0_36] : memref<5x80x400xbf16, #tpu.memory_space<vmem>>, vector<1x80x400xbf16>
    %65 = vector.shape_cast %64 : vector<1x80x400xbf16> to vector<80x400xbf16>
    %cst_37 = arith.constant dense<0.000000e+00> : vector<8x400xf32>
    %66 = tpu.matmul %63, %65, %cst_37 {dimension_numbers = #tpu.dot_dimension_numbers<[1], [0], [0], [1], [0, 0, 1, 1], [], []>} : vector<8x80xbf16>, vector<80x400xbf16>, vector<8x400xf32> -> vector<8x400xf32>
    %67 = vector.extract_strided_slice %61 {offsets = [8, 0], sizes = [8, 80], strides = [1, 1]} : vector<40x80xf32> to vector<8x80xf32>
    %68 = arith.truncf %67 : vector<8x80xf32> to vector<8x80xbf16>
    %c1_38 = arith.constant 1 : index
    %c0_39 = arith.constant 0 : index
    %c0_40 = arith.constant 0 : index
    %69 = vector.load %arg9[%c1_38, %c0_39, %c0_40] : memref<5x80x400xbf16, #tpu.memory_space<vmem>>, vector<1x80x400xbf16>
    %70 = vector.shape_cast %69 : vector<1x80x400xbf16> to vector<80x400xbf16>
    %cst_41 = arith.constant dense<0.000000e+00> : vector<8x400xf32>
    %71 = tpu.matmul %68, %70, %cst_41 {dimension_numbers = #tpu.dot_dimension_numbers<[1], [0], [0], [1], [0, 0, 1, 1], [], []>} : vector<8x80xbf16>, vector<80x400xbf16>, vector<8x400xf32> -> vector<8x400xf32>
    %72 = arith.addf %66, %71 : vector<8x400xf32>
    %73 = vector.extract_strided_slice %61 {offsets = [16, 0], sizes = [8, 80], strides = [1, 1]} : vector<40x80xf32> to vector<8x80xf32>
    %74 = arith.truncf %73 : vector<8x80xf32> to vector<8x80xbf16>
    %c2 = arith.constant 2 : index
    %c0_42 = arith.constant 0 : index
    %c0_43 = arith.constant 0 : index
    %75 = vector.load %arg9[%c2, %c0_42, %c0_43] : memref<5x80x400xbf16, #tpu.memory_space<vmem>>, vector<1x80x400xbf16>
    %76 = vector.shape_cast %75 : vector<1x80x400xbf16> to vector<80x400xbf16>
    %cst_44 = arith.constant dense<0.000000e+00> : vector<8x400xf32>
    %77 = tpu.matmul %74, %76, %cst_44 {dimension_numbers = #tpu.dot_dimension_numbers<[1], [0], [0], [1], [0, 0, 1, 1], [], []>} : vector<8x80xbf16>, vector<80x400xbf16>, vector<8x400xf32> -> vector<8x400xf32>
    %78 = arith.addf %72, %77 : vector<8x400xf32>
    %79 = vector.extract_strided_slice %61 {offsets = [24, 0], sizes = [8, 80], strides = [1, 1]} : vector<40x80xf32> to vector<8x80xf32>
    %80 = arith.truncf %79 : vector<8x80xf32> to vector<8x80xbf16>
    %c3 = arith.constant 3 : index
    %c0_45 = arith.constant 0 : index
    %c0_46 = arith.constant 0 : index
    %81 = vector.load %arg9[%c3, %c0_45, %c0_46] : memref<5x80x400xbf16, #tpu.memory_space<vmem>>, vector<1x80x400xbf16>
    %82 = vector.shape_cast %81 : vector<1x80x400xbf16> to vector<80x400xbf16>
    %cst_47 = arith.constant dense<0.000000e+00> : vector<8x400xf32>
    %83 = tpu.matmul %80, %82, %cst_47 {dimension_numbers = #tpu.dot_dimension_numbers<[1], [0], [0], [1], [0, 0, 1, 1], [], []>} : vector<8x80xbf16>, vector<80x400xbf16>, vector<8x400xf32> -> vector<8x400xf32>
    %84 = arith.addf %78, %83 : vector<8x400xf32>
    %85 = vector.extract_strided_slice %61 {offsets = [32, 0], sizes = [8, 80], strides = [1, 1]} : vector<40x80xf32> to vector<8x80xf32>
    %86 = arith.truncf %85 : vector<8x80xf32> to vector<8x80xbf16>
    %c4 = arith.constant 4 : index
    %c0_48 = arith.constant 0 : index
    %c0_49 = arith.constant 0 : index
    %87 = vector.load %arg9[%c4, %c0_48, %c0_49] : memref<5x80x400xbf16, #tpu.memory_space<vmem>>, vector<1x80x400xbf16>
    %88 = vector.shape_cast %87 : vector<1x80x400xbf16> to vector<80x400xbf16>
    %cst_50 = arith.constant dense<0.000000e+00> : vector<8x400xf32>
    %89 = tpu.matmul %86, %88, %cst_50 {dimension_numbers = #tpu.dot_dimension_numbers<[1], [0], [0], [1], [0, 0, 1, 1], [], []>} : vector<8x80xbf16>, vector<80x400xbf16>, vector<8x400xf32> -> vector<8x400xf32>
    %90 = arith.addf %84, %89 : vector<8x400xf32>
    %91 = arith.truncf %90 : vector<8x400xf32> to vector<8x400xbf16>
    %c0_51 = arith.constant 0 : index
    %c0_52 = arith.constant 0 : index
    %92 = vector.load %arg10[%c0_51, %c0_52] : memref<400x120xbf16, #tpu.memory_space<vmem>>, vector<400x120xbf16>
    %cst_53 = arith.constant dense<0.000000e+00> : vector<8x120xf32>
    %93 = tpu.matmul %91, %92, %cst_53 {dimension_numbers = #tpu.dot_dimension_numbers<[1], [0], [0], [1], [0, 0, 1, 1], [], []>} : vector<8x400xbf16>, vector<400x120xbf16>, vector<8x120xf32> -> vector<8x120xf32>
    %c0_54 = arith.constant 0 : index
    %c0_55 = arith.constant 0 : index
    %94 = vector.load %arg11[%c0_54, %c0_55] : memref<1x120xf32, #tpu.memory_space<vmem>>, vector<1x120xf32>
    %95 = vector.broadcast %94 : vector<1x120xf32> to vector<8x120xf32>
    %96 = arith.addf %93, %95 : vector<8x120xf32>
    %cst_56 = arith.constant 0.000000e+00 : f32
    %97 = vector.broadcast %cst_56 : f32 to vector<8x120xf32>
    %98 = arith.maximumf %96, %97 : vector<8x120xf32>
    %99 = arith.truncf %98 : vector<8x120xf32> to vector<8x120xbf16>
    %c0_57 = arith.constant 0 : index
    %c0_58 = arith.constant 0 : index
    %100 = vector.load %arg12[%c0_57, %c0_58] : memref<120x84xbf16, #tpu.memory_space<vmem>>, vector<120x84xbf16>
    %cst_59 = arith.constant dense<0.000000e+00> : vector<8x84xf32>
    %101 = tpu.matmul %99, %100, %cst_59 {dimension_numbers = #tpu.dot_dimension_numbers<[1], [0], [0], [1], [0, 0, 1, 1], [], []>} : vector<8x120xbf16>, vector<120x84xbf16>, vector<8x84xf32> -> vector<8x84xf32>
    %c0_60 = arith.constant 0 : index
    %c0_61 = arith.constant 0 : index
    %102 = vector.load %arg13[%c0_60, %c0_61] : memref<1x84xf32, #tpu.memory_space<vmem>>, vector<1x84xf32>
    %103 = vector.broadcast %102 : vector<1x84xf32> to vector<8x84xf32>
    %104 = arith.addf %101, %103 : vector<8x84xf32>
    %cst_62 = arith.constant 0.000000e+00 : f32
    %105 = vector.broadcast %cst_62 : f32 to vector<8x84xf32>
    %106 = arith.maximumf %104, %105 : vector<8x84xf32>
    %107 = arith.truncf %106 : vector<8x84xf32> to vector<8x84xbf16>
    %c0_63 = arith.constant 0 : index
    %c0_64 = arith.constant 0 : index
    %108 = vector.load %arg14[%c0_63, %c0_64] : memref<84x10xbf16, #tpu.memory_space<vmem>>, vector<84x10xbf16>
    %cst_65 = arith.constant dense<0.000000e+00> : vector<8x10xf32>
    %109 = tpu.matmul %107, %108, %cst_65 {dimension_numbers = #tpu.dot_dimension_numbers<[1], [0], [0], [1], [0, 0, 1, 1], [], []>} : vector<8x84xbf16>, vector<84x10xbf16>, vector<8x10xf32> -> vector<8x10xf32>
    %c0_66 = arith.constant 0 : index
    %c0_67 = arith.constant 0 : index
    %110 = vector.load %arg15[%c0_66, %c0_67] : memref<1x10xf32, #tpu.memory_space<vmem>>, vector<1x10xf32>
    %111 = vector.broadcast %110 : vector<1x10xf32> to vector<8x10xf32>
    %112 = arith.addf %109, %111 : vector<8x10xf32>
    %cst_68 = arith.constant 0.000000e+00 : f32
    %113 = vector.broadcast %cst_68 : f32 to vector<8x10xf32>
    %114 = arith.maximumf %112, %113 : vector<8x10xf32>
    %c0_69 = arith.constant 0 : index
    %c0_70 = arith.constant 0 : index
    %115 = vector.load %arg16[%c0_69, %c0_70] : memref<8x400xf32, #tpu.memory_space<vmem>>, vector<8x400xf32>
    tpu.vector_store %arg16[%c0_69, %c0_70], %90 {strides = array<i32>} : memref<8x400xf32, #tpu.memory_space<vmem>>, vector<8x400xf32>,
    %c0_71 = arith.constant 0 : index
    %c0_72 = arith.constant 0 : index
    %116 = vector.load %arg17[%c0_71, %c0_72] : memref<8x84xf32, #tpu.memory_space<vmem>>, vector<8x84xf32>
    tpu.vector_store %arg17[%c0_71, %c0_72], %104 {strides = array<i32>} : memref<8x84xf32, #tpu.memory_space<vmem>>, vector<8x84xf32>,
    %c0_73 = arith.constant 0 : index
    %c0_74 = arith.constant 0 : index
    %117 = vector.load %arg18[%c0_73, %c0_74] : memref<8x10xf32, #tpu.memory_space<vmem>>, vector<8x10xf32>
    tpu.vector_store %arg18[%c0_73, %c0_74], %114 {strides = array<i32>} : memref<8x10xf32, #tpu.memory_space<vmem>>, vector<8x10xf32>,
    return
  }
  func.func @transform_0(%arg0: i32) -> (i32, i32) {
    %c0_i32 = arith.constant 0 : i32
    %c0_i32_0 = arith.constant 0 : i32
    return %arg0, %c0_i32 : i32, i32
  }
  func.func @transform_1(%arg0: i32) -> (i32, i32) {
    %c0_i32 = arith.constant 0 : i32
    %c0_i32_0 = arith.constant 0 : i32
    %c0_i32_1 = arith.constant 0 : i32
    return %c0_i32, %c0_i32_0 : i32, i32
  }
  func.func @transform_2(%arg0: i32) -> (i32, i32) {
    %c0_i32 = arith.constant 0 : i32
    %c0_i32_0 = arith.constant 0 : i32
    %c0_i32_1 = arith.constant 0 : i32
    return %c0_i32, %c0_i32_0 : i32, i32
  }
  func.func @transform_3(%arg0: i32) -> (i32, i32, i32) {
    %c0_i32 = arith.constant 0 : i32
    %c0_i32_0 = arith.constant 0 : i32
    %c0_i32_1 = arith.constant 0 : i32
    %c0_i32_2 = arith.constant 0 : i32
    return %c0_i32, %c0_i32_0, %c0_i32_1 : i32, i32, i32
  }
  func.func @transform_4(%arg0: i32) -> (i32, i32) {
    %c0_i32 = arith.constant 0 : i32
    %c0_i32_0 = arith.constant 0 : i32
    %c0_i32_1 = arith.constant 0 : i32
    return %c0_i32, %c0_i32_0 : i32, i32
  }
  func.func @transform_5(%arg0: i32) -> (i32, i32) {
    %c0_i32 = arith.constant 0 : i32
    %c0_i32_0 = arith.constant 0 : i32
    %c0_i32_1 = arith.constant 0 : i32
    return %c0_i32, %c0_i32_0 : i32, i32
  }
  func.func @transform_6(%arg0: i32) -> (i32, i32, i32) {
    %c0_i32 = arith.constant 0 : i32
    %c0_i32_0 = arith.constant 0 : i32
    %c0_i32_1 = arith.constant 0 : i32
    %c0_i32_2 = arith.constant 0 : i32
    return %c0_i32, %c0_i32_0, %c0_i32_1 : i32, i32, i32
  }
  func.func @transform_7(%arg0: i32) -> (i32, i32) {
    %c0_i32 = arith.constant 0 : i32
    %c0_i32_0 = arith.constant 0 : i32
    %c0_i32_1 = arith.constant 0 : i32
    return %c0_i32, %c0_i32_0 : i32, i32
  }
  func.func @transform_8(%arg0: i32) -> (i32, i32, i32) {
    %c0_i32 = arith.constant 0 : i32
    %c0_i32_0 = arith.constant 0 : i32
    %c0_i32_1 = arith.constant 0 : i32
    %c0_i32_2 = arith.constant 0 : i32
    return %c0_i32, %c0_i32_0, %c0_i32_1 : i32, i32, i32
  }
  func.func @transform_9(%arg0: i32) -> (i32, i32) {
    %c0_i32 = arith.constant 0 : i32
    %c0_i32_0 = arith.constant 0 : i32
    %c0_i32_1 = arith.constant 0 : i32
    return %c0_i32, %c0_i32_0 : i32, i32
  }
  func.func @transform_10(%arg0: i32) -> (i32, i32) {
    %c0_i32 = arith.constant 0 : i32
    %c0_i32_0 = arith.constant 0 : i32
    %c0_i32_1 = arith.constant 0 : i32
    return %c0_i32, %c0_i32_0 : i32, i32
  }
  func.func @transform_11(%arg0: i32) -> (i32, i32) {
    %c0_i32 = arith.constant 0 : i32
    %c0_i32_0 = arith.constant 0 : i32
    %c0_i32_1 = arith.constant 0 : i32
    return %c0_i32, %c0_i32_0 : i32, i32
  }
  func.func @transform_12(%arg0: i32) -> (i32, i32) {
    %c0_i32 = arith.constant 0 : i32
    %c0_i32_0 = arith.constant 0 : i32
    %c0_i32_1 = arith.constant 0 : i32
    return %c0_i32, %c0_i32_0 : i32, i32
  }
  func.func @transform_13(%arg0: i32) -> (i32, i32) {
    %c0_i32 = arith.constant 0 : i32
    %c0_i32_0 = arith.constant 0 : i32
    %c0_i32_1 = arith.constant 0 : i32
    return %c0_i32, %c0_i32_0 : i32, i32
  }
  func.func @transform_14(%arg0: i32) -> (i32, i32) {
    %c0_i32 = arith.constant 0 : i32
    %c0_i32_0 = arith.constant 0 : i32
    %c0_i32_1 = arith.constant 0 : i32
    return %c0_i32, %c0_i32_0 : i32, i32
  }
  func.func @transform_15(%arg0: i32) -> (i32, i32) {
    %c0_i32 = arith.constant 0 : i32
    %c0_i32_0 = arith.constant 0 : i32
    return %arg0, %c0_i32 : i32, i32
  }
  func.func @transform_16(%arg0: i32) -> (i32, i32) {
    %c0_i32 = arith.constant 0 : i32
    %c0_i32_0 = arith.constant 0 : i32
    return %arg0, %c0_i32 : i32, i32
  }
  func.func @transform_17(%arg0: i32) -> (i32, i32) {
    %c0_i32 = arith.constant 0 : i32
    %c0_i32_0 = arith.constant 0 : i32
    return %arg0, %c0_i32 : i32, i32
  }
}

</mosaic_0001>

<bundles_post_ra>
// kernel: tile.19
= control target key start
LH: loop header
LB: loop body
LE: loop exit
PB: predicated region body
PF: predicated region fallthrough
CT: control target
= control target key end

     0   :  { %s76_s10 = smov 112   ;;  %s77_s11 = smov 80   ;;  %vm4_vm0 = vcmask 130048   ;;  %vm10_vm1 = vcmask 1048448   ;;  %vm16_vm2 = vcmask 917248   ;;  %vm22_vm3 = vcmask 786048   ;;  %s123_s0 = inlined_call_operand.vmem [shape: f32[10,16], index: 0, kind: input, shape index: {}]   ;;  %s124_s1 = inlined_call_operand.vmem [shape: f32[1,160], index: 1, kind: output, shape index: {}]  }
   0x1   :  { %v61_v0 = vld [vmem:[%s123_s0 + $0x7] sm:$0x1]   ;;  %v63_v1 = vld [vmem:[%s123_s0 + $0x5] sm:$0x1]   ;;  %v65_v2 = vld [vmem:[%s123_s0 + $0x3] sm:$0x1]  }
   0x2   :  { %8 = vrot.lane.b32.xlu0 %v61_v0, %s76_s10  ;;  %20 = vrot.lane.b32.xlu1 %v63_v1, %s77_s11  ;;  %s78_s14 = smov 48   ;;  %v62_v3 = vld [vmem:[%s123_s0 + $0x6] sm:$0x1]   ;;  %v64_v4 = vld [vmem:[%s123_s0 + $0x4] sm:$0x1]   ;;  %s79_s19 = smov 96  }
   0x3   :  { %32 = vrot.lane.b32.xlu2 %v65_v2, %s78_s14  ;;  %s80_s20 = smov 64   ;;  %v66_v5 = vld [vmem:[%s123_s0 + $0x2] sm:$0x1]   ;;  %s43_s23 = smov 3  ;;  %vm28_vm4 = vcmask 654848   ;;  %vm34_vm5 = vcmask 523648  }
   0x4   :  { %s81_s24 = smov 32   ;;  %v67_v6 = vld [vmem:[%s123_s0 + $0x1] ss:$8 sm:%s43_s23]   ;;  %s82_s27 = smov 16   ;;  %vm40_vm6 = vcmask 392448   ;;  %vm47_vm7 = vcmask 261248  }
   0x5   :  { %s2_s28 = smov 3 }
   0x6   :  { %v3_v7 = vld [vmem:[%s123_s0] ss:$8 sm:%s2_s28]  }
   0x7   :  { %5 = vst.msk [vmem:[#allocation0] ss:$8 sm:$0x3] %vm4_vm0, %v3_v7  }
   0xa   :  { %14 = vrot.lane.b32.xlu0 %v62_v3, %s79_s19  ;;  %26 = vrot.lane.b32.xlu1 %v64_v4, %s80_s20 }
   0xb   :  { %38 = vrot.lane.b32.xlu2 %v66_v5, %s81_s24 }
  0x12   :  { %45 = vrot.lane.b32.xlu0 %v67_v6, %s82_s27 }
  0x5d   :  { %v33_v8 = vpop.permute.xlu2 %32  }
  0x65   :  { %v39_v9 = vpop.permute.xlu2 %38  }
  0x74   :  { %v9_v10 = vpop.permute.xlu0 %8   ;;  %v21_v11 = vpop.permute.xlu1 %20  }
  0x75   :  { %11 = vst.msk [vmem:[#allocation0] sm:$0x1] %vm10_vm1, %v9_v10  }
  0x7c   :  { %v15_v12 = vpop.permute.xlu0 %14   ;;  %v27_v13 = vpop.permute.xlu1 %26  }
  0x7d   :  { %17 = vst.msk [vmem:[#allocation0] sm:$0x1] %vm16_vm2, %v15_v12  }
  0x7e   :  { %23 = vst.msk [vmem:[#allocation0] sm:$0x1] %vm22_vm3, %v21_v11  }
  0x7f   :  { %29 = vst.msk [vmem:[#allocation0] sm:$0x1] %vm28_vm4, %v27_v13  }
  0x80   :  { %35 = vst.msk [vmem:[#allocation0] sm:$0x1] %vm34_vm5, %v33_v8  }
  0x81   :  { %41 = vst.msk [vmem:[#allocation0] sm:$0x1] %vm40_vm6, %v39_v9  }
  0x84   :  { %v46_v14 = vpop.permute.xlu0 %45  }
  0x85   :  { %48 = vst.msk [vmem:[#allocation0] ss:$8 sm:$0x3] %vm47_vm7, %v46_v14  }
  0x8c   :  { %v51_v15 = vld [vmem:[#allocation0] sm:$0x1]  ;;  %v56_v16 = vld [vmem:[#allocation0 + $0x8] sm:$0x1] }
  0x8d   :  { %54 = vst [vmem:[%s124_s1] sm:$0x1] %v51_v15 }
  0x8e   :  { %68 = vst [vmem:[%s124_s1 + $0x1] sm:$0x1] %v56_v16 }

// kernel: tile.18
= control target key start
LH: loop header
LB: loop body
LE: loop exit
PB: predicated region body
PF: predicated region fallthrough
CT: control target
= control target key end

     0   :  { %2 = vsyncpa [#allocation1], 0  ;;  %s51_s8 = smov [#allocation0]   ;;  %s71_s0 = inlined_call_operand.hbm [shape: f32[16], index: 0, kind: input, shape index: {}]   ;;  %s72_s1 = inlined_call_operand.vmem [shape: f32[10,16], index: 1, kind: output, shape index: {}]  }
   0x1   :  { %s8_s0 = sshll.u32 %s71_s0, 4  ;;  %s10_s9 = sshll.u32 %s51_s8, 4  ;;  %s9_s0 = int_to_ptr.hbm [resolvable:$true] %s8_s0  ;;  %s11_s9 = int_to_ptr.vmem [resolvable:$true] %s10_s9 }
   0x2   :  { %13 = dma.hbm_to_vmem [thread:$0]  %s9_s0, 16, %s11_s9, [#allocation1]  }
   0x3   :  { %49 = dma.done.wait [#allocation1], 16  }
   0x4   :  { %50 = vsyncadd [#allocation1], 4294967280  ;;  %v18_v0 = vld [vmem:[#allocation0] ss:$0 sm:$0xff] }
   0x5   :  { %19 = vst [vmem:[%s72_s1] sm:$0xff] %v18_v0 }
   0x6   :  { %23 = vst [vmem:[%s72_s1 + $0x8] sm:$0xff] %v18_v0 }
   0x7   :  { %22 = vsyncpa [#allocation1], 1 }

// kernel: tile.13
= control target key start
LH: loop header
LB: loop body
LE: loop exit
PB: predicated region body
PF: predicated region fallthrough
CT: control target
= control target key end

     0   :  { %2 = vsyncpa [#allocation1], 0  ;;  %s57_s8 = smov [#allocation0]   ;;  %s83_s0 = inlined_call_operand.hbm [shape: f32[6], index: 0, kind: input, shape index: {}]   ;;  %s84_s1 = inlined_call_operand.vmem [shape: f32[28,6], index: 1, kind: output, shape index: {}]  }
   0x1   :  { %s8_s0 = sshll.u32 %s83_s0, 4  ;;  %s10_s9 = sshll.u32 %s57_s8, 4  ;;  %s9_s0 = int_to_ptr.hbm [resolvable:$true] %s8_s0  ;;  %s11_s9 = int_to_ptr.vmem [resolvable:$true] %s10_s9 }
   0x2   :  { %13 = dma.hbm_to_vmem [thread:$0]  %s9_s0, 16, %s11_s9, [#allocation1]  }
   0x3   :  { %55 = dma.done.wait [#allocation1], 16  }
   0x4   :  { %56 = vsyncadd [#allocation1], 4294967280  ;;  %v18_v0 = vld [vmem:[#allocation0] ss:$0 sm:$0xff] }
   0x5   :  { %19 = vst [vmem:[%s84_s1] sm:$0xff] %v18_v0 }
   0x6   :  { %27 = vst [vmem:[%s84_s1 + $0x8] sm:$0xff] %v18_v0 }
   0x7   :  { %28 = vst [vmem:[%s84_s1 + $0x10] sm:$0xff] %v18_v0 }
   0x8   :  { %29 = vst [vmem:[%s84_s1 + $0x18] sm:$0xff] %v18_v0 }
   0x9   :  { %26 = vsyncpa [#allocation1], 1 }

// kernel: tile.14
= control target key start
LH: loop header
LB: loop body
LE: loop exit
PB: predicated region body
PF: predicated region fallthrough
CT: control target
= control target key end

     0   :  { %vm9_vm0 = vcmask 15360   ;;  %s248_s12 = smov 126   ;;  %s249_s13 = smov 114   ;;  %vm3_vm1 = vcmask 48128   ;;  %vm13_vm2 = vcmask 31744   ;;  %vm16_vm3 = vcmask 1048560   ;;  %s378_s0 = inlined_call_operand.vmem [shape: f32[28,6], index: 0, kind: input, shape index: {}]   ;;  %s379_s1 = inlined_call_operand.vmem [shape: f32[1,168], index: 1, kind: output, shape index: {}]  }
   0x1   :  { %v192_v0 = vld [vmem:[%s378_s0 + $0x15] sm:$0x1]   ;;  %v195_v3 = vld [vmem:[%s378_s0 + $0x13] sm:$0x1]   ;;  %v197_v4 = vld [vmem:[%s378_s0 + $0x11] sm:$0x1]  }
   0x2   :  { %v193_v1 = vld [vmem:[%s378_s0 + $0x15] sm:$0x1]   ;;  %26 = vrot.lane.b32.xlu1 %v195_v3, %s249_s13  ;;  %s250_s16 = smov 102   ;;  %v194_v5 = vld [vmem:[%s378_s0 + $0x14] sm:$0x1]   ;;  %s251_s21 = smov 120  }
   0x3   :  { %v10_v2 = vsel %vm9_vm0, %v193_v1, %v192_v0  ;;  %38 = vrot.lane.b32.xlu2 %v197_v4, %s250_s16  ;;  %v196_v6 = vld [vmem:[%s378_s0 + $0x12] sm:$0x1]   ;;  %s252_s22 = smov 108   ;;  %v198_v7 = vld [vmem:[%s378_s0 + $0x10] sm:$0x1]   ;;  %s253_s25 = smov 96  }
   0x4   :  { %11 = vrot.lane.b32.xlu0 %v10_v2, %s248_s12  ;;  %v199_v8 = vld [vmem:[%s378_s0 + $0xf] sm:$0x1]   ;;  %v200_v9 = vld [vmem:[%s378_s0 + $0xe] sm:$0x1]   ;;  %s254_s30 = smov 90   ;;  %s255_s2 = smov 84  }
   0x5   :  { %v201_v10 = vld [vmem:[%s378_s0 + $0xd] sm:$0x1]   ;;  %s256_s5 = smov 78   ;;  %v202_v11 = vld [vmem:[%s378_s0 + $0xc] sm:$0x1]   ;;  %s257_s10 = smov 72  }
   0x6   :  { %v203_v12 = vld [vmem:[%s378_s0 + $0xb] sm:$0x1]   ;;  %s258_s11 = smov 66   ;;  %v204_v13 = vld [vmem:[%s378_s0 + $0xa] sm:$0x1]   ;;  %s259_s14 = smov 60  }
   0x7   :  { %v205_v14 = vld [vmem:[%s378_s0 + $0x9] sm:$0x1]   ;;  %v206_v15 = vld [vmem:[%s378_s0 + $0x8] sm:$0x1]   ;;  %s260_s19 = smov 54   ;;  %s261_s20 = smov 48  }
   0x8   :  { %v207_v16 = vld [vmem:[%s378_s0 + $0x7] sm:$0x1]   ;;  %s262_s23 = smov 42   ;;  %v208_v17 = vld [vmem:[%s378_s0 + $0x6] sm:$0x1]   ;;  %s263_s28 = smov 36  }
   0x9   :  { %v209_v18 = vld [vmem:[%s378_s0 + $0x1b] sm:$0x1]   ;;  %s264_s29 = smov 34   ;;  %v210_v19 = vld [vmem:[%s378_s0 + $0x5] sm:$0x1]   ;;  %s265_s3 = smov 30  }
   0xa   :  { %32 = vrot.lane.b32.xlu1 %v196_v6, %s252_s22  ;;  %v211_v20 = vld [vmem:[%s378_s0 + $0x1a] sm:$0x1]   ;;  %v212_v21 = vld [vmem:[%s378_s0 + $0x4] sm:$0x1]   ;;  %s266_s8 = smov 28   ;;  %s267_s9 = smov 24  }
   0xb   :  { %44 = vrot.lane.b32.xlu2 %v198_v7, %s253_s25  ;;  %v213_v22 = vld [vmem:[%s378_s0 + $0x19] sm:$0x1]   ;;  %s268_s12 = smov 22   ;;  %v214_v23 = vld [vmem:[%s378_s0 + $0x3] sm:$0x1]   ;;  %s269_s17 = smov 18  }
   0xc   :  { %20 = vrot.lane.b32.xlu0 %v194_v5, %s251_s21  ;;  %v215_v24 = vld [vmem:[%s378_s0 + $0x18] sm:$0x1]   ;;  %s270_s18 = smov 16   ;;  %v216_v25 = vld [vmem:[%s378_s0 + $0x2] sm:$0x1]   ;;  %s271_s21 = smov 12  }
   0xd   :  { %v217_v26 = vld [vmem:[%s378_s0 + $0x17] sm:$0x1]   ;;  %v218_v27 = vld [vmem:[%s378_s0 + $0x1] sm:$0x1]   ;;  %s272_s26 = smov 10   ;;  %s273_s27 = smov 6  }
   0xe   :  { %v219_v28 = vld [vmem:[%s378_s0 + $0x16] sm:$0x1]   ;;  %v2_v29 = vld [vmem:[%s378_s0] sm:$0x1]   ;;  %vm22_vm4 = vcmask 1032128   ;;  %vm28_vm5 = vcmask 982928  }
   0xf   :  { %4 = vst.msk [vmem:[#allocation0] sm:$0x1] %vm3_vm1, %v2_v29   ;;  %vm34_vm6 = vcmask 933728   ;;  %vm40_vm7 = vcmask 884528   ;;  %vm46_vm8 = vcmask 835328   ;;  %vm52_vm9 = vcmask 786128  }
  0x10   :  { %vm58_vm10 = vcmask 736928   ;;  %vm64_vm11 = vcmask 687728   ;;  %vm70_vm12 = vcmask 638528   ;;  %vm76_vm13 = vcmask 589328  }
  0x11   :  { %vm82_vm14 = vcmask 540128   ;;  %vm88_vm15 = vcmask 490928   ;;  %vm94_vm0 = vcmask 441728   ;;  %vm100_vm1 = vcmask 392528  }
  0x12   :  { %56 = vrot.lane.b32.xlu1 %v200_v9, %s255_s2 }
  0x13   :  { %62 = vrot.lane.b32.xlu2 %v201_v10, %s256_s5 }
  0x14   :  { %50 = vrot.lane.b32.xlu0 %v199_v8, %s254_s30  ;;  %s274_s30 = smov 4  }
  0x1a   :  { %74 = vrot.lane.b32.xlu1 %v203_v12, %s258_s11 }
  0x1b   :  { %80 = vrot.lane.b32.xlu2 %v204_v13, %s259_s14 }
  0x1c   :  { %68 = vrot.lane.b32.xlu0 %v202_v11, %s257_s10 }
  0x22   :  { %92 = vrot.lane.b32.xlu1 %v206_v15, %s261_s20 }
  0x23   :  { %98 = vrot.lane.b32.xlu2 %v207_v16, %s262_s23 }
  0x24   :  { %86 = vrot.lane.b32.xlu0 %v205_v14, %s260_s19 }
  0x2a   :  { %110 = vrot.lane.b32.xlu1 %v209_v18, %s264_s29 }
  0x2b   :  { %117 = vrot.lane.b32.xlu2 %v210_v19, %s265_s3 }
  0x2c   :  { %104 = vrot.lane.b32.xlu0 %v208_v17, %s263_s28 }
  0x32   :  { %130 = vrot.lane.b32.xlu1 %v212_v21, %s267_s9 }
  0x33   :  { %136 = vrot.lane.b32.xlu2 %v213_v22, %s268_s12 }
  0x34   :  { %123 = vrot.lane.b32.xlu0 %v211_v20, %s266_s8 }
  0x3a   :  { %149 = vrot.lane.b32.xlu1 %v215_v24, %s270_s18 }
  0x3b   :  { %156 = vrot.lane.b32.xlu2 %v216_v25, %s271_s21 }
  0x3c   :  { %143 = vrot.lane.b32.xlu0 %v214_v23, %s269_s17 }
  0x42   :  { %169 = vrot.lane.b32.xlu1 %v218_v27, %s273_s27 }
  0x43   :  { %175 = vrot.lane.b32.xlu2 %v219_v28, %s274_s30 }
  0x44   :  { %162 = vrot.lane.b32.xlu0 %v217_v26, %s272_s26 }
  0x5d   :  { %v39_v30 = vpop.permute.xlu2 %38  }
  0x65   :  { %v45_v31 = vpop.permute.xlu2 %44  }
  0x6d   :  { %v63_v32 = vpop.permute.xlu2 %62  }
  0x74   :  { %v27_v34 = vpop.permute.xlu1 %26  }
  0x75   :  { %v81_v35 = vpop.permute.xlu2 %80  }
  0x76   :  { %v12_v33 = vpop.permute.xlu0 %11  }
  0x77   :  { %15 = vst.msk [vmem:[#allocation0 + $0x8] sm:$0x1] %vm13_vm2, %v12_v33   ;;  %vm106_vm2 = vcmask 343328  }
  0x78   :  { %17 = vst.msk [vmem:[#allocation0] sm:$0x1] %vm16_vm3, %v12_v33   ;;  %vm119_vm3 = vcmask 294128  }
  0x7c   :  { %v33_v37 = vpop.permute.xlu1 %32  }
  0x7d   :  { %v99_v38 = vpop.permute.xlu2 %98  }
  0x7e   :  { %v21_v36 = vpop.permute.xlu0 %20  }
  0x7f   :  { %23 = vst.msk [vmem:[#allocation0] sm:$0x1] %vm22_vm4, %v21_v36   ;;  %vm112_vm4 = vcmask 326928  }
  0x80   :  { %29 = vst.msk [vmem:[#allocation0] sm:$0x1] %vm28_vm5, %v27_v34   ;;  %vm125_vm5 = vcmask 277728  }
  0x81   :  { %35 = vst.msk [vmem:[#allocation0] sm:$0x1] %vm34_vm6, %v33_v37   ;;  %vm138_vm6 = vcmask 228528  }
  0x82   :  { %41 = vst.msk [vmem:[#allocation0] sm:$0x1] %vm40_vm7, %v39_v30   ;;  %vm132_vm7 = vcmask 244928  }
  0x83   :  { %47 = vst.msk [vmem:[#allocation0] sm:$0x1] %vm46_vm8, %v45_v31   ;;  %vm145_vm8 = vcmask 195728  }
  0x84   :  { %v57_v40 = vpop.permute.xlu1 %56  }
  0x85   :  { %v118_v41 = vpop.permute.xlu2 %117  }
  0x86   :  { %v51_v39 = vpop.permute.xlu0 %50  }
  0x87   :  { %53 = vst.msk [vmem:[#allocation0] sm:$0x1] %vm52_vm9, %v51_v39   ;;  %vm158_vm9 = vcmask 146528  }
  0x88   :  { %59 = vst.msk [vmem:[#allocation0] sm:$0x1] %vm58_vm10, %v57_v40   ;;  %vm151_vm10 = vcmask 179328  }
  0x89   :  { %65 = vst.msk [vmem:[#allocation0] sm:$0x1] %vm64_vm11, %v63_v32   ;;  %vm164_vm11 = vcmask 130128  }
  0x8c   :  { %v75_v43 = vpop.permute.xlu1 %74  }
  0x8d   :  { %v137_v44 = vpop.permute.xlu2 %136  }
  0x8e   :  { %v69_v42 = vpop.permute.xlu0 %68  }
  0x8f   :  { %71 = vst.msk [vmem:[#allocation0] sm:$0x1] %vm70_vm12, %v69_v42   ;;  %vm177_vm12 = vcmask 80928  }
  0x90   :  { %77 = vst.msk [vmem:[#allocation0] sm:$0x1] %vm76_vm13, %v75_v43   ;;  %vm171_vm13 = vcmask 97328  }
  0x91   :  { %83 = vst.msk [vmem:[#allocation0] sm:$0x1] %vm82_vm14, %v81_v35  }
  0x94   :  { %v93_v46 = vpop.permute.xlu1 %92  }
  0x95   :  { %v157_v47 = vpop.permute.xlu2 %156  }
  0x96   :  { %v87_v45 = vpop.permute.xlu0 %86  }
  0x97   :  { %89 = vst.msk [vmem:[#allocation0] sm:$0x1] %vm88_vm15, %v87_v45  }
  0x98   :  { %95 = vst.msk [vmem:[#allocation0] sm:$0x1] %vm94_vm0, %v93_v46  }
  0x99   :  { %101 = vst.msk [vmem:[#allocation0] sm:$0x1] %vm100_vm1, %v99_v38  }
  0x9c   :  { %v111_v49 = vpop.permute.xlu1 %110  }
  0x9d   :  { %114 = vst.msk [vmem:[#allocation0 + $0x8] sm:$0x1] %vm112_vm4, %v111_v49   ;;  %v176_v50 = vpop.permute.xlu2 %175  }
  0x9e   :  { %v105_v48 = vpop.permute.xlu0 %104  }
  0x9f   :  { %107 = vst.msk [vmem:[#allocation0] sm:$0x1] %vm106_vm2, %v105_v48  }
  0xa0   :  { %120 = vst.msk [vmem:[#allocation0] sm:$0x1] %vm119_vm3, %v118_v41  }
  0xa4   :  { %v131_v52 = vpop.permute.xlu1 %130  }
  0xa5   :  { %133 = vst.msk [vmem:[#allocation0] sm:$0x1] %vm132_vm7, %v131_v52  }
  0xa6   :  { %v124_v51 = vpop.permute.xlu0 %123  }
  0xa7   :  { %127 = vst.msk [vmem:[#allocation0 + $0x8] sm:$0x1] %vm125_vm5, %v124_v51  }
  0xa8   :  { %140 = vst.msk [vmem:[#allocation0 + $0x8] sm:$0x1] %vm138_vm6, %v137_v44  }
  0xac   :  { %v150_v54 = vpop.permute.xlu1 %149  }
  0xad   :  { %153 = vst.msk [vmem:[#allocation0 + $0x8] sm:$0x1] %vm151_vm10, %v150_v54  }
  0xae   :  { %v144_v53 = vpop.permute.xlu0 %143  }
  0xaf   :  { %146 = vst.msk [vmem:[#allocation0] sm:$0x1] %vm145_vm8, %v144_v53  }
  0xb0   :  { %159 = vst.msk [vmem:[#allocation0] sm:$0x1] %vm158_vm9, %v157_v47  }
  0xb4   :  { %v170_v56 = vpop.permute.xlu1 %169  }
  0xb5   :  { %172 = vst.msk [vmem:[#allocation0] sm:$0x1] %vm171_vm13, %v170_v56  }
  0xb6   :  { %v163_v55 = vpop.permute.xlu0 %162  }
  0xb7   :  { %166 = vst.msk [vmem:[#allocation0 + $0x8] sm:$0x1] %vm164_vm11, %v163_v55  }
  0xb8   :  { %179 = vst.msk [vmem:[#allocation0 + $0x8] sm:$0x1] %vm177_vm12, %v176_v50  }
  0xbc   :  { %v182_v58 = vld [vmem:[#allocation0] sm:$0x1] }
  0xbd   :  { %185 = vst [vmem:[%s379_s1] sm:$0x1] %v182_v58 }
  0xbf   :  { %v187_v57 = vld [vmem:[#allocation0 + $0x8] sm:$0x1] }
  0xc0   :  { %220 = vst [vmem:[%s379_s1 + $0x1] sm:$0x1] %v187_v57 }

// kernel: lenet_forward.1
= control target key start
LH: loop header
LB: loop body
LE: loop exit
PB: predicated region body
PF: predicated region fallthrough
CT: control target
= control target key end

     0   :  { %vm281_vm0 = vcmask 1045504   ;;  %vm119_vm1 = vcmask 1046528   ;;  %vm443_vm2 = vcmask 1044480   ;;  %s14043_s20 = smov 64   ;;  %s9354_s21 = smov 96   ;;  %vm605_vm3 = vcmask 1043456   ;;  %s14023_s1 = inlined_call_operand.vmem [shape: bf16[480,168], index: 1, kind: input, shape index: {}]   ;;  %s14024_s0 = inlined_call_operand.vmem [shape: f32[256,96], index: 0, kind: input, shape index: {}]   ;;  %s14025_s2 = inlined_call_operand.vmem [shape: f32[1,168], index: 2, kind: input, shape index: {}]   ;;  %s14026_s3 = inlined_call_operand.vmem [shape: bf16[2,168,84], index: 3, kind: input, shape index: {}]   ;;  %s14027_s4 = inlined_call_operand.vmem [shape: bf16[420,160], index: 4, kind: input, shape index: {}]   ;;  %s14028_s5 = inlined_call_operand.vmem [shape: f32[1,160], index: 5, kind: input, shape index: {}]   ;;  %s14029_s6 = inlined_call_operand.vmem [shape: bf16[2,160,80], index: 6, kind: input, shape index: {}]   ;;  %s14030_s7 = inlined_call_operand.vmem [shape: bf16[40,256], index: 7, kind: input, shape index: {}]   ;;  %s14031_s8 = inlined_call_operand.vmem [shape: bf16[5,80,400], index: 8, kind: input, shape index: {}]   ;;  %s14032_s9 = inlined_call_operand.vmem [shape: bf16[400,120], index: 9, kind: input, shape index: {}]   ;;  %s14033_s15 = inlined_call_operand.vmem [shape: f32[8,400], index: 15, kind: output, shape index: {0}]   ;;  %s14034_s10 = inlined_call_operand.vmem [shape: f32[1,120], index: 10, kind: input, shape index: {}]   ;;  %s14035_s11 = inlined_call_operand.vmem [shape: bf16[120,84], index: 11, kind: input, shape index: {}]   ;;  %s14036_s12 = inlined_call_operand.vmem [shape: f32[1,84], index: 12, kind: input, shape index: {}]   ;;  %s14037_s13 = inlined_call_operand.vmem [shape: bf16[84,10], index: 13, kind: input, shape index: {}]   ;;  %s14038_s14 = inlined_call_operand.vmem [shape: f32[1,10], index: 14, kind: input, shape index: {}]   ;;  %s14039_s16 = inlined_call_operand.vmem [shape: f32[8,84], index: 16, kind: output, shape index: {1}]   ;;  %s14040_s17 = inlined_call_operand.vmem [shape: f32[8,10], index: 17, kind: output, shape index: {2}]  }
   0x1   :  { %14139 = sst [smem:[#allocation42_spill]] %s14023_s1  ;;  %s9355_s23 = smov 32   ;;  %vm703_vm4 = vcmask 785408   ;;  %vm736_vm5 = vcmask 523264   ;;  %vm769_vm6 = vcmask 261120   ;;  %vm2172_vm7 = vcmask 326656  }
   0x2   :  { %14140 = sst [smem:[#allocation43_spill]] %s14024_s0  ;;  %s14145_s1 = smov 64   ;;  %vm3212_vm8 = vcmask 1041408   ;;  %vm3989_vm9 = vcmask 293888   ;;  %vm3470_vm10 = vcmask 687104   ;;  %vm3535_vm11 = vcmask 1014784  }
   0x3   :  { %s14141_s26 = sld [smem:[#allocation42_spill]]  ;;  %s9358_s19 = smov 40   ;;  %vm3568_vm12 = vcmask 654336   ;;  %vm6807_vm13 = vcmask 130048   ;;  %vm6929_vm14 = vcmask 982016   ;;  %vm7024_vm15 = vcmask 80896  }
   0x4   :  { %s14142_s30 = sld [smem:[#allocation43_spill]]  ;;  %s9360_s0 = smov 124  }
   0x9   :  { %v7272_v0 = vld [vmem:[%s14141_s26 + $0x1d0] sm:$0xf]  ;;  %v8541_v1 = vld [vmem:[%s14141_s26 + $0x1d4] sm:$0xf0]  ;;  %v7264_v8 = vld [vmem:[%s14141_s26 + $0x1c0] sm:$0xf] }
   0xa   :  { %v9460_v2 = vld [vmem:[%s14142_s30] sm:$0xff]  ;;  %v7273_v3 = vor.u32 %v8541_v1, %v7272_v0  ;;  %v9465_v4 = vld [vmem:[%s14142_s30 + $0x8] sm:$0xff]  ;;  %v9470_v5 = vld [vmem:[%s14142_s30 + $0x10] sm:$0xff] }
   0xb   :  { %v282_v6 = vrot.slane %v9460_v2, 2  ;;  %v120_v7 = vrot.slane %v9460_v2, 1  ;;  %v283_v9 = vrot.slane %v9465_v4, 2  ;;  %v285_v10 = vrot.slane %v9470_v5, 2  ;;  %v8539_v13 = vld [vmem:[%s14141_s26 + $0x1c4] sm:$0xf0] }
   0xc   :  { %v121_v11 = vrot.slane %v9465_v4, 1  ;;  %v123_v12 = vrot.slane %v9470_v5, 1  ;;  %1549 = vmatpush.bf16.msra.mxu3 %v7273_v3  ;;  %v7265_v14 = vor.u32 %v8539_v13, %v7264_v8  ;;  %v444_v15 = vrot.slane %v9460_v2, 3  ;;  %v7256_v21 = vld [vmem:[%s14141_s26 + $0x1b0] sm:$0xf]  ;;  %v9501_v25 = vld [vmem:[%s14142_s30 + $0x18] sm:$0xff] }
   0xd   :  { %v445_v16 = vrot.slane %v9465_v4, 3  ;;  %v284_v17 = vsel %vm281_vm0, %v282_v6, %v283_v9  ;;  %v286_v18 = vsel %vm281_vm0, %v283_v9, %v285_v10  ;;  %v8537_v24 = vld [vmem:[%s14141_s26 + $0x1b4] sm:$0xf0]  ;;  %v9506_v26 = vld [vmem:[%s14142_s30 + $0x20] sm:$0xff]  ;;  %v447_v27 = vrot.slane %v9470_v5, 3  ;;  %v9527_v38 = vld [vmem:[%s14142_s30 + $0x28] sm:$0xff] }
   0xe   :  { %v122_v19 = vsel %vm119_vm1, %v120_v7, %v121_v11  ;;  %v124_v20 = vsel %vm119_vm1, %v121_v11, %v123_v12  ;;  %v8783_v22 = vpack.i.bf16 %v286_v18, %v284_v17  ;;  %v287_v28 = vrot.slane %v9501_v25, 2  ;;  %v7248_v33 = vld [vmem:[%s14141_s26 + $0x1a0] sm:$0xf]  ;;  %v8535_v35 = vld [vmem:[%s14141_s26 + $0x1a4] sm:$0xf0]  ;;  %v9532_v39 = vld [vmem:[%s14142_s30 + $0x30] sm:$0xff] }
   0xf   :  { %v8793_v23 = vpack.i.bf16 %v124_v20, %v122_v19  ;;  %v289_v29 = vrot.slane %v9506_v26, 2  ;;  %v7257_v30 = vor.u32 %v8537_v24, %v7256_v21  ;;  %v446_v31 = vsel %vm443_vm2, %v444_v15, %v445_v16  ;;  %v7240_v45 = vld [vmem:[%s14141_s26 + $0x190] sm:$0xf]  ;;  %v8533_v46 = vld [vmem:[%s14141_s26 + $0x194] sm:$0xf0]  ;;  %v9577_v7 = vld [vmem:[%s14142_s30 + $0x40] sm:$0xff] }
  0x10   :  { %8784 = vrot.lane.b32.xlu0 %v8783_v22, %s14043_s20  ;;  %1550 = vmatpush.bf16.msra.mxu3 %v7265_v14  ;;  %v448_v32 = vsel %vm443_vm2, %v445_v16, %v447_v27  ;;  %v288_v34 = vsel %vm281_vm0, %v285_v10, %v287_v28  ;;  %v449_v37 = vrot.slane %v9501_v25, 3  ;;  %v451_v40 = vrot.slane %v9506_v26, 3  ;;  %v7232_v58 = vld [vmem:[%s14141_s26 + $0x180] sm:$0xf]  ;;  %v8531_v59 = vld [vmem:[%s14141_s26 + $0x184] sm:$0xf0] }
  0x11   :  { %8794 = vrot.lane.b32.xlu1 %v8793_v23, %s9354_s21  ;;  %v290_v36 = vsel %vm281_vm0, %v287_v28, %v289_v29  ;;  %v8788_v41 = vpack.i.bf16 %v448_v32, %v446_v31  ;;  %v7249_v44 = vor.u32 %v8535_v35, %v7248_v33  ;;  %v291_v48 = vrot.slane %v9527_v38, 2  ;;  %v9572_v6 = vld [vmem:[%s14142_s30 + $0x38] sm:$0xff]  ;;  %v9599_v24 = vld [vmem:[%s14142_s30 + $0x48] sm:$0xff] }
  0x12   :  { %v8798_v42 = vpack.i.bf16 %v290_v36, %v288_v34  ;;  %v450_v43 = vsel %vm443_vm2, %v447_v27, %v449_v37  ;;  %v452_v47 = vsel %vm443_vm2, %v449_v37, %v451_v40  ;;  %v293_v49 = vrot.slane %v9532_v39, 2  ;;  %v9604_v27 = vld [vmem:[%s14142_s30 + $0x50] sm:$0xff] }
  0x13   :  { %v8803_v50 = vpack.i.bf16 %v452_v47, %v450_v43  ;;  %v125_v51 = vrot.slane %v9501_v25, 1  ;;  %v127_v52 = vrot.slane %v9506_v26, 1  ;;  %v453_v53 = vrot.slane %v9527_v38, 3 }
  0x14   :  { %1551 = vmatpush.bf16.msra.mxu3 %v7257_v30  ;;  %v7241_v54 = vor.u32 %v8533_v46, %v7240_v45  ;;  %v606_v55 = vrot.slane %v9460_v2, 4  ;;  %v607_v56 = vrot.slane %v9465_v4, 4  ;;  %v455_v57 = vrot.slane %v9532_v39, 3 }
  0x15   :  { %v609_v60 = vrot.slane %v9470_v5, 4  ;;  %8804 = vrot.lane.b32.xlu2 %v8803_v50, %s9355_s23  ;;  %v292_v61 = vsel %vm281_vm0, %v289_v29, %v291_v48  ;;  %v294_v62 = vsel %vm281_vm0, %v291_v48, %v293_v49  ;;  %v454_v63 = vsel %vm443_vm2, %v451_v40, %v453_v53  ;;  %v9633_v50 = vld [vmem:[%s14142_s30 + $0x58] sm:$0xff] }
  0x16   :  { %v126_v0 = vsel %vm119_vm1, %v123_v12, %v125_v51  ;;  %v128_v1 = vsel %vm119_vm1, %v125_v51, %v127_v52  ;;  %v456_v3 = vsel %vm443_vm2, %v453_v53, %v455_v57  ;;  %v7233_v8 = vor.u32 %v8531_v59, %v7232_v58  ;;  %v9638_v51 = vld [vmem:[%s14142_s30 + $0x60] sm:$0xff] }
  0x17   :  { %v608_v9 = vsel %vm605_vm3, %v606_v55, %v607_v56  ;;  %v8813_v10 = vpack.i.bf16 %v294_v62, %v292_v61  ;;  %v8818_v11 = vpack.i.bf16 %v456_v3, %v454_v63  ;;  %v610_v12 = vsel %vm605_vm3, %v607_v56, %v609_v60 }
  0x18   :  { %8789 = vrot.lane.b32.xlu0 %v8788_v41, %s9355_s23  ;;  %1552 = vmatpush.bf16.msra.mxu3 %v7249_v44  ;;  %v8808_v13 = vpack.i.bf16 %v128_v1, %v126_v0  ;;  %v295_v14 = vrot.slane %v9572_v6, 2  ;;  %v297_v15 = vrot.slane %v9577_v7, 2  ;;  %v9583_v16 = vpack.c.bf16 %v610_v12, %v608_v9 }
  0x19   :  { %8799 = vrot.lane.b32.xlu1 %v8798_v42, %s14043_s20  ;;  %v129_v19 = vrot.slane %v9527_v38, 1  ;;  %v131_v20 = vrot.slane %v9532_v39, 1  ;;  %v457_v21 = vrot.slane %v9572_v6, 3  ;;  %v459_v22 = vrot.slane %v9577_v7, 3 }
  0x1a   :  { %v296_v17 = vsel %vm281_vm0, %v293_v49, %v295_v14  ;;  %v298_v18 = vsel %vm281_vm0, %v295_v14, %v297_v15  ;;  %v299_v34 = vrot.slane %v9599_v24, 2  ;;  %v301_v35 = vrot.slane %v9604_v27, 2  ;;  %v8497_v14 = vld [vmem:[%s14141_s26 + $0x74] sm:$0xf0] }
  0x1b   :  { %v8828_v23 = vpack.i.bf16 %v298_v18, %v296_v17  ;;  %v130_v28 = vsel %vm119_vm1, %v127_v52, %v129_v19  ;;  %v132_v29 = vsel %vm119_vm1, %v129_v19, %v131_v20  ;;  %v458_v30 = vsel %vm443_vm2, %v455_v57, %v457_v21 }
  0x1c   :  { %1553 = vmatpush.bf16.msra.mxu3 %v7241_v54  ;;  %v460_v31 = vsel %vm443_vm2, %v457_v21, %v459_v22  ;;  %v8823_v32 = vpack.i.bf16 %v132_v29, %v130_v28  ;;  %v611_v36 = vrot.slane %v9501_v25, 4  ;;  %v613_v37 = vrot.slane %v9506_v26, 4  ;;  %v8513_v21 = vld [vmem:[%s14141_s26 + $0xf4] sm:$0xf0] }
  0x1d   :  { %8809 = vrot.lane.b32.xlu2 %v8808_v13, %s9354_s21  ;;  %v8833_v33 = vpack.i.bf16 %v460_v31, %v458_v30  ;;  %v300_v40 = vsel %vm281_vm0, %v297_v15, %v299_v34  ;;  %v302_v41 = vsel %vm281_vm0, %v299_v34, %v301_v35  ;;  %v133_v46 = vrot.slane %v9572_v6, 1  ;;  %v7096_v13 = vld [vmem:[%s14141_s26 + $0x70] sm:$0xf]  ;;  %v9698_v34 = vld [vmem:[%s14142_s30 + $0x68] sm:$0xff] }
  0x1e   :  { %v8843_v42 = vpack.i.bf16 %v302_v41, %v300_v40  ;;  %v612_v43 = vsel %vm605_vm3, %v609_v60, %v611_v36  ;;  %v614_v44 = vsel %vm605_vm3, %v611_v36, %v613_v37  ;;  %v135_v47 = vrot.slane %v9577_v7, 1  ;;  %v7160_v15 = vld [vmem:[%s14141_s26 + $0xf0] sm:$0xf] }
  0x1f   :  { %v9621_v45 = vpack.c.bf16 %v614_v44, %v612_v43  ;;  %v461_v48 = vrot.slane %v9599_v24, 3  ;;  %v463_v49 = vrot.slane %v9604_v27, 3  ;;  %v134_v52 = vsel %vm119_vm1, %v131_v20, %v133_v46 }
  0x20   :  { %8814 = vrot.lane.b32.xlu0 %v8813_v10, %s14043_s20  ;;  %1554 = vmatpush.bf16.msra.mxu3 %v7233_v8  ;;  %v136_v53 = vsel %vm119_vm1, %v133_v46, %v135_v47  ;;  %v303_v58 = vrot.slane %v9633_v50, 2  ;;  %v305_v59 = vrot.slane %v9638_v51, 2  ;;  %v615_v62 = vrot.slane %v9527_v38, 4  ;;  %v7080_v46 = vld [vmem:[%s14141_s26 + $0x50] sm:$0xf] }
  0x21   :  { %8819 = vrot.lane.b32.xlu1 %v8818_v11, %s9355_s23  ;;  %v462_v54 = vsel %vm443_vm2, %v459_v22, %v461_v48  ;;  %v464_v55 = vsel %vm443_vm2, %v461_v48, %v463_v49  ;;  %v8838_v56 = vpack.i.bf16 %v136_v53, %v134_v52  ;;  %v617_v63 = vrot.slane %v9532_v39, 4  ;;  %v7088_v22 = vld [vmem:[%s14141_s26 + $0x60] sm:$0xf]  ;;  %v8529_v48 = vld [vmem:[%s14141_s26 + $0x174] sm:$0xf0] }
  0x22   :  { %v8848_v57 = vpack.i.bf16 %v464_v55, %v462_v54  ;;  %v304_v60 = vsel %vm281_vm0, %v301_v35, %v303_v58  ;;  %v306_v61 = vsel %vm281_vm0, %v303_v58, %v305_v59  ;;  %v616_v1 = vsel %vm605_vm3, %v613_v37, %v615_v62  ;;  %v9703_v35 = vld [vmem:[%s14142_s30 + $0x70] sm:$0xff]  ;;  %v8493_v52 = vld [vmem:[%s14141_s26 + $0x54] sm:$0xf0] }
  0x23   :  { %7278 = vmatmul.msk.bf16.vlgmr.msra.gmra.mxu3 %vm703_vm4, %v9583_v16  ;;  %v8858_v0 = vpack.i.bf16 %v306_v61, %v304_v60  ;;  %v618_v3 = vsel %vm605_vm3, %v615_v62, %v617_v63  ;;  %v137_v9 = vrot.slane %v9599_v24, 1  ;;  %v139_v10 = vrot.slane %v9604_v27, 1  ;;  %v7144_v53 = vld [vmem:[%s14141_s26 + $0xd0] sm:$0xf]  ;;  %v8509_v54 = vld [vmem:[%s14141_s26 + $0xd4] sm:$0xf0] }
  0x24   :  { %v9655_v8 = vpack.c.bf16 %v618_v3, %v616_v1  ;;  %v465_v11 = vrot.slane %v9633_v50, 3  ;;  %v467_v12 = vrot.slane %v9638_v51, 3  ;;  %v7097_v30 = vor.u32 %v8497_v14, %v7096_v13  ;;  %v7072_v62 = vld [vmem:[%s14141_s26 + $0x40] sm:$0xf]  ;;  %v8507_v3 = vld [vmem:[%s14141_s26 + $0xc4] sm:$0xf0] }
  0x25   :  { %8824 = vrot.lane.b32.xlu2 %v8823_v32, %s9354_s21  ;;  %v138_v17 = vsel %vm119_vm1, %v135_v47, %v137_v9  ;;  %v140_v18 = vsel %vm119_vm1, %v137_v9, %v139_v10  ;;  %v7161_v31 = vor.u32 %v8513_v21, %v7160_v15  ;;  %v7152_v32 = vld [vmem:[%s14141_s26 + $0xe0] sm:$0xf]  ;;  %v307_v36 = vrot.slane %v9698_v34, 2  ;;  %v7224_v47 = vld [vmem:[%s14141_s26 + $0x170] sm:$0xf] }
  0x26   :  { %14143 = vst [vmem:[#allocation2_spill] sm:$0xff] %v9655_v8  ;;  %v466_v19 = vsel %vm443_vm2, %v463_v49, %v465_v11  ;;  %v468_v20 = vsel %vm443_vm2, %v465_v11, %v467_v12  ;;  %v8853_v28 = vpack.i.bf16 %v140_v18, %v138_v17  ;;  %v619_v37 = vrot.slane %v9572_v6, 4  ;;  %1280 = vmatpush.bf16.msra.mxu0 %v7097_v30  ;;  %v7216_v9 = vld [vmem:[%s14141_s26 + $0x160] sm:$0xf]  ;;  %v8527_v11 = vld [vmem:[%s14141_s26 + $0x164] sm:$0xf0] }
  0x27   :  { %v8863_v29 = vpack.i.bf16 %v468_v20, %v466_v19  ;;  %v621_v40 = vrot.slane %v9577_v7, 4  ;;  %v309_v41 = vrot.slane %v9703_v35, 2  ;;  %1369 = vmatpush.bf16.msra.mxu1 %v7161_v31  ;;  %v308_v44 = vsel %vm281_vm0, %v305_v59, %v307_v36  ;;  %v7064_v18 = vld [vmem:[%s14141_s26 + $0x30] sm:$0xf]  ;;  %v8489_v19 = vld [vmem:[%s14141_s26 + $0x34] sm:$0xf0] }
  0x28   :  { %8829 = vrot.lane.b32.xlu0 %v8828_v23, %s14043_s20  ;;  %v8495_v23 = vld [vmem:[%s14141_s26 + $0x64] sm:$0xf0]  ;;  %v7225_v55 = vor.u32 %v8529_v48, %v7224_v47  ;;  %v7081_v59 = vor.u32 %v8493_v52, %v7080_v46  ;;  %v7145_v60 = vor.u32 %v8509_v54, %v7144_v53  ;;  %v7217_v14 = vor.u32 %v8527_v11, %v7216_v9  ;;  %v7120_v46 = vld [vmem:[%s14141_s26 + $0xa0] sm:$0xf]  ;;  %v9815_v52 = vld [vmem:[%s14142_s30 + $0x78] sm:$0xff] }
  0x29   :  { %8834 = vrot.lane.b32.xlu1 %v8833_v33, %s9355_s23  ;;  %v8511_v33 = vld [vmem:[%s14141_s26 + $0xe4] sm:$0xf0]  ;;  %v310_v49 = vsel %vm281_vm0, %v307_v36, %v309_v41  ;;  %v622_v58 = vsel %vm605_vm3, %v619_v37, %v621_v40  ;;  %v141_v15 = vrot.slane %v9633_v50, 1  ;;  %v143_v17 = vrot.slane %v9638_v51, 1  ;;  %v7056_v36 = vld [vmem:[%s14141_s26 + $0x20] sm:$0xf] }
  0x2a   :  { %v7153_v43 = vor.u32 %v8511_v33, %v7152_v32  ;;  %1458 = vmatpush.bf16.msra.mxu2 %v7225_v55  ;;  %v469_v20 = vrot.slane %v9698_v34, 3  ;;  %v471_v21 = vrot.slane %v9703_v35, 3  ;;  %v7208_v32 = vld [vmem:[%s14141_s26 + $0x150] sm:$0xf]  ;;  %v8525_v33 = vld [vmem:[%s14141_s26 + $0x154] sm:$0xf0] }
  0x2b   :  { %v144_v30 = vsel %vm119_vm1, %v141_v15, %v143_v17  ;;  %v8503_v47 = vld [vmem:[%s14141_s26 + $0xa4] sm:$0xf0]  ;;  %v623_v53 = vrot.slane %v9599_v24, 4  ;;  %v625_v54 = vrot.slane %v9604_v27, 4  ;;  %v7192_v11 = vld [vmem:[%s14141_s26 + $0x130] sm:$0xf] }
  0x2c   :  { %1370 = vmatpush.bf16.msra.mxu1 %v7153_v43  ;;  %v7209_v43 = vor.u32 %v8525_v33, %v7208_v32  ;;  %v8519_v32 = vld [vmem:[%s14141_s26 + $0x124] sm:$0xf0] }
  0x2d   :  { %8839 = vrot.lane.b32.xlu2 %v8838_v56, %s9354_s21  ;;  %v8873_v56 = vpack.i.bf16 %v310_v49, %v308_v44  ;;  %v8487_v44 = vld [vmem:[%s14141_s26 + $0x24] sm:$0xf0] }
  0x2e   :  { %1459 = vmatpush.bf16.msra.mxu2 %v7217_v14  ;;  %v8523_v49 = vld [vmem:[%s14141_s26 + $0x144] sm:$0xf0]  ;;  %v7057_v55 = vor.u32 %v8487_v44, %v7056_v36  ;;  %v626_v14 = vsel %vm605_vm3, %v623_v53, %v625_v54 }
  0x30   :  { %8844 = vrot.lane.b32.xlu0 %v8843_v42, %s14043_s20  ;;  %v7089_v42 = vor.u32 %v8495_v23, %v7088_v22  ;;  %1371 = vmatpush.bf16.msra.mxu1 %v7145_v60  ;;  %v7065_v22 = vor.u32 %v8489_v19, %v7064_v18  ;;  %v7128_v23 = vld [vmem:[%s14141_s26 + $0xb0] sm:$0xf] }
  0x31   :  { %8849 = vrot.lane.b32.xlu1 %v8848_v57, %s9355_s23  ;;  %v620_v57 = vsel %vm605_vm3, %v617_v63, %v619_v37  ;;  %v8491_v63 = vld [vmem:[%s14141_s26 + $0x44] sm:$0xf0]  ;;  %v7048_v60 = vld [vmem:[%s14141_s26 + $0x10] sm:$0xf] }
  0x32   :  { %1281 = vmatpush.bf16.msra.mxu0 %v7089_v42  ;;  %v9738_v61 = vpack.c.bf16 %v622_v58, %v620_v57  ;;  %v7073_v1 = vor.u32 %v8491_v63, %v7072_v62  ;;  %v472_v42 = vsel %vm443_vm2, %v469_v20, %v471_v21  ;;  %v311_v57 = vrot.slane %v9815_v52, 2  ;;  %v8485_v62 = vld [vmem:[%s14141_s26 + $0x14] sm:$0xf0]  ;;  %1460 = vmatpush.bf16.msra.mxu2 %v7209_v43 }
  0x33   :  { %7279 = vmatmul.msk.bf16.gmra.mxu3 %vm703_vm4, %v9621_v45  ;;  %v7121_v58 = vor.u32 %v8503_v47, %v7120_v46  ;;  %v7049_v18 = vor.u32 %v8485_v62, %v7048_v60  ;;  %v7176_v47 = vld [vmem:[%s14141_s26 + $0x110] sm:$0xf]  ;;  %v7168_v60 = vld [vmem:[%s14141_s26 + $0x100] sm:$0xf]  ;;  %v9912_v62 = vld [vmem:[%s14142_s30 + $0x88] sm:$0xff] }
  0x34   :  { %14144 = vst [vmem:[#allocation3_spill] sm:$0xff] %v9738_v61 }
  0x35   :  { %8854 = vrot.lane.b32.xlu2 %v8853_v28, %s9354_s21  ;;  %v8505_v28 = vld [vmem:[%s14141_s26 + $0xb4] sm:$0xf0] }
  0x36   :  { %1282 = vmatpush.bf16.msra.mxu0 %v7081_v59  ;;  %v7129_v31 = vor.u32 %v8505_v28, %v7128_v23  ;;  %v8483_v23 = vld [vmem:[%s14141_s26 + $0x4] sm:$0xf0]  ;;  %v7104_v28 = vld [vmem:[%s14141_s26 + $0x80] sm:$0xf] }
  0x38   :  { %8859 = vrot.lane.b32.xlu0 %v8858_v0, %s14043_s20  ;;  %v7136_v0 = vld [vmem:[%s14141_s26 + $0xc0] sm:$0xf] }
  0x39   :  { %8864 = vrot.lane.b32.xlu1 %v8863_v29, %s9355_s23  ;;  %v7137_v13 = vor.u32 %v8507_v3, %v7136_v0  ;;  %v142_v29 = vsel %vm119_vm1, %v139_v10, %v141_v15  ;;  %v470_v10 = vsel %vm443_vm2, %v467_v12, %v469_v20  ;;  %v7200_v12 = vld [vmem:[%s14141_s26 + $0x140] sm:$0xf]  ;;  %v312_v0 = vsel %vm281_vm0, %v309_v41, %v311_v57  ;;  %v8501_v3 = vld [vmem:[%s14141_s26 + $0x94] sm:$0xf0] }
  0x3a   :  { %1283 = vmatpush.bf16.msra.mxu0 %v7073_v1  ;;  %v8868_v37 = vpack.i.bf16 %v144_v30, %v142_v29  ;;  %v8878_v48 = vpack.i.bf16 %v472_v42, %v470_v10  ;;  %v7201_v63 = vor.u32 %v8523_v49, %v7200_v12  ;;  %v7112_v1 = vld [vmem:[%s14141_s26 + $0x90] sm:$0xf]  ;;  %v8521_v41 = vld [vmem:[%s14141_s26 + $0x134] sm:$0xf0]  ;;  %v8499_v30 = vld [vmem:[%s14141_s26 + $0x84] sm:$0xf0] }
  0x3b   :  { %1372 = vmatpush.bf16.msra.mxu1 %v7137_v13  ;;  %v624_v13 = vsel %vm605_vm3, %v621_v40, %v623_v53  ;;  %v7113_v19 = vor.u32 %v8501_v3, %v7112_v1  ;;  %v7193_v20 = vor.u32 %v8521_v41, %v7192_v11  ;;  %v7040_v40 = vld [vmem:[%s14141_s26] sm:$0xf]  ;;  %v7105_v33 = vor.u32 %v8499_v30, %v7104_v28  ;;  %v9947_v30 = vld [vmem:[%s14142_s30 + $0x98] sm:$0xff] }
  0x3c   :  { %1461 = vmatpush.bf16.msra.mxu2 %v7201_v63  ;;  %v7041_v29 = vor.u32 %v8483_v23, %v7040_v40  ;;  %v147_v10 = vrot.slane %v9703_v35, 1  ;;  %v473_v42 = vrot.slane %v9815_v52, 3 }
  0x3d   :  { %8869 = vrot.lane.b32.xlu2 %v8868_v37, %s9354_s21  ;;  %v145_v37 = vrot.slane %v9698_v34, 1 }
  0x3e   :  { %1284 = vmatpush.bf16.msra.mxu0 %v7065_v22  ;;  %v9859_v22 = vpack.c.bf16 %v626_v14, %v624_v13  ;;  %v474_v49 = vsel %vm443_vm2, %v471_v21, %v473_v42  ;;  %v8515_v21 = vld [vmem:[%s14141_s26 + $0x104] sm:$0xf0] }
  0x3f   :  { %1373 = vmatpush.bf16.msra.mxu1 %v7129_v31  ;;  %v7184_v31 = vld [vmem:[%s14141_s26 + $0x120] sm:$0xf]  ;;  %v146_v44 = vsel %vm119_vm1, %v143_v17, %v145_v37  ;;  %v148_v46 = vsel %vm119_vm1, %v145_v37, %v147_v10  ;;  %v7169_v63 = vor.u32 %v8515_v21, %v7168_v60 }
  0x40   :  { %8874 = vrot.lane.b32.xlu0 %v8873_v56, %s14043_s20  ;;  %v9823_v56 = vld [vmem:[%s14142_s30 + $0x80] sm:$0xff]  ;;  %14146 = vst [vmem:[#allocation4_spill] sm:$0xff] %v9859_v22  ;;  %1462 = vmatpush.bf16.msra.mxu2 %v7193_v20  ;;  %v7185_v36 = vor.u32 %v8519_v32, %v7184_v31  ;;  %v8883_v12 = vpack.i.bf16 %v148_v46, %v146_v44  ;;  %v631_v32 = vrot.slane %v9698_v34, 4 }
  0x41   :  { %8879 = vrot.lane.b32.xlu1 %v8878_v48, %s9355_s23  ;;  %v313_v59 = vrot.slane %v9823_v56, 2  ;;  %v475_v43 = vrot.slane %v9823_v56, 3  ;;  %v8517_v48 = vld [vmem:[%s14141_s26 + $0x114] sm:$0xf0]  ;;  %v9952_v31 = vld [vmem:[%s14142_s30 + $0xa0] sm:$0xff] }
  0x42   :  { %1285 = vmatpush.bf16.msra.mxu0 %v7057_v55  ;;  %v7177_v55 = vor.u32 %v8517_v48, %v7176_v47  ;;  %v321_v37 = vrot.slane %v9952_v31, 2 }
  0x43   :  { %7280 = vmatmul.msk.bf16.gmra.mxu3 %vm703_vm4, %v9655_v8  ;;  %v314_v9 = vsel %vm281_vm0, %v311_v57, %v313_v59  ;;  %1374 = vmatpush.bf16.msra.mxu1 %v7121_v58  ;;  %v476_v53 = vsel %vm443_vm2, %v473_v42, %v475_v43  ;;  %v627_v57 = vrot.slane %v9633_v50, 4  ;;  %v629_v58 = vrot.slane %v9638_v51, 4  ;;  %v9917_v51 = vld [vmem:[%s14142_s30 + $0x90] sm:$0xff] }
  0x44   :  { %v8888_v15 = vpack.i.bf16 %v314_v9, %v312_v0  ;;  %1463 = vmatpush.bf16.msra.mxu2 %v7185_v36  ;;  %v8893_v17 = vpack.i.bf16 %v476_v53, %v474_v49  ;;  %v315_v0 = vrot.slane %v9912_v62, 2  ;;  %v317_v1 = vrot.slane %v9917_v51, 2 }
  0x45   :  { %8884 = vrot.lane.b32.xlu2 %v8883_v12, %s9354_s21  ;;  %v628_v3 = vsel %vm605_vm3, %v625_v54, %v627_v57  ;;  %v630_v9 = vsel %vm605_vm3, %v627_v57, %v629_v58  ;;  %v477_v54 = vrot.slane %v9912_v62, 3  ;;  %v319_v36 = vrot.slane %v9947_v30, 2 }
  0x46   :  { %1286 = vmatpush.bf16.msra.mxu0 %v7049_v18  ;;  %v316_v11 = vsel %vm281_vm0, %v313_v59, %v315_v0  ;;  %v318_v41 = vsel %vm281_vm0, %v315_v0, %v317_v1  ;;  %v9929_v14 = vpack.c.bf16 %v630_v9, %v628_v3  ;;  %v151_v18 = vrot.slane %v9823_v56, 1 }
  0x47   :  { %1375 = vmatpush.bf16.msra.mxu1 %v7113_v19  ;;  %v8903_v13 = vpack.i.bf16 %v318_v41, %v316_v11  ;;  %v479_v19 = vrot.slane %v9917_v51, 3  ;;  %v478_v40 = vsel %vm443_vm2, %v475_v43, %v477_v54  ;;  %v322_v42 = vsel %vm281_vm0, %v319_v36, %v321_v37 }
  0x48   :  { %8889 = vrot.lane.b32.xlu0 %v8888_v15, %s14145_s1  ;;  %1464 = vmatpush.bf16.msra.mxu2 %v7177_v55  ;;  %14147 = vst [vmem:[#allocation5_spill] sm:$0xff] %v9929_v14  ;;  %v149_v15 = vrot.slane %v9815_v52, 1  ;;  %v632_v44 = vsel %vm605_vm3, %v629_v58, %v631_v32  ;;  %v635_v57 = vrot.slane %v9815_v52, 4  ;;  %v153_v58 = vrot.slane %v9912_v62, 1 }
  0x49   :  { %8894 = vrot.lane.b32.xlu1 %v8893_v17, %s9355_s23  ;;  %v480_v23 = vsel %vm443_vm2, %v477_v54, %v479_v19  ;;  %v155_v60 = vrot.slane %v9917_v51, 1  ;;  %v483_v54 = vrot.slane %v9952_v31, 3 }
  0x4a   :  { %1287 = vmatpush.bf16.msra.mxu0 %v7041_v29  ;;  %v150_v59 = vsel %vm119_vm1, %v147_v10, %v149_v15  ;;  %v152_v20 = vsel %vm119_vm1, %v149_v15, %v151_v18  ;;  %v8908_v29 = vpack.i.bf16 %v480_v23, %v478_v40  ;;  %v320_v10 = vsel %vm281_vm0, %v317_v1, %v319_v36 }
  0x4b   :  { %1376 = vmatpush.bf16.msra.mxu1 %v7105_v33  ;;  %v8898_v28 = vpack.i.bf16 %v152_v20, %v150_v59  ;;  %v633_v33 = vrot.slane %v9703_v35, 4  ;;  %v8918_v43 = vpack.i.bf16 %v322_v42, %v320_v10  ;;  %v154_v11 = vsel %vm119_vm1, %v151_v18, %v153_v58 }
  0x4c   :  { %1465 = vmatpush.bf16.msra.mxu2 %v7169_v63  ;;  %v156_v41 = vsel %vm119_vm1, %v153_v58, %v155_v60 }
  0x4d   :  { %8899 = vrot.lane.b32.xlu2 %v8898_v28, %s9354_s21  ;;  %v634_v46 = vsel %vm605_vm3, %v631_v32, %v633_v33  ;;  %v8913_v15 = vpack.i.bf16 %v156_v41, %v154_v11  ;;  %v9995_v28 = vld [vmem:[%s14142_s30 + $0xa8] sm:$0xff]  ;;  %v157_v41 = vrot.slane %v9947_v30, 1 }
  0x4e   :  { %v9965_v48 = vpack.c.bf16 %v634_v46, %v632_v44  ;;  %v323_v44 = vrot.slane %v9995_v28, 2 }
  0x50   :  { %8904 = vrot.lane.b32.xlu0 %v8903_v13, %s14145_s1  ;;  %14148 = vst [vmem:[#allocation6_spill] sm:$0xff] %v9965_v48  ;;  %v637_v13 = vrot.slane %v9823_v56, 4 }
  0x51   :  { %8909 = vrot.lane.b32.xlu1 %v8908_v29, %s9355_s23  ;;  %v10000_v29 = vld [vmem:[%s14142_s30 + $0xb0] sm:$0xff] }
  0x52   :  { %v638_v10 = vsel %vm605_vm3, %v635_v57, %v637_v13  ;;  %v325_v46 = vrot.slane %v10000_v29, 2 }
  0x53   :  { %7281 = vmatmul.msk.bf16.gmra.mxu3 %vm703_vm4, %v9738_v61 }
  0x55   :  { %8914 = vrot.lane.b32.xlu2 %v8913_v15, %s9354_s21  ;;  %v641_v15 = vrot.slane %v9917_v51, 4 }
  0x58   :  { %8919 = vrot.lane.b32.xlu0 %v8918_v43, %s14145_s1 }
  0x63   :  { %7282 = vmatmul.msk.bf16.gmra.mxu3 %vm703_vm4, %v9859_v22 }
  0x6f   :  { %v9963_v47 = vpop.permute.xlu2 %8804 }
  0x73   :  { %7283 = vmatmul.msk.bf16.gmra.mxu3 %vm703_vm4, %v9929_v14 }
  0x82   :  { %v8785_v35 = vpop.permute.xlu0 %8784 }
  0x83   :  { %v8795_v12 = vpop.permute.xlu1 %8794  ;;  %v8787_v49 = vunpack.i.h.bf16 %v8785_v35  ;;  %v8786_v53 = vunpack.i.l.bf16 %v8785_v35  ;;  %7284 = vmatmul.msk.bf16.gmra.mxu3 %vm703_vm4, %v9965_v48 }
  0x84   :  { %v8797_v55 = vunpack.i.h.bf16 %v8795_v12  ;;  %v8796_v17 = vunpack.i.l.bf16 %v8795_v12 }
  0x86   :  { %v704_v21 = vsel %vm703_vm4, %v9460_v2, %v8796_v17  ;;  %v705_v63 = vsel %vm703_vm4, %v9465_v4, %v8797_v55  ;;  %v737_v0 = vsel %vm736_vm5, %v8796_v17, %v8786_v53  ;;  %v738_v1 = vsel %vm736_vm5, %v8797_v55, %v8787_v49  ;;  %v8810_v4 = vpop.permute.xlu2 %8809 }
  0x87   :  { %v9978_v3 = vpack.c.bf16 %v705_v63, %v704_v21  ;;  %v9980_v9 = vpack.c.bf16 %v738_v1, %v737_v0  ;;  %v481_v2 = vrot.slane %v9947_v30, 3  ;;  %v8812_v42 = vunpack.i.h.bf16 %v8810_v4 }
  0x88   :  { %v8811_v43 = vunpack.i.l.bf16 %v8810_v4  ;;  %v8807_v4 = vunpack.i.h.bf16 %v9963_v47 }
  0x89   :  { %1288 = vmatmul.bf16.vlgmr.msra.gmra.mxu0 %v9978_v3  ;;  %1377 = vmatmul.bf16.vlgmr.msra.gmra.mxu1 %v9980_v9  ;;  %v482_v59 = vsel %vm443_vm2, %v479_v19, %v481_v2  ;;  %v484_v18 = vsel %vm443_vm2, %v481_v2, %v483_v54  ;;  %v636_v19 = vsel %vm605_vm3, %v633_v33, %v635_v57  ;;  %v159_v2 = vrot.slane %v9952_v31, 1 }
  0x8a   :  { %v8790_v20 = vpop.permute.xlu0 %8789  ;;  %v8923_v23 = vpack.i.bf16 %v484_v18, %v482_v59  ;;  %v324_v33 = vsel %vm281_vm0, %v321_v37, %v323_v44  ;;  %v326_v57 = vsel %vm281_vm0, %v323_v44, %v325_v46  ;;  %v10014_v21 = vpack.c.bf16 %v638_v10, %v636_v19  ;;  %v10055_v44 = vld [vmem:[%s14142_s30 + $0xc0] sm:$0xff] }
  0x8b   :  { %v8800_v40 = vpop.permute.xlu1 %8799  ;;  %v8792_v32 = vunpack.i.h.bf16 %v8790_v20  ;;  %v8791_v36 = vunpack.i.l.bf16 %v8790_v20  ;;  %v8933_v63 = vpack.i.bf16 %v326_v57, %v324_v33  ;;  %v706_v0 = vsel %vm703_vm4, %v9470_v5, %v8811_v43 }
  0x8c   :  { %8924 = vrot.lane.b32.xlu1 %v8923_v23, %s9355_s23  ;;  %v8802_v55 = vunpack.i.h.bf16 %v8800_v40  ;;  %v8801_v17 = vunpack.i.l.bf16 %v8800_v40  ;;  %14149 = vst [vmem:[#allocation7_spill] sm:$0xff] %v10014_v21  ;;  %v639_v5 = vrot.slane %v9912_v62, 4  ;;  %v8806_v59 = vunpack.i.l.bf16 %v9963_v47 }
  0x8d   :  { %v770_v35 = vsel %vm769_vm6, %v8786_v53, %v8791_v36  ;;  %v771_v12 = vsel %vm769_vm6, %v8787_v49, %v8792_v32  ;;  %v707_v53 = vsel %vm703_vm4, %v9501_v25, %v8812_v42  ;;  %8934 = vrot.lane.b32.xlu0 %v8933_v63, %s14145_s1  ;;  %v158_v25 = vsel %vm119_vm1, %v155_v60, %v157_v41 }
  0x8e   :  { %v10009_v58 = vpack.c.bf16 %v771_v12, %v770_v35  ;;  %v739_v49 = vsel %vm736_vm5, %v8811_v43, %v8801_v17  ;;  %v740_v1 = vsel %vm736_vm5, %v8812_v42, %v8802_v55  ;;  %v10025_v37 = vpack.c.bf16 %v707_v53, %v706_v0  ;;  %v8825_v40 = vpop.permute.xlu2 %8824  ;;  %v10050_v43 = vld [vmem:[%s14142_s30 + $0xb8] sm:$0xff] }
  0x8f   :  { %v10027_v11 = vpack.c.bf16 %v740_v1, %v739_v49  ;;  %v485_v18 = vrot.slane %v9995_v28, 3  ;;  %v487_v20 = vrot.slane %v10000_v29, 3  ;;  %v160_v23 = vsel %vm119_vm1, %v157_v41, %v159_v2 }
  0x90   :  { %1466 = vmatmul.bf16.vlgmr.msra.gmra.mxu2 %v10009_v58  ;;  %v8928_v36 = vpack.i.bf16 %v160_v23, %v158_v25  ;;  %v640_v10 = vsel %vm605_vm3, %v637_v13, %v639_v5  ;;  %v642_v47 = vsel %vm605_vm3, %v639_v5, %v641_v15  ;;  %v773_v35 = vsel %vm769_vm6, %v8802_v55, %v8807_v4 }
  0x91   :  { %v486_v60 = vsel %vm443_vm2, %v483_v54, %v485_v18  ;;  %v488_v19 = vsel %vm443_vm2, %v485_v18, %v487_v20  ;;  %v772_v54 = vsel %vm769_vm6, %v8801_v17, %v8806_v59  ;;  %v8827_v13 = vunpack.i.h.bf16 %v8825_v40 }
  0x92   :  { %v8815_v32 = vpop.permute.xlu0 %8814  ;;  %v8938_v42 = vpack.i.bf16 %v488_v19, %v486_v60  ;;  %v8826_v12 = vunpack.i.l.bf16 %v8825_v40  ;;  %8929 = vrot.lane.b32.xlu2 %v8928_v36, %s9354_s21  ;;  %v327_v63 = vrot.slane %v10050_v43, 2  ;;  %v329_v0 = vrot.slane %v10055_v44, 2 }
  0x93   :  { %7285 = vmatmul.msk.bf16.gmra.mxu3 %vm703_vm4, %v10014_v21  ;;  %v8817_v33 = vunpack.i.h.bf16 %v8815_v32  ;;  %v8816_v57 = vunpack.i.l.bf16 %v8815_v32  ;;  %v10063_v53 = vpack.c.bf16 %v773_v35, %v772_v54  ;;  %v10067_v1 = vpack.c.bf16 %v642_v47, %v640_v10 }
  0x94   :  { %8939 = vrot.lane.b32.xlu1 %v8938_v42, %s9355_s23  ;;  %v328_v49 = vsel %vm281_vm0, %v325_v46, %v327_v63  ;;  %v330_v17 = vsel %vm281_vm0, %v327_v63, %v329_v0  ;;  %v708_v41 = vsel %vm703_vm4, %v9506_v26, %v8826_v12  ;;  %v709_v5 = vsel %vm703_vm4, %v9527_v38, %v8827_v13  ;;  %v8820_v46 = vpop.permute.xlu1 %8819 }
  0x95   :  { %14150 = vst [vmem:[#allocation8_spill] sm:$0xff] %v10067_v1  ;;  %v8948_v55 = vpack.i.bf16 %v330_v17, %v328_v49  ;;  %v741_v25 = vsel %vm736_vm5, %v8826_v12, %v8816_v57  ;;  %v742_v4 = vsel %vm736_vm5, %v8827_v13, %v8817_v33  ;;  %v10077_v59 = vpack.c.bf16 %v709_v5, %v708_v41  ;;  %v10104_v17 = vld [vmem:[%s14142_s30 + $0xc8] sm:$0xff] }
  0x96   :  { %v10079_v18 = vpack.c.bf16 %v742_v4, %v741_v25  ;;  %v161_v40 = vrot.slane %v9995_v28, 1  ;;  %v163_v26 = vrot.slane %v10000_v29, 1  ;;  %v489_v38 = vrot.slane %v10050_v43, 3  ;;  %v8840_v49 = vpop.permute.xlu2 %8839 }
  0x97   :  { %8949 = vrot.lane.b32.xlu0 %v8948_v55, %s14145_s1  ;;  %v491_v23 = vrot.slane %v10055_v44, 3  ;;  %v8822_v32 = vunpack.i.h.bf16 %v8820_v46  ;;  %v8821_v36 = vunpack.i.l.bf16 %v8820_v46  ;;  %v643_v54 = vrot.slane %v9947_v30, 4  ;;  %v10109_v55 = vld [vmem:[%s14142_s30 + $0xd0] sm:$0xff] }
  0x98   :  { %14151 = vst [vmem:[#allocation9_spill] sm:$0xff] %v10079_v18  ;;  %v162_v60 = vsel %vm119_vm1, %v159_v2, %v161_v40  ;;  %v164_v19 = vsel %vm119_vm1, %v161_v40, %v163_v26  ;;  %v490_v10 = vsel %vm443_vm2, %v487_v20, %v489_v38  ;;  %v645_v12 = vrot.slane %v9952_v31, 4 }
  0x99   :  { %1293 = vmatmul.bf16.gmra.mxu0 %v10025_v37  ;;  %1382 = vmatmul.bf16.gmra.mxu1 %v10027_v11  ;;  %v492_v47 = vsel %vm443_vm2, %v489_v38, %v491_v23  ;;  %v8943_v35 = vpack.i.bf16 %v164_v19, %v162_v60  ;;  %v774_v2 = vsel %vm769_vm6, %v8816_v57, %v8821_v36  ;;  %v331_v57 = vrot.slane %v10104_v17, 2 }
  0x9a   :  { %v8953_v13 = vpack.i.bf16 %v492_v47, %v490_v10  ;;  %v775_v63 = vsel %vm769_vm6, %v8817_v33, %v8822_v32  ;;  %v8830_v20 = vpop.permute.xlu0 %8829  ;;  %v644_v33 = vsel %vm605_vm3, %v641_v15, %v643_v54  ;;  %v333_v41 = vrot.slane %v10109_v55, 2 }
  0x9b   :  { %8944 = vrot.lane.b32.xlu2 %v8943_v35, %s9354_s21  ;;  %v10116_v5 = vpack.c.bf16 %v775_v63, %v774_v2  ;;  %v8842_v25 = vunpack.i.h.bf16 %v8840_v49  ;;  %v8841_v4 = vunpack.i.l.bf16 %v8840_v49  ;;  %v646_v46 = vsel %vm605_vm3, %v643_v54, %v645_v12 }
  0x9c   :  { %8954 = vrot.lane.b32.xlu1 %v8953_v13, %s9355_s23  ;;  %v8832_v40 = vunpack.i.h.bf16 %v8830_v20  ;;  %v8831_v38 = vunpack.i.l.bf16 %v8830_v20  ;;  %v332_v32 = vsel %vm281_vm0, %v329_v0, %v331_v57  ;;  %v334_v36 = vsel %vm281_vm0, %v331_v57, %v333_v41  ;;  %v8835_v35 = vpop.permute.xlu1 %8834 }
  0x9d   :  { %14152 = vst [vmem:[#allocation10_spill] sm:$0xff] %v10116_v5  ;;  %v8963_v60 = vpack.i.bf16 %v334_v36, %v332_v32  ;;  %v10126_v19 = vpack.c.bf16 %v646_v46, %v644_v33  ;;  %v710_v10 = vsel %vm703_vm4, %v9532_v39, %v8841_v4  ;;  %v711_v47 = vsel %vm703_vm4, %v9572_v6, %v8842_v25 }
  0x9e   :  { %v743_v54 = vsel %vm736_vm5, %v8841_v4, %v8831_v38  ;;  %v744_v0 = vsel %vm736_vm5, %v8842_v25, %v8832_v40  ;;  %v165_v13 = vrot.slane %v10050_v43, 1  ;;  %v167_v2 = vrot.slane %v10055_v44, 1 }
  0x9f   :  { %14153 = vst [vmem:[#allocation11_spill] sm:$0xff] %v10126_v19  ;;  %8964 = vrot.lane.b32.xlu0 %v8963_v60, %s14145_s1  ;;  %v493_v63 = vrot.slane %v10104_v17, 3  ;;  %v495_v49 = vrot.slane %v10109_v55, 3  ;;  %v10141_v39 = vpack.c.bf16 %v711_v47, %v710_v10  ;;  %v10143_v20 = vpack.c.bf16 %v744_v0, %v743_v54  ;;  %v8855_v0 = vpop.permute.xlu2 %8854 }
  0xa0   :  { %1471 = vmatmul.bf16.gmra.mxu2 %v10063_v53  ;;  %v8837_v6 = vunpack.i.h.bf16 %v8835_v35  ;;  %v8836_v33 = vunpack.i.l.bf16 %v8835_v35  ;;  %v166_v57 = vsel %vm119_vm1, %v163_v26, %v165_v13  ;;  %v168_v25 = vsel %vm119_vm1, %v165_v13, %v167_v2  ;;  %v10162_v35 = vld [vmem:[%s14142_s30 + $0xd8] sm:$0xff] }
  0xa1   :  { %14154 = vst [vmem:[#allocation12_spill] sm:$0xff] %v10143_v20  ;;  %v494_v4 = vsel %vm443_vm2, %v491_v23, %v493_v63  ;;  %v496_v46 = vsel %vm443_vm2, %v493_v63, %v495_v49  ;;  %v8958_v32 = vpack.i.bf16 %v168_v25, %v166_v57  ;;  %v647_v26 = vrot.slane %v9995_v28, 4 }
  0xa2   :  { %v8968_v36 = vpack.i.bf16 %v496_v46, %v494_v4  ;;  %v776_v10 = vsel %vm769_vm6, %v8831_v38, %v8836_v33  ;;  %v777_v47 = vsel %vm769_vm6, %v8832_v40, %v8837_v6  ;;  %v14046_v54 = vrot.slane %v10000_v29, 4  ;;  %v8845_v23 = vpop.permute.xlu0 %8844  ;;  %v10167_v38 = vld [vmem:[%s14142_s30 + $0xe0] sm:$0xff] }
  0xa3   :  { %7286 = vmatmul.msk.bf16.gmra.mxu3 %vm703_vm4, %v10067_v1  ;;  %8959 = vrot.lane.b32.xlu2 %v8958_v32, %s9354_s21  ;;  %v10169_v40 = vpack.c.bf16 %v777_v47, %v776_v10  ;;  %v335_v13 = vrot.slane %v10162_v35, 2  ;;  %v337_v63 = vrot.slane %v10167_v38, 2  ;;  %v8857_v6 = vunpack.i.h.bf16 %v8855_v0 }
  0xa4   :  { %8969 = vrot.lane.b32.xlu1 %v8968_v36, %s9355_s23  ;;  %v8856_v33 = vunpack.i.l.bf16 %v8855_v0  ;;  %v648_v57 = vsel %vm605_vm3, %v645_v12, %v647_v26  ;;  %v650_v25 = vsel %vm605_vm3, %v647_v26, %v14046_v54  ;;  %v8847_v4 = vunpack.i.h.bf16 %v8845_v23 }
  0xa5   :  { %14155 = vst [vmem:[#allocation13_spill] sm:$0xff] %v10169_v40  ;;  %v8846_v46 = vunpack.i.l.bf16 %v8845_v23  ;;  %v336_v32 = vsel %vm281_vm0, %v333_v41, %v335_v13  ;;  %v338_v36 = vsel %vm281_vm0, %v335_v13, %v337_v63  ;;  %v10184_v0 = vpack.c.bf16 %v650_v25, %v648_v57 }
  0xa6   :  { %v10091_v42 = vpop.f32.mrf.mxu3  ;;  %v8978_v10 = vpack.i.bf16 %v338_v36, %v336_v32  ;;  %v712_v12 = vsel %vm703_vm4, %v9577_v7, %v8856_v33  ;;  %v713_v26 = vsel %vm703_vm4, %v9599_v24, %v8857_v6  ;;  %v746_v23 = vsel %vm736_vm5, %v8857_v6, %v8847_v4 }
  0xa7   :  { %14156 = vst [vmem:[#allocation14_spill] sm:$0xff] %v10184_v0  ;;  %v745_v41 = vsel %vm736_vm5, %v8856_v33, %v8846_v46  ;;  %v169_v36 = vrot.slane %v10104_v17, 1  ;;  %v171_v54 = vrot.slane %v10109_v55, 1  ;;  %v497_v57 = vrot.slane %v10162_v35, 3 }
  0xa8   :  { %8979 = vrot.lane.b32.xlu0 %v8978_v10, %s14145_s1  ;;  %v499_v25 = vrot.slane %v10167_v38, 3  ;;  %v10199_v7 = vpack.c.bf16 %v713_v26, %v712_v12  ;;  %v10201_v24 = vpack.c.bf16 %v746_v23, %v745_v41  ;;  %v8870_v12 = vpop.permute.xlu2 %8869  ;;  %v651_v26 = vrot.slane %v10050_v43, 4 }
  0xa9   :  { %1298 = vmatmul.bf16.gmra.mxu0 %v10077_v59  ;;  %1387 = vmatmul.bf16.gmra.mxu1 %v10079_v18  ;;  %v170_v33 = vsel %vm119_vm1, %v167_v2, %v169_v36  ;;  %v172_v6 = vsel %vm119_vm1, %v169_v36, %v171_v54  ;;  %v8871_v23 = vunpack.i.l.bf16 %v8870_v12  ;;  %v8872_v36 = vunpack.i.h.bf16 %v8870_v12 }
  0xaa   :  { %14157 = vst [vmem:[#allocation15_spill] sm:$0xff] %v10201_v24  ;;  %v500_v10 = vsel %vm443_vm2, %v497_v57, %v499_v25  ;;  %v8973_v1 = vpack.i.bf16 %v172_v6, %v170_v33  ;;  %v8860_v2 = vpop.permute.xlu0 %8859 }
  0xab   :  { %v715_v12 = vsel %vm703_vm4, %v9633_v50, %v8872_v36 }
  0xac   :  { %8974 = vrot.lane.b32.xlu2 %v8973_v1, %s9354_s21 }
  0xae   :  { %v10123_v15 = vpop.f32.mrf.mxu3 }
  0xb0   :  { %1476 = vmatmul.bf16.gmra.mxu2 %v10116_v5 }
  0xb3   :  { %7287 = vmatmul.msk.bf16.gmra.mxu3 %vm703_vm4, %v10126_v19  ;;  %v8850_v19 = vpop.permute.xlu1 %8849 }
  0xb4   :  { %v8852_v13 = vunpack.i.h.bf16 %v8850_v19  ;;  %v8851_v32 = vunpack.i.l.bf16 %v8850_v19  ;;  %v498_v19 = vsel %vm443_vm2, %v495_v49, %v497_v57  ;;  %v653_v49 = vrot.slane %v10055_v44, 4 }
  0xb5   :  { %v8983_v21 = vpack.i.bf16 %v500_v10, %v498_v19 }
  0xb6   :  { %v10149_v60 = vpop.f32.mrf.mxu3  ;;  %v778_v14 = vsel %vm769_vm6, %v8846_v46, %v8851_v32  ;;  %v10227_v46 = vld [vmem:[%s14142_s30 + $0xf0] sm:$0xff]  ;;  %v654_v57 = vsel %vm605_vm3, %v651_v26, %v653_v49 }
  0xb7   :  { %8984 = vrot.lane.b32.xlu1 %v8983_v21, %s9355_s23  ;;  %v341_v1 = vrot.slane %v10227_v46, 2  ;;  %v8861_v21 = vunpack.i.l.bf16 %v8860_v2 }
  0xb9   :  { %1303 = vmatmul.bf16.gmra.mxu0 %v10141_v39  ;;  %1392 = vmatmul.bf16.gmra.mxu1 %v10143_v20 }
  0xbe   :  { %v10181_v47 = vpop.f32.mrf.mxu3 }
  0xc0   :  { %1481 = vmatmul.bf16.gmra.mxu2 %v10169_v40  ;;  %v14166_v40 = vmov 0.0  }
  0xc1   :  { %v507_v20 = vrot.slane %v14166_v40, 3 }
  0xc3   :  { %7288 = vmatmul.msk.bf16.gmra.mxu3 %vm703_vm4, %v10184_v0  ;;  %v779_v0 = vsel %vm769_vm6, %v8847_v4, %v8852_v13  ;;  %v10222_v4 = vld [vmem:[%s14142_s30 + $0xe8] sm:$0xff]  ;;  %v8862_v13 = vunpack.i.h.bf16 %v8860_v2  ;;  %v747_v2 = vsel %vm736_vm5, %v8871_v23, %v8861_v21 }
  0xc4   :  { %v10217_v41 = vpack.c.bf16 %v779_v0, %v778_v14  ;;  %v339_v32 = vrot.slane %v10222_v4, 2  ;;  %v14159_v14 = vrot.slane %v10000_v29, 4 }
  0xc6   :  { %v10207_v48 = vpop.f32.mrf.mxu3  ;;  %14158 = vst [vmem:[#allocation16_spill] sm:$0xff] %v10217_v41  ;;  %v652_v0 = vsel %vm605_vm3, %v14159_v14, %v651_v26  ;;  %v340_v33 = vsel %vm281_vm0, %v337_v63, %v339_v32  ;;  %v342_v6 = vsel %vm281_vm0, %v339_v32, %v341_v1  ;;  %v748_v26 = vsel %vm736_vm5, %v8872_v36, %v8862_v13  ;;  %v8865_v63 = vpop.permute.xlu1 %8864 }
  0xc7   :  { %v8993_v19 = vpack.i.bf16 %v342_v6, %v340_v33  ;;  %v10239_v22 = vpack.c.bf16 %v654_v57, %v652_v0  ;;  %v10251_v14 = vpack.c.bf16 %v748_v26, %v747_v2  ;;  %v173_v0 = vrot.slane %v10162_v35, 1 }
  0xc8   :  { %v8867_v57 = vunpack.i.h.bf16 %v8865_v63  ;;  %v8866_v50 = vunpack.i.l.bf16 %v8865_v63  ;;  %v503_v36 = vrot.slane %v10227_v46, 3 }
  0xc9   :  { %1308 = vmatmul.bf16.gmra.mxu0 %v10199_v7  ;;  %1397 = vmatmul.bf16.gmra.mxu1 %v10201_v24  ;;  %14160 = vst [vmem:[#allocation17_spill] sm:$0xff] %v10239_v22  ;;  %v714_v24 = vsel %vm703_vm4, %v9604_v27, %v8871_v23  ;;  %v175_v27 = vrot.slane %v10167_v38, 1  ;;  %v501_v23 = vrot.slane %v10222_v4, 3  ;;  %v174_v33 = vsel %vm119_vm1, %v171_v54, %v173_v0 }
  0xca   :  { %8994 = vrot.lane.b32.xlu0 %v8993_v19, %s14145_s1  ;;  %v10249_v32 = vpack.c.bf16 %v715_v12, %v714_v24  ;;  %14161 = vst [vmem:[#allocation18_spill] sm:$0xff] %v10251_v14  ;;  %v780_v63 = vsel %vm769_vm6, %v8861_v21, %v8866_v50  ;;  %v655_v54 = vrot.slane %v10104_v17, 4 }
  0xcb   :  { %v176_v24 = vsel %vm119_vm1, %v173_v0, %v175_v27  ;;  %v502_v19 = vsel %vm443_vm2, %v499_v25, %v501_v23  ;;  %v504_v12 = vsel %vm443_vm2, %v501_v23, %v503_v36  ;;  %v14060_v0 = vrot.slane %v10109_v55, 4  ;;  %v8885_v25 = vpop.permute.xlu2 %8884  ;;  %v10276_v23 = vld [vmem:[%s14142_s30 + $0xf8] sm:$0xff] }
  0xcc   :  { %v8988_v6 = vpack.i.bf16 %v176_v24, %v174_v33  ;;  %v8998_v26 = vpack.i.bf16 %v504_v12, %v502_v19  ;;  %v8875_v33 = vpop.permute.xlu0 %8874  ;;  %v343_v21 = vrot.slane %v10276_v23, 2 }
  0xcd   :  { %v8877_v50 = vunpack.i.h.bf16 %v8875_v33  ;;  %v8876_v19 = vunpack.i.l.bf16 %v8875_v33  ;;  %v658_v12 = vsel %vm605_vm3, %v655_v54, %v14060_v0 }
  0xce   :  { %v10237_v10 = vpop.f32.mrf.mxu3  ;;  %8989 = vrot.lane.b32.xlu2 %v8988_v6, %s9354_s21  ;;  %8999 = vrot.lane.b32.xlu1 %v8998_v26, %s9355_s23  ;;  %v656_v6 = vsel %vm605_vm3, %v653_v49, %v655_v54  ;;  %v8887_v26 = vunpack.i.h.bf16 %v8885_v25  ;;  %v9346_v49 = vld [vmem:[%s14142_s30 + $0x60] sm:$0xff] }
  0xd0   :  { %1486 = vmatmul.bf16.gmra.mxu2 %v10217_v41  ;;  %v344_v41 = vsel %vm281_vm0, %v341_v1, %v343_v21  ;;  %v717_v1 = vsel %vm703_vm4, %v9698_v34, %v8887_v26  ;;  %v505_v34 = vrot.slane %v10276_v23, 3 }
  0xd3   :  { %7289 = vmatmul.msk.bf16.gmra.mxu3 %vm703_vm4, %v10239_v22  ;;  %v781_v22 = vsel %vm769_vm6, %v8862_v13, %v8867_v57  ;;  %v14058_v13 = vmov 0.0  }
  0xd4   :  { %v10278_v24 = vpack.c.bf16 %v781_v22, %v780_v63  ;;  %v10282_v57 = vrot.slane %v14058_v13, 2  ;;  %v10294_v13 = vpack.c.bf16 %v658_v12, %v656_v6  ;;  %v7098_v6 = vld [vmem:[%s14141_s26 + $0x78] sm:$0xf0] }
  0xd6   :  { %v10263_v2 = vpop.f32.mrf.mxu3  ;;  %14162 = vst [vmem:[#allocation19_spill] sm:$0xff] %v10278_v24  ;;  %v346_v22 = vsel %vm281_vm0, %v343_v21, %v10282_v57  ;;  %v8496_v21 = vld [vmem:[%s14141_s26 + $0x74] sm:$0xf] }
  0xd7   :  { %14163 = vst [vmem:[#allocation20_spill] sm:$0xff] %v10282_v57  ;;  %v9008_v63 = vpack.i.bf16 %v346_v22, %v344_v41  ;;  %v750_v41 = vsel %vm736_vm5, %v8887_v26, %v8877_v50  ;;  %v7101_v12 = vor.u32 %v8496_v21, %v7098_v6  ;;  %v177_v22 = vrot.slane %v10222_v4, 1 }
  0xd8   :  { %14164 = vst [vmem:[#allocation21_spill] sm:$0xff] %v10294_v13 }
  0xd9   :  { %1313 = vmatmul.bf16.gmra.mxu0 %v10249_v32  ;;  %1402 = vmatmul.bf16.gmra.mxu1 %v10251_v14  ;;  %v8886_v14 = vunpack.i.l.bf16 %v8885_v25  ;;  %v8880_v25 = vpop.permute.xlu1 %8879  ;;  %v178_v57 = vsel %vm119_vm1, %v175_v27, %v177_v22 }
  0xda   :  { %9009 = vrot.lane.b32.xlu0 %v9008_v63, %s14145_s1  ;;  %v14066_v63 = vrot.slane %v10227_v46, 1  ;;  %v8881_v0 = vunpack.i.l.bf16 %v8880_v25  ;;  %1636 = vmatpush.bf16.msrb.mxu3 %v7101_v12 }
  0xdb   :  { %v716_v54 = vsel %vm703_vm4, %v9346_v49, %v8886_v14  ;;  %v749_v33 = vsel %vm736_vm5, %v8886_v14, %v8876_v19  ;;  %v8882_v49 = vunpack.i.h.bf16 %v8880_v25 }
  0xdc   :  { %v10316_v14 = vpack.c.bf16 %v717_v1, %v716_v54  ;;  %v10318_v26 = vpack.c.bf16 %v750_v41, %v749_v33  ;;  %v180_v21 = vsel %vm119_vm1, %v177_v22, %v14066_v63  ;;  %v8494_v54 = vld [vmem:[%s14141_s26 + $0x64] sm:$0xf]  ;;  %v7090_v1 = vld [vmem:[%s14141_s26 + $0x68] sm:$0xf0]  ;;  %v508_v41 = vsel %vm443_vm2, %v505_v34, %v507_v20  ;;  %v7082_v63 = vld [vmem:[%s14141_s26 + $0x58] sm:$0xf0] }
  0xdd   :  { %v9003_v6 = vpack.i.bf16 %v180_v21, %v178_v57  ;;  %v7093_v27 = vor.u32 %v8494_v54, %v7090_v1  ;;  %v659_v57 = vrot.slane %v10162_v35, 4  ;;  %v782_v25 = vsel %vm769_vm6, %v8876_v19, %v8881_v0  ;;  %v8900_v21 = vpop.permute.xlu2 %8899  ;;  %v8890_v54 = vpop.permute.xlu0 %8889  ;;  %v8492_v1 = vld [vmem:[%s14141_s26 + $0x54] sm:$0xf] }
  0xde   :  { %v10291_v61 = vpop.f32.mrf.mxu3  ;;  %14165 = vst [vmem:[#allocation22_spill] sm:$0xff] %v10318_v26  ;;  %v783_v12 = vsel %vm769_vm6, %v8877_v50, %v8882_v49  ;;  %v7085_v20 = vor.u32 %v8492_v1, %v7082_v63  ;;  %v14168_v50 = vrot.slane %v10109_v55, 4  ;;  %v8901_v49 = vunpack.i.l.bf16 %v8900_v21  ;;  %v7074_v63 = vld [vmem:[%s14141_s26 + $0x48] sm:$0xf0] }
  0xdf   :  { %9004 = vrot.lane.b32.xlu2 %v9003_v6, %s9354_s21  ;;  %1637 = vmatpush.bf16.msrb.mxu3 %v7093_v27  ;;  %v10349_v0 = vpack.c.bf16 %v783_v12, %v782_v25  ;;  %v8892_v6 = vunpack.i.h.bf16 %v8890_v54  ;;  %v8891_v27 = vunpack.i.l.bf16 %v8890_v54 }
  0xe0   :  { %1491 = vmatmul.bf16.gmra.mxu2 %v10278_v24  ;;  %v506_v24 = vsel %vm443_vm2, %v503_v36, %v505_v34  ;;  %v14067_v36 = vrot.slane %v10167_v38, 4  ;;  %v8902_v34 = vunpack.i.h.bf16 %v8900_v21 }
  0xe1   :  { %v9013_v22 = vpack.i.bf16 %v508_v41, %v506_v24  ;;  %14167 = vst [vmem:[#allocation23_spill] sm:$0xff] %v10349_v0  ;;  %v660_v24 = vsel %vm605_vm3, %v14168_v50, %v659_v57  ;;  %v8490_v41 = vld [vmem:[%s14141_s26 + $0x44] sm:$0xf]  ;;  %v751_v1 = vsel %vm736_vm5, %v8901_v49, %v8891_v27  ;;  %v8895_v50 = vpop.permute.xlu1 %8894 }
  0xe2   :  { %v662_v19 = vsel %vm605_vm3, %v659_v57, %v14067_v36  ;;  %v7077_v12 = vor.u32 %v8490_v41, %v7074_v63  ;;  %v9347_v57 = vld [vmem:[%s14142_s30 + $0x70] sm:$0xff]  ;;  %v719_v54 = vsel %vm703_vm4, %v9815_v52, %v8902_v34  ;;  %v181_v63 = vrot.slane %v10276_v23, 1 }
  0xe3   :  { %7290 = vmatmul.msk.bf16.gmra.mxu3 %vm703_vm4, %v10294_v13  ;;  %9014 = vrot.lane.b32.xlu1 %v9013_v22, %s9355_s23  ;;  %v10366_v22 = vpack.c.bf16 %v662_v19, %v660_v24  ;;  %v718_v21 = vsel %vm703_vm4, %v9347_v57, %v8901_v49  ;;  %v8488_v24 = vld [vmem:[%s14141_s26 + $0x34] sm:$0xf]  ;;  %v7066_v19 = vld [vmem:[%s14141_s26 + $0x38] sm:$0xf0]  ;;  %v10384_v57 = vrot.slane %v14166_v40, 1  ;;  %v8897_v49 = vunpack.i.h.bf16 %v8895_v50 }
  0xe4   :  { %1638 = vmatpush.bf16.msrb.mxu3 %v7085_v20  ;;  %v752_v20 = vsel %vm736_vm5, %v8902_v34, %v8892_v6  ;;  %v7069_v41 = vor.u32 %v8488_v24, %v7066_v19  ;;  %v10388_v52 = vpack.c.bf16 %v719_v54, %v718_v21  ;;  %v14172_v36 = vrot.slane %v10227_v46, 1  ;;  %v7058_v21 = vld [vmem:[%s14141_s26 + $0x28] sm:$0xf0] }
  0xe5   :  { %14169 = vst [vmem:[#allocation24_spill] sm:$0xff] %v10366_v22  ;;  %v10390_v34 = vpack.c.bf16 %v752_v20, %v751_v1  ;;  %v184_v24 = vsel %vm119_vm1, %v181_v63, %v10384_v57  ;;  %v665_v20 = vrot.slane %v10227_v46, 4  ;;  %v14174_v46 = vrot.slane %v10167_v38, 4  ;;  %v926_v38 = vld [vmem:[%s14025_s2] sm:$0x3] }
  0xe6   :  { %v10332_v33 = vpop.f32.mrf.mxu3  ;;  %14170 = vst [vmem:[#allocation25_spill] sm:$0xff] %v10384_v57  ;;  %v182_v13 = vsel %vm119_vm1, %v14172_v36, %v181_v63  ;;  %v663_v36 = vrot.slane %v10222_v4, 4  ;;  %v8905_v63 = vpop.permute.xlu0 %8904 }
  0xe7   :  { %14171 = vst [vmem:[#allocation26_spill] sm:$0xff] %v10390_v34  ;;  %v9018_v19 = vpack.i.bf16 %v184_v24, %v182_v13  ;;  %v7050_v24 = vld [vmem:[%s14141_s26 + $0x18] sm:$0xf0] }
  0xe8   :  { %1639 = vmatpush.bf16.msrb.mxu3 %v7077_v12  ;;  %v8896_v12 = vunpack.i.l.bf16 %v8895_v50  ;;  %v785_v50 = vsel %vm769_vm6, %v8892_v6, %v8897_v49  ;;  %v664_v6 = vsel %vm605_vm3, %v14174_v46, %v663_v36  ;;  %v10444_v46 = vperm.slane %v926_v38, 0 }
  0xe9   :  { %1318 = vmatmul.bf16.gmra.mxu0 %v10316_v14  ;;  %1407 = vmatmul.bf16.gmra.mxu1 %v10318_v26 }
  0xea   :  { %v784_v13 = vsel %vm769_vm6, %v8891_v27, %v8896_v12  ;;  %9019 = vrot.lane.b32.xlu2 %v9018_v19, %s9354_s21  ;;  %v666_v27 = vsel %vm605_vm3, %v663_v36, %v665_v20  ;;  %v8907_v19 = vunpack.i.h.bf16 %v8905_v63 }
  0xeb   :  { %v10418_v57 = vpack.c.bf16 %v785_v50, %v784_v13  ;;  %v7042_v13 = vld [vmem:[%s14141_s26 + $0x8] sm:$0xf0] }
  0xec   :  { %1640 = vmatpush.bf16.msrb.mxu3 %v7069_v41  ;;  %v8915_v41 = vpop.permute.xlu2 %8914 }
  0xed   :  { %14173 = vst [vmem:[#allocation27_spill] sm:$0xff] %v10418_v57  ;;  %v8917_v49 = vunpack.i.h.bf16 %v8915_v41  ;;  %v8916_v12 = vunpack.i.l.bf16 %v8915_v41  ;;  %v10436_v41 = vpack.c.bf16 %v666_v27, %v664_v6 }
  0xee   :  { %v10363_v25 = vpop.f32.mrf.mxu3 }
  0xef   :  { %14175 = vst [vmem:[#allocation28_spill] sm:$0xff] %v10436_v41 }
  0xf0   :  { %1496 = vmatmul.bf16.gmra.mxu2 %v10349_v0  ;;  %v8486_v0 = vld [vmem:[%s14141_s26 + $0x24] sm:$0xf] }
  0xf1   :  { %v7061_v1 = vor.u32 %v8486_v0, %v7058_v21  ;;  %v8484_v0 = vld [vmem:[%s14141_s26 + $0x14] sm:$0xf] }
  0xf2   :  { %v7053_v21 = vor.u32 %v8484_v0, %v7050_v24  ;;  %v721_v0 = vsel %vm703_vm4, %v9912_v62, %v8917_v49 }
  0xf3   :  { %7291 = vmatmul.msk.bf16.gmra.mxu3 %vm703_vm4, %v10366_v22  ;;  %v8482_v22 = vld [vmem:[%s14141_s26 + $0x4] sm:$0xf] }
  0xf4   :  { %1641 = vmatpush.bf16.msrb.mxu3 %v7061_v1  ;;  %v8906_v1 = vunpack.i.l.bf16 %v8905_v63  ;;  %v7045_v36 = vor.u32 %v8482_v22, %v7042_v13  ;;  %v720_v63 = vsel %vm703_vm4, %v9823_v56, %v8916_v12 }
  0xf5   :  { %v10448_v22 = vpack.c.bf16 %v721_v0, %v720_v63  ;;  %v8920_v63 = vpop.permute.xlu0 %8919  ;;  %v667_v0 = vrot.slane %v10276_v23, 4 }
  0xf6   :  { %v10403_v54 = vpop.f32.mrf.mxu3  ;;  %v753_v24 = vsel %vm736_vm5, %v8916_v12, %v8906_v1 }
  0xf8   :  { %1642 = vmatpush.bf16.msrb.mxu3 %v7053_v21  ;;  %v754_v21 = vsel %vm736_vm5, %v8917_v49, %v8907_v19 }
  0xf9   :  { %1323 = vmatmul.bf16.gmra.mxu0 %v10388_v52  ;;  %1412 = vmatmul.bf16.gmra.mxu1 %v10390_v34  ;;  %v8910_v34 = vpop.permute.xlu1 %8909  ;;  %v10450_v6 = vpack.c.bf16 %v754_v21, %v753_v24  ;;  %v10461_v24 = vrot.slane %v14166_v40, 4 }
  0xfa   :  { %v8912_v13 = vunpack.i.h.bf16 %v8910_v34 }
  0xfb   :  { %14176 = vst [vmem:[#allocation29_spill] sm:$0xff] %v10450_v6 }
  0xfc   :  { %1643 = vmatpush.bf16.msrb.mxu3 %v7045_v36  ;;  %v787_v36 = vsel %vm769_vm6, %v8907_v19, %v8912_v13  ;;  %14177 = vst [vmem:[#allocation30_spill] sm:$0xff] %v10461_v24 }
  0xfe   :  { %v10430_v50 = vpop.f32.mrf.mxu3 }
 0x100   :  { %1501 = vmatmul.bf16.gmra.mxu2 %v10418_v57  ;;  %v8911_v57 = vunpack.i.l.bf16 %v8910_v34  ;;  %v8930_v34 = vpop.permute.xlu2 %8929 }
 0x101   :  { %v8932_v26 = vunpack.i.h.bf16 %v8930_v34  ;;  %v8931_v8 = vunpack.i.l.bf16 %v8930_v34 }
 0x102   :  { %v786_v38 = vsel %vm769_vm6, %v8906_v1, %v8911_v57  ;;  %v670_v57 = vsel %vm605_vm3, %v667_v0, %v10461_v24 }
 0x103   :  { %7292 = vmatmul.msk.bf16.gmra.mxu3 %vm703_vm4, %v10436_v41  ;;  %v10463_v21 = vpack.c.bf16 %v787_v36, %v786_v38  ;;  %v8921_v41 = vunpack.i.l.bf16 %v8920_v63  ;;  %v722_v36 = vsel %vm703_vm4, %v9917_v51, %v8931_v8 }
 0x105   :  { %14178 = vst [vmem:[#allocation31_spill] sm:$0xff] %v10463_v21 }
 0x106   :  { %v1289_v27 = vpop.f32.mrf.mxu0  ;;  %v1378_v56 = vpop.f32.mrf.mxu1 }
 0x107   :  { %v1290_v62 = vadd.f32 %v1289_v27, %v10444_v46  ;;  %v10453_v12 = vpop.f32.mrf.mxu3  ;;  %v8922_v27 = vunpack.i.h.bf16 %v8920_v63  ;;  %v723_v63 = vsel %vm703_vm4, %v9947_v30, %v8932_v26 }
 0x109   :  { %v1379_v49 = vadd.f32 %v1378_v56, %v1290_v62  ;;  %1328 = vmatmul.bf16.gmra.mxu0 %v10448_v22  ;;  %1417 = vmatmul.bf16.gmra.mxu1 %v10450_v6  ;;  %v668_v6 = vsel %vm605_vm3, %v665_v20, %v667_v0  ;;  %v755_v20 = vsel %vm736_vm5, %v8931_v8, %v8921_v41  ;;  %v8925_v0 = vpop.permute.xlu1 %8924 }
 0x10a   :  { %v10472_v38 = vpack.c.bf16 %v670_v57, %v668_v6  ;;  %v756_v34 = vsel %vm736_vm5, %v8932_v26, %v8922_v27  ;;  %v8927_v51 = vunpack.i.h.bf16 %v8925_v0  ;;  %v8926_v40 = vunpack.i.l.bf16 %v8925_v0 }
 0x10b   :  { %v10484_v6 = vpack.c.bf16 %v756_v34, %v755_v20 }
 0x10c   :  { %14179 = vst [vmem:[#allocation32_spill] sm:$0xff] %v10472_v38  ;;  %v788_v26 = vsel %vm769_vm6, %v8921_v41, %v8926_v40 }
 0x10d   :  { %14181 = vst [vmem:[#allocation34_spill] sm:$0xff] %v10484_v6 }
 0x10e   :  { %v1291_v56 = vpop.f32.mrf.mxu0  ;;  %v1380_v62 = vpop.f32.mrf.mxu1 }
 0x10f   :  { %v1292_v19 = vadd.f32 %v1291_v56, %v10444_v46  ;;  %v10469_v1 = vpop.f32.mrf.mxu3 }
 0x110   :  { %1506 = vmatmul.bf16.gmra.mxu2 %v10463_v21 }
 0x111   :  { %v1381_v13 = vadd.f32 %v1380_v62, %v1292_v19  ;;  %v10482_v62 = vpack.c.bf16 %v723_v63, %v722_v36  ;;  %v8935_v36 = vpop.permute.xlu0 %8934 }
 0x113   :  { %v1467_v24 = vpop.f32.mrf.mxu2  ;;  %7293 = vmatmul.msk.bf16.gmra.mxu3 %vm703_vm4, %v10472_v38  ;;  %14180 = vst [vmem:[#allocation33_spill] sm:$0xff] %v10482_v62 }
 0x114   :  { %v1468_v56 = vadd.f32 %v1467_v24, %v1379_v49  ;;  %v789_v49 = vsel %vm769_vm6, %v8922_v27, %v8927_v51  ;;  %v8945_v24 = vpop.permute.xlu2 %8944 }
 0x115   :  { %v10494_v0 = vpack.c.bf16 %v789_v49, %v788_v26  ;;  %v8947_v5 = vunpack.i.h.bf16 %v8945_v24  ;;  %v8940_v49 = vpop.permute.xlu1 %8939 }
 0x116   :  { %v1294_v57 = vpop.f32.mrf.mxu0  ;;  %v1383_v19 = vpop.f32.mrf.mxu1  ;;  %v1557_v20 = vadd.f32 %v10091_v42, %v1468_v56 }
 0x117   :  { %v1295_v30 = vadd.f32 %v1294_v57, %v10444_v46  ;;  %v10487_v21 = vpop.f32.mrf.mxu3 }
 0x118   :  { %v1992_v27 = vmax.f32 %v1557_v20, 0.0  ;;  %v8942_v20 = vunpack.i.h.bf16 %v8940_v49 }
 0x119   :  { %v1384_v8 = vadd.f32 %v1383_v19, %v1295_v30  ;;  %1333 = vmatmul.bf16.gmra.mxu0 %v10482_v62  ;;  %1422 = vmatmul.bf16.gmra.mxu1 %v10484_v6  ;;  %v8946_v19 = vunpack.i.l.bf16 %v8945_v24  ;;  %v8937_v30 = vunpack.i.h.bf16 %v8935_v36  ;;  %v8936_v62 = vunpack.i.l.bf16 %v8935_v36 }
 0x11b   :  { %v1469_v63 = vpop.f32.mrf.mxu2  ;;  %v724_v42 = vsel %vm703_vm4, %v9952_v31, %v8946_v19  ;;  %v757_v56 = vsel %vm736_vm5, %v8946_v19, %v8936_v62  ;;  %v758_v26 = vsel %vm736_vm5, %v8947_v5, %v8937_v30 }
 0x11c   :  { %v1470_v34 = vadd.f32 %v1469_v63, %v1381_v13  ;;  %v725_v13 = vsel %vm703_vm4, %v9995_v28, %v8947_v5  ;;  %v8960_v19 = vpop.permute.xlu2 %8959 }
 0x11e   :  { %v1296_v57 = vpop.f32.mrf.mxu0  ;;  %v1385_v38 = vpop.f32.mrf.mxu1  ;;  %v1559_v6 = vadd.f32 %v10123_v15, %v1470_v34  ;;  %v8941_v34 = vunpack.i.l.bf16 %v8940_v49  ;;  %v8962_v49 = vunpack.i.h.bf16 %v8960_v19 }
 0x11f   :  { %v1297_v40 = vadd.f32 %v1296_v57, %v10444_v46  ;;  %v10498_v41 = vpop.f32.mrf.mxu3 }
 0x120   :  { %v1994_v51 = vmax.f32 %v1559_v6, 0.0  ;;  %1511 = vmatmul.bf16.gmra.mxu2 %v10494_v0  ;;  %v10512_v6 = vpack.c.bf16 %v758_v26, %v757_v56 }
 0x121   :  { %v1386_v18 = vadd.f32 %v1385_v38, %v1297_v40  ;;  %v10510_v38 = vpack.c.bf16 %v725_v13, %v724_v42  ;;  %v8950_v40 = vpop.permute.xlu0 %8949 }
 0x122   :  { %v10507_v15 = vpack.c.bf16 %v1994_v51, %v1992_v27  ;;  %14182 = vst [vmem:[#allocation35_spill] sm:$0xff] %v10512_v6 }
 0x123   :  { %v1472_v24 = vpop.f32.mrf.mxu2  ;;  %1644 = vmatmul.bf16.vlgmr.msrb.gmra.mxu3 %v9978_v3  ;;  %v791_v3 = vsel %vm769_vm6, %v8937_v30, %v8942_v20 }
 0x124   :  { %v1473_v36 = vadd.f32 %v1472_v24, %v1384_v8  ;;  %v790_v8 = vsel %vm769_vm6, %v8936_v62, %v8941_v34  ;;  %v8961_v24 = vunpack.i.l.bf16 %v8960_v19 }
 0x125   :  { %v10522_v13 = vpack.c.bf16 %v791_v3, %v790_v8 }
 0x126   :  { %v1299_v63 = vpop.f32.mrf.mxu0  ;;  %v1388_v31 = vpop.f32.mrf.mxu1  ;;  %v1562_v51 = vadd.f32 %v10149_v60, %v1473_v36  ;;  %v727_v60 = vsel %vm703_vm4, %v10050_v43, %v8962_v49 }
 0x127   :  { %v1300_v28 = vadd.f32 %v1299_v63, %v10444_v46  ;;  %v10515_v57 = vpop.f32.mrf.mxu3  ;;  %v8952_v63 = vunpack.i.h.bf16 %v8950_v40 }
 0x128   :  { %v1996_v30 = vmax.f32 %v1562_v51, 0.0 }
 0x129   :  { %v1389_v5 = vadd.f32 %v1388_v31, %v1300_v28  ;;  %1338 = vmatmul.bf16.gmra.mxu0 %v10510_v38  ;;  %1427 = vmatmul.bf16.gmra.mxu1 %v10512_v6  ;;  %v8951_v31 = vunpack.i.l.bf16 %v8950_v40  ;;  %v760_v8 = vsel %vm736_vm5, %v8962_v49, %v8952_v63 }
 0x12b   :  { %v1474_v27 = vpop.f32.mrf.mxu2  ;;  %v759_v36 = vsel %vm736_vm5, %v8961_v24, %v8951_v31 }
 0x12c   :  { %v1475_v42 = vadd.f32 %v1474_v27, %v1386_v18  ;;  %v726_v18 = vsel %vm703_vm4, %v10000_v29, %v8961_v24  ;;  %v10540_v51 = vpack.c.bf16 %v760_v8, %v759_v36 }
 0x12d   :  { %v10538_v27 = vpack.c.bf16 %v727_v60, %v726_v18 }
 0x12e   :  { %v1301_v56 = vpop.f32.mrf.mxu0  ;;  %v1390_v26 = vpop.f32.mrf.mxu1  ;;  %v1564_v28 = vadd.f32 %v10181_v47, %v1475_v42  ;;  %14183 = vst [vmem:[#allocation36_spill] sm:$0xff] %v10540_v51 }
 0x12f   :  { %v1302_v62 = vadd.f32 %v1301_v56, %v10444_v46  ;;  %v10526_v34 = vpop.f32.mrf.mxu3  ;;  %v8955_v47 = vpop.permute.xlu1 %8954 }
 0x130   :  { %v1998_v20 = vmax.f32 %v1564_v28, 0.0  ;;  %1516 = vmatmul.bf16.gmra.mxu2 %v10522_v13  ;;  %v8957_v56 = vunpack.i.h.bf16 %v8955_v47  ;;  %v8975_v28 = vpop.permute.xlu2 %8974 }
 0x131   :  { %v1391_v6 = vadd.f32 %v1390_v26, %v1302_v62  ;;  %v8956_v26 = vunpack.i.l.bf16 %v8955_v47  ;;  %v8965_v62 = vpop.permute.xlu0 %8964  ;;  %v8977_v47 = vunpack.i.h.bf16 %v8975_v28 }
 0x132   :  { %v10535_v3 = vpack.c.bf16 %v1998_v20, %v1996_v30 }
 0x133   :  { %v1477_v19 = vpop.f32.mrf.mxu2  ;;  %1649 = vmatmul.bf16.gmra.mxu3 %v10025_v37  ;;  %v793_v37 = vsel %vm769_vm6, %v8952_v63, %v8957_v56 }
 0x134   :  { %v1478_v40 = vadd.f32 %v1477_v19, %v1389_v5  ;;  %v792_v5 = vsel %vm769_vm6, %v8951_v31, %v8956_v26  ;;  %v8976_v19 = vunpack.i.l.bf16 %v8975_v28 }
 0x135   :  { %v10550_v60 = vpack.c.bf16 %v793_v37, %v792_v5 }
 0x136   :  { %v1304_v42 = vpop.f32.mrf.mxu0  ;;  %v1393_v29 = vpop.f32.mrf.mxu1  ;;  %v1567_v20 = vadd.f32 %v10207_v48, %v1478_v40  ;;  %v728_v48 = vsel %vm703_vm4, %v10055_v44, %v8976_v19 }
 0x137   :  { %v1305_v43 = vadd.f32 %v1304_v42, %v10444_v46  ;;  %v10543_v24 = vpop.f32.mrf.mxu3  ;;  %v8967_v42 = vunpack.i.h.bf16 %v8965_v62 }
 0x138   :  { %v2000_v63 = vmax.f32 %v1567_v20, 0.0 }
 0x139   :  { %v1394_v49 = vadd.f32 %v1393_v29, %v1305_v43  ;;  %1343 = vmatmul.bf16.gmra.mxu0 %v10538_v27  ;;  %1432 = vmatmul.bf16.gmra.mxu1 %v10540_v51  ;;  %v8966_v29 = vunpack.i.l.bf16 %v8965_v62  ;;  %v762_v5 = vsel %vm736_vm5, %v8977_v47, %v8967_v42 }
 0x13b   :  { %v1479_v30 = vpop.f32.mrf.mxu2  ;;  %v761_v40 = vsel %vm736_vm5, %v8976_v19, %v8966_v29 }
 0x13c   :  { %v1480_v18 = vadd.f32 %v1479_v30, %v1391_v6  ;;  %v729_v6 = vsel %vm703_vm4, %v10104_v17, %v8977_v47  ;;  %v10568_v20 = vpack.c.bf16 %v762_v5, %v761_v40  ;;  %v8512_v47 = vld [vmem:[%s14141_s26 + $0xf4] sm:$0xf]  ;;  %v10589_v5 = vpop.permute.xlu0 %8979 }
 0x13d   :  { %v10566_v30 = vpack.c.bf16 %v729_v6, %v728_v48 }
 0x13e   :  { %v1306_v36 = vpop.f32.mrf.mxu0  ;;  %v1395_v8 = vpop.f32.mrf.mxu1  ;;  %v1569_v43 = vadd.f32 %v10237_v10, %v1480_v18  ;;  %14184 = vst [vmem:[#allocation37_spill] sm:$0xff] %v10568_v20 }
 0x13f   :  { %v1307_v31 = vadd.f32 %v1306_v36, %v10444_v46  ;;  %v10554_v26 = vpop.f32.mrf.mxu3  ;;  %v8970_v10 = vpop.permute.xlu1 %8969 }
 0x140   :  { %v2002_v56 = vmax.f32 %v1569_v43, 0.0  ;;  %1521 = vmatmul.bf16.gmra.mxu2 %v10550_v60  ;;  %v8972_v36 = vunpack.i.h.bf16 %v8970_v10 }
 0x141   :  { %v1396_v51 = vadd.f32 %v1395_v8, %v1307_v31  ;;  %v8971_v8 = vunpack.i.l.bf16 %v8970_v10  ;;  %v7226_v31 = vld [vmem:[%s14141_s26 + $0x178] sm:$0xf0]  ;;  %v8510_v10 = vld [vmem:[%s14141_s26 + $0xe4] sm:$0xf] }
 0x142   :  { %v10563_v37 = vpack.c.bf16 %v2002_v56, %v2000_v63  ;;  %v8990_v56 = vpop.permute.xlu2 %8989  ;;  %v795_v40 = vsel %vm769_vm6, %v8967_v42, %v8972_v36  ;;  %v7218_v42 = vld [vmem:[%s14141_s26 + $0x168] sm:$0xf0] }
 0x143   :  { %v1482_v28 = vpop.f32.mrf.mxu2  ;;  %1654 = vmatmul.bf16.gmra.mxu3 %v10077_v59  ;;  %v8528_v59 = vld [vmem:[%s14141_s26 + $0x174] sm:$0xf]  ;;  %v794_v6 = vsel %vm769_vm6, %v8966_v29, %v8971_v8  ;;  %v8991_v29 = vunpack.i.l.bf16 %v8990_v56 }
 0x144   :  { %v1483_v62 = vadd.f32 %v1482_v28, %v1394_v49  ;;  %v7162_v49 = vld [vmem:[%s14141_s26 + $0xf8] sm:$0xf0]  ;;  %v7229_v48 = vor.u32 %v8528_v59, %v7226_v31  ;;  %v7154_v28 = vld [vmem:[%s14141_s26 + $0xe8] sm:$0xf0]  ;;  %v8992_v31 = vunpack.i.h.bf16 %v8990_v56 }
 0x145   :  { %v7165_v43 = vor.u32 %v8512_v47, %v7162_v49  ;;  %v7157_v8 = vor.u32 %v8510_v10, %v7154_v28  ;;  %v10604_v47 = vpack.c.bf16 %v795_v40, %v794_v6  ;;  %v7210_v40 = vld [vmem:[%s14141_s26 + $0x158] sm:$0xf0] }
 0x146   :  { %v1309_v18 = vpop.f32.mrf.mxu0  ;;  %v1398_v44 = vpop.f32.mrf.mxu1  ;;  %1814 = vmatpush.bf16.msrb.mxu1 %v7229_v48  ;;  %v1572_v36 = vadd.f32 %v10263_v2, %v1483_v62  ;;  %v8982_v48 = vunpack.i.h.bf16 %v10589_v5  ;;  %v8508_v2 = vld [vmem:[%s14141_s26 + $0xd4] sm:$0xf] }
 0x147   :  { %v1310_v17 = vadd.f32 %v1309_v18, %v10444_v46  ;;  %v10580_v19 = vpop.f32.mrf.mxu3  ;;  %1725 = vmatpush.bf16.msrb.mxu0 %v7165_v43  ;;  %v8526_v18 = vld [vmem:[%s14141_s26 + $0x164] sm:$0xf]  ;;  %14185 = vst [vmem:[#allocation38_spill] sm:$0xff] %v10604_v47  ;;  %v8524_v62 = vld [vmem:[%s14141_s26 + $0x154] sm:$0xf] }
 0x148   :  { %v7221_v49 = vor.u32 %v8526_v18, %v7218_v42  ;;  %v8540_v42 = vld [vmem:[%s14141_s26 + $0x1d4] sm:$0xf] }
 0x149   :  { %v1399_v63 = vadd.f32 %v1398_v44, %v1310_v17  ;;  %1348 = vmatmul.bf16.gmra.mxu0 %v10566_v30  ;;  %1437 = vmatmul.bf16.gmra.mxu1 %v10568_v20  ;;  %v8981_v20 = vunpack.i.l.bf16 %v10589_v5  ;;  %v2004_v5 = vmax.f32 %v1572_v36, 0.0  ;;  %v764_v36 = vsel %vm736_vm5, %v8992_v31, %v8982_v48 }
 0x14a   :  { %1815 = vmatpush.bf16.msrb.mxu1 %v7221_v49 }
 0x14b   :  { %v1484_v44 = vpop.f32.mrf.mxu2  ;;  %1726 = vmatpush.bf16.msrb.mxu0 %v7157_v8  ;;  %v7213_v8 = vor.u32 %v8524_v62, %v7210_v40  ;;  %v763_v49 = vsel %vm736_vm5, %v8991_v29, %v8981_v20 }
 0x14c   :  { %v1485_v17 = vadd.f32 %v1484_v44, %v1396_v51  ;;  %v7146_v51 = vld [vmem:[%s14141_s26 + $0xd8] sm:$0xf0]  ;;  %v10654_v40 = vpack.c.bf16 %v764_v36, %v763_v49 }
 0x14d   :  { %v7149_v6 = vor.u32 %v8508_v2, %v7146_v51  ;;  %v7202_v51 = vld [vmem:[%s14141_s26 + $0x148] sm:$0xf0]  ;;  %v7194_v49 = vld [vmem:[%s14141_s26 + $0x138] sm:$0xf0] }
 0x14e   :  { %v1311_v59 = vpop.f32.mrf.mxu0  ;;  %v1400_v43 = vpop.f32.mrf.mxu1  ;;  %v1574_v10 = vadd.f32 %v10291_v61, %v1485_v17  ;;  %v730_v61 = vsel %vm703_vm4, %v10109_v55, %v8991_v29  ;;  %v7274_v17 = vld [vmem:[%s14141_s26 + $0x1d8] sm:$0xf0]  ;;  %v731_v55 = vsel %vm703_vm4, %v10162_v35, %v8992_v31  ;;  %1816 = vmatpush.bf16.msrb.mxu1 %v7213_v8  ;;  %v8522_v35 = vld [vmem:[%s14141_s26 + $0x144] sm:$0xf]  ;;  %14186 = vst [vmem:[#allocation39_spill] sm:$0xff] %v10654_v40 }
 0x14f   :  { %v1312_v28 = vadd.f32 %v1311_v59, %v10444_v46  ;;  %v10619_v56 = vpop.f32.mrf.mxu3  ;;  %1727 = vmatpush.bf16.msrb.mxu0 %v7149_v6  ;;  %v7277_v59 = vor.u32 %v8540_v42, %v7274_v17  ;;  %v10652_v6 = vpack.c.bf16 %v731_v55, %v730_v61  ;;  %v7205_v8 = vor.u32 %v8522_v35, %v7202_v51  ;;  %v8502_v51 = vld [vmem:[%s14141_s26 + $0xa4] sm:$0xf] }
 0x150   :  { %v2006_v18 = vmax.f32 %v1574_v10, 0.0  ;;  %1526 = vmatmul.bf16.gmra.mxu2 %v10604_v47  ;;  %v8506_v10 = vld [vmem:[%s14141_s26 + $0xc4] sm:$0xf] }
 0x151   :  { %v1401_v44 = vadd.f32 %v1400_v43, %v1312_v28  ;;  %v8985_v43 = vpop.permute.xlu1 %8984  ;;  %v7138_v28 = vld [vmem:[%s14141_s26 + $0xc8] sm:$0xf0]  ;;  %1905 = vmatpush.bf16.msrb.mxu2 %v7277_v59  ;;  %v8504_v59 = vld [vmem:[%s14141_s26 + $0xb4] sm:$0xf] }
 0x152   :  { %v10646_v2 = vpack.c.bf16 %v2006_v18, %v2004_v5  ;;  %v7141_v31 = vor.u32 %v8506_v10, %v7138_v28  ;;  %v8987_v47 = vunpack.i.h.bf16 %v8985_v43  ;;  %v8986_v5 = vunpack.i.l.bf16 %v8985_v43  ;;  %1817 = vmatpush.bf16.msrb.mxu1 %v7205_v8  ;;  %v9005_v43 = vpop.permute.xlu2 %9004  ;;  %v7122_v8 = vld [vmem:[%s14141_s26 + $0xa8] sm:$0xf0] }
 0x153   :  { %v1487_v29 = vpop.f32.mrf.mxu2  ;;  %1659 = vmatmul.bf16.gmra.mxu3 %v10141_v39  ;;  %v7130_v39 = vld [vmem:[%s14141_s26 + $0xb8] sm:$0xf0] }
 0x154   :  { %v1488_v62 = vadd.f32 %v1487_v29, %v1399_v63  ;;  %1728 = vmatpush.bf16.msrb.mxu0 %v7141_v31  ;;  %v8520_v63 = vld [vmem:[%s14141_s26 + $0x134] sm:$0xf]  ;;  %v7133_v55 = vor.u32 %v8504_v59, %v7130_v39  ;;  %v796_v35 = vsel %vm769_vm6, %v8981_v20, %v8986_v5  ;;  %v797_v29 = vsel %vm769_vm6, %v8982_v48, %v8987_v47  ;;  %v10678_v31 = vpop.permute.xlu0 %8994  ;;  %v7186_v48 = vld [vmem:[%s14141_s26 + $0x128] sm:$0xf0] }
 0x155   :  { %v7197_v10 = vor.u32 %v8520_v63, %v7194_v49  ;;  %v9007_v20 = vunpack.i.h.bf16 %v9005_v43  ;;  %v7125_v47 = vor.u32 %v8502_v51, %v7122_v8  ;;  %v7266_v5 = vld [vmem:[%s14141_s26 + $0x1c8] sm:$0xf0]  ;;  %v10698_v59 = vpack.c.bf16 %v797_v29, %v796_v35  ;;  %v8516_v35 = vld [vmem:[%s14141_s26 + $0x114] sm:$0xf] }
 0x156   :  { %v1314_v42 = vpop.f32.mrf.mxu0  ;;  %v1403_v17 = vpop.f32.mrf.mxu1  ;;  %v1577_v28 = vadd.f32 %v10332_v33, %v1488_v62  ;;  %v8518_v33 = vld [vmem:[%s14141_s26 + $0x124] sm:$0xf]  ;;  %v8996_v51 = vunpack.i.l.bf16 %v10678_v31 }
 0x157   :  { %v1315_v18 = vadd.f32 %v1314_v42, %v10444_v46  ;;  %v10666_v61 = vpop.f32.mrf.mxu3  ;;  %1818 = vmatpush.bf16.msrb.mxu1 %v7197_v10  ;;  %v9006_v42 = vunpack.i.l.bf16 %v9005_v43  ;;  %v7189_v39 = vor.u32 %v8518_v33, %v7186_v48  ;;  %v8997_v10 = vunpack.i.h.bf16 %v10678_v31  ;;  %v8536_v48 = vld [vmem:[%s14141_s26 + $0x1b4] sm:$0xf] }
 0x158   :  { %1729 = vmatpush.bf16.msrb.mxu0 %v7133_v55  ;;  %v2008_v55 = vmax.f32 %v1577_v28, 0.0  ;;  %v7114_v28 = vld [vmem:[%s14141_s26 + $0x98] sm:$0xf0]  ;;  %v733_v33 = vsel %vm703_vm4, %v10222_v4, %v9007_v20 }
 0x159   :  { %v10671_v36 = vadd.f32 %v1403_v17, %v1315_v18  ;;  %1353 = vmatmul.bf16.gmra.mxu0 %v10652_v6  ;;  %1442 = vmatmul.bf16.gmra.mxu1 %v10654_v40  ;;  %v8538_v17 = vld [vmem:[%s14141_s26 + $0x1c4] sm:$0xf]  ;;  %v765_v4 = vsel %vm736_vm5, %v9006_v42, %v8996_v51 }
 0x15a   :  { %v7269_v63 = vor.u32 %v8538_v17, %v7266_v5  ;;  %v7258_v17 = vld [vmem:[%s14141_s26 + $0x1b8] sm:$0xf0] }
 0x15b   :  { %v1489_v62 = vpop.f32.mrf.mxu2  ;;  %1819 = vmatpush.bf16.msrb.mxu1 %v7189_v39 }
 0x15c   :  { %v1490_v18 = vadd.f32 %v1489_v62, %v1401_v44  ;;  %1730 = vmatpush.bf16.msrb.mxu0 %v7125_v47  ;;  %1906 = vmatpush.bf16.msrb.mxu2 %v7269_v63  ;;  %v8500_v44 = vld [vmem:[%s14141_s26 + $0x94] sm:$0xf]  ;;  %v7178_v47 = vld [vmem:[%s14141_s26 + $0x118] sm:$0xf0]  ;;  %v7261_v63 = vor.u32 %v8536_v48, %v7258_v17 }
 0x15d   :  { %v7117_v62 = vor.u32 %v8500_v44, %v7114_v28  ;;  %v7181_v39 = vor.u32 %v8516_v35, %v7178_v47  ;;  %v9000_v44 = vpop.permute.xlu1 %8999  ;;  %v8498_v28 = vld [vmem:[%s14141_s26 + $0x84] sm:$0xf]  ;;  %v7250_v47 = vld [vmem:[%s14141_s26 + $0x1a8] sm:$0xf0] }
 0x15e   :  { %v1316_v49 = vpop.f32.mrf.mxu0  ;;  %v1405_v43 = vpop.f32.mrf.mxu1  ;;  %v1579_v8 = vadd.f32 %v10363_v25, %v1490_v18  ;;  %v9348_v25 = vld [vmem:[%s14142_s30 + $0xe0] sm:$0xff] }
 0x15f   :  { %v1317_v40 = vadd.f32 %v1316_v49, %v10444_v46  ;;  %v10713_v29 = vpop.f32.mrf.mxu3  ;;  %v732_v31 = vsel %vm703_vm4, %v9348_v25, %v9006_v42  ;;  %v766_v49 = vsel %vm736_vm5, %v9007_v20, %v8997_v10  ;;  %1820 = vmatpush.bf16.msrb.mxu1 %v7181_v39  ;;  %v7170_v25 = vld [vmem:[%s14141_s26 + $0x108] sm:$0xf0]  ;;  %v9002_v39 = vunpack.i.h.bf16 %v9000_v44 }
 0x160   :  { %v2010_v5 = vmax.f32 %v1579_v8, 0.0  ;;  %1531 = vmatmul.bf16.gmra.mxu2 %v10698_v59  ;;  %1731 = vmatpush.bf16.msrb.mxu0 %v7117_v62  ;;  %v10744_v20 = vpack.c.bf16 %v733_v33, %v732_v31  ;;  %v8534_v62 = vld [vmem:[%s14141_s26 + $0x1a4] sm:$0xf] }
 0x161   :  { %v1406_v18 = vadd.f32 %v1405_v43, %v1317_v40  ;;  %1907 = vmatpush.bf16.msrb.mxu2 %v7261_v63  ;;  %v7106_v40 = vld [vmem:[%s14141_s26 + $0x88] sm:$0xf0]  ;;  %v8514_v43 = vld [vmem:[%s14141_s26 + $0x104] sm:$0xf]  ;;  %v7253_v33 = vor.u32 %v8534_v62, %v7250_v47  ;;  %v9001_v63 = vunpack.i.l.bf16 %v9000_v44 }
 0x162   :  { %v10742_v8 = vpack.c.bf16 %v2010_v5, %v2008_v55  ;;  %v7109_v35 = vor.u32 %v8498_v28, %v7106_v40  ;;  %v10757_v55 = vpack.c.bf16 %v766_v49, %v765_v4  ;;  %v7173_v31 = vor.u32 %v8514_v43, %v7170_v25  ;;  %v8532_v40 = vld [vmem:[%s14141_s26 + $0x194] sm:$0xf]  ;;  %v8530_v25 = vld [vmem:[%s14141_s26 + $0x184] sm:$0xf]  ;;  %v7234_v62 = vld [vmem:[%s14141_s26 + $0x188] sm:$0xf0] }
 0x163   :  { %v1492_v42 = vpop.f32.mrf.mxu2  ;;  %1664 = vmatmul.bf16.gmra.mxu3 %v10199_v7  ;;  %v7242_v7 = vld [vmem:[%s14141_s26 + $0x198] sm:$0xf0]  ;;  %v798_v44 = vsel %vm769_vm6, %v8996_v51, %v9001_v63  ;;  %v799_v43 = vsel %vm769_vm6, %v8997_v10, %v9002_v39 }
 0x164   :  { %14187 = vst [vmem:[#allocation40_spill] sm:$0xff] %v10742_v8  ;;  %v1493_v48 = vadd.f32 %v1492_v42, %v10671_v36  ;;  %1732 = vmatpush.bf16.msrb.mxu0 %v7109_v35  ;;  %1821 = vmatpush.bf16.msrb.mxu1 %v7173_v31  ;;  %v7245_v4 = vor.u32 %v8532_v40, %v7242_v7  ;;  %v9020_v42 = vpop.permute.xlu2 %9019  ;;  %v9010_v35 = vpop.permute.xlu0 %9009 }
 0x165   :  { %14188 = vst [vmem:[#allocation41_spill] sm:$0xff] %v10757_v55  ;;  %1908 = vmatpush.bf16.msrb.mxu2 %v7253_v33  ;;  %v7237_v31 = vor.u32 %v8530_v25, %v7234_v62  ;;  %v9022_v39 = vunpack.i.h.bf16 %v9020_v42  ;;  %v9021_v63 = vunpack.i.l.bf16 %v9020_v42  ;;  %v9011_v40 = vunpack.i.l.bf16 %v9010_v35 }
 0x166   :  { %v1319_v17 = vpop.f32.mrf.mxu0  ;;  %v1408_v5 = vpop.f32.mrf.mxu1  ;;  %v1582_v33 = vadd.f32 %v10403_v54, %v1493_v48  ;;  %v9349_v54 = vld [vmem:[%s14142_s30 + $0xf0] sm:$0xff]  ;;  %s9359_s30 = smov 84  }
 0x167   :  { %v1320_v28 = vadd.f32 %v1319_v17, %v10444_v46  ;;  %v10766_v36 = vpop.f32.mrf.mxu3  ;;  %v735_v48 = vsel %vm703_vm4, %v10276_v23, %v9022_v39 }
 0x168   :  { %v2012_v8 = vmax.f32 %v1582_v33, 0.0 }
 0x169   :  { %v1409_v49 = vadd.f32 %v1408_v5, %v1320_v28  ;;  %1358 = vmatmul.bf16.gmra.mxu0 %v10744_v20  ;;  %1447 = vmatmul.bf16.gmra.mxu1 %v10757_v55  ;;  %v10779_v5 = vpack.c.bf16 %v799_v43, %v798_v44  ;;  %v9012_v28 = vunpack.i.h.bf16 %v9010_v35  ;;  %v9015_v43 = vpop.permute.xlu1 %9014 }
 0x16a   :  { %1909 = vmatpush.bf16.msrb.mxu2 %v7245_v4 }
 0x16b   :  { %v1494_v47 = vpop.f32.mrf.mxu2  ;;  %v768_v44 = vsel %vm736_vm5, %v9022_v39, %v9012_v28 }
 0x16c   :  { %v1495_v17 = vadd.f32 %v1494_v47, %v1406_v18  ;;  %v734_v18 = vsel %vm703_vm4, %v9349_v54, %v9021_v63 }
 0x16e   :  { %v1321_v51 = vpop.f32.mrf.mxu0  ;;  %v1410_v10 = vpop.f32.mrf.mxu1  ;;  %v1584_v7 = vadd.f32 %v10430_v50, %v1495_v17  ;;  %1910 = vmatpush.bf16.msrb.mxu2 %v7237_v31  ;;  %v767_v50 = vsel %vm736_vm5, %v9021_v63, %v9011_v40  ;;  %v10797_v31 = vpack.c.bf16 %v735_v48, %v734_v18 }
 0x16f   :  { %v1322_v4 = vadd.f32 %v1321_v51, %v10444_v46  ;;  %v10783_v55 = vpop.f32.mrf.mxu3  ;;  %v10799_v33 = vpack.c.bf16 %v768_v44, %v767_v50 }
 0x170   :  { %v2014_v25 = vmax.f32 %v1584_v7, 0.0  ;;  %1536 = vmatmul.bf16.gmra.mxu2 %v10779_v5  ;;  %v9016_v7 = vunpack.i.l.bf16 %v9015_v43 }
 0x171   :  { %v1411_v62 = vadd.f32 %v1410_v10, %v1322_v4  ;;  %v9017_v10 = vunpack.i.h.bf16 %v9015_v43 }
 0x172   :  { %v10794_v42 = vpack.c.bf16 %v2014_v25, %v2012_v8  ;;  %v800_v8 = vsel %vm769_vm6, %v9011_v40, %v9016_v7 }
 0x173   :  { %v1497_v35 = vpop.f32.mrf.mxu2  ;;  %1669 = vmatmul.bf16.gmra.mxu3 %v10249_v32  ;;  %v801_v32 = vsel %vm769_vm6, %v9012_v28, %v9017_v10 }
 0x174   :  { %v1498_v47 = vadd.f32 %v1497_v35, %v1409_v49  ;;  %v10809_v54 = vpack.c.bf16 %v801_v32, %v800_v8 }
 0x176   :  { %v1324_v17 = vpop.f32.mrf.mxu0  ;;  %v1413_v51 = vpop.f32.mrf.mxu1  ;;  %v1587_v4 = vadd.f32 %v10453_v12, %v1498_v47 }
 0x177   :  { %v1325_v23 = vadd.f32 %v1324_v17, %v10444_v46  ;;  %v10802_v63 = vpop.f32.mrf.mxu3 }
 0x178   :  { %v2016_v35 = vmax.f32 %v1587_v4, 0.0 }
 0x179   :  { %v1414_v39 = vadd.f32 %v1413_v51, %v1325_v23  ;;  %1363 = vmatmul.bf16.gmra.mxu0 %v10797_v31  ;;  %1452 = vmatmul.bf16.gmra.mxu1 %v10799_v33 }
 0x17b   :  { %v1499_v49 = vpop.f32.mrf.mxu2 }
 0x17c   :  { %v1500_v25 = vadd.f32 %v1499_v49, %v1411_v62 }
 0x17e   :  { %v1326_v18 = vpop.f32.mrf.mxu0  ;;  %v1415_v48 = vpop.f32.mrf.mxu1  ;;  %v1589_v50 = vadd.f32 %v10469_v1, %v1500_v25 }
 0x17f   :  { %v1327_v44 = vadd.f32 %v1326_v18, %v10444_v46  ;;  %v10813_v43 = vpop.f32.mrf.mxu3 }
 0x180   :  { %v2018_v17 = vmax.f32 %v1589_v50, 0.0  ;;  %1541 = vmatmul.bf16.gmra.mxu2 %v10809_v54 }
 0x181   :  { %v1416_v51 = vadd.f32 %v1415_v48, %v1327_v44 }
 0x182   :  { %v10816_v28 = vpack.c.bf16 %v2018_v17, %v2016_v35 }
 0x183   :  { %v1502_v40 = vpop.f32.mrf.mxu2  ;;  %1674 = vmatmul.bf16.gmra.mxu3 %v10316_v14 }
 0x184   :  { %v1503_v12 = vadd.f32 %v1502_v40, %v1414_v39 }
 0x186   :  { %v1329_v62 = vpop.f32.mrf.mxu0  ;;  %v1418_v47 = vpop.f32.mrf.mxu1  ;;  %v1592_v8 = vadd.f32 %v10487_v21, %v1503_v12 }
 0x187   :  { %v1330_v10 = vadd.f32 %v1329_v62, %v10444_v46  ;;  %v10820_v1 = vpop.f32.mrf.mxu3 }
 0x188   :  { %v2020_v18 = vmax.f32 %v1592_v8, 0.0 }
 0x189   :  { %v1419_v7 = vadd.f32 %v1418_v47, %v1330_v10  ;;  %1733 = vmatmul.bf16.vlgmr.msrb.gmra.mxu0 %v9980_v9  ;;  %1822 = vmatmul.bf16.vlgmr.msrb.gmra.mxu1 %v10009_v58 }
 0x18b   :  { %v1504_v23 = vpop.f32.mrf.mxu2 }
 0x18c   :  { %v1505_v32 = vadd.f32 %v1504_v23, %v1416_v51 }
 0x18e   :  { %v1331_v49 = vpop.f32.mrf.mxu0  ;;  %v1420_v4 = vpop.f32.mrf.mxu1  ;;  %v1594_v39 = vadd.f32 %v10498_v41, %v1505_v32 }
 0x18f   :  { %v1332_v14 = vadd.f32 %v1331_v49, %v10444_v46  ;;  %v10827_v25 = vpop.f32.mrf.mxu3 }
 0x190   :  { %v2022_v48 = vmax.f32 %v1594_v39, 0.0  ;;  %7294 = vmatmul.msk.bf16.vlgmr.msrb.gmra.mxu2 %vm703_vm4, %v9583_v16 }
 0x191   :  { %v1421_v50 = vadd.f32 %v1420_v4, %v1332_v14 }
 0x192   :  { %v10831_v9 = vpack.c.bf16 %v2022_v48, %v2020_v18  ;;  %v14189_v18 = vld [vmem:[#allocation9_spill] sm:$0xff]  ;;  %v14190_v48 = vld [vmem:[#allocation10_spill] sm:$0xff] }
 0x193   :  { %v1507_v58 = vpop.f32.mrf.mxu2  ;;  %1679 = vmatmul.bf16.gmra.mxu3 %v10388_v52 }
 0x194   :  { %v1508_v44 = vadd.f32 %v1507_v58, %v1419_v7 }
 0x196   :  { %v1334_v21 = vpop.f32.mrf.mxu0  ;;  %v1423_v35 = vpop.f32.mrf.mxu1  ;;  %v1597_v16 = vadd.f32 %v10515_v57, %v1508_v44 }
 0x197   :  { %v1335_v41 = vadd.f32 %v1334_v21, %v10444_v46  ;;  %v10835_v17 = vpop.f32.mrf.mxu3 }
 0x198   :  { %v2024_v23 = vmax.f32 %v1597_v16, 0.0 }
 0x199   :  { %v1424_v51 = vadd.f32 %v1423_v35, %v1335_v41  ;;  %1738 = vmatmul.bf16.gmra.mxu0 %v10027_v11  ;;  %1827 = vmatmul.bf16.gmra.mxu1 %v10063_v53 }
 0x19b   :  { %v1509_v40 = vpop.f32.mrf.mxu2 }
 0x19c   :  { %v1510_v12 = vadd.f32 %v1509_v40, %v1421_v50 }
 0x19e   :  { %v1336_v62 = vpop.f32.mrf.mxu0  ;;  %v1425_v47 = vpop.f32.mrf.mxu1  ;;  %v1599_v10 = vadd.f32 %v10526_v34, %v1510_v12  ;;  %v14191_v12 = vld [vmem:[#allocation2_spill] sm:$0xff] }
 0x19f   :  { %v1337_v52 = vadd.f32 %v1336_v62, %v10444_v46  ;;  %v10842_v7 = vpop.f32.mrf.mxu3 }
 0x1a0   :  { %v2026_v8 = vmax.f32 %v1599_v10, 0.0  ;;  %7295 = vmatmul.msk.bf16.gmra.mxu2 %vm703_vm4, %v9621_v45 }
 0x1a1   :  { %v1426_v32 = vadd.f32 %v1425_v47, %v1337_v52 }
 0x1a2   :  { %v10846_v11 = vpack.c.bf16 %v2026_v8, %v2024_v23 }
 0x1a3   :  { %v1512_v53 = vpop.f32.mrf.mxu2  ;;  %1684 = vmatmul.bf16.gmra.mxu3 %v10448_v22 }
 0x1a4   :  { %v1513_v49 = vadd.f32 %v1512_v53, %v1424_v51  ;;  %v14193_v53 = vld [vmem:[#allocation12_spill] sm:$0xff] }
 0x1a6   :  { %v1339_v57 = vpop.f32.mrf.mxu0  ;;  %v1428_v4 = vpop.f32.mrf.mxu1  ;;  %v1602_v45 = vadd.f32 %v10543_v24, %v1513_v49  ;;  %v14192_v24 = vld [vmem:[#allocation33_spill] sm:$0xff] }
 0x1a7   :  { %v1340_v34 = vadd.f32 %v1339_v57, %v10444_v46  ;;  %v10850_v39 = vpop.f32.mrf.mxu3  ;;  %v14194_v49 = vld [vmem:[#allocation13_spill] sm:$0xff] }
 0x1a8   :  { %v2028_v51 = vmax.f32 %v1602_v45, 0.0 }
 0x1a9   :  { %v1429_v14 = vadd.f32 %v1428_v4, %v1340_v34  ;;  %1743 = vmatmul.bf16.gmra.mxu0 %v14189_v18  ;;  %1832 = vmatmul.bf16.gmra.mxu1 %v14190_v48 }
 0x1ab   :  { %v1514_v50 = vpop.f32.mrf.mxu2 }
 0x1ac   :  { %v1515_v58 = vadd.f32 %v1514_v50, %v1426_v32 }
 0x1ae   :  { %v1341_v44 = vpop.f32.mrf.mxu0  ;;  %v1430_v21 = vpop.f32.mrf.mxu1  ;;  %v1604_v35 = vadd.f32 %v10554_v26, %v1515_v58 }
 0x1af   :  { %v1342_v22 = vadd.f32 %v1341_v44, %v10444_v46  ;;  %v10857_v41 = vpop.f32.mrf.mxu3 }
 0x1b0   :  { %v2030_v40 = vmax.f32 %v1604_v35, 0.0  ;;  %7296 = vmatmul.msk.bf16.gmra.mxu2 %vm703_vm4, %v14191_v12  ;;  %v14195_v35 = vld [vmem:[#allocation3_spill] sm:$0xff] }
 0x1b1   :  { %v1431_v16 = vadd.f32 %v1430_v21, %v1342_v22 }
 0x1b2   :  { %v10861_v62 = vpack.c.bf16 %v2030_v40, %v2028_v51 }
 0x1b3   :  { %v1517_v47 = vpop.f32.mrf.mxu2  ;;  %1689 = vmatmul.bf16.gmra.mxu3 %v14192_v24  ;;  %v14197_v24 = vld [vmem:[#allocation16_spill] sm:$0xff] }
 0x1b4   :  { %v1518_v10 = vadd.f32 %v1517_v47, %v1429_v14 }
 0x1b6   :  { %v1344_v52 = vpop.f32.mrf.mxu0  ;;  %v1433_v23 = vpop.f32.mrf.mxu1  ;;  %v1607_v4 = vadd.f32 %v10580_v19, %v1518_v10  ;;  %v14196_v10 = vld [vmem:[#allocation15_spill] sm:$0xff] }
 0x1b7   :  { %v1345_v26 = vadd.f32 %v1344_v52, %v10444_v46  ;;  %v10865_v8 = vpop.f32.mrf.mxu3 }
 0x1b8   :  { %v2032_v58 = vmax.f32 %v1607_v4, 0.0 }
 0x1b9   :  { %v1434_v32 = vadd.f32 %v1433_v23, %v1345_v26  ;;  %1748 = vmatmul.bf16.gmra.mxu0 %v14193_v53  ;;  %1837 = vmatmul.bf16.gmra.mxu1 %v14194_v49 }
 0x1bb   :  { %v1519_v57 = vpop.f32.mrf.mxu2 }
 0x1bc   :  { %v1520_v34 = vadd.f32 %v1519_v57, %v1431_v16 }
 0x1be   :  { %v1346_v18 = vpop.f32.mrf.mxu0  ;;  %v1435_v48 = vpop.f32.mrf.mxu1  ;;  %v1609_v14 = vadd.f32 %v10619_v56, %v1520_v34 }
 0x1bf   :  { %v1347_v50 = vadd.f32 %v1346_v18, %v10444_v46  ;;  %v10872_v45 = vpop.f32.mrf.mxu3 }
 0x1c0   :  { %v2034_v44 = vmax.f32 %v1609_v14, 0.0  ;;  %7297 = vmatmul.msk.bf16.gmra.mxu2 %vm703_vm4, %v14195_v35 }
 0x1c1   :  { %v1436_v21 = vadd.f32 %v1435_v48, %v1347_v50  ;;  %v14198_v48 = vld [vmem:[#allocation4_spill] sm:$0xff] }
 0x1c2   :  { %v10876_v22 = vpack.c.bf16 %v2034_v44, %v2032_v58 }
 0x1c3   :  { %v1522_v51 = vpop.f32.mrf.mxu2  ;;  %1694 = vmatmul.bf16.gmra.mxu3 %v10510_v38 }
 0x1c4   :  { %v1523_v40 = vadd.f32 %v1522_v51, %v1434_v32  ;;  %v14199_v51 = vld [vmem:[#allocation18_spill] sm:$0xff] }
 0x1c6   :  { %v1349_v19 = vpop.f32.mrf.mxu0  ;;  %v1438_v16 = vpop.f32.mrf.mxu1  ;;  %v1612_v23 = vadd.f32 %v10666_v61, %v1523_v40  ;;  %v14200_v40 = vld [vmem:[#allocation19_spill] sm:$0xff] }
 0x1c7   :  { %v1350_v56 = vadd.f32 %v1349_v19, %v10444_v46  ;;  %v10880_v12 = vpop.f32.mrf.mxu3 }
 0x1c8   :  { %v2036_v4 = vmax.f32 %v1612_v23, 0.0 }
 0x1c9   :  { %v1439_v47 = vadd.f32 %v1438_v16, %v1350_v56  ;;  %1753 = vmatmul.bf16.gmra.mxu0 %v14196_v10  ;;  %1842 = vmatmul.bf16.gmra.mxu1 %v14197_v24 }
 0x1cb   :  { %v1524_v52 = vpop.f32.mrf.mxu2 }
 0x1cc   :  { %v1525_v26 = vadd.f32 %v1524_v52, %v1436_v21 }
 0x1ce   :  { %v1351_v53 = vpop.f32.mrf.mxu0  ;;  %v1440_v49 = vpop.f32.mrf.mxu1  ;;  %v1614_v32 = vadd.f32 %v10713_v29, %v1525_v26 }
 0x1cf   :  { %v1352_v38 = vadd.f32 %v1351_v53, %v10444_v46  ;;  %v10887_v57 = vpop.f32.mrf.mxu3 }
 0x1d0   :  { %v2038_v34 = vmax.f32 %v1614_v32, 0.0  ;;  %7298 = vmatmul.msk.bf16.gmra.mxu2 %vm703_vm4, %v14198_v48 }
 0x1d1   :  { %v1441_v18 = vadd.f32 %v1440_v49, %v1352_v38  ;;  %v14201_v49 = vld [vmem:[#allocation5_spill] sm:$0xff] }
 0x1d2   :  { %v10891_v14 = vpack.c.bf16 %v2038_v34, %v2036_v4 }
 0x1d3   :  { %v1527_v50 = vpop.f32.mrf.mxu2  ;;  %1699 = vmatmul.bf16.gmra.mxu3 %v10538_v27 }
 0x1d4   :  { %v1528_v58 = vadd.f32 %v1527_v50, %v1439_v47  ;;  %v8548_v50 = vld [vmem:[%s14026_s3 + $0x30] sm:$0xff] }
 0x1d6   :  { %v1354_v61 = vpop.f32.mrf.mxu0  ;;  %v1443_v44 = vpop.f32.mrf.mxu1  ;;  %v1617_v16 = vadd.f32 %v10766_v36, %v1528_v58  ;;  %v8549_v36 = vld [vmem:[%s14026_s3 + $0x38] sm:$0xff] }
 0x1d7   :  { %v1355_v29 = vadd.f32 %v1354_v61, %v10444_v46  ;;  %v10895_v21 = vpop.f32.mrf.mxu3  ;;  %2224 = vmatpush.bf16.msra.mxu3 %v8549_v36  ;;  %v14202_v61 = vld [vmem:[#allocation22_spill] sm:$0xff] }
 0x1d8   :  { %v2040_v23 = vmax.f32 %v1617_v16, 0.0 }
 0x1d9   :  { %v1444_v35 = vadd.f32 %v1443_v44, %v1355_v29  ;;  %1758 = vmatmul.bf16.gmra.mxu0 %v14199_v51  ;;  %1847 = vmatmul.bf16.gmra.mxu1 %v14200_v40  ;;  %v14203_v44 = vld [vmem:[#allocation23_spill] sm:$0xff] }
 0x1db   :  { %v1529_v19 = vpop.f32.mrf.mxu2  ;;  %2225 = vmatpush.bf16.msra.mxu3 %v8548_v50  ;;  %v14205_v50 = vld [vmem:[#allocation26_spill] sm:$0xff] }
 0x1dc   :  { %v1530_v56 = vadd.f32 %v1529_v19, %v1441_v18 }
 0x1de   :  { %v1356_v10 = vpop.f32.mrf.mxu0  ;;  %v1445_v24 = vpop.f32.mrf.mxu1  ;;  %v1619_v47 = vadd.f32 %v10783_v55, %v1530_v56 }
 0x1df   :  { %v1357_v27 = vadd.f32 %v1356_v10, %v10444_v46  ;;  %v10902_v52 = vpop.f32.mrf.mxu3 }
 0x1e0   :  { %v2042_v26 = vmax.f32 %v1619_v47, 0.0  ;;  %7299 = vmatmul.msk.bf16.gmra.mxu2 %vm703_vm4, %v14201_v49 }
 0x1e1   :  { %v1446_v53 = vadd.f32 %v1445_v24, %v1357_v27  ;;  %v8546_v24 = vld [vmem:[%s14026_s3 + $0x20] sm:$0xff] }
 0x1e2   :  { %v10906_v32 = vpack.c.bf16 %v2042_v26, %v2040_v23  ;;  %v14204_v26 = vld [vmem:[#allocation6_spill] sm:$0xff] }
 0x1e3   :  { %v1532_v38 = vpop.f32.mrf.mxu2  ;;  %1704 = vmatmul.bf16.gmra.mxu3 %v10566_v30  ;;  %v8547_v30 = vld [vmem:[%s14026_s3 + $0x28] sm:$0xff] }
 0x1e4   :  { %v1533_v4 = vadd.f32 %v1532_v38, %v1444_v35  ;;  %2226 = vmatpush.bf16.msra.mxu3 %v8547_v30 }
 0x1e6   :  { %v1359_v55 = vpop.f32.mrf.mxu0  ;;  %v1448_v34 = vpop.f32.mrf.mxu1  ;;  %v1622_v35 = vadd.f32 %v10802_v63, %v1533_v4 }
 0x1e7   :  { %v1360_v18 = vadd.f32 %v1359_v55, %v10444_v46  ;;  %v10913_v48 = vpop.f32.mrf.mxu3 }
 0x1e8   :  { %v2044_v47 = vmax.f32 %v1622_v35, 0.0  ;;  %2227 = vmatpush.bf16.msra.mxu3 %v8546_v24 }
 0x1e9   :  { %v1449_v58 = vadd.f32 %v1448_v34, %v1360_v18  ;;  %1763 = vmatmul.bf16.gmra.mxu0 %v14202_v61  ;;  %1852 = vmatmul.bf16.gmra.mxu1 %v14203_v44  ;;  %v8544_v34 = vld [vmem:[%s14026_s3 + $0x10] sm:$0xff]  ;;  %v14206_v61 = vld [vmem:[#allocation27_spill] sm:$0xff] }
 0x1eb   :  { %v1534_v29 = vpop.f32.mrf.mxu2 }
 0x1ec   :  { %v1535_v51 = vadd.f32 %v1534_v29, %v1446_v53 }
 0x1ee   :  { %v1361_v40 = vpop.f32.mrf.mxu0  ;;  %v1450_v19 = vpop.f32.mrf.mxu1  ;;  %v1624_v16 = vadd.f32 %v10813_v43, %v1535_v51  ;;  %v8545_v43 = vld [vmem:[%s14026_s3 + $0x18] sm:$0xff] }
 0x1ef   :  { %v1362_v56 = vadd.f32 %v1361_v40, %v10444_v46  ;;  %v10926_v10 = vpop.f32.mrf.mxu3  ;;  %2228 = vmatpush.bf16.msra.mxu3 %v8545_v43 }
 0x1f0   :  { %v2046_v27 = vmax.f32 %v1624_v16, 0.0  ;;  %7300 = vmatmul.msk.bf16.gmra.mxu2 %vm703_vm4, %v14204_v26  ;;  %v8542_v16 = vld [vmem:[%s14026_s3] sm:$0xff] }
 0x1f1   :  { %v1451_v23 = vadd.f32 %v1450_v19, %v1362_v56  ;;  %v9350_v56 = vld [vmem:[%s14025_s2] sm:$0x3] }
 0x1f2   :  { %v10933_v63 = vpack.c.bf16 %v2046_v27, %v2044_v47  ;;  %v10961_v24 = vperm.slane %v9350_v56, 1 }
 0x1f3   :  { %v1537_v53 = vpop.f32.mrf.mxu2  ;;  %1709 = vmatmul.bf16.gmra.mxu3 %v10652_v6  ;;  %v8543_v6 = vld [vmem:[%s14026_s3 + $0x8] sm:$0xff] }
 0x1f4   :  { %v1538_v49 = vadd.f32 %v1537_v53, %v1449_v58  ;;  %2229 = vmatpush.bf16.msra.mxu3 %v8544_v34  ;;  %v1646_v26 = vadd.f32 %v10850_v39, %v10961_v24  ;;  %v14208_v34 = vld [vmem:[#allocation29_spill] sm:$0xff] }
 0x1f6   :  { %v1364_v38 = vpop.f32.mrf.mxu0  ;;  %v1453_v36 = vpop.f32.mrf.mxu1  ;;  %v1627_v44 = vadd.f32 %v10820_v1, %v1538_v49 }
 0x1f7   :  { %v1365_v4 = vadd.f32 %v1364_v38, %v10444_v46  ;;  %v10940_v55 = vpop.f32.mrf.mxu3 }
 0x1f8   :  { %2230 = vmatpush.bf16.msra.mxu3 %v8543_v6  ;;  %v2048_v1 = vmax.f32 %v1627_v44, 0.0 }
 0x1f9   :  { %v1454_v18 = vadd.f32 %v1453_v36, %v1365_v4  ;;  %1768 = vmatmul.bf16.gmra.mxu0 %v14205_v50  ;;  %1857 = vmatmul.bf16.gmra.mxu1 %v14206_v61  ;;  %v14209_v50 = vld [vmem:[#allocation31_spill] sm:$0xff] }
 0x1fb   :  { %v1539_v58 = vpop.f32.mrf.mxu2 }
 0x1fc   :  { %v1540_v29 = vadd.f32 %v1539_v58, %v1451_v23  ;;  %v14207_v23 = vld [vmem:[#allocation7_spill] sm:$0xff]  ;;  %2231 = vmatpush.bf16.msra.mxu3 %v8542_v16  ;;  %v1648_v58 = vadd.f32 %v10857_v41, %v10961_v24  ;;  %v14210_v16 = vld [vmem:[#allocation8_spill] sm:$0xff] }
 0x1fe   :  { %v1366_v30 = vpop.f32.mrf.mxu0  ;;  %v1455_v35 = vpop.f32.mrf.mxu1  ;;  %v1629_v51 = vadd.f32 %v10827_v25, %v1540_v29 }
 0x1ff   :  { %v1367_v40 = vadd.f32 %v1366_v30, %v10444_v46  ;;  %v10953_v19 = vpop.f32.mrf.mxu3 }
 0x200   :  { %v2050_v47 = vmax.f32 %v1629_v51, 0.0  ;;  %7301 = vmatmul.msk.bf16.gmra.mxu2 %vm703_vm4, %v14207_v23 }
 0x201   :  { %v1456_v27 = vadd.f32 %v1455_v35, %v1367_v40 }
 0x202   :  { %v10965_v46 = vpack.c.bf16 %v2050_v47, %v2048_v1 }
 0x203   :  { %v1542_v25 = vpop.f32.mrf.mxu2  ;;  %1714 = vmatmul.bf16.gmra.mxu3 %v10744_v20 }
 0x204   :  { %v1543_v53 = vadd.f32 %v1542_v25, %v1454_v18  ;;  %v14211_v25 = vld [vmem:[#allocation34_spill] sm:$0xff] }
 0x206   :  { %v1734_v43 = vpop.f32.mrf.mxu0  ;;  %v1823_v49 = vpop.f32.mrf.mxu1  ;;  %v1632_v6 = vadd.f32 %v10835_v17, %v1543_v53  ;;  %v1651_v17 = vadd.f32 %v10865_v8, %v10961_v24 }
 0x207   :  { %v1735_v38 = vadd.f32 %v1734_v43, %v1646_v26  ;;  %v10970_v36 = vpop.f32.mrf.mxu3  ;;  %v1653_v43 = vadd.f32 %v10872_v45, %v10961_v24 }
 0x208   :  { %v2052_v30 = vmax.f32 %v1632_v6, 0.0 }
 0x209   :  { %v1824_v4 = vadd.f32 %v1823_v49, %v1735_v38  ;;  %1773 = vmatmul.bf16.gmra.mxu0 %v14208_v34  ;;  %1862 = vmatmul.bf16.gmra.mxu1 %v14209_v50 }
 0x20b   :  { %v1544_v61 = vpop.f32.mrf.mxu2 }
 0x20c   :  { %v1545_v39 = vadd.f32 %v1544_v61, %v1456_v27 }
 0x20e   :  { %v1736_v18 = vpop.f32.mrf.mxu0  ;;  %v1825_v44 = vpop.f32.mrf.mxu1  ;;  %v1634_v20 = vadd.f32 %v10842_v7, %v1545_v39 }
 0x20f   :  { %v1737_v29 = vadd.f32 %v1736_v18, %v1648_v58  ;;  %v10978_v40 = vpop.f32.mrf.mxu3  ;;  %v14212_v58 = vld [vmem:[#allocation11_spill] sm:$0xff] }
 0x210   :  { %v2054_v35 = vmax.f32 %v1634_v20, 0.0  ;;  %7302 = vmatmul.msk.bf16.gmra.mxu2 %vm703_vm4, %v14210_v16 }
 0x211   :  { %v1826_v51 = vadd.f32 %v1825_v44, %v1737_v29 }
 0x212   :  { %v10982_v56 = vpack.c.bf16 %v2054_v35, %v2052_v30  ;;  %v14213_v30 = vld [vmem:[#allocation35_spill] sm:$0xff] }
 0x213   :  { %v1912_v1 = vpop.f32.mrf.mxu2  ;;  %1719 = vmatmul.bf16.gmra.mxu3 %v10797_v31 }
 0x214   :  { %v1913_v41 = vadd.f32 %v1912_v1, %v1824_v4 }
 0x216   :  { %v1739_v47 = vpop.f32.mrf.mxu0  ;;  %v1828_v7 = vpop.f32.mrf.mxu1  ;;  %v1993_v4 = vmax.f32 %v1913_v41, 0.0 }
 0x217   :  { %v1740_v27 = vadd.f32 %v1739_v47, %v1651_v17  ;;  %v10989_v26 = vpop.f32.mrf.mxu3 }
 0x219   :  { %v1829_v23 = vadd.f32 %v1828_v7, %v1740_v27  ;;  %1778 = vmatmul.bf16.gmra.mxu0 %v14211_v25  ;;  %1867 = vmatmul.bf16.gmra.mxu1 %v10494_v0  ;;  %v1656_v0 = vadd.f32 %v10880_v12, %v10961_v24  ;;  %v14214_v25 = vld [vmem:[#allocation14_spill] sm:$0xff] }
 0x21b   :  { %v1914_v53 = vpop.f32.mrf.mxu2 }
 0x21c   :  { %v1915_v49 = vadd.f32 %v1914_v53, %v1826_v51  ;;  %v1658_v51 = vadd.f32 %v10887_v57, %v10961_v24 }
 0x21e   :  { %v1741_v38 = vpop.f32.mrf.mxu0  ;;  %v1830_v8 = vpop.f32.mrf.mxu1  ;;  %v1995_v34 = vmax.f32 %v1915_v49, 0.0 }
 0x21f   :  { %v1742_v31 = vadd.f32 %v1741_v38, %v1653_v43  ;;  %v10999_v39 = vpop.f32.mrf.mxu3 }
 0x220   :  { %v10993_v50 = vpack.c.bf16 %v1995_v34, %v1993_v4  ;;  %7303 = vmatmul.msk.bf16.gmra.mxu2 %vm703_vm4, %v14212_v58  ;;  %v14215_v34 = vld [vmem:[#allocation36_spill] sm:$0xff] }
 0x221   :  { %v1831_v61 = vadd.f32 %v1830_v8, %v1742_v31 }
 0x223   :  { %v1917_v6 = vpop.f32.mrf.mxu2  ;;  %2232 = vmatmul.bf16.vlgmr.msra.gmra.mxu3 %v10507_v15 }
 0x224   :  { %v1918_v18 = vadd.f32 %v1917_v6, %v1829_v23 }
 0x226   :  { %v1744_v45 = vpop.f32.mrf.mxu0  ;;  %v1833_v44 = vpop.f32.mrf.mxu1  ;;  %v1997_v17 = vmax.f32 %v1918_v18, 0.0 }
 0x227   :  { %v1745_v20 = vadd.f32 %v1744_v45, %v1656_v0  ;;  %v11006_v41 = vpop.f32.mrf.mxu3 }
 0x229   :  { %v1834_v29 = vadd.f32 %v1833_v44, %v1745_v20  ;;  %1783 = vmatmul.bf16.gmra.mxu0 %v14213_v30  ;;  %1872 = vmatmul.bf16.gmra.mxu1 %v10522_v13  ;;  %v1661_v13 = vadd.f32 %v10895_v21, %v10961_v24 }
 0x22b   :  { %v1919_v35 = vpop.f32.mrf.mxu2 }
 0x22c   :  { %v1920_v16 = vadd.f32 %v1919_v35, %v1831_v61  ;;  %v1663_v61 = vadd.f32 %v10902_v52, %v10961_v24 }
 0x22e   :  { %v1746_v1 = vpop.f32.mrf.mxu0  ;;  %v1835_v12 = vpop.f32.mrf.mxu1  ;;  %v1999_v47 = vmax.f32 %v1920_v16, 0.0 }
 0x22f   :  { %v1747_v7 = vadd.f32 %v1746_v1, %v1658_v51  ;;  %v11015_v8 = vpop.f32.mrf.mxu3 }
 0x230   :  { %v11008_v27 = vpack.c.bf16 %v1999_v47, %v1997_v17  ;;  %7304 = vmatmul.msk.bf16.gmra.mxu2 %vm703_vm4, %v14214_v25  ;;  %v14217_v47 = vld [vmem:[#allocation37_spill] sm:$0xff]  ;;  %v1668_v25 = vadd.f32 %v10926_v10, %v10961_v24  ;;  %v7386_v10 = vld [vmem:[%s14026_s3 + $0xa4] sm:$0xf] }
 0x231   :  { %v1836_v23 = vadd.f32 %v1835_v12, %v1747_v7  ;;  %v8559_v12 = vld [vmem:[%s14026_s3 + $0x8c] sm:$0xff]  ;;  %v14218_v7 = vld [vmem:[#allocation38_spill] sm:$0xff] }
 0x232   :  { %2490 = vmatpush.bf16.msra.mxu1 %v8559_v12  ;;  %v14220_v12 = vld [vmem:[#allocation39_spill] sm:$0xff] }
 0x233   :  { %v1922_v53 = vpop.f32.mrf.mxu2  ;;  %2237 = vmatmul.bf16.gmra.mxu3 %v10535_v3 }
 0x234   :  { %v1923_v43 = vadd.f32 %v1922_v53, %v1834_v29  ;;  %v14216_v29 = vld [vmem:[#allocation17_spill] sm:$0xff] }
 0x236   :  { %v1749_v57 = vpop.f32.mrf.mxu0  ;;  %v1838_v49 = vpop.f32.mrf.mxu1  ;;  %v2001_v0 = vmax.f32 %v1923_v43, 0.0 }
 0x237   :  { %v1750_v38 = vadd.f32 %v1749_v57, %v1661_v13  ;;  %v11025_v30 = vpop.f32.mrf.mxu3 }
 0x239   :  { %v1839_v4 = vadd.f32 %v1838_v49, %v1750_v38  ;;  %1788 = vmatmul.bf16.gmra.mxu0 %v14215_v34  ;;  %1877 = vmatmul.bf16.gmra.mxu1 %v10550_v60  ;;  %v1666_v60 = vadd.f32 %v10913_v48, %v10961_v24  ;;  %v8558_v48 = vld [vmem:[%s14026_s3 + $0x84] sm:$0xff]  ;;  %v8557_v34 = vld [vmem:[%s14026_s3 + $0x7c] sm:$0xff] }
 0x23a   :  { %2491 = vmatpush.bf16.msra.mxu1 %v8558_v48  ;;  %v1673_v48 = vadd.f32 %v10953_v19, %v10961_v24 }
 0x23b   :  { %v1924_v31 = vpop.f32.mrf.mxu2 }
 0x23c   :  { %v1925_v58 = vadd.f32 %v1924_v31, %v1836_v23 }
 0x23e   :  { %v1751_v6 = vpop.f32.mrf.mxu0  ;;  %v1840_v21 = vpop.f32.mrf.mxu1  ;;  %v2003_v18 = vmax.f32 %v1925_v58, 0.0  ;;  %v14219_v58 = vld [vmem:[#allocation21_spill] sm:$0xff]  ;;  %2492 = vmatpush.bf16.msra.mxu1 %v8557_v34 }
 0x23f   :  { %v1752_v45 = vadd.f32 %v1751_v6, %v1663_v61  ;;  %v11040_v53 = vpop.f32.mrf.mxu3  ;;  %v2465_v6 = vunpack.c.l.b16 %v7386_v10  ;;  %v8553_v34 = vld [vmem:[%s14026_s3 + $0x5c] sm:$0xff]  ;;  %v14221_v10 = vld [vmem:[#allocation24_spill] sm:$0xff] }
 0x240   :  { %v11021_v44 = vpack.c.bf16 %v2003_v18, %v2001_v0  ;;  %7305 = vmatmul.msk.bf16.gmra.mxu2 %vm703_vm4, %v14216_v29  ;;  %v8556_v18 = vld [vmem:[%s14026_s3 + $0x74] sm:$0xff] }
 0x241   :  { %v1841_v20 = vadd.f32 %v1840_v21, %v1752_v45  ;;  %v2476_v0 = vpack.c.b16 %v2465_v6, %v2465_v6  ;;  %v1671_v45 = vadd.f32 %v10940_v55, %v10961_v24  ;;  %v8555_v55 = vld [vmem:[%s14026_s3 + $0x6c] sm:$0xff] }
 0x242   :  { %2493 = vmatpush.bf16.msra.mxu1 %v8556_v18  ;;  %v1676_v18 = vadd.f32 %v10970_v36, %v10961_v24 }
 0x243   :  { %v1927_v35 = vpop.f32.mrf.mxu2  ;;  %2242 = vmatmul.bf16.gmra.mxu3 %v10563_v37 }
 0x244   :  { %v1928_v51 = vadd.f32 %v1927_v35, %v1839_v4 }
 0x246   :  { %v1754_v52 = vpop.f32.mrf.mxu0  ;;  %v1843_v16 = vpop.f32.mrf.mxu1  ;;  %v2005_v49 = vmax.f32 %v1928_v51, 0.0  ;;  %2494 = vmatpush.bf16.msra.mxu1 %v8555_v55  ;;  %v14223_v55 = vld [vmem:[#allocation41_spill] sm:$0xff] }
 0x247   :  { %v1755_v1 = vadd.f32 %v1754_v52, %v1666_v60  ;;  %v2488_v60 = vsel %vm605_vm3, %v2476_v0, 0  ;;  %v11059_v51 = vpop.f32.mrf.mxu3  ;;  %v8552_v0 = vld [vmem:[%s14026_s3 + $0x54] sm:$0xff] }
 0x248   :  { %2584 = vmatpush.bf16.msra.mxu2 %v2488_v60 }
 0x249   :  { %v1844_v17 = vadd.f32 %v1843_v16, %v1755_v1  ;;  %1793 = vmatmul.bf16.gmra.mxu0 %v14217_v47  ;;  %1882 = vmatmul.bf16.gmra.mxu1 %v14218_v7  ;;  %v2108_v16 = vld [vmem:[%s14026_s3 + $0x50] sm:$0xf] }
 0x24b   :  { %v1929_v23 = vpop.f32.mrf.mxu2 }
 0x24c   :  { %v1930_v13 = vadd.f32 %v1929_v23, %v1841_v20  ;;  %v8554_v23 = vld [vmem:[%s14026_s3 + $0x64] sm:$0xff] }
 0x24d   :  { %2495 = vmatpush.bf16.msra.mxu1 %v8554_v23 }
 0x24e   :  { %v1756_v43 = vpop.f32.mrf.mxu0  ;;  %v1845_v57 = vpop.f32.mrf.mxu1  ;;  %v2007_v38 = vmax.f32 %v1930_v13, 0.0 }
 0x24f   :  { %v1757_v4 = vadd.f32 %v1756_v43, %v1668_v25 }
 0x250   :  { %v11045_v31 = vpack.c.bf16 %v2007_v38, %v2005_v49  ;;  %7306 = vmatmul.msk.bf16.gmra.mxu2 %vm703_vm4, %v14219_v58  ;;  %v11081_v58 = vpop.f32.mrf.mxu3 }
 0x251   :  { %v1846_v61 = vadd.f32 %v1845_v57, %v1757_v4  ;;  %v8551_v4 = vld [vmem:[%s14026_s3 + $0x48] sm:$0xff]  ;;  %2496 = vmatpush.bf16.msra.mxu1 %v8553_v34 }
 0x253   :  { %v1932_v21 = vpop.f32.mrf.mxu2  ;;  %2247 = vmatmul.bf16.gmra.mxu3 %v10646_v2 }
 0x254   :  { %v1933_v20 = vadd.f32 %v1932_v21, %v1844_v17  ;;  %v2150_v17 = vunpack.c.l.b16 %v2108_v16  ;;  %v8550_v21 = vld [vmem:[%s14026_s3 + $0x40] sm:$0xff] }
 0x255   :  { %2497 = vmatpush.bf16.msra.mxu1 %v8552_v0 }
 0x256   :  { %v1759_v29 = vpop.f32.mrf.mxu0  ;;  %v1848_v35 = vpop.f32.mrf.mxu1  ;;  %v2161_v47 = vpack.c.b16 %v2150_v17, %v2150_v17  ;;  %v2009_v49 = vmax.f32 %v1933_v20, 0.0  ;;  %v14222_v20 = vld [vmem:[#allocation40_spill] sm:$0xff]  ;;  %v1678_v17 = vadd.f32 %v10978_v40, %v10961_v24 }
 0x257   :  { %v1760_v52 = vadd.f32 %v1759_v29, %v1671_v45 }
 0x258   :  { %v2222_v13 = vsel %vm605_vm3, %v2161_v47, 0 }
 0x259   :  { %v1849_v1 = vadd.f32 %v1848_v35, %v1760_v52  ;;  %1798 = vmatmul.bf16.gmra.mxu0 %v14220_v12  ;;  %1887 = vmatmul.bf16.gmra.mxu1 %v10698_v59  ;;  %v8561_v52 = vld [vmem:[%s14026_s3 + $0x9c] sm:$0xff]  ;;  %v11101_v12 = vpop.f32.mrf.mxu3 }
 0x25a   :  { %2318 = vmatpush.bf16.msra.mxu0 %v2222_v13  ;;  %2585 = vmatpush.bf16.msra.mxu2 %v8561_v52 }
 0x25b   :  { %v1934_v7 = vpop.f32.mrf.mxu2 }
 0x25c   :  { %v1935_v25 = vadd.f32 %v1934_v7, %v1846_v61 }
 0x25e   :  { %v1761_v43 = vpop.f32.mrf.mxu0  ;;  %v1850_v57 = vpop.f32.mrf.mxu1  ;;  %v2011_v59 = vmax.f32 %v1935_v25, 0.0  ;;  %2319 = vmatpush.bf16.msra.mxu0 %v8551_v4 }
 0x25f   :  { %v1762_v38 = vadd.f32 %v1761_v43, %v1673_v48 }
 0x260   :  { %v11083_v19 = vpack.c.bf16 %v2011_v59, %v2009_v49  ;;  %7307 = vmatmul.msk.bf16.gmra.mxu2 %vm703_vm4, %v14221_v10  ;;  %v1681_v59 = vadd.f32 %v10989_v26, %v10961_v24 }
 0x261   :  { %v1851_v61 = vadd.f32 %v1850_v57, %v1762_v38  ;;  %v14224_v57 = vld [vmem:[#allocation28_spill] sm:$0xff]  ;;  %v11114_v38 = vpop.f32.mrf.mxu3 }
 0x262   :  { %2320 = vmatpush.bf16.msra.mxu0 %v8550_v21  ;;  %v1683_v21 = vadd.f32 %v10999_v39, %v10961_v24 }
 0x263   :  { %v1937_v6 = vpop.f32.mrf.mxu2  ;;  %2252 = vmatmul.bf16.gmra.mxu3 %v14222_v20 }
 0x264   :  { %v1938_v45 = vadd.f32 %v1937_v6, %v1849_v1  ;;  %v8560_v1 = vld [vmem:[%s14026_s3 + $0x94] sm:$0xff]  ;;  %s9357_s3 = smov 80  }
 0x265   :  { %2586 = vmatpush.bf16.msra.mxu2 %v8560_v1 }
 0x266   :  { %v1764_v29 = vpop.f32.mrf.mxu0  ;;  %v1853_v35 = vpop.f32.mrf.mxu1  ;;  %v2013_v48 = vmax.f32 %v1938_v45, 0.0 }
 0x267   :  { %v1765_v60 = vadd.f32 %v1764_v29, %v1676_v18 }
 0x269   :  { %v1854_v16 = vadd.f32 %v1853_v35, %v1765_v60  ;;  %1803 = vmatmul.bf16.gmra.mxu0 %v14223_v55  ;;  %1892 = vmatmul.bf16.gmra.mxu1 %v10779_v5  ;;  %v11121_v45 = vpop.f32.mrf.mxu3  ;;  %v14225_v55 = vld [vmem:[#allocation32_spill] sm:$0xff] }
 0x26b   :  { %v1939_v36 = vpop.f32.mrf.mxu2 }
 0x26c   :  { %v1940_v47 = vadd.f32 %v1939_v36, %v1851_v61 }
 0x26e   :  { %v1766_v7 = vpop.f32.mrf.mxu0  ;;  %v1855_v23 = vpop.f32.mrf.mxu1  ;;  %v2015_v25 = vmax.f32 %v1940_v47, 0.0 }
 0x26f   :  { %v1767_v13 = vadd.f32 %v1766_v7, %v1678_v17 }
 0x270   :  { %v11108_v43 = vpack.c.bf16 %v2015_v25, %v2013_v48  ;;  %7308 = vmatmul.msk.bf16.gmra.mxu2 %vm703_vm4, %v14224_v57  ;;  %v1688_v48 = vadd.f32 %v11015_v8, %v10961_v24 }
 0x271   :  { %v1856_v5 = vadd.f32 %v1855_v23, %v1767_v13  ;;  %v11130_v47 = vpop.f32.mrf.mxu3 }
 0x273   :  { %v1942_v49 = vpop.f32.mrf.mxu2  ;;  %2257 = vmatmul.bf16.gmra.mxu3 %v10794_v42 }
 0x274   :  { %v1943_v40 = vadd.f32 %v1942_v49, %v1854_v16 }
 0x276   :  { %v1769_v4 = vpop.f32.mrf.mxu0  ;;  %v1858_v34 = vpop.f32.mrf.mxu1  ;;  %v2017_v29 = vmax.f32 %v1943_v40, 0.0 }
 0x277   :  { %v1770_v61 = vadd.f32 %v1769_v4, %v1681_v59 }
 0x279   :  { %v1859_v10 = vadd.f32 %v1858_v34, %v1770_v61  ;;  %1808 = vmatmul.bf16.gmra.mxu0 %v10799_v33  ;;  %1897 = vmatmul.bf16.gmra.mxu1 %v10809_v54  ;;  %v1686_v54 = vadd.f32 %v11006_v41, %v10961_v24  ;;  %v11141_v4 = vpop.f32.mrf.mxu3 }
 0x27b   :  { %v1944_v6 = vpop.f32.mrf.mxu2 }
 0x27c   :  { %v1945_v0 = vadd.f32 %v1944_v6, %v1856_v5 }
 0x27e   :  { %v1771_v18 = vpop.f32.mrf.mxu0  ;;  %v1860_v26 = vpop.f32.mrf.mxu1  ;;  %v2019_v35 = vmax.f32 %v1945_v0, 0.0 }
 0x27f   :  { %v1772_v60 = vadd.f32 %v1771_v18, %v1683_v21 }
 0x280   :  { %v11123_v52 = vpack.c.bf16 %v2019_v35, %v2017_v29  ;;  %7309 = vmatmul.msk.bf16.gmra.mxu2 %vm703_vm4, %v14225_v55 }
 0x281   :  { %v1861_v16 = vadd.f32 %v1860_v26, %v1772_v60  ;;  %v11151_v18 = vpop.f32.mrf.mxu3 }
 0x283   :  { %v1947_v33 = vpop.f32.mrf.mxu2  ;;  %2262 = vmatmul.bf16.gmra.mxu3 %v10816_v28 }
 0x284   :  { %v1948_v36 = vadd.f32 %v1947_v33, %v1859_v10 }
 0x286   :  { %v1774_v39 = vpop.f32.mrf.mxu0  ;;  %v1863_v1 = vpop.f32.mrf.mxu1  ;;  %v2021_v5 = vmax.f32 %v1948_v36, 0.0 }
 0x287   :  { %v1775_v17 = vadd.f32 %v1774_v39, %v1686_v54 }
 0x289   :  { %v1864_v7 = vadd.f32 %v1863_v1, %v1775_v17  ;;  %7350 = vmatmul.msk.bf16.vlgmr.msra.gmra.mxu0 %vm2172_vm7, %v10993_v50  ;;  %2498 = vmatmul.bf16.vlgmr.msra.gmra.mxu1 %v10507_v15  ;;  %v1691_v15 = vadd.f32 %v11025_v30, %v10961_v24  ;;  %v11160_v1 = vpop.f32.mrf.mxu3 }
 0x28b   :  { %v1949_v23 = vpop.f32.mrf.mxu2 }
 0x28c   :  { %v1950_v41 = vadd.f32 %v1949_v23, %v1861_v16 }
 0x28e   :  { %v1776_v25 = vpop.f32.mrf.mxu0  ;;  %v1865_v13 = vpop.f32.mrf.mxu1  ;;  %v2023_v57 = vmax.f32 %v1950_v41, 0.0 }
 0x28f   :  { %v1777_v49 = vadd.f32 %v1776_v25, %v1688_v48 }
 0x290   :  { %v11137_v59 = vpack.c.bf16 %v2023_v57, %v2021_v5  ;;  %7427 = vmatmul.msk.bf16.vlgmr.msra.gmra.mxu2 %vm2172_vm7, %v10993_v50  ;;  %v1693_v50 = vadd.f32 %v11040_v53, %v10961_v24 }
 0x291   :  { %v1866_v40 = vadd.f32 %v1865_v13, %v1777_v49  ;;  %v11167_v57 = vpop.f32.mrf.mxu3 }
 0x293   :  { %v1952_v34 = vpop.f32.mrf.mxu2  ;;  %2267 = vmatmul.bf16.gmra.mxu3 %v10831_v9 }
 0x294   :  { %v1953_v61 = vadd.f32 %v1952_v34, %v1864_v7 }
 0x296   :  { %v1779_v8 = vpop.f32.mrf.mxu0  ;;  %v1868_v10 = vpop.f32.mrf.mxu1  ;;  %v2025_v35 = vmax.f32 %v1953_v61, 0.0 }
 0x297   :  { %v1780_v6 = vadd.f32 %v1779_v8, %v1691_v15 }
 0x299   :  { %v1869_v21 = vadd.f32 %v1868_v10, %v1780_v6  ;;  %7351 = vmatmul.msk.bf16.gmra.mxu0 %vm2172_vm7, %v11008_v27  ;;  %2503 = vmatmul.bf16.gmra.mxu1 %v10535_v3  ;;  %v1696_v3 = vadd.f32 %v11059_v51, %v10961_v24  ;;  %v11179_v6 = vpop.f32.mrf.mxu3 }
 0x29b   :  { %v1954_v0 = vpop.f32.mrf.mxu2 }
 0x29c   :  { %v1955_v26 = vadd.f32 %v1954_v0, %v1866_v40 }
 0x29e   :  { %v1781_v30 = vpop.f32.mrf.mxu0  ;;  %v1870_v29 = vpop.f32.mrf.mxu1  ;;  %v2027_v60 = vmax.f32 %v1955_v26, 0.0 }
 0x29f   :  { %v1782_v16 = vadd.f32 %v1781_v30, %v1693_v50 }
 0x2a0   :  { %v11153_v55 = vpack.c.bf16 %v2027_v60, %v2025_v35  ;;  %7428 = vmatmul.msk.bf16.gmra.mxu2 %vm2172_vm7, %v11008_v27  ;;  %v1698_v27 = vadd.f32 %v11081_v58, %v10961_v24 }
 0x2a1   :  { %v1871_v33 = vadd.f32 %v1870_v29, %v1782_v16 }
 0x2a3   :  { %v1957_v54 = vpop.f32.mrf.mxu2  ;;  %2272 = vmatmul.bf16.gmra.mxu3 %v10846_v11 }
 0x2a4   :  { %v1958_v36 = vadd.f32 %v1957_v54, %v1869_v21 }
 0x2a6   :  { %v1784_v53 = vpop.f32.mrf.mxu0  ;;  %v1873_v39 = vpop.f32.mrf.mxu1  ;;  %v2029_v25 = vmax.f32 %v1958_v36, 0.0 }
 0x2a7   :  { %v1785_v17 = vadd.f32 %v1784_v53, %v1696_v3 }
 0x2a9   :  { %v1874_v7 = vadd.f32 %v1873_v39, %v1785_v17  ;;  %7352 = vmatmul.msk.bf16.gmra.mxu0 %vm2172_vm7, %v11021_v44  ;;  %2508 = vmatmul.bf16.gmra.mxu1 %v10563_v37  ;;  %v1701_v37 = vadd.f32 %v11101_v12, %v10961_v24 }
 0x2ab   :  { %v1959_v23 = vpop.f32.mrf.mxu2 }
 0x2ac   :  { %v1960_v48 = vadd.f32 %v1959_v23, %v1871_v33  ;;  %v11189_v33 = vpop.f32.mrf.mxu3 }
 0x2ae   :  { %v1786_v51 = vpop.f32.mrf.mxu0  ;;  %v1875_v41 = vpop.f32.mrf.mxu1  ;;  %v2031_v13 = vmax.f32 %v1960_v48, 0.0 }
 0x2af   :  { %v1787_v5 = vadd.f32 %v1786_v51, %v1698_v27 }
 0x2b0   :  { %v11169_v49 = vpack.c.bf16 %v2031_v13, %v2029_v25  ;;  %7429 = vmatmul.msk.bf16.gmra.mxu2 %vm2172_vm7, %v11021_v44  ;;  %v1703_v44 = vadd.f32 %v11114_v38, %v10961_v24 }
 0x2b1   :  { %v1876_v40 = vadd.f32 %v1875_v41, %v1787_v5 }
 0x2b3   :  { %v1962_v34 = vpop.f32.mrf.mxu2  ;;  %2277 = vmatmul.bf16.gmra.mxu3 %v10861_v62 }
 0x2b4   :  { %v1963_v15 = vadd.f32 %v1962_v34, %v1874_v7  ;;  %v11197_v23 = vpop.f32.mrf.mxu3 }
 0x2b6   :  { %v1789_v58 = vpop.f32.mrf.mxu0  ;;  %v1878_v61 = vpop.f32.mrf.mxu1  ;;  %v2033_v26 = vmax.f32 %v1963_v15, 0.0 }
 0x2b7   :  { %v1790_v8 = vadd.f32 %v1789_v58, %v1701_v37 }
 0x2b9   :  { %v1879_v10 = vadd.f32 %v1878_v61, %v1790_v8  ;;  %7353 = vmatmul.msk.bf16.gmra.mxu0 %vm2172_vm7, %v11045_v31  ;;  %2513 = vmatmul.bf16.gmra.mxu1 %v10646_v2  ;;  %v1706_v2 = vadd.f32 %v11121_v45, %v10961_v24 }
 0x2bb   :  { %v1964_v21 = vpop.f32.mrf.mxu2 }
 0x2bc   :  { %v1965_v0 = vadd.f32 %v1964_v21, %v1876_v40  ;;  %v11206_v37 = vpop.f32.mrf.mxu3 }
 0x2be   :  { %v1791_v12 = vpop.f32.mrf.mxu0  ;;  %v1880_v50 = vpop.f32.mrf.mxu1  ;;  %v2035_v30 = vmax.f32 %v1965_v0, 0.0 }
 0x2bf   :  { %v1792_v29 = vadd.f32 %v1791_v12, %v1703_v44 }
 0x2c0   :  { %v11183_v35 = vpack.c.bf16 %v2035_v30, %v2033_v26  ;;  %7430 = vmatmul.msk.bf16.gmra.mxu2 %vm2172_vm7, %v11045_v31  ;;  %v1708_v31 = vadd.f32 %v11130_v47, %v10961_v24 }
 0x2c1   :  { %v1881_v60 = vadd.f32 %v1880_v50, %v1792_v29 }
 0x2c3   :  { %v1967_v16 = vpop.f32.mrf.mxu2  ;;  %2282 = vmatmul.bf16.gmra.mxu3 %v10876_v22 }
 0x2c4   :  { %v1968_v54 = vadd.f32 %v1967_v16, %v1879_v10  ;;  %v11217_v50 = vpop.f32.mrf.mxu3 }
 0x2c6   :  { %v1794_v38 = vpop.f32.mrf.mxu0  ;;  %v1883_v3 = vpop.f32.mrf.mxu1  ;;  %v2037_v27 = vmax.f32 %v1968_v54, 0.0 }
 0x2c7   :  { %v1795_v36 = vadd.f32 %v1794_v38, %v1706_v2 }
 0x2c9   :  { %v1884_v53 = vadd.f32 %v1883_v3, %v1795_v36  ;;  %7354 = vmatmul.msk.bf16.gmra.mxu0 %vm2172_vm7, %v11083_v19  ;;  %2518 = vmatmul.bf16.gmra.mxu1 %v14222_v20  ;;  %v1711_v20 = vadd.f32 %v11141_v4, %v10961_v24 }
 0x2cb   :  { %v1969_v39 = vpop.f32.mrf.mxu2 }
 0x2cc   :  { %v1970_v17 = vadd.f32 %v1969_v39, %v1881_v60  ;;  %v11227_v54 = vpop.f32.mrf.mxu3 }
 0x2ce   :  { %v1796_v45 = vpop.f32.mrf.mxu0  ;;  %v1885_v7 = vpop.f32.mrf.mxu1  ;;  %v2039_v48 = vmax.f32 %v1970_v17, 0.0 }
 0x2cf   :  { %v1797_v51 = vadd.f32 %v1796_v45, %v1708_v31 }
 0x2d0   :  { %v11199_v41 = vpack.c.bf16 %v2039_v48, %v2037_v27  ;;  %7431 = vmatmul.msk.bf16.gmra.mxu2 %vm2172_vm7, %v11083_v19  ;;  %v1713_v19 = vadd.f32 %v11151_v18, %v10961_v24 }
 0x2d1   :  { %v1886_v25 = vadd.f32 %v1885_v7, %v1797_v51 }
 0x2d3   :  { %v1972_v13 = vpop.f32.mrf.mxu2  ;;  %2287 = vmatmul.bf16.gmra.mxu3 %v10891_v14 }
 0x2d4   :  { %v1973_v5 = vadd.f32 %v1972_v13, %v1884_v53  ;;  %v11236_v48 = vpop.f32.mrf.mxu3 }
 0x2d6   :  { %v1799_v47 = vpop.f32.mrf.mxu0  ;;  %v1888_v40 = vpop.f32.mrf.mxu1  ;;  %v2041_v10 = vmax.f32 %v1973_v5, 0.0 }
 0x2d7   :  { %v1800_v34 = vadd.f32 %v1799_v47, %v1711_v20 }
 0x2d9   :  { %v1889_v15 = vadd.f32 %v1888_v40, %v1800_v34  ;;  %7355 = vmatmul.msk.bf16.gmra.mxu0 %vm2172_vm7, %v11108_v43  ;;  %2523 = vmatmul.bf16.gmra.mxu1 %v10794_v42  ;;  %v1716_v42 = vadd.f32 %v11160_v1, %v10961_v24 }
 0x2db   :  { %v1974_v58 = vpop.f32.mrf.mxu2 }
 0x2dc   :  { %v1975_v61 = vadd.f32 %v1974_v58, %v1886_v25 }
 0x2de   :  { %v1801_v4 = vpop.f32.mrf.mxu0  ;;  %v1890_v8 = vpop.f32.mrf.mxu1  ;;  %v2043_v21 = vmax.f32 %v1975_v61, 0.0 }
 0x2df   :  { %v1802_v44 = vadd.f32 %v1801_v4, %v1713_v19 }
 0x2e0   :  { %v11213_v0 = vpack.c.bf16 %v2043_v21, %v2041_v10  ;;  %7432 = vmatmul.msk.bf16.gmra.mxu2 %vm2172_vm7, %v11108_v43  ;;  %v1718_v43 = vadd.f32 %v11167_v57, %v10961_v24 }
 0x2e1   :  { %v1891_v12 = vadd.f32 %v1890_v8, %v1802_v44 }
 0x2e3   :  { %v1977_v26 = vpop.f32.mrf.mxu2  ;;  %2292 = vmatmul.bf16.gmra.mxu3 %v10906_v32 }
 0x2e4   :  { %v1978_v30 = vadd.f32 %v1977_v26, %v1889_v15  ;;  %v11243_v15 = vpop.f32.mrf.mxu3 }
 0x2e6   :  { %v1804_v18 = vpop.f32.mrf.mxu0  ;;  %v1893_v29 = vpop.f32.mrf.mxu1  ;;  %v2045_v36 = vmax.f32 %v1978_v30, 0.0 }
 0x2e7   :  { %v1805_v60 = vadd.f32 %v1804_v18, %v1716_v42 }
 0x2e9   :  { %v1894_v16 = vadd.f32 %v1893_v29, %v1805_v60  ;;  %7356 = vmatmul.msk.bf16.gmra.mxu0 %vm2172_vm7, %v11123_v52  ;;  %2528 = vmatmul.bf16.gmra.mxu1 %v10816_v28  ;;  %v1721_v28 = vadd.f32 %v11179_v6, %v10961_v24 }
 0x2eb   :  { %v1979_v2 = vpop.f32.mrf.mxu2 }
 0x2ec   :  { %v1980_v38 = vadd.f32 %v1979_v2, %v1891_v12 }
 0x2ee   :  { %v1806_v1 = vpop.f32.mrf.mxu0  ;;  %v1895_v3 = vpop.f32.mrf.mxu1  ;;  %v2047_v53 = vmax.f32 %v1980_v38, 0.0 }
 0x2ef   :  { %v1807_v39 = vadd.f32 %v1806_v1, %v1718_v43 }
 0x2f0   :  { %v11229_v31 = vpack.c.bf16 %v2047_v53, %v2045_v36  ;;  %7433 = vmatmul.msk.bf16.gmra.mxu2 %vm2172_vm7, %v11123_v52  ;;  %v1723_v52 = vadd.f32 %v11189_v33, %v10961_v24  ;;  %v11253_v33 = vpop.f32.mrf.mxu3 }
 0x2f1   :  { %v1896_v17 = vadd.f32 %v1895_v3, %v1807_v39 }
 0x2f3   :  { %v1982_v45 = vpop.f32.mrf.mxu2  ;;  %2297 = vmatmul.bf16.gmra.mxu3 %v10933_v63 }
 0x2f4   :  { %v1983_v7 = vadd.f32 %v1982_v45, %v1894_v16 }
 0x2f6   :  { %v1809_v57 = vpop.f32.mrf.mxu0  ;;  %v1898_v27 = vpop.f32.mrf.mxu1  ;;  %v2049_v47 = vmax.f32 %v1983_v7, 0.0 }
 0x2f7   :  { %v1810_v51 = vadd.f32 %v1809_v57, %v1721_v28 }
 0x2f8   :  { %v11259_v30 = vpop.f32.mrf.mxu3 }
 0x2f9   :  { %v1899_v25 = vadd.f32 %v1898_v27, %v1810_v51  ;;  %7357 = vmatmul.msk.bf16.gmra.mxu0 %vm2172_vm7, %v11137_v59  ;;  %2533 = vmatmul.bf16.gmra.mxu1 %v10831_v9 }
 0x2fb   :  { %v1984_v13 = vpop.f32.mrf.mxu2 }
 0x2fc   :  { %v1985_v20 = vadd.f32 %v1984_v13, %v1896_v17 }
 0x2fe   :  { %v1811_v6 = vpop.f32.mrf.mxu0  ;;  %v1900_v5 = vpop.f32.mrf.mxu1  ;;  %v2051_v40 = vmax.f32 %v1985_v20, 0.0 }
 0x2ff   :  { %v1812_v34 = vadd.f32 %v1811_v6, %v1723_v52 }
 0x300   :  { %v11245_v58 = vpack.c.bf16 %v2051_v40, %v2049_v47  ;;  %7434 = vmatmul.msk.bf16.gmra.mxu2 %vm2172_vm7, %v11137_v59 }
 0x301   :  { %v1901_v19 = vadd.f32 %v1900_v5, %v1812_v34 }
 0x303   :  { %v1987_v61 = vpop.f32.mrf.mxu2  ;;  %2302 = vmatmul.bf16.gmra.mxu3 %v10965_v46 }
 0x304   :  { %v1988_v9 = vadd.f32 %v1987_v61, %v1899_v25 }
 0x306   :  { %v2322_v4 = vpop.f32.mrf.mxu0  ;;  %v2499_v24 = vpop.f32.mrf.mxu1  ;;  %v2053_v12 = vmax.f32 %v1988_v9, 0.0 }
 0x307   :  { %v2323_v53 = vadd.f32 %v2322_v4, %v11197_v23 }
 0x309   :  { %7358 = vmatmul.msk.bf16.gmra.mxu0 %vm2172_vm7, %v11153_v55  ;;  %2538 = vmatmul.bf16.gmra.mxu1 %v10846_v11 }
 0x30b   :  { %v1989_v8 = vpop.f32.mrf.mxu2 }
 0x30c   :  { %v1990_v10 = vadd.f32 %v1989_v8, %v1901_v19 }
 0x30e   :  { %v2324_v21 = vpop.f32.mrf.mxu0  ;;  %v2501_v44 = vpop.f32.mrf.mxu1  ;;  %v2055_v26 = vmax.f32 %v1990_v10, 0.0 }
 0x30f   :  { %v2325_v43 = vadd.f32 %v2324_v21, %v11206_v37 }
 0x310   :  { %v11255_v59 = vpack.c.bf16 %v2055_v26, %v2053_v12  ;;  %7435 = vmatmul.msk.bf16.gmra.mxu2 %vm2172_vm7, %v11153_v55  ;;  %v11267_v55 = vpop.f32.mrf.mxu3 }
 0x313   :  { %v2588_v42 = vpop.f32.mrf.mxu2  ;;  %2307 = vmatmul.bf16.gmra.mxu3 %v10982_v56 }
 0x314   :  { %v2589_v38 = vadd.f32 %v2588_v42, %v2499_v24 }
 0x316   :  { %v2327_v18 = vpop.f32.mrf.mxu0  ;;  %v2504_v11 = vpop.f32.mrf.mxu1  ;;  %v2668_v28 = vmax.f32 %v2323_v53, %v2589_v38 }
 0x317   :  { %v2328_v3 = vadd.f32 %v2327_v18, %v11217_v50 }
 0x318   :  { %v2732_v37 = vrot.slane %v2668_v28, 1  ;;  %v11275_v27 = vpop.f32.mrf.mxu3 }
 0x319   :  { %7359 = vmatmul.msk.bf16.gmra.mxu0 %vm2172_vm7, %v11169_v49  ;;  %2543 = vmatmul.bf16.gmra.mxu1 %v10861_v62 }
 0x31b   :  { %v2590_v29 = vpop.f32.mrf.mxu2 }
 0x31c   :  { %v2591_v2 = vadd.f32 %v2590_v29, %v2501_v44 }
 0x31e   :  { %v2329_v60 = vpop.f32.mrf.mxu0  ;;  %v2506_v16 = vpop.f32.mrf.mxu1  ;;  %v2669_v39 = vmax.f32 %v2325_v43, %v2591_v2 }
 0x31f   :  { %v2330_v50 = vadd.f32 %v2329_v60, %v11227_v54 }
 0x320   :  { %7436 = vmatmul.msk.bf16.gmra.mxu2 %vm2172_vm7, %v11169_v49  ;;  %v2733_v49 = vrot.slane %v2669_v39, 1  ;;  %v11298_v12 = vpop.f32.mrf.mxu3 }
 0x322   :  { %v2734_v25 = vsel %vm119_vm1, %v2732_v37, %v2733_v49 }
 0x323   :  { %v2593_v1 = vpop.f32.mrf.mxu2  ;;  %v11282_v5 = vmax.f32 %v2668_v28, %v2734_v25 }
 0x324   :  { %v2594_v36 = vadd.f32 %v2593_v1, %v2504_v11 }
 0x325   :  { %v3052_v4 = vrot.slane %v11282_v5, 4  ;;  %v2892_v21 = vrot.slane %v11282_v5, 2 }
 0x326   :  { %v2332_v62 = vpop.f32.mrf.mxu0  ;;  %v2509_v17 = vpop.f32.mrf.mxu1  ;;  %v2670_v45 = vmax.f32 %v2328_v3, %v2594_v36 }
 0x327   :  { %v2333_v61 = vadd.f32 %v2332_v62, %v11236_v48 }
 0x328   :  { %v2735_v7 = vrot.slane %v2670_v45, 1 }
 0x329   :  { %7360 = vmatmul.msk.bf16.gmra.mxu0 %vm2172_vm7, %v11183_v35  ;;  %2548 = vmatmul.bf16.gmra.mxu1 %v10876_v22 }
 0x32a   :  { %v2736_v23 = vsel %vm119_vm1, %v2733_v49, %v2735_v7 }
 0x32b   :  { %v2595_v57 = vpop.f32.mrf.mxu2  ;;  %v11280_v6 = vmax.f32 %v2669_v39, %v2736_v23  ;;  %v3213_v39 = vrot.slane %v11282_v5, 6 }
 0x32c   :  { %v2596_v51 = vadd.f32 %v2595_v57, %v2506_v16 }
 0x32d   :  { %v3053_v34 = vrot.slane %v11280_v6, 4  ;;  %v2893_v19 = vrot.slane %v11280_v6, 2  ;;  %v3214_v38 = vrot.slane %v11280_v6, 6 }
 0x32e   :  { %v2334_v13 = vpop.f32.mrf.mxu0  ;;  %v2511_v52 = vpop.f32.mrf.mxu1  ;;  %v2671_v20 = vmax.f32 %v2330_v50, %v2596_v51 }
 0x32f   :  { %v3054_v48 = vsel %vm605_vm3, %v3052_v4, %v3053_v34  ;;  %v2894_v18 = vsel %vm281_vm0, %v2892_v21, %v2893_v19  ;;  %v2335_v1 = vadd.f32 %v2334_v13, %v11243_v15  ;;  %v3215_v28 = vsel %vm3212_vm8, %v3213_v39, %v3214_v38 }
 0x330   :  { %v2737_v22 = vrot.slane %v2671_v20, 1  ;;  %7437 = vmatmul.msk.bf16.gmra.mxu2 %vm2172_vm7, %v11183_v35 }
 0x332   :  { %v2738_v47 = vsel %vm119_vm1, %v2735_v7, %v2737_v22  ;;  %v11319_v7 = vpop.f32.mrf.mxu3 }
 0x333   :  { %v11287_v40 = vmax.f32 %v2670_v45, %v2738_v47  ;;  %v2598_v54 = vpop.f32.mrf.mxu2 }
 0x334   :  { %v2599_v9 = vadd.f32 %v2598_v54, %v2509_v17 }
 0x335   :  { %v9023_v10 = vpack.i.bf16 %v11287_v40, %v11280_v6  ;;  %v3055_v35 = vrot.slane %v11287_v40, 4  ;;  %v2895_v44 = vrot.slane %v11287_v40, 2  ;;  %v3216_v2 = vrot.slane %v11287_v40, 6 }
 0x336   :  { %v2337_v24 = vpop.f32.mrf.mxu0  ;;  %v2514_v8 = vpop.f32.mrf.mxu1  ;;  %v2672_v26 = vmax.f32 %v2333_v61, %v2599_v9 }
 0x337   :  { %9024 = vrot.lane.b32.xlu1 %v9023_v10, %s9357_s3  ;;  %v3056_v42 = vsel %vm605_vm3, %v3053_v34, %v3055_v35  ;;  %v2896_v11 = vsel %vm281_vm0, %v2893_v19, %v2895_v44  ;;  %v3217_v62 = vsel %vm3212_vm8, %v3214_v38, %v3216_v2  ;;  %v2338_v25 = vadd.f32 %v2337_v24, %v11253_v33 }
 0x338   :  { %v2739_v29 = vrot.slane %v2672_v26, 1  ;;  %v9033_v60 = vpack.i.bf16 %v3056_v42, %v3054_v48  ;;  %v9028_v16 = vpack.i.bf16 %v2896_v11, %v2894_v18  ;;  %v9038_v15 = vpack.i.bf16 %v3217_v62, %v3215_v28 }
 0x339   :  { %7361 = vmatmul.msk.bf16.gmra.mxu0 %vm2172_vm7, %v11199_v41  ;;  %2553 = vmatmul.bf16.gmra.mxu1 %v10891_v14 }
 0x33a   :  { %9034 = vrot.lane.b32.xlu2 %v9033_v60, %s9358_s19  ;;  %9029 = vrot.lane.b32.xlu0 %v9028_v16, %s9359_s30  ;;  %v2740_v3 = vsel %vm119_vm1, %v2737_v22, %v2739_v29  ;;  %v11343_v10 = vpop.f32.mrf.mxu3 }
 0x33b   :  { %v2600_v43 = vpop.f32.mrf.mxu2  ;;  %v11316_v45 = vmax.f32 %v2671_v20, %v2740_v3 }
 0x33c   :  { %v2601_v36 = vadd.f32 %v2600_v43, %v2511_v52 }
 0x33d   :  { %v3057_v23 = vrot.slane %v11316_v45, 4  ;;  %v2897_v51 = vrot.slane %v11316_v45, 2  ;;  %v3218_v21 = vrot.slane %v11316_v45, 6 }
 0x33e   :  { %v2339_v14 = vpop.f32.mrf.mxu0  ;;  %v2516_v53 = vpop.f32.mrf.mxu1  ;;  %v2673_v17 = vmax.f32 %v2335_v1, %v2601_v36 }
 0x33f   :  { %v3058_v34 = vsel %vm605_vm3, %v3055_v35, %v3057_v23  ;;  %v2898_v61 = vsel %vm281_vm0, %v2895_v44, %v2897_v51  ;;  %v2340_v44 = vadd.f32 %v2339_v14, %v11259_v30  ;;  %v3219_v60 = vsel %vm3212_vm8, %v3216_v2, %v3218_v21 }
 0x340   :  { %v2741_v49 = vrot.slane %v2673_v17, 1  ;;  %7438 = vmatmul.msk.bf16.gmra.mxu2 %vm2172_vm7, %v11199_v41 }
 0x342   :  { %v2742_v37 = vsel %vm119_vm1, %v2739_v29, %v2741_v49  ;;  %9039 = vrot.lane.b32.xlu0 %v9038_v15, %s9360_s0  ;;  %v11362_v14 = vpop.f32.mrf.mxu3 }
 0x343   :  { %v11325_v57 = vmax.f32 %v2672_v26, %v2742_v37  ;;  %v2603_v50 = vpop.f32.mrf.mxu2 }
 0x344   :  { %v2604_v13 = vadd.f32 %v2603_v50, %v2514_v8 }
 0x345   :  { %v9043_v41 = vpack.i.bf16 %v11325_v57, %v11316_v45  ;;  %v3059_v22 = vrot.slane %v11325_v57, 4  ;;  %v2899_v47 = vrot.slane %v11325_v57, 2  ;;  %v3220_v8 = vrot.slane %v11325_v57, 6 }
 0x346   :  { %v2342_v52 = vpop.f32.mrf.mxu0  ;;  %v2519_v20 = vpop.f32.mrf.mxu1  ;;  %v2674_v54 = vmax.f32 %v2338_v25, %v2604_v13 }
 0x347   :  { %9044 = vrot.lane.b32.xlu2 %v9043_v41, %s9357_s3  ;;  %v3060_v19 = vsel %vm605_vm3, %v3057_v23, %v3059_v22  ;;  %v2900_v33 = vsel %vm281_vm0, %v2897_v51, %v2899_v47  ;;  %v3221_v18 = vsel %vm3212_vm8, %v3218_v21, %v3220_v8  ;;  %v2343_v2 = vadd.f32 %v2342_v52, %v11267_v55 }
 0x348   :  { %v2743_v9 = vrot.slane %v2674_v54, 1  ;;  %v9053_v4 = vpack.i.bf16 %v3060_v19, %v3058_v34  ;;  %v9048_v24 = vpack.i.bf16 %v2900_v33, %v2898_v61  ;;  %v9058_v43 = vpack.i.bf16 %v3221_v18, %v3219_v60 }
 0x349   :  { %7362 = vmatmul.msk.bf16.gmra.mxu0 %vm2172_vm7, %v11213_v0  ;;  %2558 = vmatmul.bf16.gmra.mxu1 %v10906_v32 }
 0x34a   :  { %9054 = vrot.lane.b32.xlu0 %v9053_v4, %s9358_s19  ;;  %9049 = vrot.lane.b32.xlu1 %v9048_v24, %s9359_s30  ;;  %v2744_v26 = vsel %vm119_vm1, %v2741_v49, %v2743_v9  ;;  %v11384_v19 = vpop.f32.mrf.mxu3 }
 0x34b   :  { %v2605_v35 = vpop.f32.mrf.mxu2  ;;  %v11351_v29 = vmax.f32 %v2673_v17, %v2744_v26 }
 0x34c   :  { %v2606_v48 = vadd.f32 %v2605_v35, %v2516_v53 }
 0x34d   :  { %v3061_v3 = vrot.slane %v11351_v29, 4  ;;  %v2901_v36 = vrot.slane %v11351_v29, 2 }
 0x34e   :  { %v2344_v42 = vpop.f32.mrf.mxu0  ;;  %v2521_v32 = vpop.f32.mrf.mxu1  ;;  %v2675_v11 = vmax.f32 %v2340_v44, %v2606_v48 }
 0x34f   :  { %v3062_v15 = vsel %vm605_vm3, %v3059_v22, %v3061_v3  ;;  %v2902_v50 = vsel %vm281_vm0, %v2899_v47, %v2901_v36  ;;  %v2345_v41 = vadd.f32 %v2344_v42, %v11275_v27 }
 0x350   :  { %v2745_v16 = vrot.slane %v2675_v11, 1  ;;  %7439 = vmatmul.msk.bf16.gmra.mxu2 %vm2172_vm7, %v11213_v0 }
 0x352   :  { %v2746_v38 = vsel %vm119_vm1, %v2743_v9, %v2745_v16  ;;  %9059 = vrot.lane.b32.xlu1 %v9058_v43, %s9360_s0 }
 0x353   :  { %v11358_v30 = vmax.f32 %v2674_v54, %v2746_v38  ;;  %v2608_v1 = vpop.f32.mrf.mxu2 }
 0x354   :  { %v2609_v53 = vadd.f32 %v2608_v1, %v2519_v20  ;;  %v3222_v20 = vrot.slane %v11351_v29, 6  ;;  %v11407_v1 = vpop.f32.mrf.mxu3 }
 0x355   :  { %v9063_v0 = vpack.i.bf16 %v11358_v30, %v11351_v29  ;;  %v3063_v17 = vrot.slane %v11358_v30, 4  ;;  %v2903_v28 = vrot.slane %v11358_v30, 2  ;;  %v3224_v13 = vrot.slane %v11358_v30, 6 }
 0x356   :  { %v2347_v39 = vpop.f32.mrf.mxu0  ;;  %v2524_v62 = vpop.f32.mrf.mxu1  ;;  %v2676_v49 = vmax.f32 %v2343_v2, %v2609_v53  ;;  %v3223_v9 = vsel %vm3212_vm8, %v3220_v8, %v3222_v20 }
 0x357   :  { %9064 = vrot.lane.b32.xlu0 %v9063_v0, %s9357_s3  ;;  %v3064_v37 = vsel %vm605_vm3, %v3061_v3, %v3063_v17  ;;  %v2904_v55 = vsel %vm281_vm0, %v2901_v36, %v2903_v28  ;;  %v2348_v48 = vadd.f32 %v2347_v39, %v11298_v12 }
 0x358   :  { %v2747_v23 = vrot.slane %v2676_v49, 1  ;;  %v9073_v51 = vpack.i.bf16 %v3064_v37, %v3062_v15  ;;  %v9068_v25 = vpack.i.bf16 %v2904_v55, %v2902_v50 }
 0x359   :  { %7363 = vmatmul.msk.bf16.gmra.mxu0 %vm2172_vm7, %v11229_v31  ;;  %2563 = vmatmul.bf16.gmra.mxu1 %v10933_v63  ;;  %v3225_v63 = vsel %vm3212_vm8, %v3222_v20, %v3224_v13 }
 0x35a   :  { %9074 = vrot.lane.b32.xlu1 %v9073_v51, %s9358_s19  ;;  %9069 = vrot.lane.b32.xlu2 %v9068_v25, %s9359_s30  ;;  %v2748_v22 = vsel %vm119_vm1, %v2745_v16, %v2747_v23  ;;  %v9078_v24 = vpack.i.bf16 %v3225_v63, %v3223_v9  ;;  %v8577_v25 = vld [vmem:[%s14027_s4 + $0x74] sm:$0xf0]  ;;  %v7493_v63 = vld [vmem:[%s14027_s4 + $0x60] sm:$0xf] }
 0x35b   :  { %v2610_v52 = vpop.f32.mrf.mxu2  ;;  %v11386_v33 = vmax.f32 %v2675_v11, %v2748_v22 }
 0x35c   :  { %v2611_v47 = vadd.f32 %v2610_v52, %v2521_v32  ;;  %v11432_v20 = vpop.f32.mrf.mxu3 }
 0x35d   :  { %v3065_v44 = vrot.slane %v11386_v33, 4  ;;  %v2905_v26 = vrot.slane %v11386_v33, 2 }
 0x35e   :  { %v2349_v54 = vpop.f32.mrf.mxu0  ;;  %v2526_v34 = vpop.f32.mrf.mxu1  ;;  %v2677_v61 = vmax.f32 %v2345_v41, %v2611_v47 }
 0x35f   :  { %v3066_v16 = vsel %vm605_vm3, %v3063_v17, %v3065_v44  ;;  %v2906_v38 = vsel %vm281_vm0, %v2903_v28, %v2905_v26  ;;  %v2350_v0 = vadd.f32 %v2349_v54, %v11319_v7  ;;  %v7501_v7 = vld [vmem:[%s14027_s4 + $0x70] sm:$0xf] }
 0x360   :  { %v2749_v4 = vrot.slane %v2677_v61, 1  ;;  %7440 = vmatmul.msk.bf16.gmra.mxu2 %vm2172_vm7, %v11229_v31  ;;  %v7502_v52 = vor.u32 %v8577_v25, %v7501_v7  ;;  %v7477_v7 = vld [vmem:[%s14027_s4 + $0x40] sm:$0xf] }
 0x362   :  { %v2750_v27 = vsel %vm119_vm1, %v2747_v23, %v2749_v4  ;;  %9079 = vrot.lane.b32.xlu2 %v9078_v24, %s9360_s0  ;;  %4044 = vmatpush.bf16.msrb.mxu3 %v7502_v52 }
 0x363   :  { %v11393_v35 = vmax.f32 %v2676_v49, %v2750_v27  ;;  %v2613_v21 = vpop.f32.mrf.mxu2 }
 0x364   :  { %v2614_v42 = vadd.f32 %v2613_v21, %v2524_v62  ;;  %v3226_v62 = vrot.slane %v11386_v33, 6 }
 0x365   :  { %v9083_v31 = vpack.i.bf16 %v11393_v35, %v11386_v33  ;;  %v3067_v18 = vrot.slane %v11393_v35, 4  ;;  %v2907_v11 = vrot.slane %v11393_v35, 2  ;;  %v3228_v53 = vrot.slane %v11393_v35, 6 }
 0x366   :  { %v2352_v8 = vpop.f32.mrf.mxu0  ;;  %v2529_v32 = vpop.f32.mrf.mxu1  ;;  %v2678_v60 = vmax.f32 %v2348_v48, %v2614_v42  ;;  %v3227_v55 = vsel %vm3212_vm8, %v3224_v13, %v3226_v62 }
 0x367   :  { %9084 = vrot.lane.b32.xlu1 %v9083_v31, %s9357_s3  ;;  %v3068_v43 = vsel %vm605_vm3, %v3065_v44, %v3067_v18  ;;  %v2908_v12 = vsel %vm281_vm0, %v2905_v26, %v2907_v11  ;;  %v2353_v54 = vadd.f32 %v2352_v8, %v11343_v10 }
 0x368   :  { %v2751_v3 = vrot.slane %v2678_v60, 1  ;;  %v9093_v36 = vpack.i.bf16 %v3068_v43, %v3066_v16  ;;  %v9088_v2 = vpack.i.bf16 %v2908_v12, %v2906_v38  ;;  %v8573_v16 = vld [vmem:[%s14027_s4 + $0x54] sm:$0xf0]  ;;  %v7565_v43 = vld [vmem:[%s14027_s4 + $0xf0] sm:$0xf] }
 0x369   :  { %7364 = vmatmul.msk.bf16.gmra.mxu0 %vm2172_vm7, %v11245_v58  ;;  %2568 = vmatmul.bf16.gmra.mxu1 %v10965_v46  ;;  %v3229_v46 = vsel %vm3212_vm8, %v3226_v62, %v3228_v53 }
 0x36a   :  { %9094 = vrot.lane.b32.xlu2 %v9093_v36, %s9358_s19  ;;  %9089 = vrot.lane.b32.xlu0 %v9088_v2, %s9359_s30  ;;  %v2752_v17 = vsel %vm119_vm1, %v2749_v4, %v2751_v3  ;;  %v9098_v51 = vpack.i.bf16 %v3229_v46, %v3227_v55  ;;  %v7629_v36 = vld [vmem:[%s14027_s4 + $0x170] sm:$0xf]  ;;  %v11499_v46 = vpop.f32.mrf.mxu3 }
 0x36b   :  { %v2615_v39 = vpop.f32.mrf.mxu2  ;;  %v11421_v50 = vmax.f32 %v2677_v61, %v2752_v17  ;;  %v8575_v61 = vld [vmem:[%s14027_s4 + $0x64] sm:$0xf0] }
 0x36c   :  { %v2616_v28 = vadd.f32 %v2615_v39, %v2526_v34  ;;  %v7494_v44 = vor.u32 %v8575_v61, %v7493_v63  ;;  %v8607_v63 = vld [vmem:[%s14027_s4 + $0x164] sm:$0xf0] }
 0x36d   :  { %v2909_v47 = vrot.slane %v11421_v50, 2 }
 0x36e   :  { %v2354_v49 = vpop.f32.mrf.mxu0  ;;  %v2531_v15 = vpop.f32.mrf.mxu1  ;;  %v2679_v37 = vmax.f32 %v2350_v0, %v2616_v28  ;;  %4045 = vmatpush.bf16.msrb.mxu3 %v7494_v44  ;;  %v3717_v0 = vld [vmem:[%s14027_s4 + $0x1a0] sm:$0x33]  ;;  %v8609_v28 = vld [vmem:[%s14027_s4 + $0x174] sm:$0xf0] }
 0x36f   :  { %v2910_v42 = vsel %vm281_vm0, %v2907_v11, %v2909_v47  ;;  %v7485_v11 = vld [vmem:[%s14027_s4 + $0x50] sm:$0xf]  ;;  %v2355_v2 = vadd.f32 %v2354_v49, %v11362_v14  ;;  %v3881_v14 = vunpack.c.l.b16 %v3717_v0  ;;  %v7630_v49 = vor.u32 %v8609_v28, %v7629_v36  ;;  %v7461_v28 = vld [vmem:[%s14027_s4 + $0x20] sm:$0xf] }
 0x370   :  { %v2753_v23 = vrot.slane %v2679_v37, 1  ;;  %7441 = vmatmul.msk.bf16.gmra.mxu2 %vm2172_vm7, %v11245_v58  ;;  %v3069_v58 = vrot.slane %v11421_v50, 4  ;;  %v7486_v12 = vor.u32 %v8573_v16, %v7485_v11  ;;  %v7613_v11 = vld [vmem:[%s14027_s4 + $0x150] sm:$0xf]  ;;  %v8605_v16 = vld [vmem:[%s14027_s4 + $0x154] sm:$0xf0] }
 0x371   :  { %v3935_v52 = vpack.c.b16 %v3881_v14, %v3881_v14  ;;  %4222 = vmatpush.bf16.msrb.mxu1 %v7630_v49  ;;  %v8587_v14 = vld [vmem:[%s14027_s4 + $0xc4] sm:$0xf0] }
 0x372   :  { %v2754_v41 = vsel %vm119_vm1, %v2751_v3, %v2753_v23  ;;  %9099 = vrot.lane.b32.xlu0 %v9098_v51, %s9360_s0  ;;  %v3070_v26 = vsel %vm605_vm3, %v3067_v18, %v3069_v58  ;;  %v8593_v3 = vld [vmem:[%s14027_s4 + $0xf4] sm:$0xf0]  ;;  %4046 = vmatpush.bf16.msrb.mxu3 %v7486_v12  ;;  %v7614_v12 = vor.u32 %v8605_v16, %v7613_v11 }
 0x373   :  { %v11436_v13 = vmax.f32 %v2678_v60, %v2754_v41  ;;  %v2618_v22 = vpop.f32.mrf.mxu2  ;;  %v7566_v17 = vor.u32 %v8593_v3, %v7565_v43  ;;  %v8571_v41 = vld [vmem:[%s14027_s4 + $0x44] sm:$0xf0]  ;;  %v8601_v16 = vld [vmem:[%s14027_s4 + $0x134] sm:$0xf0] }
 0x374   :  { %v2619_v34 = vadd.f32 %v2618_v22, %v2529_v32  ;;  %v7557_v22 = vld [vmem:[%s14027_s4 + $0xe0] sm:$0xf] }
 0x375   :  { %v9103_v24 = vpack.i.bf16 %v11436_v13, %v11421_v50  ;;  %v3071_v27 = vrot.slane %v11436_v13, 4  ;;  %v2911_v10 = vrot.slane %v11436_v13, 2  ;;  %v3232_v18 = vrot.slane %v11436_v13, 6  ;;  %4133 = vmatpush.bf16.msrb.mxu0 %v7566_v17 }
 0x376   :  { %v11447_v9 = vpop.f32.mrf.mxu0  ;;  %v11449_v4 = vpop.f32.mrf.mxu1  ;;  %v11455_v21 = vmax.f32 %v2353_v54, %v2619_v34  ;;  %v7478_v34 = vor.u32 %v8571_v41, %v7477_v7  ;;  %v7645_v41 = vld [vmem:[%s14027_s4 + $0x190] sm:$0xf] }
 0x377   :  { %9104 = vrot.lane.b32.xlu2 %v9103_v24, %s9357_s3  ;;  %v3072_v48 = vsel %vm605_vm3, %v3069_v58, %v3071_v27  ;;  %v2912_v8 = vsel %vm281_vm0, %v2909_v47, %v2911_v10  ;;  %v8591_v58 = vld [vmem:[%s14027_s4 + $0xe4] sm:$0xf0]  ;;  %v4039_v24 = vsel %vm3212_vm8, %v3935_v52, 0  ;;  %v2358_v3 = vadd.f32 %v11447_v9, %v11384_v19 }
 0x378   :  { %v2755_v32 = vrot.slane %v11455_v21, 1  ;;  %v9113_v31 = vpack.i.bf16 %v3072_v48, %v3070_v26  ;;  %v9108_v60 = vpack.i.bf16 %v2912_v8, %v2910_v42  ;;  %v7558_v44 = vor.u32 %v8591_v58, %v7557_v22  ;;  %4316 = vmatpush.bf16.msrb.mxu2 %v4039_v24  ;;  %4047 = vmatpush.bf16.msrb.mxu3 %v7478_v34  ;;  %v7469_v48 = vld [vmem:[%s14027_s4 + $0x30] sm:$0xf]  ;;  %v8569_v42 = vld [vmem:[%s14027_s4 + $0x34] sm:$0xf0] }
 0x379   :  { %7365 = vmatmul.msk.bf16.gmra.mxu0 %vm2172_vm7, %v11255_v59  ;;  %2573 = vmatmul.bf16.gmra.mxu1 %v10982_v56  ;;  %v3230_v56 = vrot.slane %v11421_v50, 6  ;;  %v7549_v8 = vld [vmem:[%s14027_s4 + $0xd0] sm:$0xf]  ;;  %v8603_v52 = vld [vmem:[%s14027_s4 + $0x144] sm:$0xf0] }
 0x37a   :  { %v2756_v38 = vsel %vm119_vm1, %v2753_v23, %v2755_v32  ;;  %9114 = vrot.lane.b32.xlu0 %v9113_v31, %s9358_s19  ;;  %9109 = vrot.lane.b32.xlu1 %v9108_v60, %s9359_s30  ;;  %v7470_v31 = vor.u32 %v8569_v42, %v7469_v48  ;;  %v8589_v60 = vld [vmem:[%s14027_s4 + $0xd4] sm:$0xf0]  ;;  %v7533_v48 = vld [vmem:[%s14027_s4 + $0xb0] sm:$0xf] }
 0x37b   :  { %v11491_v39 = vmax.f32 %v2679_v37, %v2756_v38  ;;  %v2620_v62 = vpop.f32.mrf.mxu2  ;;  %v3233_v23 = vsel %vm3212_vm8, %v3230_v56, %v3232_v18  ;;  %4134 = vmatpush.bf16.msrb.mxu0 %v7558_v44  ;;  %v7453_v44 = vld [vmem:[%s14027_s4 + $0x10] sm:$0xf] }
 0x37c   :  { %v2621_v55 = vadd.f32 %v2620_v62, %v2531_v15  ;;  %v3231_v15 = vsel %vm3212_vm8, %v3228_v53, %v3230_v56  ;;  %v7621_v53 = vld [vmem:[%s14027_s4 + $0x160] sm:$0xf]  ;;  %v7550_v56 = vor.u32 %v8589_v60, %v7549_v8  ;;  %4048 = vmatpush.bf16.msrb.mxu3 %v7470_v31  ;;  %v7597_v31 = vld [vmem:[%s14027_s4 + $0x130] sm:$0xf] }
 0x37d   :  { %v9118_v47 = vpack.i.bf16 %v3233_v23, %v3231_v15  ;;  %v3073_v54 = vrot.slane %v11491_v39, 4  ;;  %v7622_v26 = vor.u32 %v8607_v63, %v7621_v53  ;;  %v2913_v38 = vrot.slane %v11491_v39, 2  ;;  %v7541_v23 = vld [vmem:[%s14027_s4 + $0xc0] sm:$0xf] }
 0x37e   :  { %v11504_v37 = vpop.f32.mrf.mxu0  ;;  %v11506_v51 = vpop.f32.mrf.mxu1  ;;  %v11511_v25 = vmax.f32 %v2355_v2, %v2621_v55  ;;  %v7605_v15 = vld [vmem:[%s14027_s4 + $0x140] sm:$0xf]  ;;  %v7542_v53 = vor.u32 %v8587_v14, %v7541_v23  ;;  %v3234_v8 = vrot.slane %v11491_v39, 6 }
 0x37f   :  { %4223 = vmatpush.bf16.msrb.mxu1 %v7622_v26  ;;  %v11576_v55 = vpop.f32.mrf.mxu3  ;;  %v3074_v9 = vsel %vm605_vm3, %v3071_v27, %v3073_v54  ;;  %4135 = vmatpush.bf16.msrb.mxu0 %v7550_v56  ;;  %v2914_v27 = vsel %vm281_vm0, %v2911_v10, %v2913_v38  ;;  %v7606_v63 = vor.u32 %v8603_v52, %v7605_v15  ;;  %v8565_v26 = vld [vmem:[%s14027_s4 + $0x14] sm:$0xf0] }
 0x380   :  { %v2757_v61 = vrot.slane %v11511_v25, 1  ;;  %7442 = vmatmul.msk.bf16.gmra.mxu2 %vm2172_vm7, %v11255_v59  ;;  %v2360_v42 = vadd.f32 %v11504_v37, %v11407_v1  ;;  %v7454_v1 = vor.u32 %v8565_v26, %v7453_v44  ;;  %v3235_v14 = vsel %vm3212_vm8, %v3232_v18, %v3234_v8  ;;  %v8599_v18 = vld [vmem:[%s14027_s4 + $0x124] sm:$0xf0] }
 0x382   :  { %v2758_v59 = vsel %vm119_vm1, %v2755_v32, %v2757_v61  ;;  %9119 = vrot.lane.b32.xlu1 %v9118_v47, %s9360_s0 }
 0x383   :  { %v11559_v43 = vmax.f32 %v11455_v21, %v2758_v59  ;;  %v2623_v32 = vpop.f32.mrf.mxu2  ;;  %4224 = vmatpush.bf16.msrb.mxu1 %v7614_v12  ;;  %v8585_v59 = vld [vmem:[%s14027_s4 + $0xb4] sm:$0xf0]  ;;  %4136 = vmatpush.bf16.msrb.mxu0 %v7542_v53 }
 0x384   :  { %v2624_v36 = vadd.f32 %v2623_v32, %v11449_v4  ;;  %v8567_v4 = vld [vmem:[%s14027_s4 + $0x24] sm:$0xf0]  ;;  %v7534_v37 = vor.u32 %v8585_v59, %v7533_v48  ;;  %v7637_v32 = vld [vmem:[%s14027_s4 + $0x180] sm:$0xf] }
 0x385   :  { %v9123_v0 = vpack.i.bf16 %v11559_v43, %v11491_v39  ;;  %v3075_v21 = vrot.slane %v11559_v43, 4  ;;  %v2915_v17 = vrot.slane %v11559_v43, 2  ;;  %v3236_v47 = vrot.slane %v11559_v43, 6 }
 0x386   :  { %v11565_v2 = vpop.f32.mrf.mxu0  ;;  %v11567_v62 = vpop.f32.mrf.mxu1  ;;  %v11578_v19 = vmax.f32 %v2358_v3, %v2624_v36  ;;  %v7462_v34 = vor.u32 %v8567_v4, %v7461_v28  ;;  %v7445_v28 = vld [vmem:[%s14027_s4] sm:$0xf] }
 0x387   :  { %9124 = vrot.lane.b32.xlu0 %v9123_v0, %s9357_s3  ;;  %v3076_v49 = vsel %vm605_vm3, %v3073_v54, %v3075_v21  ;;  %v2916_v7 = vsel %vm281_vm0, %v2913_v38, %v2915_v17  ;;  %v8613_v54 = vld [vmem:[%s14027_s4 + $0x194] sm:$0xf0]  ;;  %v8611_v38 = vld [vmem:[%s14027_s4 + $0x184] sm:$0xf0]  ;;  %4225 = vmatpush.bf16.msrb.mxu1 %v7606_v63  ;;  %v3237_v0 = vsel %vm3212_vm8, %v3234_v8, %v3236_v47  ;;  %v7525_v4 = vld [vmem:[%s14027_s4 + $0xa0] sm:$0xf] }
 0x388   :  { %v2759_v22 = vrot.slane %v11578_v19, 1  ;;  %v9133_v10 = vpack.i.bf16 %v3076_v49, %v3074_v9  ;;  %v9128_v58 = vpack.i.bf16 %v2916_v7, %v2914_v27  ;;  %v7646_v24 = vor.u32 %v8613_v54, %v7645_v41  ;;  %4049 = vmatpush.bf16.msrb.mxu3 %v7462_v34  ;;  %4137 = vmatpush.bf16.msrb.mxu0 %v7534_v37  ;;  %v8583_v49 = vld [vmem:[%s14027_s4 + $0xa4] sm:$0xf0]  ;;  %v7589_v27 = vld [vmem:[%s14027_s4 + $0x120] sm:$0xf]  ;;  %v11679_v7 = vpop.f32.mrf.mxu3 }
 0x389   :  { %v7638_v12 = vor.u32 %v8611_v38, %v7637_v32  ;;  %v7526_v41 = vor.u32 %v8583_v49, %v7525_v4  ;;  %v8581_v54 = vld [vmem:[%s14027_s4 + $0x94] sm:$0xf0]  ;;  %v7581_v34 = vld [vmem:[%s14027_s4 + $0x110] sm:$0xf]  ;;  %v7573_v37 = vld [vmem:[%s14027_s4 + $0x100] sm:$0xf] }
 0x38a   :  { %9134 = vrot.lane.b32.xlu1 %v9133_v10, %s9358_s19  ;;  %9129 = vrot.lane.b32.xlu2 %v9128_v58, %s9359_s30  ;;  %v2760_v60 = vsel %vm119_vm1, %v2757_v61, %v2759_v22  ;;  %v7598_v61 = vor.u32 %v8601_v16, %v7597_v31  ;;  %v7590_v10 = vor.u32 %v8599_v18, %v7589_v27  ;;  %v7517_v58 = vld [vmem:[%s14027_s4 + $0x90] sm:$0xf]  ;;  %v8597_v63 = vld [vmem:[%s14027_s4 + $0x114] sm:$0xf0] }
 0x38b   :  { %v2625_v11 = vpop.f32.mrf.mxu2  ;;  %4317 = vmatpush.bf16.msrb.mxu2 %v7646_v24  ;;  %v11668_v23 = vmax.f32 %v11511_v25, %v2760_v60  ;;  %v9138_v25 = vpack.i.bf16 %v3237_v0, %v3235_v14  ;;  %v7518_v48 = vor.u32 %v8581_v54, %v7517_v58  ;;  %v7582_v59 = vor.u32 %v8597_v63, %v7581_v34  ;;  %v8595_v16 = vld [vmem:[%s14027_s4 + $0x104] sm:$0xf0] }
 0x38c   :  { %v2626_v56 = vadd.f32 %v2625_v11, %v11506_v51  ;;  %v8563_v51 = vld [vmem:[%s14027_s4 + $0x4] sm:$0xf0]  ;;  %4050 = vmatpush.bf16.msrb.mxu3 %v7454_v1  ;;  %4226 = vmatpush.bf16.msrb.mxu1 %v7598_v61  ;;  %v7509_v1 = vld [vmem:[%s14027_s4 + $0x80] sm:$0xf]  ;;  %v7574_v4 = vor.u32 %v8595_v16, %v7573_v37 }
 0x38d   :  { %v7446_v52 = vor.u32 %v8563_v51, %v7445_v28  ;;  %v3077_v26 = vrot.slane %v11668_v23, 4  ;;  %4138 = vmatpush.bf16.msrb.mxu0 %v7526_v41  ;;  %v2917_v8 = vrot.slane %v11668_v23, 2 }
 0x38e   :  { %v11649_v3 = vpop.f32.mrf.mxu0  ;;  %v11651_v36 = vpop.f32.mrf.mxu1  ;;  %v11659_v9 = vmax.f32 %v2360_v42, %v2626_v56  ;;  %v2363_v42 = vadd.f32 %v11565_v2, %v11432_v20  ;;  %v8579_v20 = vld [vmem:[%s14027_s4 + $0x84] sm:$0xf0] }
 0x38f   :  { %4318 = vmatpush.bf16.msrb.mxu2 %v7638_v12  ;;  %v3078_v32 = vsel %vm605_vm3, %v3075_v21, %v3077_v26  ;;  %v7510_v56 = vor.u32 %v8579_v20, %v7509_v1  ;;  %v2918_v0 = vsel %vm281_vm0, %v2915_v17, %v2917_v8  ;;  %v2365_v27 = vadd.f32 %v11649_v3, %v11499_v46 }
 0x390   :  { %v2761_v15 = vrot.slane %v11659_v9, 1  ;;  %4051 = vmatpush.bf16.msrb.mxu3 %v7446_v52  ;;  %4227 = vmatpush.bf16.msrb.mxu1 %v7590_v10  ;;  %v11732_v14 = vpop.f32.mrf.mxu3  ;;  %v3238_v52 = vrot.slane %v11668_v23, 6 }
 0x391   :  { %4139 = vmatpush.bf16.msrb.mxu0 %v7518_v48 }
 0x392   :  { %v2762_v53 = vsel %vm119_vm1, %v2759_v22, %v2761_v15  ;;  %9139 = vrot.lane.b32.xlu2 %v9138_v25, %s9360_s0  ;;  %v3239_v46 = vsel %vm3212_vm8, %v3236_v47, %v3238_v52 }
 0x393   :  { %v11700_v24 = vmax.f32 %v11578_v19, %v2762_v53  ;;  %v2628_v44 = vpop.f32.mrf.mxu2 }
 0x394   :  { %v2629_v22 = vadd.f32 %v2628_v44, %v11567_v62  ;;  %4228 = vmatpush.bf16.msrb.mxu1 %v7582_v59 }
 0x395   :  { %v9143_v19 = vpack.i.bf16 %v11700_v24, %v11668_v23  ;;  %v3079_v11 = vrot.slane %v11700_v24, 4  ;;  %v2919_v62 = vrot.slane %v11700_v24, 2  ;;  %v3240_v21 = vrot.slane %v11700_v24, 6  ;;  %4140 = vmatpush.bf16.msrb.mxu0 %v7510_v56 }
 0x396   :  { %v2367_v31 = vpop.f32.mrf.mxu0  ;;  %v2544_v60 = vpop.f32.mrf.mxu1  ;;  %v2684_v2 = vmax.f32 %v2363_v42, %v2629_v22 }
 0x397   :  { %9144 = vrot.lane.b32.xlu1 %v9143_v19, %s9357_s3  ;;  %v3080_v38 = vsel %vm605_vm3, %v3077_v26, %v3079_v11  ;;  %v2920_v28 = vsel %vm281_vm0, %v2917_v8, %v2919_v62  ;;  %v3241_v58 = vsel %vm3212_vm8, %v3238_v52, %v3240_v21 }
 0x398   :  { %v2763_v61 = vrot.slane %v2684_v2, 1  ;;  %v9153_v12 = vpack.i.bf16 %v3080_v38, %v3078_v32  ;;  %v9148_v51 = vpack.i.bf16 %v2920_v28, %v2918_v0  ;;  %4229 = vmatpush.bf16.msrb.mxu1 %v7574_v4  ;;  %v9158_v3 = vpack.i.bf16 %v3241_v58, %v3239_v46  ;;  %v11757_v26 = vpop.f32.mrf.mxu3 }
 0x39a   :  { %9154 = vrot.lane.b32.xlu2 %v9153_v12, %s9358_s19  ;;  %9149 = vrot.lane.b32.xlu0 %v9148_v51, %s9359_s30  ;;  %v2764_v17 = vsel %vm119_vm1, %v2761_v15, %v2763_v61 }
 0x39b   :  { %v2630_v49 = vpop.f32.mrf.mxu2  ;;  %v11746_v54 = vmax.f32 %v11659_v9, %v2764_v17  ;;  %v2368_v9 = vadd.f32 %v2367_v31, %v11576_v55 }
 0x39c   :  { %v2631_v25 = vadd.f32 %v2630_v49, %v11651_v36 }
 0x39d   :  { %v3081_v63 = vrot.slane %v11746_v54, 4  ;;  %v2921_v44 = vrot.slane %v11746_v54, 2 }
 0x39e   :  { %v2369_v41 = vpop.f32.mrf.mxu0  ;;  %v2546_v18 = vpop.f32.mrf.mxu1  ;;  %v2685_v10 = vmax.f32 %v2365_v27, %v2631_v25 }
 0x39f   :  { %v3082_v1 = vsel %vm605_vm3, %v3079_v11, %v3081_v63  ;;  %v2922_v55 = vsel %vm281_vm0, %v2919_v62, %v2921_v44  ;;  %v3242_v62 = vrot.slane %v11746_v54, 6  ;;  %v2370_v12 = vadd.f32 %v2369_v41, %v11679_v7 }
 0x3a0   :  { %v2765_v34 = vrot.slane %v2685_v10, 1  ;;  %v11788_v7 = vpop.f32.mrf.mxu3 }
 0x3a2   :  { %v2766_v36 = vsel %vm119_vm1, %v2763_v61, %v2765_v34  ;;  %9159 = vrot.lane.b32.xlu0 %v9158_v3, %s9360_s0 }
 0x3a3   :  { %v11752_v15 = vmax.f32 %v2684_v2, %v2766_v36  ;;  %v2633_v53 = vpop.f32.mrf.mxu2 }
 0x3a4   :  { %v2634_v48 = vadd.f32 %v2633_v53, %v2544_v60  ;;  %v9035_v60 = vpop.permute.xlu2 %9034 }
 0x3a5   :  { %v9163_v47 = vpack.i.bf16 %v11752_v15, %v11746_v54  ;;  %v3083_v8 = vrot.slane %v11752_v15, 4  ;;  %v2923_v59 = vrot.slane %v11752_v15, 2  ;;  %v3244_v38 = vrot.slane %v11752_v15, 6 }
 0x3a6   :  { %v2372_v42 = vpop.f32.mrf.mxu0  ;;  %v2549_v22 = vpop.f32.mrf.mxu1  ;;  %v2686_v19 = vmax.f32 %v2368_v9, %v2634_v48  ;;  %v9036_v9 = vunpack.i.l.bf16 %v9035_v60 }
 0x3a7   :  { %9164 = vrot.lane.b32.xlu2 %v9163_v47, %s9357_s3  ;;  %v3084_v20 = vsel %vm605_vm3, %v3081_v63, %v3083_v8  ;;  %v2924_v31 = vsel %vm281_vm0, %v2921_v44, %v2923_v59  ;;  %v3245_v52 = vsel %vm3212_vm8, %v3242_v62, %v3244_v38  ;;  %v9037_v44 = vunpack.i.h.bf16 %v9035_v60 }
 0x3a8   :  { %v9173_v2 = vpack.i.bf16 %v3084_v20, %v3082_v1  ;;  %v9168_v37 = vpack.i.bf16 %v2924_v31, %v2922_v55  ;;  %v2767_v16 = vrot.slane %v2686_v19, 1  ;;  %v2373_v47 = vadd.f32 %v2372_v42, %v11732_v14 }
 0x3a9   :  { %v9025_v32 = vpop.permute.xlu1 %9024 }
 0x3aa   :  { %v9027_v56 = vunpack.i.h.bf16 %v9025_v32  ;;  %v9026_v61 = vunpack.i.l.bf16 %v9025_v32  ;;  %9169 = vrot.lane.b32.xlu1 %v9168_v37, %s9359_s30  ;;  %9174 = vrot.lane.b32.xlu0 %v9173_v2, %s9358_s19  ;;  %v2768_v4 = vsel %vm119_vm1, %v2765_v34, %v2767_v16  ;;  %v3243_v34 = vsel %vm3212_vm8, %v3240_v21, %v3242_v62 }
 0x3ab   :  { %v2635_v11 = vpop.f32.mrf.mxu2  ;;  %v11799_v3 = vmax.f32 %v2685_v10, %v2768_v4  ;;  %v9178_v63 = vpack.i.bf16 %v3245_v52, %v3243_v34 }
 0x3ac   :  { %v11778_v0 = vpack.c.bf16 %v9027_v56, %v9026_v61  ;;  %v2636_v28 = vadd.f32 %v2635_v11, %v2546_v18  ;;  %v9030_v51 = vpop.permute.xlu0 %9029  ;;  %v11797_v46 = vpop.permute.xlu2 %9044 }
 0x3ad   :  { %v9032_v49 = vunpack.i.h.bf16 %v9030_v51  ;;  %v9031_v27 = vunpack.i.l.bf16 %v9030_v51  ;;  %v9046_v10 = vunpack.i.l.bf16 %v11797_v46  ;;  %v3085_v55 = vrot.slane %v11799_v3, 4 }
 0x3ae   :  { %v2374_v17 = vpop.f32.mrf.mxu0  ;;  %v2551_v25 = vpop.f32.mrf.mxu1  ;;  %v11784_v58 = vmax.f32 %v2370_v12, %v2636_v28  ;;  %7651 = vmatmul.msk.bf16.vlgmr.msrb.gmra.mxu2 %vm3989_vm9, %v11778_v0 }
 0x3af   :  { %v3472_v41 = vsel %vm3470_vm10, %v11280_v6, %v9032_v49  ;;  %v3471_v18 = vsel %vm3470_vm10, %v11282_v5, %v9031_v27  ;;  %v9047_v5 = vunpack.i.h.bf16 %v11797_v46  ;;  %v3504_v31 = vsel %vm2172_vm7, %v9032_v49, %v9037_v44 }
 0x3b0   :  { %v2769_v36 = vrot.slane %v11784_v58, 1  ;;  %v11802_v53 = vpack.c.bf16 %v3472_v41, %v3471_v18  ;;  %v3503_v32 = vsel %vm2172_vm7, %v9031_v27, %v9036_v9  ;;  %v3086_v49 = vsel %vm605_vm3, %v3083_v8, %v3085_v55  ;;  %v11834_v27 = vpop.f32.mrf.mxu3 }
 0x3b1   :  { %v2375_v44 = vadd.f32 %v2374_v17, %v11757_v26 }
 0x3b2   :  { %v2770_v6 = vsel %vm119_vm1, %v2767_v16, %v2769_v36  ;;  %4052 = vmatmul.bf16.vlgmr.msrb.gmra.mxu3 %v11802_v53  ;;  %9179 = vrot.lane.b32.xlu1 %v9178_v63, %s9360_s0  ;;  %v11850_v63 = vpack.c.bf16 %v9047_v5, %v9046_v10 }
 0x3b3   :  { %v11808_v21 = vmax.f32 %v2686_v19, %v2770_v6  ;;  %v2638_v48 = vpop.f32.mrf.mxu2  ;;  %v2925_v19 = vrot.slane %v11799_v3, 2 }
 0x3b4   :  { %v2639_v1 = vadd.f32 %v2638_v48, %v2549_v22  ;;  %v9040_v20 = vpop.permute.xlu0 %9039 }
 0x3b5   :  { %v9042_v60 = vunpack.i.h.bf16 %v9040_v20  ;;  %v9041_v2 = vunpack.i.l.bf16 %v9040_v20  ;;  %v9183_v62 = vpack.i.bf16 %v11808_v21, %v11799_v3  ;;  %v3087_v14 = vrot.slane %v11808_v21, 4 }
 0x3b6   :  { %v2377_v37 = vpop.f32.mrf.mxu0  ;;  %v2554_v16 = vpop.f32.mrf.mxu1  ;;  %v2688_v11 = vmax.f32 %v2373_v47, %v2639_v1  ;;  %v2926_v8 = vsel %vm281_vm0, %v2923_v59, %v2925_v19 }
 0x3b7   :  { %v3570_v42 = vsel %vm3568_vm12, %v9042_v60, %v9027_v56  ;;  %v3536_v22 = vsel %vm3535_vm11, %v3503_v32, %v9041_v2  ;;  %v3537_v12 = vsel %vm3535_vm11, %v3504_v31, %v9042_v60  ;;  %v3569_v28 = vsel %vm3568_vm12, %v9041_v2, %v9026_v61  ;;  %9184 = vrot.lane.b32.xlu0 %v9183_v62, %s9357_s3 }
 0x3b8   :  { %v11823_v51 = vpack.c.bf16 %v3537_v12, %v3536_v22  ;;  %v11825_v4 = vpack.c.bf16 %v3570_v42, %v3569_v28  ;;  %v3088_v56 = vsel %vm605_vm3, %v3085_v55, %v3087_v14  ;;  %v2771_v52 = vrot.slane %v2688_v11, 1 }
 0x3b9   :  { %v9193_v41 = vpack.i.bf16 %v3088_v56, %v3086_v49  ;;  %v2927_v61 = vrot.slane %v11808_v21, 2  ;;  %v3248_v55 = vrot.slane %v11808_v21, 6  ;;  %v11883_v49 = vpop.permute.xlu2 %9069  ;;  %v2378_v56 = vadd.f32 %v2377_v37, %v11788_v7 }
 0x3ba   :  { %4141 = vmatmul.bf16.vlgmr.msrb.gmra.mxu0 %v11823_v51  ;;  %4230 = vmatmul.bf16.vlgmr.msrb.gmra.mxu1 %v11825_v4  ;;  %v2772_v47 = vsel %vm119_vm1, %v2769_v36, %v2771_v52 }
 0x3bb   :  { %9194 = vrot.lane.b32.xlu1 %v9193_v41, %s9358_s19  ;;  %v2928_v18 = vsel %vm281_vm0, %v2925_v19, %v2927_v61  ;;  %v2640_v34 = vpop.f32.mrf.mxu2  ;;  %v11866_v36 = vmax.f32 %v11784_v58, %v2772_v47 }
 0x3bc   :  { %v9188_v9 = vpack.i.bf16 %v2928_v18, %v2926_v8  ;;  %v2641_v6 = vadd.f32 %v2640_v34, %v2551_v25  ;;  %v9050_v48 = vpop.permute.xlu1 %9049  ;;  %v9055_v2 = vpop.permute.xlu0 %9054  ;;  %v3246_v25 = vrot.slane %v11799_v3, 6 }
 0x3bd   :  { %v9052_v1 = vunpack.i.h.bf16 %v9050_v48  ;;  %v9051_v59 = vunpack.i.l.bf16 %v9050_v48  ;;  %v9057_v22 = vunpack.i.h.bf16 %v9055_v2  ;;  %v3089_v18 = vrot.slane %v11866_v36, 4 }
 0x3be   :  { %v2379_v20 = vpop.f32.mrf.mxu0  ;;  %9189 = vrot.lane.b32.xlu2 %v9188_v9, %s9359_s30  ;;  %v11856_v31 = vmax.f32 %v2375_v44, %v2641_v6  ;;  %v2556_v60 = vpop.f32.mrf.mxu1  ;;  %7652 = vmatmul.msk.bf16.gmra.mxu2 %vm3989_vm9, %v11850_v63  ;;  %v3249_v62 = vsel %vm3212_vm8, %v3246_v25, %v3248_v55  ;;  %v3247_v58 = vsel %vm3212_vm8, %v3244_v38, %v3246_v25 }
 0x3bf   :  { %v3473_v26 = vsel %vm3470_vm10, %v11287_v40, %v9051_v59  ;;  %v3474_v17 = vsel %vm3470_vm10, %v11316_v45, %v9052_v1  ;;  %v9056_v40 = vunpack.i.l.bf16 %v9055_v2  ;;  %v11876_v45 = vpop.f32.mrf.mxu3  ;;  %v9198_v41 = vpack.i.bf16 %v3249_v62, %v3247_v58 }
 0x3c0   :  { %v2773_v19 = vrot.slane %v11856_v31, 1  ;;  %v11869_v32 = vpack.c.bf16 %v3474_v17, %v3473_v26  ;;  %v3506_v38 = vsel %vm2172_vm7, %v9052_v1, %v9057_v22  ;;  %v9071_v22 = vunpack.i.l.bf16 %v11883_v49 }
 0x3c1   :  { %v3505_v48 = vsel %vm2172_vm7, %v9051_v59, %v9056_v40  ;;  %v3090_v46 = vsel %vm605_vm3, %v3087_v14, %v3089_v18 }
 0x3c2   :  { %v2774_v42 = vsel %vm119_vm1, %v2771_v52, %v2773_v19  ;;  %4057 = vmatmul.bf16.gmra.mxu3 %v11869_v32 }
 0x3c3   :  { %v11878_v12 = vmax.f32 %v2688_v11, %v2774_v42  ;;  %v2643_v28 = vpop.f32.mrf.mxu2  ;;  %v9072_v42 = vunpack.i.h.bf16 %v11883_v49 }
 0x3c4   :  { %v2644_v8 = vadd.f32 %v2643_v28, %v2554_v16  ;;  %v9060_v52 = vpop.permute.xlu1 %9059  ;;  %v2929_v16 = vrot.slane %v11866_v36, 2 }
 0x3c5   :  { %v9062_v34 = vunpack.i.h.bf16 %v9060_v52  ;;  %v9061_v44 = vunpack.i.l.bf16 %v9060_v52  ;;  %v9203_v11 = vpack.i.bf16 %v11878_v12, %v11866_v36  ;;  %v3091_v6 = vrot.slane %v11878_v12, 4 }
 0x3c6   :  { %v2382_v9 = vpop.f32.mrf.mxu0  ;;  %9199 = vrot.lane.b32.xlu2 %v9198_v41, %s9360_s0  ;;  %v2690_v7 = vmax.f32 %v2378_v56, %v2644_v8  ;;  %v2559_v37 = vpop.f32.mrf.mxu1  ;;  %v2380_v56 = vadd.f32 %v2379_v20, %v11834_v27  ;;  %v2930_v49 = vsel %vm281_vm0, %v2927_v61, %v2929_v16  ;;  %v3252_v14 = vrot.slane %v11878_v12, 6 }
 0x3c7   :  { %9204 = vrot.lane.b32.xlu1 %v9203_v11, %s9357_s3  ;;  %v3538_v47 = vsel %vm3535_vm11, %v3505_v48, %v9061_v44  ;;  %v3539_v2 = vsel %vm3535_vm11, %v3506_v38, %v9062_v34  ;;  %v3571_v26 = vsel %vm3568_vm12, %v9061_v44, %v9046_v10  ;;  %v3572_v1 = vsel %vm3568_vm12, %v9062_v34, %v9047_v5  ;;  %v2295_v20 = vpop.f32.mrf.mxu3 }
 0x3c8   :  { %v2775_v59 = vrot.slane %v2690_v7, 1  ;;  %v11903_v17 = vpack.c.bf16 %v3539_v2, %v3538_v47  ;;  %v11905_v25 = vpack.c.bf16 %v3572_v1, %v3571_v26  ;;  %v3092_v62 = vsel %vm605_vm3, %v3089_v18, %v3091_v6 }
 0x3c9   :  { %v9065_v40 = vpop.permute.xlu0 %9064  ;;  %v2931_v5 = vrot.slane %v11878_v12, 2  ;;  %v9213_v28 = vpack.i.bf16 %v3092_v62, %v3090_v46  ;;  %v3475_v27 = vsel %vm3470_vm10, %v11325_v57, %v9071_v22  ;;  %v3476_v61 = vsel %vm3470_vm10, %v11351_v29, %v9072_v42 }
 0x3ca   :  { %v9067_v10 = vunpack.i.h.bf16 %v9065_v40  ;;  %v9066_v58 = vunpack.i.l.bf16 %v9065_v40  ;;  %4146 = vmatmul.bf16.gmra.mxu0 %v11903_v17  ;;  %4235 = vmatmul.bf16.gmra.mxu1 %v11905_v25  ;;  %v2776_v52 = vsel %vm119_vm1, %v2773_v19, %v2775_v59  ;;  %v11942_v29 = vpack.c.bf16 %v3476_v61, %v3475_v27 }
 0x3cb   :  { %v2932_v41 = vsel %vm281_vm0, %v2929_v16, %v2931_v5  ;;  %v2645_v8 = vpop.f32.mrf.mxu2  ;;  %v9080_v16 = vpop.permute.xlu2 %9079  ;;  %v11937_v2 = vmax.f32 %v11856_v31, %v2776_v52 }
 0x3cc   :  { %v11925_v18 = vpack.c.bf16 %v9067_v10, %v9066_v58  ;;  %v9208_v34 = vpack.i.bf16 %v2932_v41, %v2930_v49  ;;  %v2646_v44 = vadd.f32 %v2645_v8, %v2556_v60  ;;  %v9075_v11 = vpop.permute.xlu1 %9074  ;;  %v3250_v60 = vrot.slane %v11866_v36, 6 }
 0x3cd   :  { %v9076_v38 = vunpack.i.l.bf16 %v9075_v11  ;;  %v9077_v47 = vunpack.i.h.bf16 %v9075_v11  ;;  %v9082_v62 = vunpack.i.h.bf16 %v9080_v16  ;;  %v9081_v40 = vunpack.i.l.bf16 %v9080_v16 }
 0x3ce   :  { %v2384_v48 = vpop.f32.mrf.mxu0  ;;  %9214 = vrot.lane.b32.xlu2 %v9213_v28, %s9358_s19  ;;  %9209 = vrot.lane.b32.xlu0 %v9208_v34, %s9359_s30  ;;  %v11933_v19 = vmax.f32 %v2380_v56, %v2646_v44  ;;  %v2561_v26 = vpop.f32.mrf.mxu1  ;;  %v3253_v1 = vsel %vm3212_vm8, %v3250_v60, %v3252_v14  ;;  %v2383_v28 = vadd.f32 %v2382_v9, %v11876_v45 }
 0x3cf   :  { %7653 = vmatmul.msk.bf16.gmra.mxu2 %vm3989_vm9, %v11925_v18  ;;  %v3507_v46 = vsel %vm2172_vm7, %v9071_v22, %v9076_v38  ;;  %v3508_v56 = vsel %vm2172_vm7, %v9072_v42, %v9077_v47  ;;  %v3251_v49 = vsel %vm3212_vm8, %v3248_v55, %v3250_v60  ;;  %v3573_v34 = vsel %vm3568_vm12, %v9081_v40, %v9066_v58  ;;  %v2298_v61 = vpop.f32.mrf.mxu3 }
 0x3d0   :  { %v2777_v57 = vrot.slane %v11933_v19, 1  ;;  %v9218_v8 = vpack.i.bf16 %v3253_v1, %v3251_v49  ;;  %v2933_v22 = vrot.slane %v11937_v2, 2  ;;  %v3540_v45 = vsel %vm3535_vm11, %v3507_v46, %v9081_v40 }
 0x3d1   :  { %v3574_v9 = vsel %vm3568_vm12, %v9082_v62, %v9067_v10  ;;  %v3541_v55 = vsel %vm3535_vm11, %v3508_v56, %v9082_v62 }
 0x3d2   :  { %v2778_v31 = vsel %vm119_vm1, %v2775_v59, %v2777_v57  ;;  %4062 = vmatmul.bf16.gmra.mxu3 %v11942_v29  ;;  %v3093_v59 = vrot.slane %v11937_v2, 4  ;;  %v2934_v10 = vsel %vm281_vm0, %v2931_v5, %v2933_v22  ;;  %v11976_v47 = vpack.c.bf16 %v3541_v55, %v3540_v45 }
 0x3d3   :  { %v11955_v41 = vmax.f32 %v2690_v7, %v2778_v31  ;;  %v2648_v52 = vpop.f32.mrf.mxu2  ;;  %v9095_v16 = vpop.permute.xlu2 %9094  ;;  %v11978_v60 = vpack.c.bf16 %v3574_v9, %v3573_v34  ;;  %v3254_v45 = vrot.slane %v11937_v2, 6 }
 0x3d4   :  { %v2649_v44 = vadd.f32 %v2648_v52, %v2559_v37  ;;  %v2385_v52 = vadd.f32 %v2384_v48, %v2295_v20 }
 0x3d5   :  { %v9223_v42 = vpack.i.bf16 %v11955_v41, %v11937_v2  ;;  %v3095_v7 = vrot.slane %v11955_v41, 4  ;;  %v2935_v11 = vrot.slane %v11955_v41, 2  ;;  %v3256_v49 = vrot.slane %v11955_v41, 6 }
 0x3d6   :  { %9219 = vrot.lane.b32.xlu0 %v9218_v8, %s9360_s0  ;;  %v2692_v58 = vmax.f32 %v2383_v28, %v2649_v44  ;;  %v2387_v38 = vpop.f32.mrf.mxu0  ;;  %v2564_v40 = vpop.f32.mrf.mxu1  ;;  %v3094_v28 = vsel %vm605_vm3, %v3091_v6, %v3093_v59 }
 0x3d7   :  { %9224 = vrot.lane.b32.xlu2 %v9223_v42, %s9357_s3  ;;  %v3096_v37 = vsel %vm605_vm3, %v3093_v59, %v3095_v7  ;;  %v2936_v27 = vsel %vm281_vm0, %v2933_v22, %v2935_v11  ;;  %v3257_v55 = vsel %vm3212_vm8, %v3254_v45, %v3256_v49 }
 0x3d8   :  { %v9228_v1 = vpack.i.bf16 %v2936_v27, %v2934_v10  ;;  %v2779_v62 = vrot.slane %v2692_v58, 1  ;;  %v9233_v56 = vpack.i.bf16 %v3096_v37, %v3094_v28  ;;  %v3255_v27 = vsel %vm3212_vm8, %v3252_v14, %v3254_v45  ;;  %v2300_v28 = vpop.f32.mrf.mxu3 }
 0x3d9   :  { %v9085_v46 = vpop.permute.xlu1 %9084  ;;  %v2388_v14 = vadd.f32 %v2387_v38, %v2298_v61 }
 0x3da   :  { %v9087_v31 = vunpack.i.h.bf16 %v9085_v46  ;;  %v9086_v5 = vunpack.i.l.bf16 %v9085_v46  ;;  %4151 = vmatmul.bf16.gmra.mxu0 %v11976_v47  ;;  %4240 = vmatmul.bf16.gmra.mxu1 %v11978_v60  ;;  %v2780_v6 = vsel %vm119_vm1, %v2777_v57, %v2779_v62  ;;  %v9238_v46 = vpack.i.bf16 %v3257_v55, %v3255_v27 }
 0x3db   :  { %9229 = vrot.lane.b32.xlu1 %v9228_v1, %s9359_s30  ;;  %v2650_v8 = vpop.f32.mrf.mxu2  ;;  %v12006_v57 = vmax.f32 %v11933_v19, %v2780_v6 }
 0x3dc   :  { %v11987_v34 = vpack.c.bf16 %v9087_v31, %v9086_v5  ;;  %v2651_v22 = vadd.f32 %v2650_v8, %v2561_v26  ;;  %v9090_v44 = vpop.permute.xlu0 %9089  ;;  %v12003_v26 = vpop.permute.xlu2 %9104 }
 0x3dd   :  { %v9092_v9 = vunpack.i.h.bf16 %v9090_v44  ;;  %v9091_v59 = vunpack.i.l.bf16 %v9090_v44  ;;  %v9107_v19 = vunpack.i.h.bf16 %v12003_v26  ;;  %v9106_v44 = vunpack.i.l.bf16 %v12003_v26 }
 0x3de   :  { %9234 = vrot.lane.b32.xlu0 %v9233_v56, %s9358_s19  ;;  %v11992_v42 = vmax.f32 %v2385_v52, %v2651_v22  ;;  %v2389_v1 = vpop.f32.mrf.mxu0  ;;  %v9096_v56 = vunpack.i.l.bf16 %v9095_v16  ;;  %v2566_v52 = vpop.f32.mrf.mxu1  ;;  %v3097_v55 = vrot.slane %v12006_v57, 4 }
 0x3df   :  { %7654 = vmatmul.msk.bf16.gmra.mxu2 %vm3989_vm9, %v11987_v34  ;;  %v3477_v48 = vsel %vm3470_vm10, %v11358_v30, %v9091_v59  ;;  %v3478_v20 = vsel %vm3470_vm10, %v11386_v33, %v9092_v9  ;;  %v9097_v33 = vunpack.i.h.bf16 %v9095_v16  ;;  %v2937_v16 = vrot.slane %v12006_v57, 2 }
 0x3e0   :  { %v2781_v37 = vrot.slane %v11992_v42, 1  ;;  %v12009_v10 = vpack.c.bf16 %v3478_v20, %v3477_v48 }
 0x3e2   :  { %v2782_v30 = vsel %vm119_vm1, %v2779_v62, %v2781_v37  ;;  %4067 = vmatmul.bf16.gmra.mxu3 %v12009_v10  ;;  %v3510_v62 = vsel %vm2172_vm7, %v9092_v9, %v9097_v33 }
 0x3e3   :  { %v12017_v8 = vmax.f32 %v2692_v58, %v2782_v30  ;;  %9239 = vrot.lane.b32.xlu1 %v9238_v46, %s9360_s0  ;;  %v2653_v22 = vpop.f32.mrf.mxu2  ;;  %v3509_v58 = vsel %vm2172_vm7, %v9091_v59, %v9096_v56  ;;  %v3098_v59 = vsel %vm605_vm3, %v3095_v7, %v3097_v55 }
 0x3e4   :  { %v2654_v45 = vadd.f32 %v2653_v22, %v2564_v40  ;;  %v9100_v6 = vpop.permute.xlu0 %9099 }
 0x3e5   :  { %v9102_v48 = vunpack.i.h.bf16 %v9100_v6  ;;  %v9101_v20 = vunpack.i.l.bf16 %v9100_v6  ;;  %v9243_v46 = vpack.i.bf16 %v12017_v8, %v12006_v57  ;;  %v14095_v30 = vrot.slane %v12017_v8, 4 }
 0x3e6   :  { %v2694_v27 = vmax.f32 %v2388_v14, %v2654_v45  ;;  %v2938_v6 = vsel %vm281_vm0, %v2935_v11, %v2937_v16 }
 0x3e7   :  { %v3542_v38 = vsel %vm3535_vm11, %v3509_v58, %v9101_v20  ;;  %v3543_v61 = vsel %vm3535_vm11, %v3510_v62, %v9102_v48  ;;  %v3575_v40 = vsel %vm3568_vm12, %v9101_v20, %v9086_v5  ;;  %v3576_v9 = vsel %vm3568_vm12, %v9102_v48, %v9087_v31  ;;  %9244 = vrot.lane.b32.xlu0 %v9243_v46, %s9357_s3  ;;  %v2392_v31 = vpop.f32.mrf.mxu0  ;;  %v2303_v62 = vpop.f32.mrf.mxu3 }
 0x3e8   :  { %v12033_v33 = vpack.c.bf16 %v3543_v61, %v3542_v38  ;;  %v12035_v22 = vpack.c.bf16 %v3576_v9, %v3575_v40  ;;  %v3100_v56 = vsel %vm605_vm3, %v3097_v55, %v14095_v30  ;;  %v2783_v14 = vrot.slane %v2694_v27, 1  ;;  %v2569_v40 = vpop.f32.mrf.mxu1 }
 0x3e9   :  { %v9253_v45 = vpack.i.bf16 %v3100_v56, %v3098_v59  ;;  %v14094_v5 = vrot.slane %v12017_v8, 2  ;;  %v12057_v48 = vpack.c.bf16 %v9107_v19, %v9106_v44  ;;  %v2390_v20 = vadd.f32 %v2389_v1, %v2300_v28 }
 0x3ea   :  { %4156 = vmatmul.bf16.gmra.mxu0 %v12033_v33  ;;  %4245 = vmatmul.bf16.gmra.mxu1 %v12035_v22  ;;  %v2784_v61 = vsel %vm119_vm1, %v2781_v37, %v2783_v14  ;;  %v14093_v59 = vrot.slane %v12017_v8, 6  ;;  %v3258_v37 = vrot.slane %v12006_v57, 6 }
 0x3eb   :  { %9254 = vrot.lane.b32.xlu1 %v9253_v45, %s9358_s19  ;;  %v2940_v7 = vsel %vm281_vm0, %v2937_v16, %v14094_v5  ;;  %v2655_v55 = vpop.f32.mrf.mxu2 }
 0x3ec   :  { %v9248_v58 = vpack.i.bf16 %v2940_v7, %v2938_v6  ;;  %v2656_v46 = vadd.f32 %v2655_v55, %v2566_v52  ;;  %v9110_v38 = vpop.permute.xlu1 %9109  ;;  %v9115_v56 = vpop.permute.xlu0 %9114  ;;  %v12072_v52 = vmax.f32 %v11992_v42, %v2784_v61  ;;  %v3261_v7 = vsel %vm3212_vm8, %v3258_v37, %v14093_v59 }
 0x3ed   :  { %v9112_v11 = vunpack.i.h.bf16 %v9110_v38  ;;  %v9111_v9 = vunpack.i.l.bf16 %v9110_v38  ;;  %v3259_v42 = vsel %vm3212_vm8, %v3256_v49, %v3258_v37  ;;  %v2393_v38 = vadd.f32 %v2392_v31, %v2303_v62 }
 0x3ee   :  { %9249 = vrot.lane.b32.xlu2 %v9248_v58, %s9359_s30  ;;  %v12062_v16 = vmax.f32 %v2390_v20, %v2656_v46  ;;  %v9117_v20 = vunpack.i.h.bf16 %v9115_v56  ;;  %v12087_v46 = vpop.permute.xlu2 %9129  ;;  %v9258_v61 = vpack.i.bf16 %v3261_v7, %v3259_v42  ;;  %v3101_v59 = vrot.slane %v12072_v52, 4 }
 0x3ef   :  { %7655 = vmatmul.msk.bf16.gmra.mxu2 %vm3989_vm9, %v12057_v48  ;;  %v3479_v1 = vsel %vm3470_vm10, %v11393_v35, %v9111_v9  ;;  %v3480_v28 = vsel %vm3470_vm10, %v11421_v50, %v9112_v11  ;;  %v9116_v35 = vunpack.i.l.bf16 %v9115_v56  ;;  %v2305_v30 = vpop.f32.mrf.mxu3  ;;  %v2941_v62 = vrot.slane %v12072_v52, 2 }
 0x3f0   :  { %v2785_v45 = vrot.slane %v12062_v16, 1  ;;  %v12075_v6 = vpack.c.bf16 %v3480_v28, %v3479_v1  ;;  %v3512_v49 = vsel %vm2172_vm7, %v9112_v11, %v9117_v20 }
 0x3f1   :  { %v3511_v37 = vsel %vm2172_vm7, %v9111_v9, %v9116_v35 }
 0x3f2   :  { %v2786_v55 = vsel %vm119_vm1, %v2783_v14, %v2785_v45  ;;  %4072 = vmatmul.bf16.gmra.mxu3 %v12075_v6  ;;  %v2394_v14 = vpop.f32.mrf.mxu0 }
 0x3f3   :  { %v12082_v50 = vmax.f32 %v2694_v27, %v2786_v55  ;;  %v2658_v58 = vpop.f32.mrf.mxu2 }
 0x3f4   :  { %v2659_v1 = vadd.f32 %v2658_v58, %v2569_v40  ;;  %v9120_v28 = vpop.permute.xlu1 %9119  ;;  %v2571_v40 = vpop.f32.mrf.mxu1 }
 0x3f5   :  { %v9122_v5 = vunpack.i.h.bf16 %v9120_v28  ;;  %v9121_v56 = vunpack.i.l.bf16 %v9120_v28  ;;  %v9263_v27 = vpack.i.bf16 %v12082_v50, %v12072_v52  ;;  %v14096_v55 = vrot.slane %v12082_v50, 4 }
 0x3f6   :  { %9259 = vrot.lane.b32.xlu2 %v9258_v61, %s9360_s0  ;;  %v2696_v31 = vmax.f32 %v2393_v38, %v2659_v1  ;;  %v9132_v61 = vunpack.i.h.bf16 %v12087_v46  ;;  %v9131_v1 = vunpack.i.l.bf16 %v12087_v46 }
 0x3f7   :  { %9264 = vrot.lane.b32.xlu1 %v9263_v27, %s9357_s3  ;;  %v3544_v7 = vsel %vm3535_vm11, %v3511_v37, %v9121_v56  ;;  %v3545_v42 = vsel %vm3535_vm11, %v3512_v49, %v9122_v5  ;;  %v3577_v58 = vsel %vm3568_vm12, %v9121_v56, %v9106_v44  ;;  %v3578_v11 = vsel %vm3568_vm12, %v9122_v5, %v9107_v19 }
 0x3f8   :  { %v2787_v9 = vrot.slane %v2696_v31, 1  ;;  %v12106_v20 = vpack.c.bf16 %v3545_v42, %v3544_v7  ;;  %v12108_v35 = vpack.c.bf16 %v3578_v11, %v3577_v58  ;;  %v3104_v38 = vsel %vm605_vm3, %v3101_v59, %v14096_v55 }
 0x3f9   :  { %v9125_v28 = vpop.permute.xlu0 %9124  ;;  %v14228_v44 = vrot.slane %v12017_v8, 4  ;;  %v2943_v19 = vrot.slane %v12082_v50, 2  ;;  %v2395_v49 = vadd.f32 %v2394_v14, %v2305_v30  ;;  %v14229_v37 = vrot.slane %v12017_v8, 2 }
 0x3fa   :  { %14226 = vst [vmem:[#allocation9_spill] sm:$0xff] %v12106_v20  ;;  %v9127_v5 = vunpack.i.h.bf16 %v9125_v28  ;;  %v9126_v56 = vunpack.i.l.bf16 %v9125_v28  ;;  %4161 = vmatmul.bf16.gmra.mxu0 %v12106_v20  ;;  %4250 = vmatmul.bf16.gmra.mxu1 %v12108_v35  ;;  %v14099_v58 = vrot.slane %v12082_v50, 6  ;;  %v3481_v30 = vsel %vm3470_vm10, %v11436_v13, %v9131_v1  ;;  %v2308_v13 = vpop.f32.mrf.mxu3 }
 0x3fb   :  { %14227 = vst [vmem:[#allocation10_spill] sm:$0xff] %v12108_v35  ;;  %v3102_v26 = vsel %vm605_vm3, %v14228_v44, %v3101_v59  ;;  %v2942_v7 = vsel %vm281_vm0, %v14229_v37, %v2941_v62  ;;  %v2944_v46 = vsel %vm281_vm0, %v2941_v62, %v2943_v19  ;;  %v2660_v42 = vpop.f32.mrf.mxu2  ;;  %v2788_v59 = vsel %vm119_vm1, %v2785_v45, %v2787_v9  ;;  %v2397_v37 = vpop.f32.mrf.mxu0 }
 0x3fc   :  { %v9273_v27 = vpack.i.bf16 %v3104_v38, %v3102_v26  ;;  %v12127_v11 = vpack.c.bf16 %v9127_v5, %v9126_v56  ;;  %v9268_v28 = vpack.i.bf16 %v2944_v46, %v2942_v7  ;;  %v2661_v44 = vadd.f32 %v2660_v42, %v2571_v40  ;;  %v9135_v55 = vpop.permute.xlu1 %9134  ;;  %v9140_v38 = vpop.permute.xlu2 %9139 }
 0x3fd   :  { %v9136_v20 = vunpack.i.l.bf16 %v9135_v55  ;;  %v3482_v14 = vsel %vm3470_vm10, %v11491_v39, %v9132_v61  ;;  %v9137_v45 = vunpack.i.h.bf16 %v9135_v55  ;;  %v3262_v26 = vrot.slane %v12072_v52, 6  ;;  %v2574_v46 = vpop.f32.mrf.mxu1 }
 0x3fe   :  { %14230 = vst [vmem:[#allocation2_spill] sm:$0xff] %v12127_v11  ;;  %9274 = vrot.lane.b32.xlu2 %v9273_v27, %s9358_s19  ;;  %9269 = vrot.lane.b32.xlu0 %v9268_v28, %s9359_s30  ;;  %v12135_v62 = vmax.f32 %v2395_v49, %v2661_v44  ;;  %v12139_v40 = vmax.f32 %v12062_v16, %v2788_v59  ;;  %v9142_v49 = vunpack.i.h.bf16 %v9140_v38  ;;  %v9141_v55 = vunpack.i.l.bf16 %v9140_v38 }
 0x3ff   :  { %7656 = vmatmul.msk.bf16.gmra.mxu2 %vm3989_vm9, %v12127_v11  ;;  %v12144_v7 = vpack.c.bf16 %v3482_v14, %v3481_v30  ;;  %v3265_v27 = vsel %vm3212_vm8, %v3262_v26, %v14099_v58  ;;  %v3513_v42 = vsel %vm2172_vm7, %v9131_v1, %v9136_v20  ;;  %v2398_v16 = vadd.f32 %v2397_v37, %v2308_v13 }
 0x400   :  { %v2789_v39 = vrot.slane %v12135_v62, 1  ;;  %v3514_v28 = vsel %vm2172_vm7, %v9132_v61, %v9137_v45  ;;  %v14231_v44 = vrot.slane %v12017_v8, 6  ;;  %v3579_v38 = vsel %vm3568_vm12, %v9141_v55, %v9126_v56 }
 0x401   :  { %v2945_v35 = vrot.slane %v12139_v40, 2  ;;  %v3546_v1 = vsel %vm3535_vm11, %v3513_v42, %v9141_v55  ;;  %v3105_v61 = vrot.slane %v12139_v40, 4 }
 0x402   :  { %v2790_v59 = vsel %vm119_vm1, %v2787_v9, %v2789_v39  ;;  %4077 = vmatmul.bf16.gmra.mxu3 %v12144_v7  ;;  %v3263_v30 = vsel %vm3212_vm8, %v14231_v44, %v3262_v26  ;;  %v3580_v9 = vsel %vm3568_vm12, %v9142_v49, %v9127_v5  ;;  %v3547_v26 = vsel %vm3535_vm11, %v3514_v28, %v9142_v49  ;;  %v2310_v44 = vpop.f32.mrf.mxu3 }
 0x403   :  { %v12156_v14 = vmax.f32 %v2696_v31, %v2790_v59  ;;  %v9278_v11 = vpack.i.bf16 %v3265_v27, %v3263_v30  ;;  %v2663_v58 = vpop.f32.mrf.mxu2  ;;  %v12177_v49 = vpack.c.bf16 %v3547_v26, %v3546_v1  ;;  %v12179_v55 = vpack.c.bf16 %v3580_v9, %v3579_v38 }
 0x404   :  { %v2664_v20 = vadd.f32 %v2663_v58, %v2574_v46  ;;  %v2946_v58 = vsel %vm281_vm0, %v2943_v19, %v2945_v35  ;;  %v9155_v27 = vpop.permute.xlu2 %9154  ;;  %v14232_v59 = vrot.slane %v12082_v50, 4 }
 0x405   :  { %v9283_v45 = vpack.i.bf16 %v12156_v14, %v12139_v40  ;;  %v14103_v31 = vrot.slane %v12156_v14, 4  ;;  %v14102_v37 = vrot.slane %v12156_v14, 2  ;;  %v2576_v38 = vpop.f32.mrf.mxu1 }
 0x406   :  { %9279 = vrot.lane.b32.xlu0 %v9278_v11, %s9360_s0  ;;  %v2698_v56 = vmax.f32 %v2398_v16, %v2664_v20  ;;  %v2399_v11 = vpop.f32.mrf.mxu0  ;;  %v3106_v28 = vsel %vm605_vm3, %v14232_v59, %v3105_v61  ;;  %v14101_v20 = vrot.slane %v12156_v14, 6 }
 0x407   :  { %9284 = vrot.lane.b32.xlu2 %v9283_v45, %s9357_s3  ;;  %v3108_v5 = vsel %vm605_vm3, %v3105_v61, %v14103_v31  ;;  %v2948_v13 = vsel %vm281_vm0, %v2945_v35, %v14102_v37  ;;  %v2400_v9 = vadd.f32 %v2399_v11, %v2310_v44  ;;  %v3266_v61 = vrot.slane %v12139_v40, 6 }
 0x408   :  { %v9288_v46 = vpack.i.bf16 %v2948_v13, %v2946_v58  ;;  %v2791_v42 = vrot.slane %v2698_v56, 1  ;;  %v9293_v35 = vpack.i.bf16 %v3108_v5, %v3106_v28  ;;  %v14234_v44 = vrot.slane %v12082_v50, 6 }
 0x409   :  { %v9145_v16 = vpop.permute.xlu1 %9144  ;;  %v3269_v28 = vsel %vm3212_vm8, %v3266_v61, %v14101_v20 }
 0x40a   :  { %v9147_v30 = vunpack.i.h.bf16 %v9145_v16  ;;  %v9146_v19 = vunpack.i.l.bf16 %v9145_v16  ;;  %4166 = vmatmul.bf16.gmra.mxu0 %v12177_v49  ;;  %4255 = vmatmul.bf16.gmra.mxu1 %v12179_v55  ;;  %v2792_v58 = vsel %vm119_vm1, %v2789_v39, %v2791_v42 }
 0x40b   :  { %9289 = vrot.lane.b32.xlu1 %v9288_v46, %s9359_s30  ;;  %v2665_v1 = vpop.f32.mrf.mxu2  ;;  %v12199_v46 = vmax.f32 %v12135_v62, %v2792_v58 }
 0x40c   :  { %v12188_v45 = vpack.c.bf16 %v9147_v30, %v9146_v19  ;;  %v2666_v26 = vadd.f32 %v2665_v1, %v2576_v38  ;;  %v9150_v13 = vpop.permute.xlu0 %9149  ;;  %v12206_v38 = vpop.permute.xlu2 %9164 }
 0x40d   :  { %v9152_v59 = vunpack.i.h.bf16 %v9150_v13  ;;  %v9151_v5 = vunpack.i.l.bf16 %v9150_v13  ;;  %v14235_v13 = vld [vmem:[#allocation25_spill] sm:$0xff] }
 0x40e   :  { %14233 = vst [vmem:[#allocation33_spill] sm:$0xff] %v12188_v45  ;;  %9294 = vrot.lane.b32.xlu0 %v9293_v35, %s9358_s19  ;;  %v2699_v16 = vmax.f32 %v2400_v9, %v2666_v26  ;;  %v3267_v35 = vsel %vm3212_vm8, %v14234_v44, %v3266_v61  ;;  %v9157_v61 = vunpack.i.h.bf16 %v9155_v27  ;;  %v9156_v44 = vunpack.i.l.bf16 %v9155_v27 }
 0x40f   :  { %7657 = vmatmul.msk.bf16.gmra.mxu2 %vm3989_vm9, %v12188_v45  ;;  %v3483_v39 = vsel %vm3470_vm10, %v11559_v43, %v9151_v5  ;;  %v3484_v1 = vsel %vm3470_vm10, %v11668_v23, %v9152_v59  ;;  %v9298_v9 = vpack.i.bf16 %v3269_v28, %v3267_v35  ;;  %v3109_v23 = vrot.slane %v12199_v46, 4  ;;  %v14239_v45 = vld [vmem:[#allocation20_spill] sm:$0xff] }
 0x410   :  { %v2793_v11 = vrot.slane %v2699_v16, 1  ;;  %v12213_v58 = vpack.c.bf16 %v3484_v1, %v3483_v39 }
 0x412   :  { %v2794_v26 = vsel %vm119_vm1, %v2791_v42, %v2793_v11  ;;  %v2795_v62 = vsel %vm119_vm1, %v2793_v11, %v14235_v13  ;;  %14236 = vst [vmem:[#allocation12_spill] sm:$0xff] %v12213_v58  ;;  %4082 = vmatmul.bf16.gmra.mxu3 %v12213_v58 }
 0x413   :  { %v12215_v20 = vmax.f32 %v2698_v56, %v2794_v26  ;;  %v12217_v43 = vmax.f32 %v2699_v16, %v2795_v62  ;;  %9299 = vrot.lane.b32.xlu1 %v9298_v9, %s9360_s0  ;;  %v2949_v56 = vrot.slane %v12199_v46, 2  ;;  %v3516_v9 = vsel %vm2172_vm7, %v9152_v59, %v9157_v61 }
 0x414   :  { %v9160_v42 = vpop.permute.xlu0 %9159  ;;  %v3515_v26 = vsel %vm2172_vm7, %v9151_v5, %v9156_v44  ;;  %v14237_v5 = vrot.slane %v12156_v14, 4  ;;  %v14238_v44 = vrot.slane %v12156_v14, 2 }
 0x415   :  { %v9303_v28 = vpack.i.bf16 %v12215_v20, %v12199_v46  ;;  %v14105_v11 = vrot.slane %v12215_v20, 4  ;;  %v2951_v16 = vrot.slane %v12215_v20, 2  ;;  %v9162_v35 = vunpack.i.h.bf16 %v9160_v42 }
 0x416   :  { %v9161_v27 = vunpack.i.l.bf16 %v9160_v42  ;;  %v2953_v1 = vrot.slane %v12217_v43, 2  ;;  %v3110_v61 = vsel %vm605_vm3, %v14237_v5, %v3109_v23 }
 0x417   :  { %9304 = vrot.lane.b32.xlu0 %v9303_v28, %s9357_s3  ;;  %v3112_v13 = vsel %vm605_vm3, %v3109_v23, %v14105_v11  ;;  %v2952_v62 = vsel %vm281_vm0, %v2949_v56, %v2951_v16  ;;  %v3549_v39 = vsel %vm3535_vm11, %v3516_v9, %v9162_v35  ;;  %v3582_v31 = vsel %vm3568_vm12, %v9162_v35, %v9147_v30 }
 0x418   :  { %v3548_v37 = vsel %vm3535_vm11, %v3515_v26, %v9161_v27  ;;  %v3581_v42 = vsel %vm3568_vm12, %v9161_v27, %v9146_v19  ;;  %v2950_v28 = vsel %vm281_vm0, %v14238_v44, %v2949_v56  ;;  %v9313_v11 = vpack.i.bf16 %v3112_v13, %v3110_v61 }
 0x419   :  { %v12241_v58 = vpack.c.bf16 %v3549_v39, %v3548_v37  ;;  %v12243_v59 = vpack.c.bf16 %v3582_v31, %v3581_v42  ;;  %v9308_v26 = vpack.i.bf16 %v2952_v62, %v2950_v28  ;;  %v2954_v9 = vsel %vm281_vm0, %v2951_v16, %v2953_v1 }
 0x41a   :  { %v2955_v19 = vsel %vm281_vm0, %v2953_v1, %v14239_v45  ;;  %v14240_v31 = vunpack.i.l.bf16 %v12206_v38  ;;  %v14241_v37 = vunpack.i.h.bf16 %v12206_v38  ;;  %v3272_v56 = vrot.slane %v12215_v20, 6 }
 0x41b   :  { %4171 = vmatmul.bf16.gmra.mxu0 %v12241_v58  ;;  %4260 = vmatmul.bf16.gmra.mxu1 %v12243_v59  ;;  %v9323_v35 = vpack.i.bf16 %v2955_v19, %v2954_v9  ;;  %v3270_v27 = vrot.slane %v12199_v46, 6  ;;  %v3274_v1 = vrot.slane %v12217_v43, 6  ;;  %v14242_v13 = vmov 0.0  }
 0x41c   :  { %v12260_v30 = vpack.c.bf16 %v14241_v37, %v14240_v31  ;;  %9314 = vrot.lane.b32.xlu1 %v9313_v11, %s9358_s19  ;;  %9309 = vrot.lane.b32.xlu2 %v9308_v26, %s9359_s30  ;;  %v9170_v23 = vpop.permute.xlu1 %9169  ;;  %v3276_v62 = vrot.slane %v14242_v13, 6  ;;  %v9175_v42 = vpop.permute.xlu0 %9174  ;;  %v9328_v28 = vpack.i.bf16 0.0, %v12217_v43  ;;  %v14243_v26 = vrot.slane %v12156_v14, 6 }
 0x41d   :  { %v9172_v16 = vunpack.i.h.bf16 %v9170_v23  ;;  %v9171_v39 = vunpack.i.l.bf16 %v9170_v23  ;;  %v3273_v44 = vsel %vm3212_vm8, %v3270_v27, %v3272_v56  ;;  %v9177_v19 = vunpack.i.h.bf16 %v9175_v42 }
 0x41e   :  { %v3271_v9 = vsel %vm3212_vm8, %v14243_v26, %v3270_v27  ;;  %v9176_v31 = vunpack.i.l.bf16 %v9175_v42  ;;  %v3275_v37 = vsel %vm3212_vm8, %v3272_v56, %v3274_v1  ;;  %v3277_v23 = vsel %vm3212_vm8, %v3274_v1, %v3276_v62  ;;  %v9190_v27 = vpop.permute.xlu2 %9189 }
 0x41f   :  { %7658 = vmatmul.msk.bf16.gmra.mxu2 %vm3989_vm9, %v12260_v30  ;;  %9324 = vrot.lane.b32.xlu0 %v9323_v35, %s9359_s30  ;;  %v3485_v11 = vsel %vm3470_vm10, %v11700_v24, %v9171_v39  ;;  %v3486_v5 = vsel %vm3470_vm10, %v11746_v54, %v9172_v16  ;;  %v9318_v24 = vpack.i.bf16 %v3273_v44, %v3271_v9  ;;  %v3113_v35 = vrot.slane %v12217_v43, 4 }
 0x420   :  { %v12275_v61 = vpack.c.bf16 %v3486_v5, %v3485_v11  ;;  %v9338_v5 = vpack.i.bf16 %v3277_v23, %v3275_v37  ;;  %v3518_v42 = vsel %vm2172_vm7, %v9172_v16, %v9177_v19  ;;  %v3517_v56 = vsel %vm2172_vm7, %v9171_v39, %v9176_v31  ;;  %v14249_v19 = vld [vmem:[#allocation30_spill] sm:$0xff] }
 0x421   :  { %v14244_v44 = vunpack.i.l.bf16 %v12206_v38  ;;  %v14245_v26 = vunpack.i.h.bf16 %v12206_v38  ;;  %v14248_v16 = vrot.slane %v12215_v20, 4  ;;  %v3115_v31 = vsel %vm605_vm3, %v3113_v35, %v14249_v19 }
 0x422   :  { %4087 = vmatmul.bf16.gmra.mxu3 %v12275_v61 }
 0x423   :  { %v3114_v39 = vsel %vm605_vm3, %v14248_v16, %v3113_v35 }
 0x424   :  { %9329 = vrot.lane.b32.xlu1 %v9328_v28, %s9357_s3  ;;  %v9180_v54 = vpop.permute.xlu1 %9179  ;;  %9319 = vrot.lane.b32.xlu2 %v9318_v24, %s9360_s0  ;;  %v9192_v24 = vunpack.i.h.bf16 %v9190_v27  ;;  %v9333_v38 = vpack.i.bf16 %v3115_v31, %v3114_v39 }
 0x425   :  { %v9182_v13 = vunpack.i.h.bf16 %v9180_v54  ;;  %v9181_v11 = vunpack.i.l.bf16 %v9180_v54 }
 0x427   :  { %9339 = vrot.lane.b32.xlu0 %v9338_v5, %s9360_s0  ;;  %v3550_v1 = vsel %vm3535_vm11, %v3517_v56, %v9181_v11  ;;  %v3551_v62 = vsel %vm3535_vm11, %v3518_v42, %v9182_v13  ;;  %v3583_v28 = vsel %vm3568_vm12, %v9181_v11, %v14244_v44  ;;  %v3584_v9 = vsel %vm3568_vm12, %v9182_v13, %v14245_v26  ;;  %v3718_v44 = vld [vmem:[%s14028_s5] sm:$0x3] }
 0x428   :  { %v12299_v37 = vpack.c.bf16 %v3551_v62, %v3550_v1  ;;  %v12301_v23 = vpack.c.bf16 %v3584_v9, %v3583_v28  ;;  %v9191_v5 = vunpack.i.l.bf16 %v9190_v27  ;;  %v3488_v27 = vsel %vm3470_vm10, %v11799_v3, %v9192_v24  ;;  %v9200_v28 = vpop.permute.xlu2 %9199 }
 0x429   :  { %v9185_v54 = vpop.permute.xlu0 %9184  ;;  %v12324_v16 = vperm.slane %v3718_v44, 0  ;;  %v9201_v39 = vunpack.i.l.bf16 %v9200_v28 }
 0x42a   :  { %14246 = vst [vmem:[#allocation13_spill] sm:$0xff] %v12299_v37  ;;  %v9187_v42 = vunpack.i.h.bf16 %v9185_v54  ;;  %v9186_v11 = vunpack.i.l.bf16 %v9185_v54  ;;  %v3487_v35 = vsel %vm3470_vm10, %v11752_v15, %v9191_v5  ;;  %v9202_v54 = vunpack.i.h.bf16 %v9200_v28 }
 0x42b   :  { %14247 = vst [vmem:[#allocation3_spill] sm:$0xff] %v12301_v23  ;;  %4176 = vmatmul.bf16.gmra.mxu0 %v12299_v37  ;;  %4265 = vmatmul.bf16.gmra.mxu1 %v12301_v23  ;;  %v12322_v9 = vpack.c.bf16 %v3488_v27, %v3487_v35 }
 0x42c   :  { %v12310_v13 = vpack.c.bf16 %v9187_v42, %v9186_v11  ;;  %9334 = vrot.lane.b32.xlu2 %v9333_v38, %s9358_s19  ;;  %v3585_v3 = vsel %vm3568_vm12, %v9201_v39, %v9186_v11  ;;  %v3586_v27 = vsel %vm3568_vm12, %v9202_v54, %v9187_v42 }
 0x42d   :  { %v9195_v56 = vpop.permute.xlu1 %9194  ;;  %14251 = vst [vmem:[#allocation16_spill] sm:$0xff] %v12322_v9 }
 0x42e   :  { %14250 = vst [vmem:[#allocation15_spill] sm:$0xff] %v12310_v13  ;;  %v9197_v1 = vunpack.i.h.bf16 %v9195_v56  ;;  %v9196_v62 = vunpack.i.l.bf16 %v9195_v56 }
 0x42f   :  { %7659 = vmatmul.msk.bf16.gmra.mxu2 %vm3989_vm9, %v12310_v13 }
 0x430   :  { %v3519_v19 = vsel %vm2172_vm7, %v9191_v5, %v9196_v62  ;;  %v3520_v31 = vsel %vm2172_vm7, %v9192_v24, %v9197_v1  ;;  %v12336_v1 = vpack.c.bf16 %v3586_v27, %v3585_v3 }
 0x431   :  { %v4320_v26 = vpop.f32.mrf.mxu2  ;;  %v3552_v56 = vsel %vm3535_vm11, %v3519_v19, %v9201_v39  ;;  %v3553_v35 = vsel %vm3535_vm11, %v3520_v31, %v9202_v54  ;;  %v9215_v31 = vpop.permute.xlu2 %9214 }
 0x432   :  { %4092 = vmatmul.bf16.gmra.mxu3 %v12322_v9  ;;  %v12334_v24 = vpack.c.bf16 %v3553_v35, %v3552_v56  ;;  %14253 = vst [vmem:[#allocation18_spill] sm:$0xff] %v12336_v1 }
 0x434   :  { %14252 = vst [vmem:[#allocation4_spill] sm:$0xff] %v12334_v24 }
 0x435   :  { %v4053_v15 = vpop.f32.mrf.mxu3 }
 0x436   :  { %v4054_v38 = vadd.f32 %v4053_v15, %v12324_v16 }
 0x437   :  { %v4142_v44 = vpop.f32.mrf.mxu0  ;;  %v4231_v45 = vpop.f32.mrf.mxu1 }
 0x438   :  { %v4143_v13 = vadd.f32 %v4142_v44, %v4054_v38 }
 0x439   :  { %v4322_v5 = vpop.f32.mrf.mxu2  ;;  %v9205_v62 = vpop.permute.xlu1 %9204 }
 0x43a   :  { %v4232_v28 = vadd.f32 %v4231_v45, %v4143_v13  ;;  %v9207_v9 = vunpack.i.h.bf16 %v9205_v62  ;;  %v9206_v11 = vunpack.i.l.bf16 %v9205_v62 }
 0x43b   :  { %4181 = vmatmul.bf16.gmra.mxu0 %v12334_v24  ;;  %4270 = vmatmul.bf16.gmra.mxu1 %v12336_v1  ;;  %v12351_v1 = vpop.permute.xlu2 %9224 }
 0x43c   :  { %v4321_v39 = vadd.f32 %v4320_v26, %v4232_v28  ;;  %v12340_v19 = vpack.c.bf16 %v9207_v9, %v9206_v11 }
 0x43d   :  { %v4055_v42 = vpop.f32.mrf.mxu3 }
 0x43e   :  { %14254 = vst [vmem:[#allocation19_spill] sm:$0xff] %v12340_v19  ;;  %v4056_v54 = vadd.f32 %v4055_v42, %v12324_v16 }
 0x43f   :  { %7660 = vmatmul.msk.bf16.gmra.mxu2 %vm3989_vm9, %v12340_v19  ;;  %v4144_v15 = vpop.f32.mrf.mxu0  ;;  %v4233_v3 = vpop.f32.mrf.mxu1  ;;  %v4756_v19 = vmax.f32 %v4321_v39, 0.0 }
 0x440   :  { %v9210_v38 = vpop.permute.xlu0 %9209  ;;  %v4145_v45 = vadd.f32 %v4144_v15, %v4056_v54 }
 0x441   :  { %v9212_v13 = vunpack.i.h.bf16 %v9210_v38  ;;  %v9211_v56 = vunpack.i.l.bf16 %v9210_v38  ;;  %v4325_v35 = vpop.f32.mrf.mxu2  ;;  %v9217_v38 = vunpack.i.h.bf16 %v9215_v31 }
 0x442   :  { %v4234_v27 = vadd.f32 %v4233_v3, %v4145_v45  ;;  %v9216_v45 = vunpack.i.l.bf16 %v9215_v31 }
 0x443   :  { %v3489_v26 = vsel %vm3470_vm10, %v11808_v21, %v9211_v56  ;;  %v3490_v44 = vsel %vm3470_vm10, %v11866_v36, %v9212_v13 }
 0x444   :  { %v4323_v62 = vadd.f32 %v4322_v5, %v4234_v27  ;;  %v12349_v28 = vpack.c.bf16 %v3490_v44, %v3489_v26  ;;  %v9227_v5 = vunpack.i.h.bf16 %v12351_v1  ;;  %v9226_v27 = vunpack.i.l.bf16 %v12351_v1 }
 0x445   :  { %v4058_v42 = vpop.f32.mrf.mxu3 }
 0x446   :  { %14255 = vst [vmem:[#allocation5_spill] sm:$0xff] %v12349_v28  ;;  %v4758_v24 = vmax.f32 %v4323_v62, 0.0  ;;  %4097 = vmatmul.bf16.gmra.mxu3 %v12349_v28  ;;  %v4059_v54 = vadd.f32 %v4058_v42, %v12324_v16  ;;  %v3522_v62 = vsel %vm2172_vm7, %v9212_v13, %v9217_v38  ;;  %v3521_v28 = vsel %vm2172_vm7, %v9211_v56, %v9216_v45 }
 0x447   :  { %v4147_v15 = vpop.f32.mrf.mxu0  ;;  %v4236_v3 = vpop.f32.mrf.mxu1 }
 0x448   :  { %v12355_v21 = vpack.c.bf16 %v4758_v24, %v4756_v19  ;;  %v9220_v23 = vpop.permute.xlu0 %9219  ;;  %v4148_v36 = vadd.f32 %v4147_v15, %v4059_v54 }
 0x449   :  { %v9222_v26 = vunpack.i.h.bf16 %v9220_v23  ;;  %v9221_v44 = vunpack.i.l.bf16 %v9220_v23  ;;  %v4327_v39 = vpop.f32.mrf.mxu2  ;;  %v12369_v23 = vpack.c.bf16 %v9227_v5, %v9226_v27 }
 0x44a   :  { %14256 = vst [vmem:[#allocation22_spill] sm:$0xff] %v12355_v21  ;;  %v4237_v42 = vadd.f32 %v4236_v3, %v4148_v36 }
 0x44b   :  { %v3554_v37 = vsel %vm3535_vm11, %v3521_v28, %v9221_v44  ;;  %v3555_v31 = vsel %vm3535_vm11, %v3522_v62, %v9222_v26  ;;  %v3587_v24 = vsel %vm3568_vm12, %v9221_v44, %v9206_v11  ;;  %v3588_v19 = vsel %vm3568_vm12, %v9222_v26, %v9207_v9  ;;  %14257 = vst [vmem:[#allocation23_spill] sm:$0xff] %v12369_v23 }
 0x44c   :  { %v4326_v54 = vadd.f32 %v4325_v35, %v4237_v42  ;;  %v12365_v15 = vpack.c.bf16 %v3555_v31, %v3554_v37  ;;  %v12367_v1 = vpack.c.bf16 %v3588_v19, %v3587_v24 }
 0x44d   :  { %v9230_v21 = vpop.permute.xlu1 %9229  ;;  %v4060_v13 = vpop.f32.mrf.mxu3 }
 0x44e   :  { %4186 = vmatmul.bf16.gmra.mxu0 %v12365_v15  ;;  %4275 = vmatmul.bf16.gmra.mxu1 %v12367_v1  ;;  %v9232_v56 = vunpack.i.h.bf16 %v9230_v21  ;;  %v9231_v28 = vunpack.i.l.bf16 %v9230_v21  ;;  %v4061_v3 = vadd.f32 %v4060_v13, %v12324_v16 }
 0x44f   :  { %7661 = vmatmul.msk.bf16.gmra.mxu2 %vm3989_vm9, %v12369_v23  ;;  %v4149_v9 = vpop.f32.mrf.mxu0  ;;  %v4238_v37 = vpop.f32.mrf.mxu1 }
 0x450   :  { %v9235_v11 = vpop.permute.xlu0 %9234  ;;  %v4150_v35 = vadd.f32 %v4149_v9, %v4061_v3  ;;  %v3491_v38 = vsel %vm3470_vm10, %v11878_v12, %v9231_v28  ;;  %v3492_v45 = vsel %vm3470_vm10, %v11937_v2, %v9232_v56  ;;  %v4760_v12 = vmax.f32 %v4326_v54, 0.0 }
 0x451   :  { %v12380_v44 = vpack.c.bf16 %v3492_v45, %v3491_v38  ;;  %v9237_v21 = vunpack.i.h.bf16 %v9235_v11  ;;  %v9236_v62 = vunpack.i.l.bf16 %v9235_v11 }
 0x452   :  { %v4239_v36 = vadd.f32 %v4238_v37, %v4150_v35  ;;  %v4330_v26 = vpop.f32.mrf.mxu2 }
 0x453   :  { %14258 = vst [vmem:[#allocation6_spill] sm:$0xff] %v12380_v44  ;;  %v3524_v23 = vsel %vm2172_vm7, %v9232_v56, %v9237_v21  ;;  %v3523_v2 = vsel %vm2172_vm7, %v9231_v28, %v9236_v62 }
 0x454   :  { %v4328_v42 = vadd.f32 %v4327_v39, %v4239_v36  ;;  %v9250_v36 = vpop.permute.xlu2 %9249 }
 0x455   :  { %v9240_v31 = vpop.permute.xlu1 %9239  ;;  %v4063_v24 = vpop.f32.mrf.mxu3 }
 0x456   :  { %v4762_v19 = vmax.f32 %v4328_v42, 0.0  ;;  %4102 = vmatmul.bf16.gmra.mxu3 %v12380_v44  ;;  %v9242_v13 = vunpack.i.h.bf16 %v9240_v31  ;;  %v9241_v3 = vunpack.i.l.bf16 %v9240_v31  ;;  %v4064_v9 = vadd.f32 %v4063_v24, %v12324_v16 }
 0x457   :  { %v4152_v37 = vpop.f32.mrf.mxu0  ;;  %v4241_v35 = vpop.f32.mrf.mxu1 }
 0x458   :  { %v4153_v38 = vadd.f32 %v4152_v37, %v4064_v9  ;;  %v3556_v11 = vsel %vm3535_vm11, %v3523_v2, %v9241_v3  ;;  %v3557_v39 = vsel %vm3535_vm11, %v3524_v23, %v9242_v13  ;;  %v3589_v45 = vsel %vm3568_vm12, %v9241_v3, %v9226_v27 }
 0x459   :  { %v3590_v42 = vsel %vm3568_vm12, %v9242_v13, %v9227_v5  ;;  %v9245_v24 = vpop.permute.xlu0 %9244  ;;  %v12390_v54 = vpack.c.bf16 %v3557_v39, %v3556_v11  ;;  %v12394_v28 = vpack.c.bf16 %v4762_v19, %v4760_v12  ;;  %v9252_v2 = vunpack.i.h.bf16 %v9250_v36 }
 0x45a   :  { %v4242_v31 = vadd.f32 %v4241_v35, %v4153_v38  ;;  %v4332_v44 = vpop.f32.mrf.mxu2  ;;  %v12392_v56 = vpack.c.bf16 %v3590_v42, %v3589_v45  ;;  %v9247_v21 = vunpack.i.h.bf16 %v9245_v24  ;;  %v9246_v62 = vunpack.i.l.bf16 %v9245_v24 }
 0x45b   :  { %14260 = vst [vmem:[#allocation27_spill] sm:$0xff] %v12394_v28  ;;  %v9251_v37 = vunpack.i.l.bf16 %v9250_v36  ;;  %v3494_v35 = vsel %vm3470_vm10, %v12006_v57, %v9252_v2 }
 0x45c   :  { %14259 = vst [vmem:[#allocation26_spill] sm:$0xff] %v12392_v56  ;;  %v4331_v9 = vadd.f32 %v4330_v26, %v4242_v31  ;;  %v12396_v23 = vpack.c.bf16 %v9247_v21, %v9246_v62  ;;  %v9260_v36 = vpop.permute.xlu2 %9259 }
 0x45d   :  { %v4065_v27 = vpop.f32.mrf.mxu3  ;;  %v9255_v5 = vpop.permute.xlu1 %9254  ;;  %v3493_v26 = vsel %vm3470_vm10, %v11955_v41, %v9251_v37  ;;  %v9262_v57 = vunpack.i.h.bf16 %v9260_v36 }
 0x45e   :  { %14261 = vst [vmem:[#allocation7_spill] sm:$0xff] %v12396_v23  ;;  %4191 = vmatmul.bf16.gmra.mxu0 %v12390_v54  ;;  %4280 = vmatmul.bf16.gmra.mxu1 %v12392_v56  ;;  %v4066_v13 = vadd.f32 %v4065_v27, %v12324_v16  ;;  %v9257_v38 = vunpack.i.h.bf16 %v9255_v5  ;;  %v9256_v11 = vunpack.i.l.bf16 %v9255_v5  ;;  %v12407_v31 = vpack.c.bf16 %v3494_v35, %v3493_v26 }
 0x45f   :  { %7662 = vmatmul.msk.bf16.gmra.mxu2 %vm3989_vm9, %v12396_v23  ;;  %v4154_v19 = vpop.f32.mrf.mxu0  ;;  %v4243_v3 = vpop.f32.mrf.mxu1  ;;  %v4764_v24 = vmax.f32 %v4331_v9, 0.0  ;;  %v9261_v23 = vunpack.i.l.bf16 %v9260_v36  ;;  %v3592_v26 = vsel %vm3568_vm12, %v9262_v57, %v9247_v21 }
 0x460   :  { %v4155_v12 = vadd.f32 %v4154_v19, %v4066_v13  ;;  %v3525_v28 = vsel %vm2172_vm7, %v9251_v37, %v9256_v11  ;;  %v3526_v13 = vsel %vm2172_vm7, %v9252_v2, %v9257_v38 }
 0x461   :  { %v3558_v9 = vsel %vm3535_vm11, %v3525_v28, %v9261_v23  ;;  %v3559_v37 = vsel %vm3535_vm11, %v3526_v13, %v9262_v57  ;;  %v3591_v2 = vsel %vm3568_vm12, %v9261_v23, %v9246_v62 }
 0x462   :  { %v4244_v39 = vadd.f32 %v4243_v3, %v4155_v12  ;;  %v4335_v45 = vpop.f32.mrf.mxu2 }
 0x464   :  { %v4333_v42 = vadd.f32 %v4332_v44, %v4244_v39 }
 0x465   :  { %v4068_v27 = vpop.f32.mrf.mxu3 }
 0x466   :  { %v4766_v19 = vmax.f32 %v4333_v42, 0.0  ;;  %4107 = vmatmul.bf16.gmra.mxu3 %v12407_v31  ;;  %v4069_v41 = vadd.f32 %v4068_v27, %v12324_v16  ;;  %v12427_v27 = vpack.c.bf16 %v3592_v26, %v3591_v2 }
 0x467   :  { %v4157_v5 = vpop.f32.mrf.mxu0  ;;  %v4246_v3 = vpop.f32.mrf.mxu1 }
 0x468   :  { %v4158_v12 = vadd.f32 %v4157_v5, %v4069_v41  ;;  %v12413_v56 = vpack.c.bf16 %v4766_v19, %v4764_v24  ;;  %v12425_v24 = vpack.c.bf16 %v3559_v37, %v3558_v9  ;;  %14265 = vst [vmem:[#allocation34_spill] sm:$0xff] %v12427_v27  ;;  %v9275_v19 = vpop.permute.xlu2 %9274 }
 0x469   :  { %v12415_v44 = vpop.permute.xlu1 %9264 }
 0x46a   :  { %14262 = vst [vmem:[#allocation29_spill] sm:$0xff] %v12413_v56  ;;  %v4247_v35 = vadd.f32 %v4246_v3, %v4158_v12  ;;  %v4337_v38 = vpop.f32.mrf.mxu2  ;;  %v9267_v11 = vunpack.i.h.bf16 %v12415_v44  ;;  %v9266_v39 = vunpack.i.l.bf16 %v12415_v44 }
 0x46b   :  { %14264 = vst [vmem:[#allocation8_spill] sm:$0xff] %v12425_v24 }
 0x46c   :  { %v4336_v36 = vadd.f32 %v4335_v45, %v4247_v35  ;;  %v12423_v42 = vpack.c.bf16 %v9267_v11, %v9266_v39 }
 0x46d   :  { %v4070_v28 = vpop.f32.mrf.mxu3 }
 0x46e   :  { %14263 = vst [vmem:[#allocation31_spill] sm:$0xff] %v12423_v42  ;;  %4196 = vmatmul.bf16.gmra.mxu0 %v12425_v24  ;;  %4285 = vmatmul.bf16.gmra.mxu1 %v12427_v27  ;;  %v4071_v21 = vadd.f32 %v4070_v28, %v12324_v16  ;;  %v4768_v35 = vmax.f32 %v4336_v36, 0.0 }
 0x46f   :  { %7663 = vmatmul.msk.bf16.gmra.mxu2 %vm3989_vm9, %v12423_v42  ;;  %v4159_v62 = vpop.f32.mrf.mxu0  ;;  %v4248_v23 = vpop.f32.mrf.mxu1 }
 0x470   :  { %v9270_v45 = vpop.permute.xlu0 %9269  ;;  %v4160_v13 = vadd.f32 %v4159_v62, %v4071_v21  ;;  %v12440_v26 = vpop.permute.xlu2 %9284  ;;  %v8576_v62 = vld [vmem:[%s14027_s4 + $0x74] sm:$0xf] }
 0x471   :  { %v9272_v41 = vunpack.i.h.bf16 %v9270_v45  ;;  %v9271_v57 = vunpack.i.l.bf16 %v9270_v45  ;;  %v9277_v45 = vunpack.i.h.bf16 %v9275_v19 }
 0x472   :  { %v4249_v5 = vadd.f32 %v4248_v23, %v4160_v13  ;;  %v4340_v3 = vpop.f32.mrf.mxu2  ;;  %v9276_v13 = vunpack.i.l.bf16 %v9275_v19  ;;  %v9351_v19 = vld [vmem:[%s14027_s4 + $0x1a0] sm:$0x33] }
 0x473   :  { %v3495_v12 = vsel %vm3470_vm10, %v12017_v8, %v9271_v57  ;;  %v3496_v44 = vsel %vm3470_vm10, %v12072_v52, %v9272_v41  ;;  %v7503_v8 = vld [vmem:[%s14027_s4 + $0x78] sm:$0xf0] }
 0x474   :  { %v4338_v9 = vadd.f32 %v4337_v38, %v4249_v5  ;;  %v12438_v37 = vpack.c.bf16 %v3496_v44, %v3495_v12  ;;  %v7506_v23 = vor.u32 %v8576_v62, %v7503_v8  ;;  %v14126_v44 = vunpack.i.h.bf16 %v12440_v26 }
 0x475   :  { %v4073_v2 = vpop.f32.mrf.mxu3  ;;  %v3527_v42 = vsel %vm2172_vm7, %v9271_v57, %v9276_v13 }
 0x476   :  { %14266 = vst [vmem:[#allocation11_spill] sm:$0xff] %v12438_v37  ;;  %v4770_v28 = vmax.f32 %v4338_v9, 0.0  ;;  %4112 = vmatmul.bf16.gmra.mxu3 %v12438_v37  ;;  %v4074_v21 = vadd.f32 %v4073_v2, %v12324_v16  ;;  %v14127_v9 = vunpack.i.l.bf16 %v12440_v26  ;;  %v3528_v37 = vsel %vm2172_vm7, %v9272_v41, %v9277_v45 }
 0x477   :  { %v4162_v52 = vpop.f32.mrf.mxu0  ;;  %v4251_v38 = vpop.f32.mrf.mxu1  ;;  %4400 = vmatpush.bf16.msra.mxu3 %v7506_v23 }
 0x478   :  { %v9280_v5 = vpop.permute.xlu0 %9279  ;;  %v4163_v36 = vadd.f32 %v4162_v52, %v4074_v21  ;;  %v12450_v12 = vpack.c.bf16 %v4770_v28, %v4768_v35  ;;  %v3882_v21 = vunpack.c.h.b16 %v9351_v19  ;;  %v12473_v23 = vpack.c.bf16 %v14126_v44, %v14127_v9  ;;  %v8570_v9 = vld [vmem:[%s14027_s4 + $0x44] sm:$0xf] }
 0x479   :  { %v9282_v2 = vunpack.i.h.bf16 %v9280_v5  ;;  %v9281_v56 = vunpack.i.l.bf16 %v9280_v5 }
 0x47a   :  { %14267 = vst [vmem:[#allocation35_spill] sm:$0xff] %v12450_v12  ;;  %v4252_v27 = vadd.f32 %v4251_v38, %v4163_v36  ;;  %v4342_v24 = vpop.f32.mrf.mxu2  ;;  %v3936_v38 = vpack.c.b16 %v3882_v21, %v3882_v21 }
 0x47b   :  { %v3560_v35 = vsel %vm3535_vm11, %v3527_v42, %v9281_v56  ;;  %v3561_v28 = vsel %vm3535_vm11, %v3528_v37, %v9282_v2  ;;  %v3593_v62 = vsel %vm3568_vm12, %v9281_v56, %v9266_v39  ;;  %v3594_v8 = vsel %vm3568_vm12, %v9282_v2, %v9267_v11  ;;  %14269 = vst [vmem:[#allocation36_spill] sm:$0xff] %v12473_v23  ;;  %v8574_v56 = vld [vmem:[%s14027_s4 + $0x64] sm:$0xf]  ;;  %v7495_v11 = vld [vmem:[%s14027_s4 + $0x68] sm:$0xf0] }
 0x47c   :  { %v12463_v52 = vadd.f32 %v4340_v3, %v4252_v27  ;;  %v12465_v41 = vpack.c.bf16 %v3561_v28, %v3560_v35  ;;  %v12467_v57 = vpack.c.bf16 %v3594_v8, %v3593_v62  ;;  %v4042_v13 = vsel %vm3212_vm8, %v3936_v38, 0  ;;  %v8572_v35 = vld [vmem:[%s14027_s4 + $0x54] sm:$0xf]  ;;  %v7487_v28 = vld [vmem:[%s14027_s4 + $0x58] sm:$0xf0] }
 0x47d   :  { %v9290_v42 = vpop.permute.xlu1 %9289  ;;  %v4075_v45 = vpop.f32.mrf.mxu3  ;;  %v7498_v5 = vor.u32 %v8574_v56, %v7495_v11  ;;  %4672 = vmatpush.bf16.msra.mxu2 %v4042_v13  ;;  %v8592_v62 = vld [vmem:[%s14027_s4 + $0xf4] sm:$0xf]  ;;  %v7490_v38 = vor.u32 %v8572_v35, %v7487_v28 }
 0x47e   :  { %14268 = vst [vmem:[#allocation14_spill] sm:$0xff] %v12467_v57  ;;  %4201 = vmatmul.bf16.gmra.mxu0 %v12465_v41  ;;  %4290 = vmatmul.bf16.gmra.mxu1 %v12467_v57  ;;  %v9292_v39 = vunpack.i.h.bf16 %v9290_v42  ;;  %v9291_v27 = vunpack.i.l.bf16 %v9290_v42  ;;  %v4076_v3 = vadd.f32 %v4075_v45, %v12324_v16  ;;  %v8608_v42 = vld [vmem:[%s14027_s4 + $0x174] sm:$0xf]  ;;  %v7631_v45 = vld [vmem:[%s14027_s4 + $0x178] sm:$0xf0] }
 0x47f   :  { %7664 = vmatmul.msk.bf16.gmra.mxu2 %vm3989_vm9, %v12473_v23  ;;  %v4164_v37 = vpop.f32.mrf.mxu0  ;;  %v4253_v19 = vpop.f32.mrf.mxu1  ;;  %4401 = vmatpush.bf16.msra.mxu3 %v7498_v5 }
 0x480   :  { %v9295_v36 = vpop.permute.xlu0 %9294  ;;  %v4165_v2 = vadd.f32 %v4164_v37, %v4076_v3  ;;  %v3497_v21 = vsel %vm3470_vm10, %v12082_v50, %v9291_v27  ;;  %v3498_v8 = vsel %vm3470_vm10, %v12139_v40, %v9292_v39  ;;  %v7567_v50 = vld [vmem:[%s14027_s4 + $0xf8] sm:$0xf0]  ;;  %v7634_v40 = vor.u32 %v8608_v42, %v7631_v45 }
 0x481   :  { %v12509_v3 = vpack.c.bf16 %v3498_v8, %v3497_v21  ;;  %v7570_v37 = vor.u32 %v8592_v62, %v7567_v50  ;;  %v9296_v13 = vunpack.i.l.bf16 %v9295_v36  ;;  %v9297_v5 = vunpack.i.h.bf16 %v9295_v36  ;;  %v7559_v62 = vld [vmem:[%s14027_s4 + $0xe8] sm:$0xf0] }
 0x482   :  { %v4254_v56 = vadd.f32 %v4253_v19, %v4165_v2  ;;  %v4345_v11 = vpop.f32.mrf.mxu2  ;;  %4578 = vmatpush.bf16.msra.mxu1 %v7634_v40  ;;  %v7479_v2 = vld [vmem:[%s14027_s4 + $0x48] sm:$0xf0]  ;;  %v8590_v19 = vld [vmem:[%s14027_s4 + $0xe4] sm:$0xf]  ;;  %v4772_v8 = vmax.f32 %v12463_v52, 0.0 }
 0x483   :  { %14270 = vst [vmem:[#allocation17_spill] sm:$0xff] %v12509_v3  ;;  %4489 = vmatpush.bf16.msra.mxu0 %v7570_v37  ;;  %4402 = vmatpush.bf16.msra.mxu3 %v7490_v38  ;;  %v3529_v38 = vsel %vm2172_vm7, %v9291_v27, %v9296_v13  ;;  %v7482_v42 = vor.u32 %v8570_v9, %v7479_v2  ;;  %v7623_v37 = vld [vmem:[%s14027_s4 + $0x168] sm:$0xf0]  ;;  %v8568_v9 = vld [vmem:[%s14027_s4 + $0x34] sm:$0xf] }
 0x484   :  { %v4343_v35 = vadd.f32 %v4342_v24, %v4254_v56  ;;  %v7562_v45 = vor.u32 %v8590_v19, %v7559_v62  ;;  %v8606_v56 = vld [vmem:[%s14027_s4 + $0x164] sm:$0xf]  ;;  %v3530_v40 = vsel %vm2172_vm7, %v9292_v39, %v9297_v5  ;;  %v7471_v27 = vld [vmem:[%s14027_s4 + $0x38] sm:$0xf0]  ;;  %v8588_v13 = vld [vmem:[%s14027_s4 + $0xd4] sm:$0xf]  ;;  %v14271_v5 = vunpack.i.l.bf16 %v12440_v26 }
 0x485   :  { %v9300_v28 = vpop.permute.xlu1 %9299  ;;  %v4078_v44 = vpop.f32.mrf.mxu3  ;;  %v14272_v62 = vunpack.i.h.bf16 %v12440_v26  ;;  %v8604_v26 = vld [vmem:[%s14027_s4 + $0x154] sm:$0xf] }
 0x486   :  { %4117 = vmatmul.bf16.gmra.mxu3 %v12509_v3  ;;  %v9302_v24 = vunpack.i.h.bf16 %v9300_v28  ;;  %v9301_v36 = vunpack.i.l.bf16 %v9300_v28  ;;  %v4079_v21 = vadd.f32 %v4078_v44, %v12324_v16  ;;  %v12533_v44 = vpop.permute.xlu2 %9309  ;;  %v4774_v2 = vmax.f32 %v4343_v35, 0.0 }
 0x487   :  { %v4167_v50 = vpop.f32.mrf.mxu0  ;;  %v4256_v12 = vpop.f32.mrf.mxu1  ;;  %4403 = vmatpush.bf16.msra.mxu3 %v7482_v42  ;;  %4490 = vmatpush.bf16.msra.mxu0 %v7562_v45  ;;  %v7626_v42 = vor.u32 %v8606_v56, %v7623_v37  ;;  %v7474_v45 = vor.u32 %v8568_v9, %v7471_v27  ;;  %v8566_v56 = vld [vmem:[%s14027_s4 + $0x24] sm:$0xf] }
 0x488   :  { %v4168_v28 = vadd.f32 %v4167_v50, %v4079_v21  ;;  %v3562_v52 = vsel %vm3535_vm11, %v3529_v38, %v9301_v36  ;;  %v3563_v39 = vsel %vm3535_vm11, %v3530_v40, %v9302_v24  ;;  %v3595_v21 = vsel %vm3568_vm12, %v9301_v36, %v14271_v5  ;;  %v7551_v50 = vld [vmem:[%s14027_s4 + $0xd8] sm:$0xf0] }
 0x489   :  { %v12546_v19 = vpop.permute.xlu0 %9304  ;;  %v3596_v38 = vsel %vm3568_vm12, %v9302_v24, %v14272_v62  ;;  %v12560_v57 = vpack.c.bf16 %v3563_v39, %v3562_v52  ;;  %v7615_v24 = vld [vmem:[%s14027_s4 + $0x158] sm:$0xf0]  ;;  %v9312_v39 = vunpack.i.h.bf16 %v12533_v44  ;;  %4579 = vmatpush.bf16.msra.mxu1 %v7626_v42  ;;  %v12589_v37 = vpack.c.bf16 %v4774_v2, %v4772_v8 }
 0x48a   :  { %v4257_v3 = vadd.f32 %v4256_v12, %v4168_v28  ;;  %v4347_v35 = vpop.f32.mrf.mxu2  ;;  %v14132_v23 = vunpack.i.h.bf16 %v12546_v19  ;;  %v14133_v40 = vunpack.i.l.bf16 %v12546_v19  ;;  %v12568_v36 = vpack.c.bf16 %v3596_v38, %v3595_v21  ;;  %v8602_v38 = vld [vmem:[%s14027_s4 + $0x144] sm:$0xf] }
 0x48b   :  { %v7554_v12 = vor.u32 %v8588_v13, %v7551_v50  ;;  %v9311_v28 = vunpack.i.l.bf16 %v12533_v44  ;;  %4404 = vmatpush.bf16.msra.mxu3 %v7474_v45  ;;  %v7618_v21 = vor.u32 %v8604_v26, %v7615_v24  ;;  %14275 = vst [vmem:[#allocation21_spill] sm:$0xff] %v12589_v37  ;;  %v7543_v13 = vld [vmem:[%s14027_s4 + $0xc8] sm:$0xf0]  ;;  %v8612_v26 = vld [vmem:[%s14027_s4 + $0x194] sm:$0xf] }
 0x48c   :  { %14273 = vst [vmem:[#allocation37_spill] sm:$0xff] %v12568_v36  ;;  %v12571_v5 = vadd.f32 %v4345_v11, %v4257_v3  ;;  %v12577_v52 = vpack.c.bf16 %v14132_v23, %v14133_v40  ;;  %v7463_v11 = vld [vmem:[%s14027_s4 + $0x28] sm:$0xf0]  ;;  %v8586_v3 = vld [vmem:[%s14027_s4 + $0xc4] sm:$0xf] }
 0x48d   :  { %v4080_v62 = vpop.f32.mrf.mxu3  ;;  %v7466_v27 = vor.u32 %v8566_v56, %v7463_v11  ;;  %4491 = vmatpush.bf16.msra.mxu0 %v7554_v12  ;;  %v7546_v2 = vor.u32 %v8586_v3, %v7543_v13  ;;  %v7607_v50 = vld [vmem:[%s14027_s4 + $0x148] sm:$0xf0]  ;;  %v7647_v24 = vld [vmem:[%s14027_s4 + $0x198] sm:$0xf0]  ;;  %v8564_v12 = vld [vmem:[%s14027_s4 + $0x14] sm:$0xf]  ;;  %4580 = vmatpush.bf16.msra.mxu1 %v7618_v21 }
 0x48e   :  { %14274 = vst [vmem:[#allocation38_spill] sm:$0xff] %v12577_v52  ;;  %4206 = vmatmul.bf16.gmra.mxu0 %v12560_v57  ;;  %4295 = vmatmul.bf16.gmra.mxu1 %v12568_v36  ;;  %v9315_v44 = vpop.permute.xlu1 %9314  ;;  %v4081_v9 = vadd.f32 %v4080_v62, %v12324_v16  ;;  %v3499_v62 = vsel %vm3470_vm10, %v12156_v14, %v9311_v28  ;;  %v7455_v11 = vld [vmem:[%s14027_s4 + $0x18] sm:$0xf0]  ;;  %v8584_v3 = vld [vmem:[%s14027_s4 + $0xb4] sm:$0xf]  ;;  %v9320_v23 = vpop.permute.xlu2 %9319 }
 0x48f   :  { %7665 = vmatmul.msk.bf16.gmra.mxu2 %vm3989_vm9, %v12577_v52  ;;  %v4169_v8 = vpop.f32.mrf.mxu0  ;;  %v4258_v45 = vpop.f32.mrf.mxu1  ;;  %v7650_v56 = vor.u32 %v8612_v26, %v7647_v24  ;;  %v9316_v13 = vunpack.i.l.bf16 %v9315_v44  ;;  %4405 = vmatpush.bf16.msra.mxu3 %v7466_v27  ;;  %v7610_v14 = vor.u32 %v8602_v38, %v7607_v50  ;;  %v7535_v26 = vld [vmem:[%s14027_s4 + $0xb8] sm:$0xf0]  ;;  %v8600_v24 = vld [vmem:[%s14027_s4 + $0x134] sm:$0xf]  ;;  %v9317_v40 = vunpack.i.h.bf16 %v9315_v44  ;;  %v8610_v21 = vld [vmem:[%s14027_s4 + $0x184] sm:$0xf] }
 0x490   :  { %v4170_v42 = vadd.f32 %v4169_v8, %v4081_v9  ;;  %v3500_v9 = vsel %vm3470_vm10, %v12199_v46, %v9312_v39  ;;  %v7458_v8 = vor.u32 %v8564_v12, %v7455_v11  ;;  %v7599_v46 = vld [vmem:[%s14027_s4 + $0x138] sm:$0xf0]  ;;  %v7639_v27 = vld [vmem:[%s14027_s4 + $0x188] sm:$0xf0]  ;;  %v7538_v38 = vor.u32 %v8584_v3, %v7535_v26  ;;  %v8562_v36 = vld [vmem:[%s14027_s4 + $0x4] sm:$0xf] }
 0x491   :  { %4673 = vmatpush.bf16.msra.mxu2 %v7650_v56  ;;  %4492 = vmatpush.bf16.msra.mxu0 %v7546_v2  ;;  %v7642_v50 = vor.u32 %v8610_v21, %v7639_v27  ;;  %v9321_v56 = vunpack.i.l.bf16 %v9320_v23  ;;  %v3531_v12 = vsel %vm2172_vm7, %v9311_v28, %v9316_v13  ;;  %v7602_v11 = vor.u32 %v8600_v24, %v7599_v46  ;;  %v7447_v2 = vld [vmem:[%s14027_s4 + $0x8] sm:$0xf0] }
 0x492   :  { %v4259_v37 = vadd.f32 %v4258_v45, %v4170_v42  ;;  %v12630_v52 = vpop.f32.mrf.mxu2  ;;  %v12641_v42 = vpack.c.bf16 %v3500_v9, %v3499_v62  ;;  %v9322_v45 = vunpack.i.h.bf16 %v9320_v23  ;;  %4581 = vmatpush.bf16.msra.mxu1 %v7610_v14  ;;  %v3532_v23 = vsel %vm2172_vm7, %v9312_v39, %v9317_v40  ;;  %v7527_v13 = vld [vmem:[%s14027_s4 + $0xa8] sm:$0xf0]  ;;  %v8598_v9 = vld [vmem:[%s14027_s4 + $0x124] sm:$0xf]  ;;  %v12664_v14 = vpop.permute.xlu0 %9324 }
 0x493   :  { %4406 = vmatpush.bf16.msra.mxu3 %v7458_v8  ;;  %v7450_v3 = vor.u32 %v8562_v36, %v7447_v2  ;;  %v14276_v40 = vunpack.i.l.bf16 %v12546_v19  ;;  %v7591_v36 = vld [vmem:[%s14027_s4 + $0x128] sm:$0xf0]  ;;  %v3564_v21 = vsel %vm3535_vm11, %v3531_v12, %v9321_v56  ;;  %v14277_v27 = vunpack.i.h.bf16 %v12546_v19 }
 0x494   :  { %v4348_v44 = vadd.f32 %v4347_v35, %v4259_v37  ;;  %v8582_v35 = vld [vmem:[%s14027_s4 + $0xa4] sm:$0xf]  ;;  %v4776_v37 = vmax.f32 %v12571_v5, 0.0  ;;  %v7594_v19 = vor.u32 %v8598_v9, %v7591_v36  ;;  %v7511_v36 = vld [vmem:[%s14027_s4 + $0x88] sm:$0xf0] }
 0x495   :  { %4674 = vmatpush.bf16.msra.mxu2 %v7642_v50  ;;  %v4083_v5 = vpop.f32.mrf.mxu3  ;;  %v3597_v39 = vsel %vm3568_vm12, %v9321_v56, %v14276_v40  ;;  %4493 = vmatpush.bf16.msra.mxu0 %v7538_v38  ;;  %v7530_v8 = vor.u32 %v8582_v35, %v7527_v13  ;;  %v3598_v50 = vsel %vm3568_vm12, %v9322_v45, %v14277_v27  ;;  %v7519_v38 = vld [vmem:[%s14027_s4 + $0x98] sm:$0xf0]  ;;  %v8596_v40 = vld [vmem:[%s14027_s4 + $0x114] sm:$0xf] }
 0x496   :  { %v4778_v28 = vmax.f32 %v4348_v44, 0.0  ;;  %4122 = vmatmul.bf16.gmra.mxu3 %v12641_v42  ;;  %v12656_v62 = vpop.permute.xlu1 %9329  ;;  %v4084_v26 = vadd.f32 %v4083_v5, %v12324_v16  ;;  %v8580_v44 = vld [vmem:[%s14027_s4 + $0x94] sm:$0xf]  ;;  %v3565_v56 = vsel %vm3535_vm11, %v3532_v23, %v9322_v45  ;;  %4582 = vmatpush.bf16.msra.mxu1 %v7602_v11  ;;  %v9327_v45 = vunpack.i.h.bf16 %v12664_v14 }
 0x497   :  { %v9331_v13 = vunpack.i.l.bf16 %v12656_v62  ;;  %4407 = vmatpush.bf16.msra.mxu3 %v7450_v3  ;;  %v12694_v35 = vpack.c.bf16 %v3565_v56, %v3564_v21  ;;  %v9326_v11 = vunpack.i.l.bf16 %v12664_v14  ;;  %v14279_v23 = vunpack.i.h.bf16 %v12656_v62  ;;  %v8594_v14 = vld [vmem:[%s14027_s4 + $0x104] sm:$0xf] }
 0x498   :  { %v4172_v24 = vpop.f32.mrf.mxu0  ;;  %v4261_v46 = vpop.f32.mrf.mxu1  ;;  %v12683_v2 = vpack.c.bf16 %v4778_v28, %v4776_v37  ;;  %v7583_v37 = vld [vmem:[%s14027_s4 + $0x118] sm:$0xf0]  ;;  %v7522_v28 = vor.u32 %v8580_v44, %v7519_v38  ;;  %v3502_v56 = vsel %vm3470_vm10, %v12217_v43, %v9327_v45 }
 0x499   :  { %v4173_v12 = vadd.f32 %v4172_v24, %v4084_v26  ;;  %4494 = vmatpush.bf16.msra.mxu0 %v7530_v8  ;;  %v12702_v3 = vpack.c.bf16 %v14279_v23, %v9331_v13  ;;  %v7586_v9 = vor.u32 %v8596_v40, %v7583_v37  ;;  %v8578_v8 = vld [vmem:[%s14027_s4 + $0x84] sm:$0xf]  ;;  %v7575_v26 = vld [vmem:[%s14027_s4 + $0x108] sm:$0xf0]  ;;  %v9335_v44 = vpop.permute.xlu2 %9334  ;;  %v3501_v38 = vsel %vm3470_vm10, %v12215_v20, %v9326_v11 }
 0x49a   :  { %14278 = vst [vmem:[#allocation39_spill] sm:$0xff] %v12683_v2  ;;  %v4352_v5 = vpop.f32.mrf.mxu2  ;;  %v12696_v2 = vpack.c.bf16 %v3598_v50, %v3597_v39  ;;  %4583 = vmatpush.bf16.msra.mxu1 %v7594_v19  ;;  %v7578_v19 = vor.u32 %v8594_v14, %v7575_v26  ;;  %v9336_v23 = vunpack.i.l.bf16 %v9335_v44 }
 0x49b   :  { %v4262_v27 = vadd.f32 %v4261_v46, %v4173_v12  ;;  %14280 = vst [vmem:[#allocation24_spill] sm:$0xff] %v12702_v3  ;;  %v7514_v46 = vor.u32 %v8578_v8, %v7511_v36  ;;  %v9340_v12 = vpop.permute.xlu0 %9339 }
 0x49c   :  { %v9342_v8 = vunpack.i.h.bf16 %v9340_v12  ;;  %v9341_v36 = vunpack.i.l.bf16 %v9340_v12  ;;  %v3533_v20 = vsel %vm2172_vm7, %v9326_v11, %v9336_v23 }
 0x49d   :  { %v4351_v39 = vadd.f32 %v12630_v52, %v4262_v27  ;;  %v4085_v24 = vpop.f32.mrf.mxu3  ;;  %4495 = vmatpush.bf16.msra.mxu0 %v7522_v28  ;;  %v12726_v28 = vpack.c.bf16 %v3502_v56, %v3501_v38 }
 0x49e   :  { %4211 = vmatmul.bf16.gmra.mxu0 %v12694_v35  ;;  %4300 = vmatmul.bf16.gmra.mxu1 %v12696_v2  ;;  %v4086_v52 = vadd.f32 %v4085_v24, %v12324_v16  ;;  %v9337_v24 = vunpack.i.h.bf16 %v9335_v44  ;;  %v3599_v44 = vsel %vm3568_vm12, %v9341_v36, %v9331_v13 }
 0x49f   :  { %7666 = vmatmul.msk.bf16.gmra.mxu2 %vm3989_vm9, %v12702_v3  ;;  %4584 = vmatpush.bf16.msra.mxu1 %v7586_v9  ;;  %v4780_v14 = vmax.f32 %v4351_v39, 0.0 }
 0x4a0   :  { %v4174_v21 = vpop.f32.mrf.mxu0  ;;  %v4263_v50 = vpop.f32.mrf.mxu1  ;;  %v3534_v9 = vsel %vm2172_vm7, %v9327_v45, %v9337_v24 }
 0x4a1   :  { %v4175_v40 = vadd.f32 %v4174_v21, %v4086_v52  ;;  %4496 = vmatpush.bf16.msra.mxu0 %v7514_v46  ;;  %v3567_v38 = vsel %vm3535_vm11, %v3534_v9, %v9342_v8 }
 0x4a2   :  { %v4355_v37 = vpop.f32.mrf.mxu2 }
 0x4a3   :  { %v4264_v27 = vadd.f32 %v4263_v50, %v4175_v40  ;;  %4585 = vmatpush.bf16.msra.mxu1 %v7578_v19  ;;  %v3566_v50 = vsel %vm3535_vm11, %v3533_v20, %v9341_v36 }
 0x4a5   :  { %v4353_v3 = vadd.f32 %v4352_v5, %v4264_v27  ;;  %v4088_v43 = vpop.f32.mrf.mxu3  ;;  %v14281_v5 = vunpack.i.h.bf16 %v12656_v62 }
 0x4a6   :  { %4127 = vmatmul.bf16.gmra.mxu3 %v12726_v28  ;;  %v4089_v46 = vadd.f32 %v4088_v43, %v12324_v16 }
 0x4a7   :  { %v4782_v26 = vmax.f32 %v4353_v3, 0.0  ;;  %v3600_v56 = vsel %vm3568_vm12, %v9342_v8, %v14281_v5  ;;  %v12740_v3 = vpack.c.bf16 %v3567_v38, %v3566_v50 }
 0x4a8   :  { %v4177_v52 = vpop.f32.mrf.mxu0  ;;  %v4266_v21 = vpop.f32.mrf.mxu1  ;;  %v12742_v39 = vpack.c.bf16 %v3600_v56, %v3599_v44 }
 0x4a9   :  { %v4178_v11 = vadd.f32 %v4177_v52, %v4089_v46  ;;  %v12738_v12 = vpack.c.bf16 %v4782_v26, %v4780_v14 }
 0x4aa   :  { %v4357_v19 = vpop.f32.mrf.mxu2 }
 0x4ab   :  { %v4267_v45 = vadd.f32 %v4266_v21, %v4178_v11 }
 0x4ad   :  { %v4356_v40 = vadd.f32 %v4355_v37, %v4267_v45  ;;  %v4090_v27 = vpop.f32.mrf.mxu3 }
 0x4ae   :  { %4216 = vmatmul.bf16.gmra.mxu0 %v12740_v3  ;;  %4305 = vmatmul.bf16.gmra.mxu1 %v12742_v39  ;;  %v4091_v62 = vadd.f32 %v4090_v27, %v12324_v16 }
 0x4af   :  { %7667 = vmatmul.msk.bf16.vlgmr.msra.gmra.mxu2 %vm3989_vm9, %v11778_v0  ;;  %v4784_v37 = vmax.f32 %v4356_v40, 0.0 }
 0x4b0   :  { %v4179_v13 = vpop.f32.mrf.mxu0  ;;  %v4268_v23 = vpop.f32.mrf.mxu1 }
 0x4b1   :  { %v4180_v8 = vadd.f32 %v4179_v13, %v4091_v62 }
 0x4b2   :  { %v4360_v36 = vpop.f32.mrf.mxu2 }
 0x4b3   :  { %v4269_v24 = vadd.f32 %v4268_v23, %v4180_v8 }
 0x4b5   :  { %v4358_v20 = vadd.f32 %v4357_v19, %v4269_v24  ;;  %v4093_v43 = vpop.f32.mrf.mxu3 }
 0x4b6   :  { %4408 = vmatmul.bf16.vlgmr.msra.gmra.mxu3 %v11802_v53  ;;  %v4094_v14 = vadd.f32 %v4093_v43, %v12324_v16 }
 0x4b7   :  { %v4786_v9 = vmax.f32 %v4358_v20, 0.0 }
 0x4b8   :  { %v4182_v26 = vpop.f32.mrf.mxu0  ;;  %v4271_v46 = vpop.f32.mrf.mxu1 }
 0x4b9   :  { %v4183_v52 = vadd.f32 %v4182_v26, %v4094_v14  ;;  %v12751_v0 = vpack.c.bf16 %v4786_v9, %v4784_v37 }
 0x4ba   :  { %v4362_v21 = vpop.f32.mrf.mxu2 }
 0x4bb   :  { %v4272_v50 = vadd.f32 %v4271_v46, %v4183_v52 }
 0x4bd   :  { %v4361_v38 = vadd.f32 %v4360_v36, %v4272_v50  ;;  %v4095_v44 = vpop.f32.mrf.mxu3 }
 0x4be   :  { %4497 = vmatmul.bf16.vlgmr.msra.gmra.mxu0 %v11823_v51  ;;  %4586 = vmatmul.bf16.vlgmr.msra.gmra.mxu1 %v11825_v4  ;;  %v4096_v53 = vadd.f32 %v4095_v44, %v12324_v16 }
 0x4bf   :  { %7668 = vmatmul.msk.bf16.gmra.mxu2 %vm3989_vm9, %v11850_v63  ;;  %v4788_v27 = vmax.f32 %v4361_v38, 0.0 }
 0x4c0   :  { %v4184_v5 = vpop.f32.mrf.mxu0  ;;  %v4273_v56 = vpop.f32.mrf.mxu1 }
 0x4c1   :  { %v4185_v11 = vadd.f32 %v4184_v5, %v4096_v53 }
 0x4c2   :  { %v4365_v19 = vpop.f32.mrf.mxu2 }
 0x4c3   :  { %v4274_v45 = vadd.f32 %v4273_v56, %v4185_v11 }
 0x4c5   :  { %v4363_v40 = vadd.f32 %v4362_v21, %v4274_v45 }
 0x4c6   :  { %4413 = vmatmul.bf16.gmra.mxu3 %v11869_v32 }
 0x4c7   :  { %v4790_v62 = vmax.f32 %v4363_v40, 0.0 }
 0x4c9   :  { %v4098_v13 = vpop.f32.mrf.mxu3  ;;  %v12760_v23 = vpack.c.bf16 %v4790_v62, %v4788_v27 }
 0x4ca   :  { %v4099_v51 = vadd.f32 %v4098_v13, %v12324_v16  ;;  %v4367_v4 = vpop.f32.mrf.mxu2 }
 0x4cb   :  { %v4187_v8 = vpop.f32.mrf.mxu0  ;;  %v4276_v63 = vpop.f32.mrf.mxu1 }
 0x4cc   :  { %v4188_v36 = vadd.f32 %v4187_v8, %v4099_v51 }
 0x4ce   :  { %v4277_v24 = vadd.f32 %v4276_v63, %v4188_v36  ;;  %4502 = vmatmul.bf16.gmra.mxu0 %v11903_v17  ;;  %4591 = vmatmul.bf16.gmra.mxu1 %v11905_v25 }
 0x4cf   :  { %7669 = vmatmul.msk.bf16.gmra.mxu2 %vm3989_vm9, %v11925_v18 }
 0x4d0   :  { %v4366_v32 = vadd.f32 %v4365_v19, %v4277_v24 }
 0x4d1   :  { %v4100_v20 = vpop.f32.mrf.mxu3 }
 0x4d2   :  { %v4101_v43 = vadd.f32 %v4100_v20, %v12324_v16  ;;  %v4370_v37 = vpop.f32.mrf.mxu2  ;;  %v4792_v50 = vmax.f32 %v4366_v32, 0.0 }
 0x4d3   :  { %v4189_v9 = vpop.f32.mrf.mxu0  ;;  %v4278_v14 = vpop.f32.mrf.mxu1 }
 0x4d4   :  { %v4190_v26 = vadd.f32 %v4189_v9, %v4101_v43 }
 0x4d6   :  { %v4279_v46 = vadd.f32 %v4278_v14, %v4190_v26  ;;  %4418 = vmatmul.bf16.gmra.mxu3 %v11942_v29 }
 0x4d8   :  { %v4368_v52 = vadd.f32 %v4367_v4, %v4279_v46 }
 0x4d9   :  { %v4103_v21 = vpop.f32.mrf.mxu3 }
 0x4da   :  { %v4794_v17 = vmax.f32 %v4368_v52, 0.0  ;;  %v4104_v25 = vadd.f32 %v4103_v21, %v12324_v16  ;;  %v4372_v38 = vpop.f32.mrf.mxu2 }
 0x4db   :  { %v4192_v44 = vpop.f32.mrf.mxu0  ;;  %v4281_v18 = vpop.f32.mrf.mxu1 }
 0x4dc   :  { %v4193_v53 = vadd.f32 %v4192_v44, %v4104_v25  ;;  %v12769_v5 = vpack.c.bf16 %v4794_v17, %v4792_v50 }
 0x4de   :  { %v4282_v56 = vadd.f32 %v4281_v18, %v4193_v53  ;;  %4507 = vmatmul.bf16.gmra.mxu0 %v11976_v47  ;;  %4596 = vmatmul.bf16.gmra.mxu1 %v11978_v60 }
 0x4df   :  { %7670 = vmatmul.msk.bf16.gmra.mxu2 %vm3989_vm9, %v11987_v34 }
 0x4e0   :  { %v4371_v29 = vadd.f32 %v4370_v37, %v4282_v56  ;;  %v14282_v56 = vld [vmem:[#allocation9_spill] sm:$0xff] }
 0x4e1   :  { %v4105_v11 = vpop.f32.mrf.mxu3 }
 0x4e2   :  { %v4106_v19 = vadd.f32 %v4105_v11, %v12324_v16  ;;  %v4375_v45 = vpop.f32.mrf.mxu2  ;;  %v4796_v8 = vmax.f32 %v4371_v29, 0.0  ;;  %v14283_v29 = vld [vmem:[#allocation10_spill] sm:$0xff] }
 0x4e3   :  { %v4194_v40 = vpop.f32.mrf.mxu0  ;;  %v4283_v27 = vpop.f32.mrf.mxu1  ;;  %v14284_v11 = vld [vmem:[#allocation2_spill] sm:$0xff] }
 0x4e4   :  { %v4195_v62 = vadd.f32 %v4194_v40, %v4106_v19 }
 0x4e6   :  { %v4284_v13 = vadd.f32 %v4283_v27, %v4195_v62  ;;  %4423 = vmatmul.bf16.gmra.mxu3 %v12009_v10 }
 0x4e8   :  { %v4373_v51 = vadd.f32 %v4372_v38, %v4284_v13 }
 0x4e9   :  { %v4108_v4 = vpop.f32.mrf.mxu3 }
 0x4ea   :  { %v4798_v47 = vmax.f32 %v4373_v51, 0.0  ;;  %v4109_v60 = vadd.f32 %v4108_v4, %v12324_v16  ;;  %v4377_v63 = vpop.f32.mrf.mxu2 }
 0x4eb   :  { %v4197_v36 = vpop.f32.mrf.mxu0  ;;  %v4286_v34 = vpop.f32.mrf.mxu1 }
 0x4ec   :  { %v4198_v24 = vadd.f32 %v4197_v36, %v4109_v60  ;;  %v12778_v32 = vpack.c.bf16 %v4798_v47, %v4796_v8 }
 0x4ee   :  { %v4287_v20 = vadd.f32 %v4286_v34, %v4198_v24  ;;  %4512 = vmatmul.bf16.gmra.mxu0 %v12033_v33  ;;  %4601 = vmatmul.bf16.gmra.mxu1 %v12035_v22 }
 0x4ef   :  { %7671 = vmatmul.msk.bf16.gmra.mxu2 %vm3989_vm9, %v12057_v48 }
 0x4f0   :  { %v4376_v10 = vadd.f32 %v4375_v45, %v4287_v20 }
 0x4f1   :  { %v4110_v43 = vpop.f32.mrf.mxu3 }
 0x4f2   :  { %v4111_v37 = vadd.f32 %v4110_v43, %v12324_v16  ;;  %v4380_v9 = vpop.f32.mrf.mxu2  ;;  %v4800_v17 = vmax.f32 %v4376_v10, 0.0 }
 0x4f3   :  { %v4199_v14 = vpop.f32.mrf.mxu0  ;;  %v4288_v26 = vpop.f32.mrf.mxu1 }
 0x4f4   :  { %v4200_v46 = vadd.f32 %v4199_v14, %v4111_v37  ;;  %v14285_v37 = vld [vmem:[#allocation33_spill] sm:$0xff] }
 0x4f6   :  { %v4289_v52 = vadd.f32 %v4288_v26, %v4200_v46  ;;  %4428 = vmatmul.bf16.gmra.mxu3 %v12075_v6 }
 0x4f8   :  { %v4378_v21 = vadd.f32 %v4377_v63, %v4289_v52 }
 0x4f9   :  { %v4113_v50 = vpop.f32.mrf.mxu3 }
 0x4fa   :  { %v4802_v33 = vmax.f32 %v4378_v21, 0.0  ;;  %v4114_v22 = vadd.f32 %v4113_v50, %v12324_v16  ;;  %v4382_v25 = vpop.f32.mrf.mxu2 }
 0x4fb   :  { %v4202_v38 = vpop.f32.mrf.mxu0  ;;  %v4291_v48 = vpop.f32.mrf.mxu1 }
 0x4fc   :  { %v4203_v44 = vadd.f32 %v4202_v38, %v4114_v22  ;;  %v12787_v18 = vpack.c.bf16 %v4802_v33, %v4800_v17  ;;  %v14286_v17 = vld [vmem:[#allocation12_spill] sm:$0xff] }
 0x4fe   :  { %v4292_v53 = vadd.f32 %v4291_v48, %v4203_v44  ;;  %4517 = vmatmul.bf16.gmra.mxu0 %v14282_v56  ;;  %4606 = vmatmul.bf16.gmra.mxu1 %v14283_v29 }
 0x4ff   :  { %7672 = vmatmul.msk.bf16.gmra.mxu2 %vm3989_vm9, %v14284_v11 }
 0x500   :  { %v4381_v6 = vadd.f32 %v4380_v9, %v4292_v53 }
 0x501   :  { %v4115_v19 = vpop.f32.mrf.mxu3 }
 0x502   :  { %v4116_v45 = vadd.f32 %v4115_v19, %v12324_v16  ;;  %v4385_v40 = vpop.f32.mrf.mxu2  ;;  %v4804_v47 = vmax.f32 %v4381_v6, 0.0 }
 0x503   :  { %v4204_v27 = vpop.f32.mrf.mxu0  ;;  %v4293_v62 = vpop.f32.mrf.mxu1 }
 0x504   :  { %v4205_v13 = vadd.f32 %v4204_v27, %v4116_v45 }
 0x506   :  { %v4294_v51 = vadd.f32 %v4293_v62, %v4205_v13  ;;  %4433 = vmatmul.bf16.gmra.mxu3 %v12144_v7 }
 0x508   :  { %v4383_v4 = vadd.f32 %v4382_v25, %v4294_v51 }
 0x509   :  { %v4118_v8 = vpop.f32.mrf.mxu3 }
 0x50a   :  { %v4806_v60 = vmax.f32 %v4383_v4, 0.0  ;;  %v4119_v63 = vadd.f32 %v4118_v8, %v12324_v16  ;;  %v4387_v36 = vpop.f32.mrf.mxu2 }
 0x50b   :  { %v4207_v34 = vpop.f32.mrf.mxu0  ;;  %v4296_v24 = vpop.f32.mrf.mxu1 }
 0x50c   :  { %v4208_v20 = vadd.f32 %v4207_v34, %v4119_v63  ;;  %v12796_v10 = vpack.c.bf16 %v4806_v60, %v4804_v47 }
 0x50e   :  { %v4297_v43 = vadd.f32 %v4296_v24, %v4208_v20  ;;  %4522 = vmatmul.bf16.gmra.mxu0 %v12177_v49  ;;  %4611 = vmatmul.bf16.gmra.mxu1 %v12179_v55  ;;  %v14287_v24 = vld [vmem:[#allocation13_spill] sm:$0xff]  ;;  %v14288_v20 = vld [vmem:[#allocation3_spill] sm:$0xff] }
 0x50f   :  { %7673 = vmatmul.msk.bf16.gmra.mxu2 %vm3989_vm9, %v14285_v37 }
 0x510   :  { %v4386_v7 = vadd.f32 %v4385_v40, %v4297_v43  ;;  %v14289_v43 = vld [vmem:[#allocation15_spill] sm:$0xff] }
 0x511   :  { %v4120_v9 = vpop.f32.mrf.mxu3 }
 0x512   :  { %v4121_v14 = vadd.f32 %v4120_v9, %v12324_v16  ;;  %v4390_v26 = vpop.f32.mrf.mxu2  ;;  %v4808_v25 = vmax.f32 %v4386_v7, 0.0 }
 0x513   :  { %v4209_v46 = vpop.f32.mrf.mxu0  ;;  %v4298_v52 = vpop.f32.mrf.mxu1 }
 0x514   :  { %v4210_v21 = vadd.f32 %v4209_v46, %v4121_v14 }
 0x516   :  { %v4299_v50 = vadd.f32 %v4298_v52, %v4210_v21  ;;  %4438 = vmatmul.bf16.gmra.mxu3 %v14286_v17  ;;  %v14290_v21 = vld [vmem:[#allocation16_spill] sm:$0xff] }
 0x518   :  { %v4388_v33 = vadd.f32 %v4387_v36, %v4299_v50  ;;  %v9352_v50 = vld [vmem:[%s14028_s5] sm:$0x3] }
 0x519   :  { %v4123_v22 = vpop.f32.mrf.mxu3  ;;  %v12825_v17 = vperm.slane %v9352_v50, 1 }
 0x51a   :  { %v4810_v49 = vmax.f32 %v4388_v33, 0.0  ;;  %v4124_v55 = vadd.f32 %v4123_v22, %v12324_v16  ;;  %v4392_v38 = vpop.f32.mrf.mxu2 }
 0x51b   :  { %v4212_v48 = vpop.f32.mrf.mxu0  ;;  %v4301_v44 = vpop.f32.mrf.mxu1 }
 0x51c   :  { %v4213_v53 = vadd.f32 %v4212_v48, %v4124_v55  ;;  %v12805_v56 = vpack.c.bf16 %v4810_v49, %v4808_v25 }
 0x51e   :  { %v4302_v29 = vadd.f32 %v4301_v44, %v4213_v53  ;;  %4527 = vmatmul.bf16.gmra.mxu0 %v12241_v58  ;;  %4616 = vmatmul.bf16.gmra.mxu1 %v12243_v59 }
 0x51f   :  { %7674 = vmatmul.msk.bf16.gmra.mxu2 %vm3989_vm9, %v12260_v30 }
 0x520   :  { %v4391_v11 = vadd.f32 %v4390_v26, %v4302_v29 }
 0x521   :  { %v4125_v6 = vpop.f32.mrf.mxu3 }
 0x522   :  { %v4126_v19 = vadd.f32 %v4125_v6, %v12324_v16  ;;  %v4395_v45 = vpop.f32.mrf.mxu2  ;;  %v4812_v8 = vmax.f32 %v4391_v11, 0.0  ;;  %v14291_v11 = vld [vmem:[#allocation4_spill] sm:$0xff]  ;;  %v14292_v6 = vld [vmem:[#allocation18_spill] sm:$0xff] }
 0x523   :  { %v4214_v40 = vpop.f32.mrf.mxu0  ;;  %v4303_v27 = vpop.f32.mrf.mxu1 }
 0x524   :  { %v4215_v62 = vadd.f32 %v4214_v40, %v4126_v19  ;;  %v14293_v19 = vld [vmem:[#allocation19_spill] sm:$0xff] }
 0x526   :  { %v4304_v13 = vadd.f32 %v4303_v27, %v4215_v62  ;;  %4443 = vmatmul.bf16.gmra.mxu3 %v12275_v61 }
 0x528   :  { %v4393_v51 = vadd.f32 %v4392_v38, %v4304_v13 }
 0x529   :  { %v4128_v4 = vpop.f32.mrf.mxu3 }
 0x52a   :  { %v4814_v58 = vmax.f32 %v4393_v51, 0.0  ;;  %v4129_v59 = vadd.f32 %v4128_v4, %v12324_v16  ;;  %v4397_v47 = vpop.f32.mrf.mxu2 }
 0x52b   :  { %v4217_v60 = vpop.f32.mrf.mxu0  ;;  %v4306_v30 = vpop.f32.mrf.mxu1 }
 0x52c   :  { %v4218_v63 = vadd.f32 %v4217_v60, %v4129_v59  ;;  %v12814_v36 = vpack.c.bf16 %v4814_v58, %v4812_v8  ;;  %v14294_v58 = vld [vmem:[#allocation5_spill] sm:$0xff] }
 0x52e   :  { %v4307_v34 = vadd.f32 %v4306_v30, %v4218_v63  ;;  %4532 = vmatmul.bf16.gmra.mxu0 %v14287_v24  ;;  %4621 = vmatmul.bf16.gmra.mxu1 %v14288_v20 }
 0x52f   :  { %7675 = vmatmul.msk.bf16.gmra.mxu2 %vm3989_vm9, %v14289_v43 }
 0x530   :  { %v4396_v61 = vadd.f32 %v4395_v45, %v4307_v34 }
 0x531   :  { %v4130_v37 = vpop.f32.mrf.mxu3 }
 0x532   :  { %v4131_v7 = vadd.f32 %v4130_v37, %v12324_v16  ;;  %v4676_v9 = vpop.f32.mrf.mxu2  ;;  %v4816_v25 = vmax.f32 %v4396_v61, 0.0 }
 0x533   :  { %v4219_v14 = vpop.f32.mrf.mxu0  ;;  %v4308_v26 = vpop.f32.mrf.mxu1 }
 0x534   :  { %v4220_v46 = vadd.f32 %v4219_v14, %v4131_v7  ;;  %v14295_v7 = vld [vmem:[#allocation23_spill] sm:$0xff] }
 0x536   :  { %v4309_v52 = vadd.f32 %v4308_v26, %v4220_v46  ;;  %4448 = vmatmul.bf16.gmra.mxu3 %v14290_v21 }
 0x538   :  { %v4398_v33 = vadd.f32 %v4397_v47, %v4309_v52 }
 0x539   :  { %v4409_v22 = vpop.f32.mrf.mxu3 }
 0x53a   :  { %v4818_v49 = vmax.f32 %v4398_v33, 0.0  ;;  %v4410_v55 = vadd.f32 %v4409_v22, %v12825_v17  ;;  %v4678_v16 = vpop.f32.mrf.mxu2  ;;  %v14296_v22 = vld [vmem:[#allocation6_spill] sm:$0xff] }
 0x53b   :  { %v4498_v38 = vpop.f32.mrf.mxu0  ;;  %v4587_v48 = vpop.f32.mrf.mxu1 }
 0x53c   :  { %v4499_v44 = vadd.f32 %v4498_v38, %v4410_v55  ;;  %v12828_v53 = vpack.c.bf16 %v4818_v49, %v4816_v25 }
 0x53e   :  { %v4588_v29 = vadd.f32 %v4587_v48, %v4499_v44  ;;  %4537 = vmatmul.bf16.gmra.mxu0 %v14291_v11  ;;  %4626 = vmatmul.bf16.gmra.mxu1 %v14292_v6  ;;  %v14297_v6 = vld [vmem:[#allocation26_spill] sm:$0xff] }
 0x53f   :  { %7676 = vmatmul.msk.bf16.gmra.mxu2 %vm3989_vm9, %v14293_v19  ;;  %v14298_v19 = vld [vmem:[#allocation7_spill] sm:$0xff] }
 0x540   :  { %v4677_v45 = vadd.f32 %v4676_v9, %v4588_v29 }
 0x541   :  { %v4411_v40 = vpop.f32.mrf.mxu3 }
 0x542   :  { %v4412_v27 = vadd.f32 %v4411_v40, %v12825_v17  ;;  %v4681_v62 = vpop.f32.mrf.mxu2  ;;  %v4757_v60 = vmax.f32 %v4677_v45, 0.0 }
 0x543   :  { %v4500_v13 = vpop.f32.mrf.mxu0  ;;  %v4589_v51 = vpop.f32.mrf.mxu1 }
 0x544   :  { %v4501_v4 = vadd.f32 %v4500_v13, %v4412_v27 }
 0x546   :  { %v4590_v8 = vadd.f32 %v4589_v51, %v4501_v4  ;;  %4453 = vmatmul.bf16.gmra.mxu3 %v14294_v58 }
 0x548   :  { %v4679_v59 = vadd.f32 %v4678_v16, %v4590_v8 }
 0x549   :  { %v4414_v47 = vpop.f32.mrf.mxu3 }
 0x54a   :  { %v4759_v30 = vmax.f32 %v4679_v59, 0.0  ;;  %v4415_v63 = vadd.f32 %v4414_v47, %v12825_v17  ;;  %v4683_v34 = vpop.f32.mrf.mxu2 }
 0x54b   :  { %v4503_v24 = vpop.f32.mrf.mxu0  ;;  %v4592_v20 = vpop.f32.mrf.mxu1 }
 0x54c   :  { %v12837_v43 = vpack.c.bf16 %v4759_v30, %v4757_v60  ;;  %v4504_v61 = vadd.f32 %v4503_v24, %v4415_v63 }
 0x54e   :  { %v4593_v37 = vadd.f32 %v4592_v20, %v4504_v61  ;;  %4542 = vmatmul.bf16.gmra.mxu0 %v12365_v15  ;;  %4631 = vmatmul.bf16.gmra.mxu1 %v12367_v1 }
 0x54f   :  { %7677 = vmatmul.msk.bf16.gmra.mxu2 %vm3989_vm9, %v14295_v7  ;;  %v14300_v7 = vld [vmem:[#allocation34_spill] sm:$0xff] }
 0x550   :  { %v4682_v9 = vadd.f32 %v4681_v62, %v4593_v37  ;;  %v14299_v37 = vld [vmem:[#allocation8_spill] sm:$0xff] }
 0x551   :  { %v4416_v14 = vpop.f32.mrf.mxu3 }
 0x552   :  { %v4417_v26 = vadd.f32 %v4416_v14, %v12825_v17  ;;  %v4686_v46 = vpop.f32.mrf.mxu2  ;;  %v4761_v55 = vmax.f32 %v4682_v9, 0.0  ;;  %v14301_v9 = vld [vmem:[#allocation31_spill] sm:$0xff] }
 0x553   :  { %v4505_v52 = vpop.f32.mrf.mxu0  ;;  %v4594_v21 = vpop.f32.mrf.mxu1 }
 0x554   :  { %v4506_v50 = vadd.f32 %v4505_v52, %v4417_v26 }
 0x556   :  { %v4595_v33 = vadd.f32 %v4594_v21, %v4506_v50  ;;  %4458 = vmatmul.bf16.gmra.mxu3 %v14296_v22  ;;  %v14302_v22 = vld [vmem:[#allocation11_spill] sm:$0xff] }
 0x558   :  { %v4684_v25 = vadd.f32 %v4683_v34, %v4595_v33 }
 0x559   :  { %v4419_v49 = vpop.f32.mrf.mxu3 }
 0x55a   :  { %v4763_v15 = vmax.f32 %v4684_v25, 0.0  ;;  %v4420_v1 = vadd.f32 %v4419_v49, %v12825_v17  ;;  %v4688_v16 = vpop.f32.mrf.mxu2 }
 0x55b   :  { %v4508_v38 = vpop.f32.mrf.mxu0  ;;  %v4597_v48 = vpop.f32.mrf.mxu1 }
 0x55c   :  { %v12846_v44 = vpack.c.bf16 %v4763_v15, %v4761_v55  ;;  %v4509_v29 = vadd.f32 %v4508_v38, %v4420_v1  ;;  %v8621_v38 = vld [vmem:[%s14029_s6 + $0x38] sm:$0xff] }
 0x55d   :  { %4980 = vmatpush.bf16.msrb.mxu3 %v8621_v38 }
 0x55e   :  { %v4598_v11 = vadd.f32 %v4597_v48, %v4509_v29  ;;  %4547 = vmatmul.bf16.gmra.mxu0 %v12390_v54  ;;  %4636 = vmatmul.bf16.gmra.mxu1 %v14297_v6 }
 0x55f   :  { %7678 = vmatmul.msk.bf16.gmra.mxu2 %vm3989_vm9, %v14298_v19  ;;  %v8633_v19 = vld [vmem:[%s14029_s6 + $0x98] sm:$0xff] }
 0x560   :  { %v4687_v45 = vadd.f32 %v4686_v46, %v4598_v11  ;;  %5334 = vmatpush.bf16.msrb.mxu2 %v8633_v19 }
 0x561   :  { %v4421_v40 = vpop.f32.mrf.mxu3 }
 0x562   :  { %v4422_v27 = vadd.f32 %v4421_v40, %v12825_v17  ;;  %v4691_v62 = vpop.f32.mrf.mxu2  ;;  %v4765_v47 = vmax.f32 %v4687_v45, 0.0  ;;  %v14303_v40 = vld [vmem:[#allocation14_spill] sm:$0xff] }
 0x563   :  { %v4510_v13 = vpop.f32.mrf.mxu0  ;;  %v4599_v51 = vpop.f32.mrf.mxu1 }
 0x564   :  { %v4511_v4 = vadd.f32 %v4510_v13, %v4422_v27  ;;  %v8620_v27 = vld [vmem:[%s14029_s6 + $0x30] sm:$0xff] }
 0x565   :  { %4981 = vmatpush.bf16.msrb.mxu3 %v8620_v27 }
 0x566   :  { %v4600_v8 = vadd.f32 %v4599_v51, %v4511_v4  ;;  %4463 = vmatmul.bf16.gmra.mxu3 %v12407_v31 }
 0x568   :  { %v4689_v58 = vadd.f32 %v4688_v16, %v4600_v8 }
 0x569   :  { %v4424_v59 = vpop.f32.mrf.mxu3 }
 0x56a   :  { %v4767_v54 = vmax.f32 %v4689_v58, 0.0  ;;  %v4425_v60 = vadd.f32 %v4424_v59, %v12825_v17  ;;  %v4693_v30 = vpop.f32.mrf.mxu2  ;;  %v8623_v58 = vld [vmem:[%s14029_s6 + $0x48] sm:$0xff] }
 0x56b   :  { %v4513_v63 = vpop.f32.mrf.mxu0  ;;  %v4602_v34 = vpop.f32.mrf.mxu1  ;;  %v8631_v59 = vld [vmem:[%s14029_s6 + $0x88] sm:$0xff]  ;;  %5075 = vmatpush.bf16.msrb.mxu0 %v8623_v58 }
 0x56c   :  { %v12855_v24 = vpack.c.bf16 %v4767_v54, %v4765_v47  ;;  %v4514_v20 = vadd.f32 %v4513_v63, %v4425_v60  ;;  %5239 = vmatpush.bf16.msrb.mxu1 %v8631_v59  ;;  %v14305_v63 = vld [vmem:[#allocation17_spill] sm:$0xff] }
 0x56e   :  { %v4603_v61 = vadd.f32 %v4602_v34, %v4514_v20  ;;  %4552 = vmatmul.bf16.gmra.mxu0 %v14299_v37  ;;  %4641 = vmatmul.bf16.gmra.mxu1 %v14300_v7  ;;  %v8618_v34 = vld [vmem:[%s14029_s6 + $0x20] sm:$0xff] }
 0x56f   :  { %7679 = vmatmul.msk.bf16.gmra.mxu2 %vm3989_vm9, %v14301_v9  ;;  %v8630_v20 = vld [vmem:[%s14029_s6 + $0x80] sm:$0xff] }
 0x570   :  { %v4692_v31 = vadd.f32 %v4691_v62, %v4603_v61  ;;  %v14304_v62 = vld [vmem:[#allocation36_spill] sm:$0xff]  ;;  %5240 = vmatpush.bf16.msrb.mxu1 %v8630_v20 }
 0x571   :  { %v4426_v14 = vpop.f32.mrf.mxu3  ;;  %v8624_v20 = vld [vmem:[%s14029_s6 + $0x50] sm:$0xff] }
 0x572   :  { %v4427_v26 = vadd.f32 %v4426_v14, %v12825_v17  ;;  %v4696_v46 = vpop.f32.mrf.mxu2  ;;  %v4769_v55 = vmax.f32 %v4692_v31, 0.0 }
 0x573   :  { %v4515_v52 = vpop.f32.mrf.mxu0  ;;  %v4604_v21 = vpop.f32.mrf.mxu1 }
 0x574   :  { %v4516_v50 = vadd.f32 %v4515_v52, %v4427_v26  ;;  %v8617_v26 = vld [vmem:[%s14029_s6 + $0x18] sm:$0xff] }
 0x576   :  { %v4605_v33 = vadd.f32 %v4604_v21, %v4516_v50  ;;  %4468 = vmatmul.bf16.gmra.mxu3 %v14302_v22 }
 0x578   :  { %v4694_v25 = vadd.f32 %v4693_v30, %v4605_v33 }
 0x579   :  { %v4429_v49 = vpop.f32.mrf.mxu3 }
 0x57a   :  { %v4771_v15 = vmax.f32 %v4694_v25, 0.0  ;;  %v4430_v1 = vadd.f32 %v4429_v49, %v12825_v17  ;;  %v4698_v16 = vpop.f32.mrf.mxu2  ;;  %v14306_v25 = vld [vmem:[#allocation37_spill] sm:$0xff]  ;;  %v8616_v49 = vld [vmem:[%s14029_s6 + $0x10] sm:$0xff] }
 0x57b   :  { %v4518_v48 = vpop.f32.mrf.mxu0  ;;  %v4607_v29 = vpop.f32.mrf.mxu1 }
 0x57c   :  { %v12867_v11 = vpack.c.bf16 %v4771_v15, %v4769_v55  ;;  %v4519_v6 = vadd.f32 %v4518_v48, %v4430_v1  ;;  %v8628_v55 = vld [vmem:[%s14029_s6 + $0x70] sm:$0xff]  ;;  %v14307_v15 = vld [vmem:[#allocation38_spill] sm:$0xff]  ;;  %v8615_v48 = vld [vmem:[%s14029_s6 + $0x8] sm:$0xff] }
 0x57e   :  { %v4608_v45 = vadd.f32 %v4607_v29, %v4519_v6  ;;  %4557 = vmatmul.bf16.gmra.mxu0 %v12465_v41  ;;  %4646 = vmatmul.bf16.gmra.mxu1 %v14303_v40  ;;  %v8619_v41 = vld [vmem:[%s14029_s6 + $0x28] sm:$0xff]  ;;  %v8632_v6 = vld [vmem:[%s14029_s6 + $0x90] sm:$0xff] }
 0x57f   :  { %7680 = vmatmul.msk.bf16.gmra.mxu2 %vm3989_vm9, %v14304_v62  ;;  %4982 = vmatpush.bf16.msrb.mxu3 %v8619_v41  ;;  %v8627_v29 = vld [vmem:[%s14029_s6 + $0x68] sm:$0xff]  ;;  %v8614_v62 = vld [vmem:[%s14029_s6] sm:$0xff] }
 0x580   :  { %v4697_v13 = vadd.f32 %v4696_v46, %v4608_v45  ;;  %v8629_v46 = vld [vmem:[%s14029_s6 + $0x78] sm:$0xff]  ;;  %5335 = vmatpush.bf16.msrb.mxu2 %v8632_v6 }
 0x581   :  { %v4431_v51 = vpop.f32.mrf.mxu3  ;;  %5241 = vmatpush.bf16.msrb.mxu1 %v8629_v46 }
 0x582   :  { %v4432_v4 = vadd.f32 %v4431_v51, %v12825_v17  ;;  %v4701_v8 = vpop.f32.mrf.mxu2  ;;  %v4773_v7 = vmax.f32 %v4697_v13, 0.0  ;;  %v8626_v13 = vld [vmem:[%s14029_s6 + $0x60] sm:$0xff] }
 0x583   :  { %v4520_v47 = vpop.f32.mrf.mxu0  ;;  %v4609_v54 = vpop.f32.mrf.mxu1  ;;  %4983 = vmatpush.bf16.msrb.mxu3 %v8618_v34  ;;  %v8622_v34 = vld [vmem:[%s14029_s6 + $0x40] sm:$0xff] }
 0x584   :  { %v4521_v60 = vadd.f32 %v4520_v47, %v4432_v4  ;;  %5076 = vmatpush.bf16.msrb.mxu0 %v8622_v34 }
 0x585   :  { %5242 = vmatpush.bf16.msrb.mxu1 %v8628_v55 }
 0x586   :  { %v4610_v30 = vadd.f32 %v4609_v54, %v4521_v60  ;;  %4473 = vmatmul.bf16.gmra.mxu3 %v14305_v63 }
 0x587   :  { %4984 = vmatpush.bf16.msrb.mxu3 %v8617_v26 }
 0x588   :  { %v4699_v61 = vadd.f32 %v4698_v16, %v4610_v30 }
 0x589   :  { %v4434_v37 = vpop.f32.mrf.mxu3  ;;  %5243 = vmatpush.bf16.msrb.mxu1 %v8627_v29 }
 0x58a   :  { %v4775_v9 = vmax.f32 %v4699_v61, 0.0  ;;  %v4435_v31 = vadd.f32 %v4434_v37, %v12825_v17  ;;  %v4703_v14 = vpop.f32.mrf.mxu2  ;;  %v14308_v61 = vld [vmem:[#allocation24_spill] sm:$0xff] }
 0x58b   :  { %v4523_v52 = vpop.f32.mrf.mxu0  ;;  %v4612_v21 = vpop.f32.mrf.mxu1  ;;  %4985 = vmatpush.bf16.msrb.mxu3 %v8616_v49 }
 0x58c   :  { %v12903_v50 = vpack.c.bf16 %v4775_v9, %v4773_v7  ;;  %v4524_v33 = vadd.f32 %v4523_v52, %v4435_v31 }
 0x58d   :  { %5244 = vmatpush.bf16.msrb.mxu1 %v8626_v13 }
 0x58e   :  { %v4613_v22 = vadd.f32 %v4612_v21, %v4524_v33  ;;  %4562 = vmatmul.bf16.gmra.mxu0 %v12560_v57  ;;  %4651 = vmatmul.bf16.gmra.mxu1 %v14306_v25 }
 0x58f   :  { %7681 = vmatmul.msk.bf16.gmra.mxu2 %vm3989_vm9, %v14307_v15  ;;  %4986 = vmatpush.bf16.msrb.mxu3 %v8615_v48 }
 0x590   :  { %v4702_v1 = vadd.f32 %v4701_v8, %v4613_v22 }
 0x591   :  { %v4436_v16 = vpop.f32.mrf.mxu3 }
 0x592   :  { %v4437_v38 = vadd.f32 %v4436_v16, %v12825_v17  ;;  %v4706_v57 = vpop.f32.mrf.mxu2  ;;  %v4777_v8 = vmax.f32 %v4702_v1, 0.0 }
 0x593   :  { %v4525_v19 = vpop.f32.mrf.mxu0  ;;  %v4614_v45 = vpop.f32.mrf.mxu1  ;;  %4987 = vmatpush.bf16.msrb.mxu3 %v8614_v62 }
 0x594   :  { %v4526_v40 = vadd.f32 %v4525_v19, %v4437_v38 }
 0x596   :  { %v4615_v27 = vadd.f32 %v4614_v45, %v4526_v40  ;;  %4478 = vmatmul.bf16.gmra.mxu3 %v12641_v42  ;;  %v8625_v42 = vld [vmem:[%s14029_s6 + $0x58] sm:$0xff]  ;;  %v14309_v40 = vld [vmem:[#allocation22_spill] sm:$0xff] }
 0x597   :  { %5245 = vmatpush.bf16.msrb.mxu1 %v8625_v42 }
 0x598   :  { %v4704_v51 = vadd.f32 %v4703_v14, %v4615_v27 }
 0x599   :  { %v4439_v4 = vpop.f32.mrf.mxu3 }
 0x59a   :  { %v4779_v41 = vmax.f32 %v4704_v51, 0.0  ;;  %v4440_v58 = vadd.f32 %v4439_v4, %v12825_v17  ;;  %v4708_v59 = vpop.f32.mrf.mxu2 }
 0x59b   :  { %v4528_v47 = vpop.f32.mrf.mxu0  ;;  %v4617_v54 = vpop.f32.mrf.mxu1  ;;  %5246 = vmatpush.bf16.msrb.mxu1 %v8624_v20 }
 0x59c   :  { %v12936_v60 = vpack.c.bf16 %v4779_v41, %v4777_v8  ;;  %v4529_v30 = vadd.f32 %v4528_v47, %v4440_v58 }
 0x59e   :  { %v4618_v63 = vadd.f32 %v4617_v54, %v4529_v30  ;;  %4567 = vmatmul.bf16.gmra.mxu0 %v12694_v35  ;;  %4656 = vmatmul.bf16.gmra.mxu1 %v12696_v2 }
 0x59f   :  { %7682 = vmatmul.msk.bf16.gmra.mxu2 %vm3989_vm9, %v14308_v61 }
 0x5a0   :  { %v4707_v37 = vadd.f32 %v4706_v57, %v4618_v63 }
 0x5a1   :  { %v4441_v7 = vpop.f32.mrf.mxu3 }
 0x5a2   :  { %v4442_v9 = vadd.f32 %v4441_v7, %v12825_v17  ;;  %v4711_v35 = vpop.f32.mrf.mxu2  ;;  %v4781_v21 = vmax.f32 %v4707_v37, 0.0  ;;  %v14310_v37 = vld [vmem:[#allocation27_spill] sm:$0xff] }
 0x5a3   :  { %v4530_v31 = vpop.f32.mrf.mxu0  ;;  %v4619_v2 = vpop.f32.mrf.mxu1 }
 0x5a4   :  { %v4531_v14 = vadd.f32 %v4530_v31, %v4442_v9 }
 0x5a6   :  { %v4620_v26 = vadd.f32 %v4619_v2, %v4531_v14  ;;  %4483 = vmatmul.bf16.gmra.mxu3 %v12726_v28 }
 0x5a8   :  { %v4709_v46 = vadd.f32 %v4708_v59, %v4620_v26 }
 0x5a9   :  { %v4444_v52 = vpop.f32.mrf.mxu3 }
 0x5aa   :  { %v4783_v33 = vmax.f32 %v4709_v46, 0.0  ;;  %v4445_v22 = vadd.f32 %v4444_v52, %v12825_v17  ;;  %v4713_v25 = vpop.f32.mrf.mxu2 }
 0x5ab   :  { %v4533_v49 = vpop.f32.mrf.mxu0  ;;  %v4622_v55 = vpop.f32.mrf.mxu1 }
 0x5ac   :  { %v12951_v15 = vpack.c.bf16 %v4783_v33, %v4781_v21  ;;  %v4534_v1 = vadd.f32 %v4533_v49, %v4445_v22 }
 0x5ae   :  { %v4623_v16 = vadd.f32 %v4622_v55, %v4534_v1  ;;  %4572 = vmatmul.bf16.gmra.mxu0 %v12740_v3  ;;  %4661 = vmatmul.bf16.gmra.mxu1 %v12742_v39 }
 0x5af   :  { %7799 = vmatmul.msk.bf16.vlgmr.msrb.gmra.mxu2 %vm769_vm6, %v12837_v43 }
 0x5b0   :  { %v4712_v28 = vadd.f32 %v4711_v35, %v4623_v16 }
 0x5b1   :  { %v4446_v38 = vpop.f32.mrf.mxu3 }
 0x5b2   :  { %v4447_v57 = vadd.f32 %v4446_v38, %v12825_v17  ;;  %v4716_v48 = vpop.f32.mrf.mxu2  ;;  %v4785_v13 = vmax.f32 %v4712_v28, 0.0  ;;  %v14311_v38 = vld [vmem:[#allocation29_spill] sm:$0xff] }
 0x5b3   :  { %v4535_v29 = vpop.f32.mrf.mxu0  ;;  %v4624_v6 = vpop.f32.mrf.mxu1 }
 0x5b4   :  { %v4536_v19 = vadd.f32 %v4535_v29, %v4447_v57 }
 0x5b6   :  { %v4625_v45 = vadd.f32 %v4624_v6, %v4536_v19  ;;  %4988 = vmatmul.bf16.vlgmr.msrb.gmra.mxu3 %v14309_v40 }
 0x5b8   :  { %v4714_v27 = vadd.f32 %v4713_v25, %v4625_v45 }
 0x5b9   :  { %v4449_v62 = vpop.f32.mrf.mxu3 }
 0x5ba   :  { %v4787_v3 = vmax.f32 %v4714_v27, 0.0  ;;  %v4450_v39 = vadd.f32 %v4449_v62, %v12825_v17  ;;  %v4718_v51 = vpop.f32.mrf.mxu2 }
 0x5bb   :  { %v4538_v4 = vpop.f32.mrf.mxu0  ;;  %v4627_v8 = vpop.f32.mrf.mxu1 }
 0x5bc   :  { %v12960_v41 = vpack.c.bf16 %v4787_v3, %v4785_v13  ;;  %v4539_v58 = vadd.f32 %v4538_v4, %v4450_v39 }
 0x5be   :  { %v4628_v59 = vadd.f32 %v4627_v8, %v4539_v58  ;;  %7723 = vmatmul.msk.bf16.vlgmr.msrb.gmra.mxu0 %vm769_vm6, %v12837_v43  ;;  %5247 = vmatmul.bf16.vlgmr.msrb.gmra.mxu1 %v14309_v40 }
 0x5bf   :  { %7800 = vmatmul.msk.bf16.gmra.mxu2 %vm769_vm6, %v12846_v44 }
 0x5c0   :  { %v4717_v42 = vadd.f32 %v4716_v48, %v4628_v59 }
 0x5c1   :  { %v4451_v47 = vpop.f32.mrf.mxu3 }
 0x5c2   :  { %v4452_v54 = vadd.f32 %v4451_v47, %v12825_v17  ;;  %v4721_v30 = vpop.f32.mrf.mxu2  ;;  %v4789_v35 = vmax.f32 %v4717_v42, 0.0  ;;  %v14312_v47 = vld [vmem:[#allocation35_spill] sm:$0xff] }
 0x5c3   :  { %v4540_v63 = vpop.f32.mrf.mxu0  ;;  %v4629_v34 = vpop.f32.mrf.mxu1 }
 0x5c4   :  { %v4541_v20 = vadd.f32 %v4540_v63, %v4452_v54 }
 0x5c6   :  { %v4630_v61 = vadd.f32 %v4629_v34, %v4541_v20  ;;  %4993 = vmatmul.bf16.gmra.mxu3 %v14310_v37 }
 0x5c8   :  { %v4719_v7 = vadd.f32 %v4718_v51, %v4630_v61 }
 0x5c9   :  { %v4454_v9 = vpop.f32.mrf.mxu3 }
 0x5ca   :  { %v4791_v43 = vmax.f32 %v4719_v7, 0.0  ;;  %v4455_v31 = vadd.f32 %v4454_v9, %v12825_v17  ;;  %v4723_v2 = vpop.f32.mrf.mxu2 }
 0x5cb   :  { %v4543_v14 = vpop.f32.mrf.mxu0  ;;  %v4632_v26 = vpop.f32.mrf.mxu1 }
 0x5cc   :  { %v12970_v46 = vpack.c.bf16 %v4791_v43, %v4789_v35  ;;  %v4544_v52 = vadd.f32 %v4543_v14, %v4455_v31 }
 0x5ce   :  { %v4633_v21 = vadd.f32 %v4632_v26, %v4544_v52  ;;  %7724 = vmatmul.msk.bf16.gmra.mxu0 %vm769_vm6, %v12846_v44  ;;  %5252 = vmatmul.bf16.gmra.mxu1 %v14310_v37 }
 0x5cf   :  { %7801 = vmatmul.msk.bf16.gmra.mxu2 %vm769_vm6, %v12855_v24 }
 0x5d0   :  { %v4722_v33 = vadd.f32 %v4721_v30, %v4633_v21 }
 0x5d1   :  { %v4456_v22 = vpop.f32.mrf.mxu3 }
 0x5d2   :  { %v4457_v25 = vadd.f32 %v4456_v22, %v12825_v17  ;;  %v4726_v49 = vpop.f32.mrf.mxu2  ;;  %v4793_v29 = vmax.f32 %v4722_v33, 0.0  ;;  %v14313_v22 = vld [vmem:[#allocation21_spill] sm:$0xff] }
 0x5d3   :  { %v4545_v55 = vpop.f32.mrf.mxu0  ;;  %v4634_v1 = vpop.f32.mrf.mxu1 }
 0x5d4   :  { %v4546_v16 = vadd.f32 %v4545_v55, %v4457_v25 }
 0x5d6   :  { %v4635_v28 = vadd.f32 %v4634_v1, %v4546_v16  ;;  %4998 = vmatmul.bf16.gmra.mxu3 %v14311_v38 }
 0x5d8   :  { %v4724_v57 = vadd.f32 %v4723_v2, %v4635_v28 }
 0x5d9   :  { %v4459_v48 = vpop.f32.mrf.mxu3 }
 0x5da   :  { %v4795_v44 = vmax.f32 %v4724_v57, 0.0  ;;  %v4460_v6 = vadd.f32 %v4459_v48, %v12825_v17  ;;  %v4728_v19 = vpop.f32.mrf.mxu2 }
 0x5db   :  { %v4548_v45 = vpop.f32.mrf.mxu0  ;;  %v4637_v40 = vpop.f32.mrf.mxu1 }
 0x5dc   :  { %v12980_v27 = vpack.c.bf16 %v4795_v44, %v4793_v29  ;;  %v4549_v62 = vadd.f32 %v4548_v45, %v4460_v6 }
 0x5de   :  { %v4638_v13 = vadd.f32 %v4637_v40, %v4549_v62  ;;  %7725 = vmatmul.msk.bf16.gmra.mxu0 %vm769_vm6, %v12855_v24  ;;  %5257 = vmatmul.bf16.gmra.mxu1 %v14311_v38 }
 0x5df   :  { %7802 = vmatmul.msk.bf16.gmra.mxu2 %vm769_vm6, %v12867_v11 }
 0x5e0   :  { %v4727_v3 = vadd.f32 %v4726_v49, %v4638_v13 }
 0x5e1   :  { %v4461_v39 = vpop.f32.mrf.mxu3 }
 0x5e2   :  { %v4462_v51 = vadd.f32 %v4461_v39, %v12825_v17  ;;  %v4731_v4 = vpop.f32.mrf.mxu2  ;;  %v4797_v63 = vmax.f32 %v4727_v3, 0.0  ;;  %v14314_v39 = vld [vmem:[#allocation39_spill] sm:$0xff] }
 0x5e3   :  { %v4550_v8 = vpop.f32.mrf.mxu0  ;;  %v4639_v58 = vpop.f32.mrf.mxu1 }
 0x5e4   :  { %v4551_v59 = vadd.f32 %v4550_v8, %v4462_v51 }
 0x5e6   :  { %v4640_v42 = vadd.f32 %v4639_v58, %v4551_v59  ;;  %5003 = vmatmul.bf16.gmra.mxu3 %v14312_v47 }
 0x5e8   :  { %v4729_v54 = vadd.f32 %v4728_v19, %v4640_v42 }
 0x5e9   :  { %v4464_v30 = vpop.f32.mrf.mxu3 }
 0x5ea   :  { %v4799_v24 = vmax.f32 %v4729_v54, 0.0  ;;  %v4465_v34 = vadd.f32 %v4464_v30, %v12825_v17  ;;  %v4733_v20 = vpop.f32.mrf.mxu2 }
 0x5eb   :  { %v4553_v61 = vpop.f32.mrf.mxu0  ;;  %v4642_v37 = vpop.f32.mrf.mxu1 }
 0x5ec   :  { %v12990_v7 = vpack.c.bf16 %v4799_v24, %v4797_v63  ;;  %v4554_v9 = vadd.f32 %v4553_v61, %v4465_v34 }
 0x5ee   :  { %v4643_v35 = vadd.f32 %v4642_v37, %v4554_v9  ;;  %7726 = vmatmul.msk.bf16.gmra.mxu0 %vm769_vm6, %v12867_v11  ;;  %5262 = vmatmul.bf16.gmra.mxu1 %v14312_v47 }
 0x5ef   :  { %7803 = vmatmul.msk.bf16.gmra.mxu2 %vm769_vm6, %v12903_v50 }
 0x5f0   :  { %v4732_v43 = vadd.f32 %v4731_v4, %v4643_v35 }
 0x5f1   :  { %v4466_v31 = vpop.f32.mrf.mxu3 }
 0x5f2   :  { %v4467_v2 = vadd.f32 %v4466_v31, %v12825_v17  ;;  %v4736_v14 = vpop.f32.mrf.mxu2  ;;  %v4801_v55 = vmax.f32 %v4732_v43, 0.0 }
 0x5f3   :  { %v4555_v26 = vpop.f32.mrf.mxu0  ;;  %v4644_v52 = vpop.f32.mrf.mxu1 }
 0x5f4   :  { %v4556_v21 = vadd.f32 %v4555_v26, %v4467_v2 }
 0x5f6   :  { %v4645_v33 = vadd.f32 %v4644_v52, %v4556_v21  ;;  %5008 = vmatmul.bf16.gmra.mxu3 %v14313_v22 }
 0x5f8   :  { %v4734_v25 = vadd.f32 %v4733_v20, %v4645_v33 }
 0x5f9   :  { %v4469_v49 = vpop.f32.mrf.mxu3 }
 0x5fa   :  { %v4803_v11 = vmax.f32 %v4734_v25, 0.0  ;;  %v4470_v1 = vadd.f32 %v4469_v49, %v12825_v17  ;;  %v4738_v16 = vpop.f32.mrf.mxu2 }
 0x5fb   :  { %v4558_v28 = vpop.f32.mrf.mxu0  ;;  %v4647_v38 = vpop.f32.mrf.mxu1 }
 0x5fc   :  { %v13000_v57 = vpack.c.bf16 %v4803_v11, %v4801_v55  ;;  %v4559_v48 = vadd.f32 %v4558_v28, %v4470_v1 }
 0x5fe   :  { %v4648_v29 = vadd.f32 %v4647_v38, %v4559_v48  ;;  %7727 = vmatmul.msk.bf16.gmra.mxu0 %vm769_vm6, %v12903_v50  ;;  %5267 = vmatmul.bf16.gmra.mxu1 %v14313_v22 }
 0x5ff   :  { %7804 = vmatmul.msk.bf16.gmra.mxu2 %vm769_vm6, %v12936_v60 }
 0x600   :  { %v4737_v44 = vadd.f32 %v4736_v14, %v4648_v29 }
 0x601   :  { %v4471_v6 = vpop.f32.mrf.mxu3 }
 0x602   :  { %v4472_v19 = vadd.f32 %v4471_v6, %v12825_v17  ;;  %v4741_v45 = vpop.f32.mrf.mxu2  ;;  %v4805_v8 = vmax.f32 %v4737_v44, 0.0 }
 0x603   :  { %v4560_v40 = vpop.f32.mrf.mxu0  ;;  %v4649_v62 = vpop.f32.mrf.mxu1 }
 0x604   :  { %v4561_v13 = vadd.f32 %v4560_v40, %v4472_v19 }
 0x606   :  { %v4650_v3 = vadd.f32 %v4649_v62, %v4561_v13  ;;  %5013 = vmatmul.bf16.gmra.mxu3 %v14314_v39 }
 0x608   :  { %v4739_v51 = vadd.f32 %v4738_v16, %v4650_v3 }
 0x609   :  { %v4474_v4 = vpop.f32.mrf.mxu3 }
 0x60a   :  { %v4807_v50 = vmax.f32 %v4739_v51, 0.0  ;;  %v4475_v58 = vadd.f32 %v4474_v4, %v12825_v17  ;;  %v4743_v59 = vpop.f32.mrf.mxu2 }
 0x60b   :  { %v4563_v42 = vpop.f32.mrf.mxu0  ;;  %v4652_v47 = vpop.f32.mrf.mxu1 }
 0x60c   :  { %v13010_v54 = vpack.c.bf16 %v4807_v50, %v4805_v8  ;;  %v4564_v30 = vadd.f32 %v4563_v42, %v4475_v58 }
 0x60e   :  { %v4653_v63 = vadd.f32 %v4652_v47, %v4564_v30  ;;  %7728 = vmatmul.msk.bf16.gmra.mxu0 %vm769_vm6, %v12936_v60  ;;  %5272 = vmatmul.bf16.gmra.mxu1 %v14314_v39 }
 0x60f   :  { %7805 = vmatmul.msk.bf16.gmra.mxu2 %vm769_vm6, %v12951_v15 }
 0x610   :  { %v4742_v24 = vadd.f32 %v4741_v45, %v4653_v63 }
 0x611   :  { %v4476_v34 = vpop.f32.mrf.mxu3 }
 0x612   :  { %v4477_v20 = vadd.f32 %v4476_v34, %v12825_v17  ;;  %v4746_v61 = vpop.f32.mrf.mxu2  ;;  %v4809_v14 = vmax.f32 %v4742_v24, 0.0 }
 0x613   :  { %v4565_v37 = vpop.f32.mrf.mxu0  ;;  %v4654_v9 = vpop.f32.mrf.mxu1 }
 0x614   :  { %v4566_v35 = vadd.f32 %v4565_v37, %v4477_v20 }
 0x616   :  { %v4655_v43 = vadd.f32 %v4654_v9, %v4566_v35  ;;  %5018 = vmatmul.bf16.gmra.mxu3 %v12738_v12 }
 0x618   :  { %v4744_v31 = vadd.f32 %v4743_v59, %v4655_v43 }
 0x619   :  { %v4479_v2 = vpop.f32.mrf.mxu3 }
 0x61a   :  { %v4811_v60 = vmax.f32 %v4744_v31, 0.0  ;;  %v4480_v26 = vadd.f32 %v4479_v2, %v12825_v17  ;;  %v4748_v52 = vpop.f32.mrf.mxu2 }
 0x61b   :  { %v4568_v21 = vpop.f32.mrf.mxu0  ;;  %v4657_v33 = vpop.f32.mrf.mxu1 }
 0x61c   :  { %v13020_v22 = vpack.c.bf16 %v4811_v60, %v4809_v14  ;;  %v4569_v25 = vadd.f32 %v4568_v21, %v4480_v26 }
 0x61e   :  { %v4658_v49 = vadd.f32 %v4657_v33, %v4569_v25  ;;  %7729 = vmatmul.msk.bf16.gmra.mxu0 %vm769_vm6, %v12951_v15  ;;  %5277 = vmatmul.bf16.gmra.mxu1 %v12738_v12 }
 0x61f   :  { %7806 = vmatmul.msk.bf16.gmra.mxu2 %vm769_vm6, %v12960_v41 }
 0x620   :  { %v4747_v55 = vadd.f32 %v4746_v61, %v4658_v49 }
 0x621   :  { %v4481_v11 = vpop.f32.mrf.mxu3 }
 0x622   :  { %v4482_v1 = vadd.f32 %v4481_v11, %v12825_v17  ;;  %v4751_v16 = vpop.f32.mrf.mxu2  ;;  %v4813_v19 = vmax.f32 %v4747_v55, 0.0 }
 0x623   :  { %v4570_v28 = vpop.f32.mrf.mxu0  ;;  %v4659_v38 = vpop.f32.mrf.mxu1 }
 0x624   :  { %v4571_v48 = vadd.f32 %v4570_v28, %v4482_v1 }
 0x626   :  { %v4660_v29 = vadd.f32 %v4659_v38, %v4571_v48  ;;  %5023 = vmatmul.bf16.gmra.mxu3 %v12751_v0 }
 0x628   :  { %v4749_v44 = vadd.f32 %v4748_v52, %v4660_v29 }
 0x629   :  { %v4484_v6 = vpop.f32.mrf.mxu3 }
 0x62a   :  { %v4815_v15 = vmax.f32 %v4749_v44, 0.0  ;;  %v4485_v12 = vadd.f32 %v4484_v6, %v12825_v17  ;;  %v4753_v45 = vpop.f32.mrf.mxu2 }
 0x62b   :  { %v4573_v40 = vpop.f32.mrf.mxu0  ;;  %v4662_v62 = vpop.f32.mrf.mxu1 }
 0x62c   :  { %v13030_v13 = vpack.c.bf16 %v4815_v15, %v4813_v19  ;;  %v4574_v3 = vadd.f32 %v4573_v40, %v4485_v12 }
 0x62e   :  { %v4663_v39 = vadd.f32 %v4662_v62, %v4574_v3  ;;  %7730 = vmatmul.msk.bf16.gmra.mxu0 %vm769_vm6, %v12960_v41  ;;  %5282 = vmatmul.bf16.gmra.mxu1 %v12751_v0 }
 0x62f   :  { %7807 = vmatmul.msk.bf16.gmra.mxu2 %vm769_vm6, %v12970_v46 }
 0x630   :  { %v4752_v51 = vadd.f32 %v4751_v16, %v4663_v39 }
 0x631   :  { %v4486_v4 = vpop.f32.mrf.mxu3 }
 0x632   :  { %v4487_v8 = vadd.f32 %v4486_v4, %v12825_v17  ;;  %v5337_v50 = vpop.f32.mrf.mxu2  ;;  %v4817_v24 = vmax.f32 %v4752_v51, 0.0 }
 0x633   :  { %v4575_v58 = vpop.f32.mrf.mxu0  ;;  %v4664_v59 = vpop.f32.mrf.mxu1 }
 0x634   :  { %v4576_v42 = vadd.f32 %v4575_v58, %v4487_v8 }
 0x636   :  { %v4665_v47 = vadd.f32 %v4664_v59, %v4576_v42  ;;  %5028 = vmatmul.bf16.gmra.mxu3 %v12760_v23 }
 0x638   :  { %v4754_v30 = vadd.f32 %v4753_v45, %v4665_v47 }
 0x639   :  { %v4989_v63 = vpop.f32.mrf.mxu3 }
 0x63a   :  { %v4819_v41 = vmax.f32 %v4754_v30, 0.0  ;;  %v5339_v34 = vpop.f32.mrf.mxu2 }
 0x63b   :  { %v5078_v0 = vpop.f32.mrf.mxu0  ;;  %v5248_v20 = vpop.f32.mrf.mxu1 }
 0x63c   :  { %v13039_v61 = vpack.c.bf16 %v4819_v41, %v4817_v24  ;;  %v5079_v37 = vadd.f32 %v5078_v0, %v4989_v63  ;;  %v5338_v9 = vadd.f32 %v5337_v50, %v5248_v20 }
 0x63e   :  { %v5417_v35 = vmax.f32 %v5079_v37, %v5338_v9  ;;  %7731 = vmatmul.msk.bf16.gmra.mxu0 %vm769_vm6, %v12970_v46  ;;  %5287 = vmatmul.bf16.gmra.mxu1 %v12760_v23 }
 0x63f   :  { %7808 = vmatmul.msk.bf16.gmra.mxu2 %vm769_vm6, %v12980_v27 }
 0x640   :  { %v5481_v52 = vrot.slane %v5417_v35, 2 }
 0x641   :  { %v4991_v17 = vpop.f32.mrf.mxu3 }
 0x642   :  { %v5342_v43 = vpop.f32.mrf.mxu2 }
 0x643   :  { %v5080_v31 = vpop.f32.mrf.mxu0  ;;  %v5250_v2 = vpop.f32.mrf.mxu1 }
 0x644   :  { %v5081_v14 = vadd.f32 %v5080_v31, %v4991_v17  ;;  %v5340_v60 = vadd.f32 %v5339_v34, %v5250_v2 }
 0x646   :  { %v5418_v26 = vmax.f32 %v5081_v14, %v5340_v60  ;;  %5033 = vmatmul.bf16.gmra.mxu3 %v12769_v5 }
 0x648   :  { %v5482_v21 = vrot.slane %v5418_v26, 2 }
 0x649   :  { %v4994_v33 = vpop.f32.mrf.mxu3 }
 0x64a   :  { %v5344_v25 = vpop.f32.mrf.mxu2  ;;  %v5483_v46 = vsel %vm281_vm0, %v5481_v52, %v5482_v21 }
 0x64b   :  { %v5083_v49 = vpop.f32.mrf.mxu0  ;;  %v5253_v23 = vpop.f32.mrf.mxu1  ;;  %v5577_v55 = vmax.f32 %v5417_v35, %v5483_v46 }
 0x64c   :  { %v5084_v11 = vadd.f32 %v5083_v49, %v4994_v33  ;;  %v5343_v1 = vadd.f32 %v5342_v43, %v5253_v23 }
 0x64e   :  { %v5419_v16 = vmax.f32 %v5084_v11, %v5343_v1  ;;  %7732 = vmatmul.msk.bf16.gmra.mxu0 %vm769_vm6, %v12980_v27  ;;  %5292 = vmatmul.bf16.gmra.mxu1 %v12769_v5 }
 0x64f   :  { %7809 = vmatmul.msk.bf16.gmra.mxu2 %vm769_vm6, %v12990_v7 }
 0x650   :  { %v5484_v28 = vrot.slane %v5419_v16, 2 }
 0x651   :  { %v4996_v38 = vpop.f32.mrf.mxu3 }
 0x652   :  { %v5347_v48 = vpop.f32.mrf.mxu2  ;;  %v5485_v29 = vsel %vm281_vm0, %v5482_v21, %v5484_v28 }
 0x653   :  { %v5085_v44 = vpop.f32.mrf.mxu0  ;;  %v5255_v6 = vpop.f32.mrf.mxu1  ;;  %v5578_v19 = vmax.f32 %v5418_v26, %v5485_v29 }
 0x654   :  { %v5086_v15 = vadd.f32 %v5085_v44, %v4996_v38  ;;  %v5345_v12 = vadd.f32 %v5344_v25, %v5255_v6 }
 0x655   :  { %v13054_v45 = vpack.c.bf16 %v5578_v19, %v5577_v55 }
 0x656   :  { %v5420_v40 = vmax.f32 %v5086_v15, %v5345_v12  ;;  %5038 = vmatmul.bf16.gmra.mxu3 %v12778_v32 }
 0x658   :  { %v5486_v27 = vrot.slane %v5420_v40, 2 }
 0x659   :  { %v4999_v5 = vpop.f32.mrf.mxu3 }
 0x65a   :  { %v5349_v62 = vpop.f32.mrf.mxu2  ;;  %v5487_v3 = vsel %vm281_vm0, %v5484_v28, %v5486_v27 }
 0x65b   :  { %v5088_v39 = vpop.f32.mrf.mxu0  ;;  %v5258_v51 = vpop.f32.mrf.mxu1  ;;  %v5579_v4 = vmax.f32 %v5419_v16, %v5487_v3 }
 0x65c   :  { %v5089_v8 = vadd.f32 %v5088_v39, %v4999_v5  ;;  %v5348_v50 = vadd.f32 %v5347_v48, %v5258_v51 }
 0x65e   :  { %v5421_v58 = vmax.f32 %v5089_v8, %v5348_v50  ;;  %7733 = vmatmul.msk.bf16.gmra.mxu0 %vm769_vm6, %v12990_v7  ;;  %5297 = vmatmul.bf16.gmra.mxu1 %v12778_v32 }
 0x65f   :  { %7810 = vmatmul.msk.bf16.gmra.mxu2 %vm769_vm6, %v13000_v57 }
 0x660   :  { %v5488_v59 = vrot.slane %v5421_v58, 2 }
 0x661   :  { %v5001_v42 = vpop.f32.mrf.mxu3 }
 0x662   :  { %v5352_v47 = vpop.f32.mrf.mxu2  ;;  %v5489_v30 = vsel %vm281_vm0, %v5486_v27, %v5488_v59 }
 0x663   :  { %v5090_v63 = vpop.f32.mrf.mxu0  ;;  %v5260_v24 = vpop.f32.mrf.mxu1  ;;  %v5580_v41 = vmax.f32 %v5420_v40, %v5489_v30 }
 0x664   :  { %v5091_v34 = vadd.f32 %v5090_v63, %v5001_v42  ;;  %v5350_v0 = vadd.f32 %v5349_v62, %v5260_v24 }
 0x665   :  { %v13064_v20 = vpack.c.bf16 %v5580_v41, %v5579_v4 }
 0x666   :  { %v5422_v37 = vmax.f32 %v5091_v34, %v5350_v0  ;;  %5043 = vmatmul.bf16.gmra.mxu3 %v12787_v18 }
 0x668   :  { %v5490_v7 = vrot.slane %v5422_v37, 2 }
 0x669   :  { %v5004_v32 = vpop.f32.mrf.mxu3 }
 0x66a   :  { %v5354_v9 = vpop.f32.mrf.mxu2  ;;  %v5491_v35 = vsel %vm281_vm0, %v5488_v59, %v5490_v7 }
 0x66b   :  { %v5093_v17 = vpop.f32.mrf.mxu0  ;;  %v5263_v43 = vpop.f32.mrf.mxu1  ;;  %v5581_v31 = vmax.f32 %v5421_v58, %v5491_v35 }
 0x66c   :  { %v5094_v2 = vadd.f32 %v5093_v17, %v5004_v32  ;;  %v5353_v14 = vadd.f32 %v5352_v47, %v5263_v43 }
 0x66e   :  { %v5423_v60 = vmax.f32 %v5094_v2, %v5353_v14  ;;  %7734 = vmatmul.msk.bf16.gmra.mxu0 %vm769_vm6, %v13000_v57  ;;  %5302 = vmatmul.bf16.gmra.mxu1 %v12787_v18 }
 0x66f   :  { %7811 = vmatmul.msk.bf16.gmra.mxu2 %vm769_vm6, %v13010_v54 }
 0x670   :  { %v5492_v26 = vrot.slane %v5423_v60, 2 }
 0x671   :  { %v5006_v52 = vpop.f32.mrf.mxu3 }
 0x672   :  { %v5357_v21 = vpop.f32.mrf.mxu2  ;;  %v5493_v33 = vsel %vm281_vm0, %v5490_v7, %v5492_v26 }
 0x673   :  { %v5095_v25 = vpop.f32.mrf.mxu0  ;;  %v5265_v46 = vpop.f32.mrf.mxu1  ;;  %v5582_v49 = vmax.f32 %v5422_v37, %v5493_v33 }
 0x674   :  { %v5096_v23 = vadd.f32 %v5095_v25, %v5006_v52  ;;  %v5355_v55 = vadd.f32 %v5354_v9, %v5265_v46 }
 0x675   :  { %v13074_v11 = vpack.c.bf16 %v5582_v49, %v5581_v31 }
 0x676   :  { %v5424_v1 = vmax.f32 %v5096_v23, %v5355_v55  ;;  %5048 = vmatmul.bf16.gmra.mxu3 %v12796_v10 }
 0x678   :  { %v5494_v57 = vrot.slane %v5424_v1, 2 }
 0x679   :  { %v5009_v18 = vpop.f32.mrf.mxu3 }
 0x67a   :  { %v13077_v16 = vpop.f32.mrf.mxu2  ;;  %v5495_v28 = vsel %vm281_vm0, %v5492_v26, %v5494_v57 }
 0x67b   :  { %v5098_v38 = vpop.f32.mrf.mxu0  ;;  %v5268_v48 = vpop.f32.mrf.mxu1  ;;  %v5583_v29 = vmax.f32 %v5423_v60, %v5495_v28 }
 0x67c   :  { %v5099_v44 = vadd.f32 %v5098_v38, %v5009_v18  ;;  %v5358_v6 = vadd.f32 %v5357_v21, %v5268_v48 }
 0x67e   :  { %v13080_v19 = vmax.f32 %v5099_v44, %v5358_v6  ;;  %7735 = vmatmul.msk.bf16.gmra.mxu0 %vm769_vm6, %v13010_v54  ;;  %5307 = vmatmul.bf16.gmra.mxu1 %v12796_v10 }
 0x67f   :  { %7812 = vmatmul.msk.bf16.gmra.mxu2 %vm769_vm6, %v13020_v22 }
 0x680   :  { %v5496_v15 = vrot.slane %v13080_v19, 2 }
 0x681   :  { %v13088_v12 = vpop.f32.mrf.mxu3 }
 0x682   :  { %v5362_v40 = vpop.f32.mrf.mxu2  ;;  %v5497_v27 = vsel %vm281_vm0, %v5494_v57, %v5496_v15 }
 0x683   :  { %v13093_v5 = vpop.f32.mrf.mxu0  ;;  %v13095_v62 = vpop.f32.mrf.mxu1  ;;  %v5584_v3 = vmax.f32 %v5424_v1, %v5497_v27 }
 0x684   :  { %v5101_v44 = vadd.f32 %v13093_v5, %v13088_v12  ;;  %v5360_v6 = vadd.f32 %v13077_v16, %v13095_v62 }
 0x685   :  { %v13097_v54 = vpack.c.bf16 %v5584_v3, %v5583_v29 }
 0x686   :  { %5053 = vmatmul.bf16.gmra.mxu3 %v12805_v56 }
 0x689   :  { %v5014_v10 = vpop.f32.mrf.mxu3 }
 0x68a   :  { %v5364_v39 = vpop.f32.mrf.mxu2 }
 0x68b   :  { %v5103_v51 = vpop.f32.mrf.mxu0  ;;  %v5273_v4 = vpop.f32.mrf.mxu1 }
 0x68c   :  { %v5104_v18 = vadd.f32 %v5103_v51, %v5014_v10  ;;  %v5363_v28 = vadd.f32 %v5362_v40, %v5273_v4 }
 0x68e   :  { %7736 = vmatmul.msk.bf16.gmra.mxu0 %vm769_vm6, %v13020_v22  ;;  %5312 = vmatmul.bf16.gmra.mxu1 %v12805_v56 }
 0x68f   :  { %7813 = vmatmul.msk.bf16.gmra.mxu2 %vm769_vm6, %v13030_v13 }
 0x691   :  { %v5016_v8 = vpop.f32.mrf.mxu3 }
 0x692   :  { %v5367_v50 = vpop.f32.mrf.mxu2 }
 0x693   :  { %v5105_v58 = vpop.f32.mrf.mxu0  ;;  %v5275_v59 = vpop.f32.mrf.mxu1 }
 0x694   :  { %v5106_v46 = vadd.f32 %v5105_v58, %v5016_v8  ;;  %v5427_v58 = vmax.f32 %v5104_v18, %v5363_v28 }
 0x696   :  { %5058 = vmatmul.bf16.gmra.mxu3 %v12814_v36 }
 0x699   :  { %v5019_v42 = vpop.f32.mrf.mxu3 }
 0x69a   :  { %v5369_v47 = vpop.f32.mrf.mxu2 }
 0x69b   :  { %v5108_v30 = vpop.f32.mrf.mxu0  ;;  %v5278_v63 = vpop.f32.mrf.mxu1 }
 0x69c   :  { %v5109_v52 = vadd.f32 %v5108_v30, %v5019_v42  ;;  %v5368_v21 = vadd.f32 %v5367_v50, %v5278_v63 }
 0x69e   :  { %7737 = vmatmul.msk.bf16.gmra.mxu0 %vm769_vm6, %v13030_v13  ;;  %5317 = vmatmul.bf16.gmra.mxu1 %v12814_v36  ;;  %v5429_v38 = vmax.f32 %v5109_v52, %v5368_v21 }
 0x69f   :  { %7814 = vmatmul.msk.bf16.gmra.mxu2 %vm769_vm6, %v13039_v61 }
 0x6a0   :  { %v5504_v10 = vrot.slane %v5429_v38, 2 }
 0x6a1   :  { %v5021_v56 = vpop.f32.mrf.mxu3 }
 0x6a2   :  { %v5372_v22 = vpop.f32.mrf.mxu2 }
 0x6a3   :  { %v5110_v24 = vpop.f32.mrf.mxu0  ;;  %v5280_v41 = vpop.f32.mrf.mxu1 }
 0x6a4   :  { %v5111_v2 = vadd.f32 %v5110_v24, %v5021_v56  ;;  %v5370_v14 = vadd.f32 %v5369_v47, %v5280_v41  ;;  %v5500_v24 = vrot.slane %v5427_v58, 2 }
 0x6a6   :  { %5063 = vmatmul.bf16.gmra.mxu3 %v12828_v53  ;;  %v5430_v23 = vmax.f32 %v5111_v2, %v5370_v14 }
 0x6a8   :  { %v5506_v3 = vrot.slane %v5430_v23, 2 }
 0x6a9   :  { %v5024_v34 = vpop.f32.mrf.mxu3 }
 0x6aa   :  { %v5374_v0 = vpop.f32.mrf.mxu2  ;;  %v5507_v63 = vsel %vm281_vm0, %v5504_v10, %v5506_v3 }
 0x6ab   :  { %v5113_v37 = vpop.f32.mrf.mxu0  ;;  %v5283_v7 = vpop.f32.mrf.mxu1 }
 0x6ac   :  { %v5114_v43 = vadd.f32 %v5113_v37, %v5024_v34  ;;  %v5373_v31 = vadd.f32 %v5372_v22, %v5283_v7 }
 0x6ae   :  { %7738 = vmatmul.msk.bf16.gmra.mxu0 %vm769_vm6, %v13039_v61  ;;  %5322 = vmatmul.bf16.gmra.mxu1 %v12828_v53  ;;  %v5431_v33 = vmax.f32 %v5114_v43, %v5373_v31  ;;  %v5365_v61 = vadd.f32 %v5364_v39, %v5275_v59  ;;  %v5426_v59 = vmax.f32 %v5101_v44, %v5360_v6 }
 0x6b0   :  { %v5508_v48 = vrot.slane %v5431_v33, 2  ;;  %v5428_v27 = vmax.f32 %v5106_v46, %v5365_v61  ;;  %v5498_v37 = vrot.slane %v5426_v59, 2 }
 0x6b1   :  { %v5026_v13 = vpop.f32.mrf.mxu3 }
 0x6b2   :  { %v5377_v36 = vpop.f32.mrf.mxu2  ;;  %v5509_v4 = vsel %vm281_vm0, %v5506_v3, %v5508_v48  ;;  %v5502_v16 = vrot.slane %v5428_v27, 2  ;;  %v5499_v21 = vsel %vm281_vm0, %v5496_v15, %v5498_v37 }
 0x6b3   :  { %v5115_v32 = vpop.f32.mrf.mxu0  ;;  %v5285_v9 = vpop.f32.mrf.mxu1  ;;  %v5590_v22 = vmax.f32 %v5430_v23, %v5509_v4  ;;  %v5585_v61 = vmax.f32 %v13080_v19, %v5499_v21 }
 0x6b4   :  { %v5116_v35 = vadd.f32 %v5115_v32, %v5026_v13  ;;  %v5375_v17 = vadd.f32 %v5374_v0, %v5285_v9  ;;  %v5505_v34 = vsel %vm281_vm0, %v5502_v16, %v5504_v10  ;;  %v5589_v0 = vmax.f32 %v5429_v38, %v5507_v63 }
 0x6b5   :  { %v5503_v13 = vsel %vm281_vm0, %v5500_v24, %v5502_v16  ;;  %v5588_v9 = vmax.f32 %v5428_v27, %v5505_v34 }
 0x6b6   :  { %v5432_v60 = vmax.f32 %v5116_v35, %v5375_v17  ;;  %v5615_v32 = vpack.c.bf16 %v5590_v22, %v5589_v0  ;;  %v5501_v17 = vsel %vm281_vm0, %v5498_v37, %v5500_v24  ;;  %v5587_v14 = vmax.f32 %v5427_v58, %v5503_v13 }
 0x6b8   :  { %v5510_v55 = vrot.slane %v5432_v60, 2 }
 0x6b9   :  { %v5029_v26 = vpop.f32.mrf.mxu3 }
 0x6ba   :  { %v5379_v25 = vpop.f32.mrf.mxu2  ;;  %v5511_v39 = vsel %vm281_vm0, %v5508_v48, %v5510_v55 }
 0x6bb   :  { %v5118_v49 = vpop.f32.mrf.mxu0  ;;  %v5288_v53 = vpop.f32.mrf.mxu1  ;;  %v5591_v5 = vmax.f32 %v5431_v33, %v5511_v39  ;;  %v5614_v33 = vpack.c.bf16 %v5588_v9, %v5587_v14 }
 0x6bc   :  { %v5119_v1 = vadd.f32 %v5118_v49, %v5029_v26  ;;  %v5378_v57 = vadd.f32 %v5377_v36, %v5288_v53 }
 0x6be   :  { %v13115_v29 = vmax.f32 %v5119_v1, %v5378_v57 }
 0x6c0   :  { %v5512_v8 = vrot.slane %v13115_v29, 2 }
 0x6c1   :  { %v5031_v50 = vpop.f32.mrf.mxu3 }
 0x6c2   :  { %v5513_v40 = vsel %vm281_vm0, %v5510_v55, %v5512_v8  ;;  %v5382_v51 = vpop.f32.mrf.mxu2 }
 0x6c3   :  { %v5120_v42 = vpop.f32.mrf.mxu0  ;;  %v5290_v12 = vpop.f32.mrf.mxu1  ;;  %v5592_v47 = vmax.f32 %v5432_v60, %v5513_v40 }
 0x6c4   :  { %v5121_v62 = vadd.f32 %v5120_v42, %v5031_v50  ;;  %v5380_v30 = vadd.f32 %v5379_v25, %v5290_v12  ;;  %v5586_v25 = vmax.f32 %v5426_v59, %v5501_v17 }
 0x6c5   :  { %v5616_v56 = vpack.c.bf16 %v5592_v47, %v5591_v5 }
 0x6c6   :  { %v5434_v41 = vmax.f32 %v5121_v62, %v5380_v30  ;;  %v5613_v23 = vpack.c.bf16 %v5586_v25, %v5585_v61 }
 0x6c7   :  { %5657 = vmatpush.bf16.msra.mxu3 %v5616_v56 }
 0x6c8   :  { %v5514_v7 = vrot.slane %v5434_v41, 2 }
 0x6c9   :  { %v5034_v36 = vpop.f32.mrf.mxu3 }
 0x6ca   :  { %v5384_v35 = vpop.f32.mrf.mxu2  ;;  %v5515_v43 = vsel %vm281_vm0, %v5512_v8, %v5514_v7 }
 0x6cb   :  { %v5123_v31 = vpop.f32.mrf.mxu0  ;;  %v5293_v2 = vpop.f32.mrf.mxu1  ;;  %5658 = vmatpush.bf16.msra.mxu3 %v5615_v32  ;;  %v5593_v60 = vmax.f32 %v13115_v29, %v5515_v43 }
 0x6cc   :  { %v5124_v26 = vadd.f32 %v5123_v31, %v5034_v36  ;;  %v5383_v52 = vadd.f32 %v5382_v51, %v5293_v2 }
 0x6ce   :  { %v5435_v46 = vmax.f32 %v5124_v26, %v5383_v52 }
 0x6cf   :  { %5659 = vmatpush.bf16.msra.mxu3 %v5614_v33 }
 0x6d0   :  { %v5516_v49 = vrot.slane %v5435_v46, 2 }
 0x6d1   :  { %v5036_v53 = vpop.f32.mrf.mxu3 }
 0x6d2   :  { %v5387_v55 = vpop.f32.mrf.mxu2  ;;  %v5517_v1 = vsel %vm281_vm0, %v5514_v7, %v5516_v49 }
 0x6d3   :  { %v5125_v57 = vpop.f32.mrf.mxu0  ;;  %v5295_v18 = vpop.f32.mrf.mxu1  ;;  %5660 = vmatpush.bf16.msra.mxu3 %v5613_v23  ;;  %v5594_v28 = vmax.f32 %v5434_v41, %v5517_v1 }
 0x6d4   :  { %v5126_v38 = vadd.f32 %v5125_v57, %v5036_v53  ;;  %v5385_v48 = vadd.f32 %v5384_v35, %v5295_v18 }
 0x6d5   :  { %v13136_v29 = vpack.c.bf16 %v5594_v28, %v5593_v60 }
 0x6d6   :  { %v5436_v15 = vmax.f32 %v5126_v38, %v5385_v48 }
 0x6d7   :  { %5661 = vmatpush.bf16.msra.mxu3 %v13097_v54 }
 0x6d8   :  { %v5518_v3 = vrot.slane %v5436_v15, 2 }
 0x6d9   :  { %v5039_v44 = vpop.f32.mrf.mxu3 }
 0x6da   :  { %v5389_v6 = vpop.f32.mrf.mxu2  ;;  %v5519_v10 = vsel %vm281_vm0, %v5516_v49, %v5518_v3 }
 0x6db   :  { %v5128_v19 = vpop.f32.mrf.mxu0  ;;  %v5298_v27 = vpop.f32.mrf.mxu1  ;;  %5662 = vmatpush.bf16.msra.mxu3 %v13074_v11  ;;  %v5595_v42 = vmax.f32 %v5435_v46, %v5519_v10 }
 0x6dc   :  { %v5129_v39 = vadd.f32 %v5128_v19, %v5039_v44  ;;  %v5388_v8 = vadd.f32 %v5387_v55, %v5298_v27 }
 0x6de   :  { %v5437_v50 = vmax.f32 %v5129_v39, %v5388_v8 }
 0x6df   :  { %5663 = vmatpush.bf16.msra.mxu3 %v13064_v20 }
 0x6e0   :  { %v5520_v58 = vrot.slane %v5437_v50, 2 }
 0x6e1   :  { %v5041_v40 = vpop.f32.mrf.mxu3 }
 0x6e2   :  { %v5392_v51 = vpop.f32.mrf.mxu2  ;;  %v5521_v54 = vsel %vm281_vm0, %v5518_v3, %v5520_v58 }
 0x6e3   :  { %v5130_v4 = vpop.f32.mrf.mxu0  ;;  %v5300_v59 = vpop.f32.mrf.mxu1  ;;  %5664 = vmatpush.bf16.msra.mxu3 %v13054_v45  ;;  %v5596_v12 = vmax.f32 %v5436_v15, %v5521_v54 }
 0x6e4   :  { %v5131_v11 = vadd.f32 %v5130_v4, %v5041_v40  ;;  %v5390_v5 = vadd.f32 %v5389_v6, %v5300_v59 }
 0x6e5   :  { %v13144_v47 = vpack.c.bf16 %v5596_v12, %v5595_v42 }
 0x6e6   :  { %v5438_v16 = vmax.f32 %v5131_v11, %v5390_v5 }
 0x6e8   :  { %v5522_v56 = vrot.slane %v5438_v16, 2 }
 0x6e9   :  { %v5044_v62 = vpop.f32.mrf.mxu3 }
 0x6ea   :  { %v5394_v20 = vpop.f32.mrf.mxu2  ;;  %v5523_v0 = vsel %vm281_vm0, %v5520_v58, %v5522_v56 }
 0x6eb   :  { %v5133_v30 = vpop.f32.mrf.mxu0  ;;  %v5303_v63 = vpop.f32.mrf.mxu1  ;;  %v5597_v32 = vmax.f32 %v5437_v50, %v5523_v0 }
 0x6ec   :  { %v5134_v22 = vadd.f32 %v5133_v30, %v5044_v62  ;;  %v5393_v24 = vadd.f32 %v5392_v51, %v5303_v63 }
 0x6ee   :  { %v5439_v41 = vmax.f32 %v5134_v22, %v5393_v24  ;;  %v7817_v22 = vld [vmem:[%s14030_s7] sm:$0xf]  ;;  %v8635_v24 = vld [vmem:[%s14030_s7 + $0x4] sm:$0xf0] }
 0x6f0   :  { %v5524_v34 = vrot.slane %v5439_v41, 2 }
 0x6f1   :  { %v5046_v37 = vpop.f32.mrf.mxu3 }
 0x6f2   :  { %v5397_v45 = vpop.f32.mrf.mxu2  ;;  %v5525_v7 = vsel %vm281_vm0, %v5522_v56, %v5524_v34 }
 0x6f3   :  { %v5135_v13 = vpop.f32.mrf.mxu0  ;;  %v5305_v36 = vpop.f32.mrf.mxu1  ;;  %v5598_v9 = vmax.f32 %v5438_v16, %v5525_v7 }
 0x6f4   :  { %v5136_v35 = vadd.f32 %v5135_v13, %v5046_v37  ;;  %v5395_v17 = vadd.f32 %v5394_v20, %v5305_v36  ;;  %v7818_v37 = vor.u32 %v8635_v24, %v7817_v22  ;;  %v5629_v24 = vld [vmem:[%s14030_s7 + $0x20] sm:$0xff] }
 0x6f5   :  { %v13148_v43 = vpack.c.bf16 %v5598_v9, %v5597_v32 }
 0x6f6   :  { %v5440_v31 = vmax.f32 %v5136_v35, %v5395_v17  ;;  %5665 = vmatmul.bf16.vlgmr.msra.gmra.mxu3 %v7818_v37 }
 0x6f8   :  { %v5526_v2 = vrot.slane %v5440_v31, 2 }
 0x6f9   :  { %v5049_v14 = vpop.f32.mrf.mxu3 }
 0x6fa   :  { %v5399_v60 = vpop.f32.mrf.mxu2  ;;  %v5527_v26 = vsel %vm281_vm0, %v5524_v34, %v5526_v2 }
 0x6fb   :  { %v5138_v52 = vpop.f32.mrf.mxu0  ;;  %v5308_v21 = vpop.f32.mrf.mxu1  ;;  %v5599_v33 = vmax.f32 %v5439_v41, %v5527_v26 }
 0x6fc   :  { %v5139_v25 = vadd.f32 %v5138_v52, %v5049_v14  ;;  %v5398_v46 = vadd.f32 %v5397_v45, %v5308_v21 }
 0x6fe   :  { %v13151_v61 = vmax.f32 %v5139_v25, %v5398_v46 }
 0x700   :  { %v5528_v49 = vrot.slane %v13151_v61, 2 }
 0x701   :  { %v5051_v53 = vpop.f32.mrf.mxu3 }
 0x702   :  { %v5402_v23 = vpop.f32.mrf.mxu2  ;;  %v5529_v55 = vsel %vm281_vm0, %v5526_v2, %v5528_v49 }
 0x703   :  { %v5140_v1 = vpop.f32.mrf.mxu0  ;;  %v5310_v57 = vpop.f32.mrf.mxu1  ;;  %v5600_v18 = vmax.f32 %v5440_v31, %v5529_v55  ;;  %v14315_v55 = vld [vmem:[#allocation20_spill] sm:$0xff] }
 0x704   :  { %v5141_v2 = vadd.f32 %v5140_v1, %v5051_v53  ;;  %v5400_v14 = vadd.f32 %v5399_v60, %v5310_v57  ;;  %v7919_v60 = vld [vmem:[%s14031_s8 + $0x130] sm:$0xf0] }
 0x705   :  { %v13157_v28 = vpack.c.bf16 %v5600_v18, %v5599_v33 }
 0x706   :  { %v5442_v53 = vmax.f32 %v5141_v2, %v5400_v14  ;;  %v8651_v2 = vld [vmem:[%s14031_s8 + $0x6c] sm:$0xf]  ;;  %v7995_v14 = vld [vmem:[%s14031_s8 + $0x78] sm:$0xf0] }
 0x709   :  { %v5054_v38 = vpop.f32.mrf.mxu3 }
 0x70a   :  { %v5404_v48 = vpop.f32.mrf.mxu2 }
 0x70b   :  { %v5143_v15 = vpop.f32.mrf.mxu0  ;;  %v5313_v44 = vpop.f32.mrf.mxu1 }
 0x70c   :  { %v5144_v32 = vadd.f32 %v5143_v15, %v5054_v38  ;;  %v5403_v9 = vadd.f32 %v5402_v23, %v5313_v44  ;;  %v8674_v15 = vld [vmem:[%s14031_s8 + $0x124] sm:$0xf] }
 0x70d   :  { %v7922_v44 = vor.u32 %v8674_v15, %v7919_v60  ;;  %v7963_v15 = vld [vmem:[%s14031_s8 + $0x38] sm:$0xf0] }
 0x70e   :  { %v5443_v33 = vmax.f32 %v5144_v32, %v5403_v9  ;;  %v5644_v32 = vunpack.c.h.b16 %v5629_v24 }
 0x70f   :  { %5865 = vmatpush.bf16.msra.mxu2 %v7922_v44 }
 0x710   :  { %v5650_v9 = vpack.c.b16 %v5644_v32, %v5644_v32 }
 0x711   :  { %v5056_v6 = vpop.f32.mrf.mxu3 }
 0x712   :  { %v5407_v3 = vpop.f32.mrf.mxu2 }
 0x713   :  { %v5145_v19 = vpop.f32.mrf.mxu0  ;;  %v5315_v27 = vpop.f32.mrf.mxu1 }
 0x714   :  { %v5146_v41 = vadd.f32 %v5145_v19, %v5056_v6  ;;  %v5405_v45 = vadd.f32 %v5404_v48, %v5315_v27  ;;  %v5532_v6 = vrot.slane %v5443_v33, 2 }
 0x716   :  { %v5444_v26 = vmax.f32 %v5146_v41, %v5405_v45  ;;  %v7909_v41 = vld [vmem:[%s14031_s8 + $0x108] sm:$0xf]  ;;  %v7819_v45 = vld [vmem:[%s14030_s7 + $0x8] sm:$0xf0] }
 0x718   :  { %v5534_v1 = vrot.slane %v5444_v26, 2 }
 0x719   :  { %v5059_v39 = vpop.f32.mrf.mxu3 }
 0x71a   :  { %v5409_v58 = vpop.f32.mrf.mxu2 }
 0x71b   :  { %v5148_v8 = vpop.f32.mrf.mxu0  ;;  %v5318_v50 = vpop.f32.mrf.mxu1 }
 0x71c   :  { %v5149_v62 = vadd.f32 %v5148_v8, %v5059_v39  ;;  %v5408_v20 = vadd.f32 %v5407_v3, %v5318_v50  ;;  %v7925_v39 = vld [vmem:[%s14031_s8 + $0x128] sm:$0xf]  ;;  %v8677_v8 = vld [vmem:[%s14031_s8 + $0x134] sm:$0xf0]  ;;  %v8670_v50 = vld [vmem:[%s14031_s8 + $0x104] sm:$0xf] }
 0x71e   :  { %v5445_v35 = vmax.f32 %v5149_v62, %v5408_v20 }
 0x720   :  { %v5536_v25 = vrot.slane %v5445_v35, 2 }
 0x721   :  { %v5061_v10 = vpop.f32.mrf.mxu3 }
 0x722   :  { %v5412_v54 = vpop.f32.mrf.mxu2  ;;  %v5537_v3 = vsel %vm281_vm0, %v5534_v1, %v5536_v25 }
 0x723   :  { %v5150_v40 = vpop.f32.mrf.mxu0  ;;  %v5320_v51 = vpop.f32.mrf.mxu1 }
 0x724   :  { %v5151_v5 = vadd.f32 %v5150_v40, %v5061_v10  ;;  %v5410_v16 = vadd.f32 %v5409_v58, %v5320_v51  ;;  %v7926_v10 = vor.u32 %v8677_v8, %v7925_v39  ;;  %v7903_v40 = vld [vmem:[%s14031_s8 + $0x110] sm:$0xf0]  ;;  %v7825_v51 = vld [vmem:[%s14030_s7 + $0x10] sm:$0xf]  ;;  %v8695_v8 = vld [vmem:[%s14031_s8 + $0x1cc] sm:$0xf] }
 0x726   :  { %v5446_v7 = vmax.f32 %v5151_v5, %v5410_v16  ;;  %5878 = vmatpush.bf16.msra.mxu1 %v7926_v10  ;;  %v7871_v10 = vld [vmem:[%s14031_s8 + $0xd0] sm:$0xf0] }
 0x728   :  { %v5538_v52 = vrot.slane %v5446_v7, 2 }
 0x729   :  { %v5064_v4 = vpop.f32.mrf.mxu3 }
 0x72a   :  { %v5414_v63 = vpop.f32.mrf.mxu2  ;;  %v5539_v57 = vsel %vm281_vm0, %v5536_v25, %v5538_v52  ;;  %v8647_v25 = vld [vmem:[%s14031_s8 + $0x4c] sm:$0xf] }
 0x72b   :  { %v5153_v59 = vpop.f32.mrf.mxu0  ;;  %v5323_v42 = vpop.f32.mrf.mxu1  ;;  %v5605_v58 = vmax.f32 %v5445_v35, %v5539_v57  ;;  %v8655_v35 = vld [vmem:[%s14031_s8 + $0x8c] sm:$0xf]  ;;  %v7885_v57 = vld [vmem:[%s14031_s8 + $0xe0] sm:$0xf] }
 0x72c   :  { %v5154_v12 = vadd.f32 %v5153_v59, %v5064_v4  ;;  %v5413_v11 = vadd.f32 %v5412_v54, %v5323_v42  ;;  %v8637_v54 = vld [vmem:[%s14030_s7 + $0x14] sm:$0xf0]  ;;  %v5530_v4 = vrot.slane %v5442_v53, 2  ;;  %v5535_v59 = vsel %vm281_vm0, %v5532_v6, %v5534_v1 }
 0x72d   :  { %v7906_v42 = vor.u32 %v8670_v50, %v7903_v40  ;;  %v7826_v5 = vor.u32 %v8637_v54, %v7825_v51  ;;  %v5603_v62 = vmax.f32 %v5443_v33, %v5535_v59  ;;  %v8669_v1 = vld [vmem:[%s14031_s8 + $0xf4] sm:$0xf0]  ;;  %v8115_v50 = vld [vmem:[%s14031_s8 + $0x1d8] sm:$0xf0]  ;;  %v8658_v40 = vld [vmem:[%s14031_s8 + $0xa4] sm:$0xf] }
 0x72e   :  { %v5447_v30 = vmax.f32 %v5154_v12, %v5413_v11  ;;  %v5604_v11 = vmax.f32 %v5444_v26, %v5537_v3  ;;  %v5533_v16 = vsel %vm281_vm0, %v5530_v4, %v5532_v6  ;;  %v5531_v20 = vsel %vm281_vm0, %v5528_v49, %v5530_v4  ;;  %v8673_v49 = vld [vmem:[%s14031_s8 + $0x114] sm:$0xf0]  ;;  %v8668_v6 = vld [vmem:[%s14031_s8 + $0xec] sm:$0xf0]  ;;  %v7855_v4 = vld [vmem:[%s14031_s8 + $0xb0] sm:$0xf0] }
 0x72f   :  { %5866 = vmatpush.bf16.msra.mxu2 %v7906_v42  ;;  %5670 = vmatmul.bf16.gmra.mxu3 %v7826_v5  ;;  %v7998_v26 = vor.u32 %v8651_v2, %v7995_v14  ;;  %v7886_v3 = vor.u32 %v8668_v6, %v7885_v57  ;;  %v8118_v51 = vor.u32 %v8695_v8, %v8115_v50  ;;  %v8675_v59 = vld [vmem:[%s14031_s8 + $0x12c] sm:$0xf]  ;;  %v7927_v42 = vld [vmem:[%s14031_s8 + $0x138] sm:$0xf0]  ;;  %v7877_v5 = vld [vmem:[%s14031_s8 + $0xc8] sm:$0xf] }
 0x730   :  { %v5540_v17 = vrot.slane %v5447_v30, 2  ;;  %v7895_v2 = vld [vmem:[%s14031_s8 + $0xf8] sm:$0xf0]  ;;  %v8683_v57 = vld [vmem:[%s14031_s8 + $0x16c] sm:$0xf] }
 0x731   :  { %v5066_v56 = vpop.f32.mrf.mxu3  ;;  %v8679_v6 = vld [vmem:[%s14031_s8 + $0x14c] sm:$0xf]  ;;  %v7961_v8 = vld [vmem:[%s14031_s8 + $0x28] sm:$0xf]  ;;  %v8645_v50 = vld [vmem:[%s14031_s8 + $0x34] sm:$0xf0] }
 0x732   :  { %v5541_v48 = vsel %vm281_vm0, %v5538_v52, %v5540_v17  ;;  %v7917_v52 = vld [vmem:[%s14031_s8 + $0x120] sm:$0xf] }
 0x733   :  { %v5155_v34 = vpop.f32.mrf.mxu0  ;;  %v5325_v0 = vpop.f32.mrf.mxu1  ;;  %v5606_v27 = vmax.f32 %v5446_v7, %v5541_v48  ;;  %v8672_v48 = vld [vmem:[%s14031_s8 + $0x10c] sm:$0xf0] }
 0x734   :  { %v5156_v13 = vadd.f32 %v5155_v34, %v5066_v56  ;;  %v5415_v36 = vadd.f32 %v5414_v63, %v5325_v0  ;;  %v5602_v63 = vmax.f32 %v5442_v53, %v5533_v16  ;;  %v5601_v56 = vmax.f32 %v13151_v61, %v5531_v20  ;;  %v8634_v61 = vld [vmem:[%s14030_s7 + $0x4] sm:$0xf]  ;;  %v7893_v53 = vld [vmem:[%s14031_s8 + $0xe8] sm:$0xf]  ;;  %v8665_v20 = vld [vmem:[%s14031_s8 + $0xd4] sm:$0xf0] }
 0x735   :  { %v5623_v12 = vpack.c.bf16 %v5606_v27, %v5605_v58  ;;  %v5643_v34 = vunpack.c.l.b16 %v5629_v24  ;;  %v7910_v0 = vor.u32 %v8673_v49, %v7909_v41  ;;  %v7822_v7 = vor.u32 %v8634_v61, %v7819_v45  ;;  %v7947_v27 = vld [vmem:[%s14031_s8 + $0x18] sm:$0xf0]  ;;  %v8662_v58 = vld [vmem:[%s14031_s8 + $0xc4] sm:$0xf]  ;;  %v7853_v41 = vld [vmem:[%s14031_s8 + $0xa0] sm:$0xf] }
 0x736   :  { %v5448_v31 = vmax.f32 %v5156_v13, %v5415_v36  ;;  %v5621_v22 = vpack.c.bf16 %v5602_v63, %v5601_v56  ;;  %v8636_v13 = vld [vmem:[%s14030_s7 + $0x14] sm:$0xf]  ;;  %v7827_v36 = vld [vmem:[%s14030_s7 + $0x18] sm:$0xf0]  ;;  %v7894_v44 = vor.u32 %v8669_v1, %v7893_v53  ;;  %v7874_v54 = vor.u32 %v8662_v58, %v7871_v10  ;;  %v8660_v49 = vld [vmem:[%s14031_s8 + $0xac] sm:$0xf0] }
 0x737   :  { %v5649_v37 = vpack.c.b16 %v5643_v34, %v5643_v34  ;;  %5879 = vmatpush.bf16.msra.mxu1 %v7910_v0  ;;  %v7858_v16 = vor.u32 %v8658_v40, %v7855_v4  ;;  %v8099_v63 = vld [vmem:[%s14031_s8 + $0x1b8] sm:$0xf0]  ;;  %v7930_v56 = vor.u32 %v8675_v59, %v7927_v42  ;;  %v7861_v34 = vld [vmem:[%s14031_s8 + $0xa8] sm:$0xf]  ;;  %v7854_v0 = vor.u32 %v8660_v49, %v7853_v41  ;;  %v8657_v61 = vld [vmem:[%s14031_s8 + $0x94] sm:$0xf0] }
 0x738   :  { %v5542_v21 = vrot.slane %v5448_v31, 2  ;;  %v8661_v45 = vld [vmem:[%s14031_s8 + $0xb4] sm:$0xf0]  ;;  %v7953_v10 = vld [vmem:[%s14031_s8 + $0x20] sm:$0xf]  ;;  %v7962_v4 = vor.u32 %v8645_v50, %v7961_v8 }
 0x739   :  { %v8644_v40 = vld [vmem:[%s14031_s8 + $0x2c] sm:$0xf0]  ;;  %v7945_v59 = vld [vmem:[%s14031_s8 + $0x8] sm:$0xf]  ;;  %v8641_v42 = vld [vmem:[%s14031_s8 + $0x14] sm:$0xf0] }
 0x73a   :  { %v5543_v46 = vsel %vm281_vm0, %v5540_v17, %v5542_v21  ;;  %v5544_v18 = vsel %vm281_vm0, %v5542_v21, %v14315_v55  ;;  %v8011_v17 = vld [vmem:[%s14031_s8 + $0x98] sm:$0xf0]  ;;  %v8676_v21 = vld [vmem:[%s14031_s8 + $0x12c] sm:$0xf0]  ;;  %v8711_v49 = vld [vmem:[%s14031_s8 + $0x24c] sm:$0xf] }
 0x73b   :  { %v5607_v38 = vmax.f32 %v5447_v30, %v5543_v46  ;;  %v5608_v23 = vmax.f32 %v5448_v31, %v5544_v18  ;;  %v5622_v30 = vpack.c.bf16 %v5604_v11, %v5603_v62  ;;  %v8014_v31 = vor.u32 %v8655_v35, %v8011_v17  ;;  %v7979_v46 = vld [vmem:[%s14031_s8 + $0x58] sm:$0xf0]  ;;  %v7901_v18 = vld [vmem:[%s14031_s8 + $0x100] sm:$0xf]  ;;  %5880 = vmatpush.bf16.msra.mxu1 %v7894_v44  ;;  %v8664_v11 = vld [vmem:[%s14031_s8 + $0xcc] sm:$0xf0] }
 0x73c   :  { %v7918_v33 = vor.u32 %v8676_v21, %v7917_v52  ;;  %v7982_v55 = vor.u32 %v8647_v25, %v7979_v46  ;;  %v7879_v52 = vld [vmem:[%s14031_s8 + $0xd8] sm:$0xf0]  ;;  %v7993_v21 = vld [vmem:[%s14031_s8 + $0x68] sm:$0xf]  ;;  %v8735_v50 = vld [vmem:[%s14031_s8 + $0x30c] sm:$0xf] }
 0x73d   :  { %v5624_v19 = vpack.c.bf16 %v5608_v23, %v5607_v38  ;;  %v7902_v38 = vor.u32 %v8672_v48, %v7901_v18  ;;  %v8643_v23 = vld [vmem:[%s14031_s8 + $0x2c] sm:$0xf]  ;;  %v7977_v46 = vld [vmem:[%s14031_s8 + $0x48] sm:$0xf]  ;;  %v7985_v18 = vld [vmem:[%s14031_s8 + $0x60] sm:$0xf] }
 0x73e   :  { %5852 = vmatpush.bf16.msrb.mxu3 %v7918_v33  ;;  %v7966_v60 = vor.u32 %v8643_v23, %v7963_v15  ;;  %v8653_v33 = vld [vmem:[%s14031_s8 + $0x74] sm:$0xf0]  ;;  %v8652_v48 = vld [vmem:[%s14031_s8 + $0x6c] sm:$0xf0]  ;;  %v8067_v44 = vld [vmem:[%s14031_s8 + $0x178] sm:$0xf0] }
 0x73f   :  { %5680 = vmatpush.bf16.msra.mxu0 %v5624_v19  ;;  %5675 = vmatmul.bf16.gmra.mxu3 %v5649_v37  ;;  %v8639_v19 = vld [vmem:[%s14031_s8 + $0xc] sm:$0xf]  ;;  %v8009_v37 = vld [vmem:[%s14031_s8 + $0x88] sm:$0xf]  ;;  %v7994_v25 = vor.u32 %v8653_v33, %v7993_v21  ;;  %v8648_v23 = vld [vmem:[%s14031_s8 + $0x4c] sm:$0xf0]  ;;  %v7986_v1 = vor.u32 %v8652_v48, %v7985_v18 }
 0x740   :  { %v7950_v39 = vor.u32 %v8639_v19, %v7947_v27  ;;  %v8659_v19 = vld [vmem:[%s14031_s8 + $0xac] sm:$0xf]  ;;  %v7863_v27 = vld [vmem:[%s14031_s8 + $0xb8] sm:$0xf0]  ;;  %v8089_v21 = vld [vmem:[%s14031_s8 + $0x1a0] sm:$0xf] }
 0x741   :  { %v8692_v33 = vld [vmem:[%s14031_s8 + $0x1ac] sm:$0xf0]  ;;  %v8171_v18 = vld [vmem:[%s14031_s8 + $0x218] sm:$0xf0] }
 0x742   :  { %5853 = vmatpush.bf16.msrb.mxu3 %v7902_v38  ;;  %v7969_v38 = vld [vmem:[%s14031_s8 + $0x40] sm:$0xf] }
 0x743   :  { %5681 = vmatpush.bf16.msra.mxu0 %v5623_v12  ;;  %v7869_v12 = vld [vmem:[%s14031_s8 + $0xc0] sm:$0xf]  ;;  %v7970_v58 = vor.u32 %v8648_v23, %v7969_v38  ;;  %v8646_v38 = vld [vmem:[%s14031_s8 + $0x44] sm:$0xf]  ;;  %v7971_v23 = vld [vmem:[%s14031_s8 + $0x50] sm:$0xf0] }
 0x744   :  { %v7870_v62 = vor.u32 %v8664_v11, %v7869_v12  ;;  %v7954_v12 = vor.u32 %v8644_v40, %v7953_v10  ;;  %v7937_v11 = vld [vmem:[%s14031_s8] sm:$0xf]  ;;  %v7974_v8 = vor.u32 %v8646_v38, %v7971_v23  ;;  %v8642_v10 = vld [vmem:[%s14031_s8 + $0x24] sm:$0xf]  ;;  %v7955_v40 = vld [vmem:[%s14031_s8 + $0x30] sm:$0xf0] }
 0x745   :  { %v8291_v38 = vld [vmem:[%s14031_s8 + $0x2d8] sm:$0xf0]  ;;  %v8686_v23 = vld [vmem:[%s14031_s8 + $0x184] sm:$0xf] }
 0x746   :  { %5854 = vmatpush.bf16.msrb.mxu3 %v7886_v3  ;;  %v8070_v3 = vor.u32 %v8683_v57, %v8067_v44  ;;  %v8689_v57 = vld [vmem:[%s14031_s8 + $0x194] sm:$0xf0]  ;;  %v8073_v44 = vld [vmem:[%s14031_s8 + $0x180] sm:$0xf] }
 0x747   :  { %5682 = vmatpush.bf16.msra.mxu0 %v5622_v30  ;;  %v8691_v30 = vld [vmem:[%s14031_s8 + $0x1ac] sm:$0xf] }
 0x748   :  { %v8102_v24 = vor.u32 %v8691_v30, %v8099_v63  ;;  %v8715_v30 = vld [vmem:[%s14031_s8 + $0x26c] sm:$0xf]  ;;  %v8219_v63 = vld [vmem:[%s14031_s8 + $0x278] sm:$0xf0] }
 0x74a   :  { %5855 = vmatpush.bf16.msrb.mxu3 %v7870_v62 }
 0x74b   :  { %5683 = vmatpush.bf16.msra.mxu0 %v5621_v22  ;;  %v7878_v22 = vor.u32 %v8665_v20, %v7877_v5  ;;  %v8640_v5 = vld [vmem:[%s14031_s8 + $0xc] sm:$0xf0] }
 0x74c   :  { %v7938_v20 = vor.u32 %v8640_v5, %v7937_v11  ;;  %v8684_v11 = vld [vmem:[%s14031_s8 + $0x16c] sm:$0xf0] }
 0x74d   :  { %5881 = vmatpush.bf16.msra.mxu1 %v7878_v22 }
 0x74e   :  { %5856 = vmatpush.bf16.msrb.mxu3 %v7854_v0 }
 0x74f   :  { %5684 = vmatpush.bf16.msra.mxu0 %v13157_v28  ;;  %v8666_v28 = vld [vmem:[%s14031_s8 + $0xe4] sm:$0xf] }
 0x753   :  { %5685 = vmatpush.bf16.msra.mxu0 %v13148_v43 }
 0x757   :  { %5686 = vmatpush.bf16.msra.mxu0 %v13144_v47  ;;  %v7887_v47 = vld [vmem:[%s14031_s8 + $0xf0] sm:$0xf0] }
 0x758   :  { %v7890_v43 = vor.u32 %v8666_v28, %v7887_v47  ;;  %v7862_v28 = vor.u32 %v8661_v45, %v7861_v34  ;;  %v8001_v47 = vld [vmem:[%s14031_s8 + $0x80] sm:$0xf]  ;;  %v8203_v34 = vld [vmem:[%s14031_s8 + $0x258] sm:$0xf0]  ;;  %v8003_v45 = vld [vmem:[%s14031_s8 + $0x90] sm:$0xf0] }
 0x75a   :  { %5867 = vmatpush.bf16.msra.mxu2 %v7890_v43  ;;  %v8656_v43 = vld [vmem:[%s14031_s8 + $0x8c] sm:$0xf0]  ;;  %5882 = vmatpush.bf16.msra.mxu1 %v7862_v28 }
 0x75b   :  { %5687 = vmatpush.bf16.msra.mxu0 %v13136_v29  ;;  %v7830_v29 = vor.u32 %v8636_v13, %v7827_v36  ;;  %v8687_v13 = vld [vmem:[%s14031_s8 + $0x18c] sm:$0xf]  ;;  %v8002_v32 = vor.u32 %v8656_v43, %v8001_v47  ;;  %v8697_v47 = vld [vmem:[%s14031_s8 + $0x1d4] sm:$0xf0]  ;;  %v8105_v43 = vld [vmem:[%s14031_s8 + $0x1c0] sm:$0xf] }
 0x75c   :  { %v8671_v36 = vld [vmem:[%s14031_s8 + $0x10c] sm:$0xf] }
 0x75e   :  { %5688 = vmatmul.bf16.vlgmr.msra.gmra.mxu0 %v7822_v7  ;;  %5868 = vmatpush.bf16.msra.mxu2 %v7874_v54  ;;  %v8010_v7 = vor.u32 %v8657_v61, %v8009_v37  ;;  %v7866_v54 = vor.u32 %v8659_v19, %v7863_v27  ;;  %v8206_v37 = vor.u32 %v8711_v49, %v8203_v34  ;;  %v8654_v61 = vld [vmem:[%s14031_s8 + $0x84] sm:$0xf]  ;;  %v8049_v34 = vld [vmem:[%s14031_s8 + $0x148] sm:$0xf] }
 0x75f   :  { %6046 = vmatpush.bf16.msrb.mxu0 %v8014_v31  ;;  %v8667_v31 = vld [vmem:[%s14031_s8 + $0xec] sm:$0xf]  ;;  %6007 = vmatpush.bf16.msrb.mxu1 %v8002_v32  ;;  %v8187_v32 = vld [vmem:[%s14031_s8 + $0x238] sm:$0xf0] }
 0x760   :  { %6033 = vmatpush.bf16.msra.mxu3 %v8010_v7  ;;  %v7898_v14 = vor.u32 %v8667_v31, %v7895_v2  ;;  %v8113_v7 = vld [vmem:[%s14031_s8 + $0x1c8] sm:$0xf]  ;;  %v7987_v31 = vld [vmem:[%s14031_s8 + $0x70] sm:$0xf0] }
 0x761   :  { %v8114_v2 = vor.u32 %v8697_v47, %v8113_v7  ;;  %v8217_v7 = vld [vmem:[%s14031_s8 + $0x268] sm:$0xf]  ;;  %v8680_v47 = vld [vmem:[%s14031_s8 + $0x14c] sm:$0xf0] }
 0x762   :  { %5869 = vmatpush.bf16.msra.mxu2 %v7858_v16  ;;  %v7946_v16 = vor.u32 %v8641_v42, %v7945_v59  ;;  %v8685_v42 = vld [vmem:[%s14031_s8 + $0x174] sm:$0xf0] }
 0x763   :  { %6047 = vmatpush.bf16.msrb.mxu0 %v7998_v26  ;;  %v8663_v26 = vld [vmem:[%s14031_s8 + $0xcc] sm:$0xf]  ;;  %6008 = vmatpush.bf16.msrb.mxu1 %v7986_v1 }
 0x764   :  { %6034 = vmatpush.bf16.msra.mxu3 %v7994_v25 }
 0x766   :  { %5891 = vmatpush.bf16.msrb.mxu2 %v7930_v56 }
 0x767   :  { %6048 = vmatpush.bf16.msrb.mxu0 %v7982_v55  ;;  %v8649_v55 = vld [vmem:[%s14031_s8 + $0x54] sm:$0xf0]  ;;  %6009 = vmatpush.bf16.msrb.mxu1 %v7970_v58  ;;  %v8323_v58 = vld [vmem:[%s14031_s8 + $0x318] sm:$0xf0] }
 0x768   :  { %v7978_v53 = vor.u32 %v8649_v55, %v7977_v46  ;;  %v8703_v55 = vld [vmem:[%s14031_s8 + $0x20c] sm:$0xf] }
 0x769   :  { %v8174_v19 = vor.u32 %v8703_v55, %v8171_v18 }
 0x76a   :  { %6035 = vmatpush.bf16.msra.mxu3 %v7978_v53  ;;  %v8090_v53 = vor.u32 %v8692_v33, %v8089_v21  ;;  %v8713_v21 = vld [vmem:[%s14031_s8 + $0x254] sm:$0xf0] }
 0x76b   :  { %6049 = vmatpush.bf16.msrb.mxu0 %v7966_v60  ;;  %v7882_v60 = vor.u32 %v8663_v26, %v7879_v52  ;;  %6010 = vmatpush.bf16.msrb.mxu1 %v7954_v12  ;;  %v8693_v52 = vld [vmem:[%s14031_s8 + $0x1b4] sm:$0xf0]  ;;  %v8057_v12 = vld [vmem:[%s14031_s8 + $0x160] sm:$0xf] }
 0x76c   :  { %v8058_v49 = vor.u32 %v8684_v11, %v8057_v12 }
 0x76e   :  { %5693 = vmatmul.bf16.gmra.mxu0 %v7830_v29  ;;  %v7911_v29 = vld [vmem:[%s14031_s8 + $0x118] sm:$0xf0]  ;;  %6036 = vmatpush.bf16.msra.mxu3 %v7962_v4  ;;  %v8065_v4 = vld [vmem:[%s14031_s8 + $0x168] sm:$0xf] }
 0x76f   :  { %6050 = vmatpush.bf16.msrb.mxu0 %v7950_v39  ;;  %v7914_v35 = vor.u32 %v8671_v36, %v7911_v29  ;;  %v8051_v39 = vld [vmem:[%s14031_s8 + $0x158] sm:$0xf0]  ;;  %6011 = vmatpush.bf16.msrb.mxu1 %v7938_v20  ;;  %v8707_v29 = vld [vmem:[%s14031_s8 + $0x22c] sm:$0xf]  ;;  %v7958_v20 = vor.u32 %v8642_v10, %v7955_v40  ;;  %v8059_v10 = vld [vmem:[%s14031_s8 + $0x170] sm:$0xf0] }
 0x770   :  { %v8190_v25 = vor.u32 %v8707_v29, %v8187_v32  ;;  %v8307_v29 = vld [vmem:[%s14031_s8 + $0x2f8] sm:$0xf0] }
 0x771   :  { %5892 = vmatpush.bf16.msrb.mxu2 %v7914_v35 }
 0x772   :  { %6037 = vmatpush.bf16.msra.mxu3 %v7946_v16 }
 0x773   :  { %6223 = vmatpush.bf16.msra.mxu0 %v8118_v51  ;;  %v8054_v51 = vor.u32 %v8679_v6, %v8051_v39  ;;  %v8688_v6 = vld [vmem:[%s14031_s8 + $0x18c] sm:$0xf0]  ;;  %v8155_v39 = vld [vmem:[%s14031_s8 + $0x1f8] sm:$0xf0] }
 0x774   :  { %v8074_v59 = vor.u32 %v8688_v6, %v8073_v44  ;;  %v8709_v44 = vld [vmem:[%s14031_s8 + $0x234] sm:$0xf0] }
 0x775   :  { %5893 = vmatpush.bf16.msrb.mxu2 %v7898_v14  ;;  %v8097_v14 = vld [vmem:[%s14031_s8 + $0x1a8] sm:$0xf] }
 0x777   :  { %6224 = vmatpush.bf16.msra.mxu0 %v8102_v24  ;;  %v8222_v24 = vor.u32 %v8715_v30, %v8219_v63  ;;  %v8638_v30 = vld [vmem:[%s14031_s8 + $0x4] sm:$0xf]  ;;  %v7939_v63 = vld [vmem:[%s14031_s8 + $0x10] sm:$0xf0] }
 0x779   :  { %v5666_v15 = vpop.f32.mrf.mxu3  ;;  %5894 = vmatpush.bf16.msrb.mxu2 %v7882_v60  ;;  %v8081_v60 = vld [vmem:[%s14031_s8 + $0x188] sm:$0xf] }
 0x77d   :  { %5895 = vmatpush.bf16.msrb.mxu2 %v7866_v54  ;;  %v8082_v54 = vor.u32 %v8689_v57, %v8081_v60  ;;  %v8185_v57 = vld [vmem:[%s14031_s8 + $0x228] sm:$0xf] }
 0x77e   :  { %5698 = vmatmul.bf16.gmra.mxu0 %v5650_v9  ;;  %v8083_v9 = vld [vmem:[%s14031_s8 + $0x198] sm:$0xf0]  ;;  %v8186_v40 = vor.u32 %v8709_v44, %v8185_v57  ;;  %v8281_v57 = vld [vmem:[%s14031_s8 + $0x2c0] sm:$0xf]  ;;  %v8728_v44 = vld [vmem:[%s14031_s8 + $0x2cc] sm:$0xf0] }
 0x77f   :  { %v8086_v17 = vor.u32 %v8687_v13, %v8083_v9  ;;  %v8696_v13 = vld [vmem:[%s14031_s8 + $0x1cc] sm:$0xf0]  ;;  %v8006_v9 = vor.u32 %v8654_v61, %v8003_v45  ;;  %v8041_v61 = vld [vmem:[%s14031_s8 + $0x140] sm:$0xf]  ;;  %v8731_v45 = vld [vmem:[%s14031_s8 + $0x2ec] sm:$0xf] }
 0x780   :  { %v8106_v26 = vor.u32 %v8696_v13, %v8105_v43  ;;  %v7942_v43 = vor.u32 %v8638_v30, %v7939_v63  ;;  %v8209_v13 = vld [vmem:[%s14031_s8 + $0x260] sm:$0xf]  ;;  %v8714_v30 = vld [vmem:[%s14031_s8 + $0x264] sm:$0xf] }
 0x781   :  { %6225 = vmatpush.bf16.msra.mxu0 %v8086_v17  ;;  %v5668_v62 = vpop.f32.mrf.mxu3  ;;  %v8650_v17 = vld [vmem:[%s14031_s8 + $0x64] sm:$0xf] }
 0x782   :  { %v7990_v48 = vor.u32 %v8650_v17, %v7987_v31  ;;  %v8690_v17 = vld [vmem:[%s14031_s8 + $0x1a4] sm:$0xf]  ;;  %v8091_v31 = vld [vmem:[%s14031_s8 + $0x1b0] sm:$0xf0] }
 0x783   :  { %v8094_v18 = vor.u32 %v8690_v17, %v8091_v31  ;;  %v8313_v31 = vld [vmem:[%s14031_s8 + $0x300] sm:$0xf] }
 0x785   :  { %6226 = vmatpush.bf16.msra.mxu0 %v8070_v3  ;;  %v8699_v3 = vld [vmem:[%s14031_s8 + $0x1ec] sm:$0xf] }
 0x786   :  { %v8158_v5 = vor.u32 %v8699_v3, %v8155_v39 }
 0x789   :  { %6227 = vmatpush.bf16.msra.mxu0 %v8054_v51 }
 0x7b2   :  { %v5671_v0 = vpop.f32.mrf.mxu3 }
 0x7ba   :  { %v13506_v46 = vpop.f32.mrf.mxu3 }
 0x7c2   :  { %v13568_v16 = vpop.f32.mrf.mxu3 }
 0x7ca   :  { %v5678_v55 = vpop.f32.mrf.mxu3 }
 0x7db   :  { %v5689_v56 = vpop.f32.mrf.mxu0 }
 0x7dc   :  { %v5690_v22 = vadd.f32 %v5689_v56, %v5666_v15  ;;  %v8098_v15 = vor.u32 %v8693_v52, %v8097_v14  ;;  %v8694_v56 = vld [vmem:[%s14031_s8 + $0x1c4] sm:$0xf]  ;;  %v8042_v14 = vor.u32 %v8680_v47, %v8041_v61  ;;  %v8201_v52 = vld [vmem:[%s14031_s8 + $0x248] sm:$0xf]  ;;  %v8737_v61 = vld [vmem:[%s14031_s8 + $0x314] sm:$0xf0] }
 0x7dd   :  { %v8202_v60 = vor.u32 %v8713_v21, %v8201_v52  ;;  %v8706_v52 = vld [vmem:[%s14031_s8 + $0x224] sm:$0xf] }
 0x7de   :  { %v13448_v41 = vpack.c.bf16 %v5690_v22, %v5690_v22  ;;  %v8107_v22 = vld [vmem:[%s14031_s8 + $0x1d0] sm:$0xf0] }
 0x7df   :  { %v8110_v32 = vor.u32 %v8694_v56, %v8107_v22  ;;  %v8161_v56 = vld [vmem:[%s14031_s8 + $0x200] sm:$0xf]  ;;  %v8704_v22 = vld [vmem:[%s14031_s8 + $0x20c] sm:$0xf0] }
 0x7e0   :  { %8018 = vmatmul.msk.bf16.vlgmr.msrb.gmra.mxu0 %vm3568_vm12, %v13448_v41 }
 0x7e1   :  { %6404 = vmatpush.bf16.msrb.mxu0 %v8222_v24  ;;  %v8066_v24 = vor.u32 %v8685_v42, %v8065_v4  ;;  %v8705_v4 = vld [vmem:[%s14031_s8 + $0x214] sm:$0xf0]  ;;  %v8678_v42 = vld [vmem:[%s14031_s8 + $0x144] sm:$0xf] }
 0x7e3   :  { %v5691_v28 = vpop.f32.mrf.mxu0 }
 0x7e4   :  { %v5692_v36 = vadd.f32 %v5691_v28, %v5668_v62  ;;  %v8326_v62 = vor.u32 %v8735_v50, %v8323_v58  ;;  %v8717_v28 = vld [vmem:[%s14031_s8 + $0x274] sm:$0xf0]  ;;  %v8275_v50 = vld [vmem:[%s14031_s8 + $0x2b8] sm:$0xf0]  ;;  %v8682_v58 = vld [vmem:[%s14031_s8 + $0x164] sm:$0xf] }
 0x7e5   :  { %6405 = vmatpush.bf16.msrb.mxu0 %v8206_v37  ;;  %v8062_v11 = vor.u32 %v8682_v58, %v8059_v10  ;;  %v8724_v58 = vld [vmem:[%s14031_s8 + $0x2ac] sm:$0xf0]  ;;  %v8734_v10 = vld [vmem:[%s14031_s8 + $0x304] sm:$0xf] }
 0x7e6   :  { %v13482_v35 = vpack.c.bf16 %v5692_v36, %v5692_v36  ;;  %v8716_v36 = vld [vmem:[%s14031_s8 + $0x26c] sm:$0xf0] }
 0x7e7   :  { %v8210_v33 = vor.u32 %v8716_v36, %v8209_v13  ;;  %v8145_v36 = vld [vmem:[%s14031_s8 + $0x1e0] sm:$0xf] }
 0x7e8   :  { %7932 = vmatmul.msk.bf16.vlgmr.msra.gmra.mxu2 %vm3568_vm12, %v13482_v35  ;;  %7931 = vmatmul.msk.bf16.vlgmr.msrb.gmra.mxu3 %vm3568_vm12, %v13482_v35 }
 0x7e9   :  { %6020 = vmatpush.bf16.msra.mxu2 %v8006_v9  ;;  %7933 = vmatmul.msk.bf16.vlgmr.msra.gmra.mxu1 %vm3568_vm12, %v13482_v35 }
 0x7ea   :  { %6210 = vmatpush.bf16.msrb.mxu3 %v8114_v2  ;;  %6184 = vmatpush.bf16.msra.mxu1 %v8106_v26  ;;  %v8218_v2 = vor.u32 %v8717_v28, %v8217_v7  ;;  %v8162_v28 = vor.u32 %v8704_v22, %v8161_v56  ;;  %v8726_v22 = vld [vmem:[%s14031_s8 + $0x2c4] sm:$0xf] }
 0x7eb   :  { %v5694_v1 = vpop.f32.mrf.mxu0  ;;  %6406 = vmatpush.bf16.msrb.mxu0 %v8190_v25  ;;  %v8310_v25 = vor.u32 %v8731_v45, %v8307_v29  ;;  %v8700_v29 = vld [vmem:[%s14031_s8 + $0x1ec] sm:$0xf0] }
 0x7ec   :  { %v5695_v27 = vadd.f32 %v5694_v1, %v5671_v0  ;;  %v8681_v0 = vld [vmem:[%s14031_s8 + $0x154] sm:$0xf0] }
 0x7ed   :  { %6021 = vmatpush.bf16.msra.mxu2 %v7990_v48  ;;  %v8050_v9 = vor.u32 %v8681_v0, %v8049_v34  ;;  %v8727_v48 = vld [vmem:[%s14031_s8 + $0x2cc] sm:$0xf]  ;;  %v8153_v34 = vld [vmem:[%s14031_s8 + $0x1e8] sm:$0xf]  ;;  %v8701_v0 = vld [vmem:[%s14031_s8 + $0x1f4] sm:$0xf0] }
 0x7ee   :  { %v13552_v51 = vpack.c.bf16 %v5695_v27, %v5695_v27  ;;  %6211 = vmatpush.bf16.msrb.mxu3 %v8098_v15  ;;  %6185 = vmatpush.bf16.msra.mxu1 %v8090_v53  ;;  %v8075_v15 = vld [vmem:[%s14031_s8 + $0x190] sm:$0xf0]  ;;  %v8708_v27 = vld [vmem:[%s14031_s8 + $0x22c] sm:$0xf0]  ;;  %v8294_v3 = vor.u32 %v8727_v48, %v8291_v38  ;;  %v8154_v13 = vor.u32 %v8701_v0, %v8153_v34  ;;  %v8729_v48 = vld [vmem:[%s14031_s8 + $0x2d4] sm:$0xf0] }
 0x7ef   :  { %6407 = vmatpush.bf16.msrb.mxu0 %v8174_v19  ;;  %v8177_v19 = vld [vmem:[%s14031_s8 + $0x220] sm:$0xf]  ;;  %v8078_v39 = vor.u32 %v8686_v23, %v8075_v15  ;;  %v8702_v23 = vld [vmem:[%s14031_s8 + $0x204] sm:$0xf]  ;;  %v8267_v0 = vld [vmem:[%s14031_s8 + $0x2b0] sm:$0xf0] }
 0x7f0   :  { %8122 = vmatmul.msk.bf16.vlgmr.msra.gmra.mxu0 %vm3568_vm12, %v13552_v51  ;;  %v8722_v34 = vld [vmem:[%s14031_s8 + $0x2a4] sm:$0xf] }
 0x7f1   :  { %6022 = vmatpush.bf16.msra.mxu2 %v7974_v8  ;;  %v8723_v8 = vld [vmem:[%s14031_s8 + $0x2ac] sm:$0xf] }
 0x7f2   :  { %6212 = vmatpush.bf16.msrb.mxu3 %v8082_v54  ;;  %6186 = vmatpush.bf16.msra.mxu1 %v8074_v59  ;;  %v8169_v54 = vld [vmem:[%s14031_s8 + $0x208] sm:$0xf]  ;;  %v8178_v59 = vor.u32 %v8708_v27, %v8177_v19  ;;  %v8278_v12 = vor.u32 %v8723_v8, %v8275_v50  ;;  %v8725_v19 = vld [vmem:[%s14031_s8 + $0x2b4] sm:$0xf0]  ;;  %v8147_v8 = vld [vmem:[%s14031_s8 + $0x1f0] sm:$0xf0] }
 0x7f3   :  { %v5696_v37 = vpop.f32.mrf.mxu0  ;;  %6408 = vmatpush.bf16.msrb.mxu0 %v8158_v5  ;;  %v8043_v5 = vld [vmem:[%s14031_s8 + $0x150] sm:$0xf0]  ;;  %v8170_v63 = vor.u32 %v8705_v4, %v8169_v54  ;;  %v8265_v50 = vld [vmem:[%s14031_s8 + $0x2a0] sm:$0xf]  ;;  %v8257_v4 = vld [vmem:[%s14031_s8 + $0x288] sm:$0xf] }
 0x7f4   :  { %v5697_v26 = vadd.f32 %v5696_v37, %v13506_v46  ;;  %v8712_v46 = vld [vmem:[%s14031_s8 + $0x24c] sm:$0xf0]  ;;  %v8321_v37 = vld [vmem:[%s14031_s8 + $0x308] sm:$0xf]  ;;  %v8046_v7 = vor.u32 %v8678_v42, %v8043_v5  ;;  %v8249_v5 = vld [vmem:[%s14031_s8 + $0x280] sm:$0xf] }
 0x7f5   :  { %6023 = vmatpush.bf16.msra.mxu2 %v7958_v20  ;;  %v8259_v20 = vld [vmem:[%s14031_s8 + $0x298] sm:$0xf0]  ;;  %v8322_v17 = vor.u32 %v8737_v61, %v8321_v37  ;;  %v8270_v37 = vor.u32 %v8722_v34, %v8267_v0  ;;  %v8718_v61 = vld [vmem:[%s14031_s8 + $0x284] sm:$0xf] }
 0x7f6   :  { %6213 = vmatpush.bf16.msrb.mxu3 %v8066_v24  ;;  %6187 = vmatpush.bf16.msra.mxu1 %v8058_v49  ;;  %v13649_v1 = vpack.c.bf16 %v5697_v26, %v5697_v26  ;;  %v8211_v49 = vld [vmem:[%s14031_s8 + $0x270] sm:$0xf0]  ;;  %v8762_v34 = vld [vmem:[%s14032_s9 + $0xc0] sm:$0xff] }
 0x7f7   :  { %6585 = vmatpush.bf16.msra.mxu0 %v8326_v62  ;;  %v8719_v62 = vld [vmem:[%s14031_s8 + $0x28c] sm:$0xf]  ;;  %v8214_v47 = vor.u32 %v8714_v30, %v8211_v49 }
 0x7f8   :  { %7934 = vmatmul.msk.bf16.vlgmr.msrb.gmra.mxu2 %vm3568_vm12, %v13482_v35  ;;  %8017 = vmatmul.msk.bf16.vlgmr.msra.gmra.mxu3 %vm3568_vm12, %v13448_v41  ;;  %v8193_v35 = vld [vmem:[%s14031_s8 + $0x240] sm:$0xf]  ;;  %v8262_v45 = vor.u32 %v8719_v62, %v8259_v20  ;;  %v8720_v62 = vld [vmem:[%s14031_s8 + $0x28c] sm:$0xf0]  ;;  %v8730_v20 = vld [vmem:[%s14031_s8 + $0x2e4] sm:$0xf] }
 0x7f9   :  { %6024 = vmatpush.bf16.msra.mxu2 %v7942_v43  ;;  %8015 = vmatmul.msk.bf16.vlgmr.msrb.gmra.mxu1 %vm3568_vm12, %v13448_v41  ;;  %v8194_v6 = vor.u32 %v8712_v46, %v8193_v35  ;;  %v8710_v43 = vld [vmem:[%s14031_s8 + $0x244] sm:$0xf]  ;;  %v8297_v35 = vld [vmem:[%s14031_s8 + $0x2e0] sm:$0xf]  ;;  %v8732_v46 = vld [vmem:[%s14031_s8 + $0x2ec] sm:$0xf0] }
 0x7fa   :  { %6214 = vmatpush.bf16.msrb.mxu3 %v8050_v9  ;;  %6188 = vmatpush.bf16.msra.mxu1 %v8042_v14  ;;  %v8146_v14 = vor.u32 %v8700_v29, %v8145_v36  ;;  %v8298_v15 = vor.u32 %v8732_v46, %v8297_v35 }
 0x7fb   :  { %v5699_v53 = vpop.f32.mrf.mxu0  ;;  %6586 = vmatpush.bf16.msra.mxu0 %v8310_v25 }
 0x7fc   :  { %v5700_v9 = vadd.f32 %v5699_v53, %v13568_v16  ;;  %v8733_v16 = vld [vmem:[%s14031_s8 + $0x2f4] sm:$0xf0] }
 0x7fd   :  { %6197 = vmatpush.bf16.msrb.mxu2 %v8110_v32  ;;  %v8195_v32 = vld [vmem:[%s14031_s8 + $0x250] sm:$0xf0] }
 0x7fe   :  { %6391 = vmatpush.bf16.msra.mxu3 %v8218_v2  ;;  %6365 = vmatpush.bf16.msrb.mxu1 %v8210_v33  ;;  %v8736_v2 = vld [vmem:[%s14031_s8 + $0x30c] sm:$0xf0]  ;;  %v8198_v26 = vor.u32 %v8710_v43, %v8195_v32  ;;  %v8179_v33 = vld [vmem:[%s14031_s8 + $0x230] sm:$0xf0]  ;;  %v13756_v25 = vpack.c.bf16 %v5700_v9, %v5700_v9  ;;  %v8745_v32 = vld [vmem:[%s14032_s9 + $0x38] sm:$0xff] }
 0x7ff   :  { %6587 = vmatpush.bf16.msra.mxu0 %v8294_v3  ;;  %v8314_v21 = vor.u32 %v8736_v2, %v8313_v31  ;;  %v8182_v38 = vor.u32 %v8706_v52, %v8179_v33  ;;  %v8698_v3 = vld [vmem:[%s14031_s8 + $0x1e4] sm:$0xf]  ;;  %v8744_v9 = vld [vmem:[%s14032_s9 + $0x30] sm:$0xff]  ;;  %v8761_v2 = vld [vmem:[%s14032_s9 + $0xb8] sm:$0xff] }
 0x800   :  { %8226 = vmatmul.msk.bf16.vlgmr.msrb.gmra.mxu0 %vm3568_vm12, %v13649_v1  ;;  %v8150_v42 = vor.u32 %v8698_v3, %v8147_v8  ;;  %v8742_v52 = vld [vmem:[%s14032_s9 + $0x20] sm:$0xff] }
 0x801   :  { %6198 = vmatpush.bf16.msrb.mxu2 %v8094_v18  ;;  %v8289_v18 = vld [vmem:[%s14031_s8 + $0x2c8] sm:$0xf]  ;;  %v8738_v8 = vld [vmem:[%s14032_s9] sm:$0xff] }
 0x802   :  { %6392 = vmatpush.bf16.msra.mxu3 %v8202_v60  ;;  %6366 = vmatpush.bf16.msrb.mxu1 %v8194_v6  ;;  %v8163_v60 = vld [vmem:[%s14031_s8 + $0x210] sm:$0xf0]  ;;  %v8290_v53 = vor.u32 %v8729_v48, %v8289_v18  ;;  %v8273_v6 = vld [vmem:[%s14031_s8 + $0x2a8] sm:$0xf]  ;;  %v8741_v18 = vld [vmem:[%s14032_s9 + $0x18] sm:$0xff] }
 0x803   :  { %v5701_v24 = vpop.f32.mrf.mxu0  ;;  %6588 = vmatpush.bf16.msra.mxu0 %v8278_v12  ;;  %v8166_v27 = vor.u32 %v8702_v23, %v8163_v60  ;;  %v8274_v54 = vor.u32 %v8725_v19, %v8273_v6  ;;  %v8266_v12 = vor.u32 %v8724_v58, %v8265_v50  ;;  %v8758_v48 = vld [vmem:[%s14032_s9 + $0xa0] sm:$0xff]  ;;  %v8752_v60 = vld [vmem:[%s14032_s9 + $0x70] sm:$0xff] }
 0x804   :  { %v8283_v24 = vld [vmem:[%s14031_s8 + $0x2d0] sm:$0xf0] }
 0x805   :  { %6199 = vmatpush.bf16.msrb.mxu2 %v8078_v39  ;;  %v8282_v39 = vor.u32 %v8728_v44, %v8281_v57  ;;  %v8286_v49 = vor.u32 %v8726_v22, %v8283_v24  ;;  %v8757_v57 = vld [vmem:[%s14032_s9 + $0x98] sm:$0xff]  ;;  %v8751_v44 = vld [vmem:[%s14032_s9 + $0x68] sm:$0xff]  ;;  %v8746_v24 = vld [vmem:[%s14032_s9 + $0x40] sm:$0xff] }
 0x806   :  { %6393 = vmatpush.bf16.msra.mxu3 %v8186_v40  ;;  %6367 = vmatpush.bf16.msrb.mxu1 %v8178_v59  ;;  %v8315_v40 = vld [vmem:[%s14031_s8 + $0x310] sm:$0xf0]  ;;  %v8721_v59 = vld [vmem:[%s14031_s8 + $0x294] sm:$0xf0] }
 0x807   :  { %6589 = vmatpush.bf16.msra.mxu0 %v8262_v45  ;;  %v8258_v30 = vor.u32 %v8721_v59, %v8257_v4  ;;  %v8251_v45 = vld [vmem:[%s14031_s8 + $0x290] sm:$0xf0]  ;;  %v8749_v59 = vld [vmem:[%s14032_s9 + $0x58] sm:$0xff] }
 0x808   :  { %8016 = vmatmul.msk.bf16.vlgmr.msra.gmra.mxu2 %vm3568_vm12, %v13448_v41  ;;  %8121 = vmatmul.msk.bf16.vlgmr.msrb.gmra.mxu3 %vm3568_vm12, %v13552_v51  ;;  %v8305_v41 = vld [vmem:[%s14031_s8 + $0x2e8] sm:$0xf] }
 0x809   :  { %6200 = vmatpush.bf16.msrb.mxu2 %v8062_v11  ;;  %8119 = vmatmul.msk.bf16.vlgmr.msra.gmra.mxu1 %vm3568_vm12, %v13552_v51  ;;  %v8306_v55 = vor.u32 %v8733_v16, %v8305_v41  ;;  %v8318_v11 = vor.u32 %v8734_v10, %v8315_v40  ;;  %v8750_v10 = vld [vmem:[%s14032_s9 + $0x60] sm:$0xff] }
 0x80a   :  { %6394 = vmatpush.bf16.msra.mxu3 %v8170_v63  ;;  %6368 = vmatpush.bf16.msrb.mxu1 %v8162_v28  ;;  %v8250_v63 = vor.u32 %v8720_v62, %v8249_v5 }
 0x80d   :  { %6201 = vmatpush.bf16.msrb.mxu2 %v8046_v7  ;;  %v8254_v7 = vor.u32 %v8718_v61, %v8251_v45 }
 0x80e   :  { %6395 = vmatpush.bf16.msra.mxu3 %v8154_v13  ;;  %6369 = vmatpush.bf16.msrb.mxu1 %v8146_v14  ;;  %v8743_v14 = vld [vmem:[%s14032_s9 + $0x28] sm:$0xff] }
 0x810   :  { %8330 = vmatmul.msk.bf16.vlgmr.msra.gmra.mxu0 %vm3568_vm12, %v13756_v25 }
 0x811   :  { %6378 = vmatpush.bf16.msra.mxu2 %v8214_v47 }
 0x812   :  { %6572 = vmatpush.bf16.msrb.mxu3 %v8322_v17  ;;  %6546 = vmatpush.bf16.msra.mxu1 %v8314_v21 }
 0x815   :  { %6379 = vmatpush.bf16.msra.mxu2 %v8198_v26  ;;  %v8760_v26 = vld [vmem:[%s14032_s9 + $0xb0] sm:$0xff] }
 0x816   :  { %6573 = vmatpush.bf16.msrb.mxu3 %v8306_v55  ;;  %6547 = vmatpush.bf16.msra.mxu1 %v8298_v15  ;;  %v8759_v55 = vld [vmem:[%s14032_s9 + $0xa8] sm:$0xff] }
 0x818   :  { %8120 = vmatmul.msk.bf16.vlgmr.msrb.gmra.mxu2 %vm3568_vm12, %v13552_v51  ;;  %8225 = vmatmul.msk.bf16.vlgmr.msra.gmra.mxu3 %vm3568_vm12, %v13649_v1  ;;  %v8299_v51 = vld [vmem:[%s14031_s8 + $0x2f0] sm:$0xf0] }
 0x819   :  { %6380 = vmatpush.bf16.msra.mxu2 %v8182_v38  ;;  %8223 = vmatmul.msk.bf16.vlgmr.msrb.gmra.mxu1 %vm3568_vm12, %v13649_v1  ;;  %v8302_v56 = vor.u32 %v8730_v20, %v8299_v51  ;;  %v8740_v38 = vld [vmem:[%s14032_s9 + $0x10] sm:$0xff] }
 0x81a   :  { %6574 = vmatpush.bf16.msrb.mxu3 %v8290_v53  ;;  %6548 = vmatpush.bf16.msra.mxu1 %v8282_v39  ;;  %v8756_v39 = vld [vmem:[%s14032_s9 + $0x90] sm:$0xff] }
 0x81b   :  { %v8748_v20 = vld [vmem:[%s14032_s9 + $0x50] sm:$0xff] }
 0x81d   :  { %6381 = vmatpush.bf16.msra.mxu2 %v8166_v27  ;;  %v8739_v27 = vld [vmem:[%s14032_s9 + $0x8] sm:$0xff] }
 0x81e   :  { %6575 = vmatpush.bf16.msrb.mxu3 %v8274_v54  ;;  %6549 = vmatpush.bf16.msra.mxu1 %v8266_v12  ;;  %v8755_v54 = vld [vmem:[%s14032_s9 + $0x88] sm:$0xff] }
 0x821   :  { %6382 = vmatpush.bf16.msra.mxu2 %v8150_v42 }
 0x822   :  { %6576 = vmatpush.bf16.msrb.mxu3 %v8258_v30  ;;  %6550 = vmatpush.bf16.msra.mxu1 %v8250_v63  ;;  %v8747_v30 = vld [vmem:[%s14032_s9 + $0x48] sm:$0xff] }
 0x825   :  { %6559 = vmatpush.bf16.msrb.mxu2 %v8318_v11  ;;  %v8754_v11 = vld [vmem:[%s14032_s9 + $0x80] sm:$0xff] }
 0x826   :  { %6811 = vmatpush.bf16.msrb.mxu1 %v8745_v32  ;;  %6837 = vmatpush.bf16.msra.mxu3 %v8761_v2 }
 0x828   :  { %8224 = vmatmul.msk.bf16.vlgmr.msra.gmra.mxu2 %vm3568_vm12, %v13649_v1  ;;  %8329 = vmatmul.msk.bf16.vlgmr.msrb.gmra.mxu3 %vm3568_vm12, %v13756_v25 }
 0x829   :  { %6560 = vmatpush.bf16.msrb.mxu2 %v8302_v56  ;;  %8327 = vmatmul.msk.bf16.vlgmr.msra.gmra.mxu1 %vm3568_vm12, %v13756_v25 }
 0x82a   :  { %6812 = vmatpush.bf16.msrb.mxu1 %v8744_v9  ;;  %6838 = vmatpush.bf16.msra.mxu3 %v8760_v26 }
 0x82d   :  { %6561 = vmatpush.bf16.msrb.mxu2 %v8286_v49 }
 0x82e   :  { %6813 = vmatpush.bf16.msrb.mxu1 %v8743_v14  ;;  %6839 = vmatpush.bf16.msra.mxu3 %v8759_v55 }
 0x831   :  { %6562 = vmatpush.bf16.msrb.mxu2 %v8270_v37 }
 0x832   :  { %6814 = vmatpush.bf16.msrb.mxu1 %v8742_v52  ;;  %6840 = vmatpush.bf16.msra.mxu3 %v8758_v48 }
 0x835   :  { %6563 = vmatpush.bf16.msrb.mxu2 %v8254_v7 }
 0x836   :  { %6815 = vmatpush.bf16.msrb.mxu1 %v8741_v18  ;;  %6841 = vmatpush.bf16.msra.mxu3 %v8757_v57  ;;  %v8765_v57 = vld [vmem:[%s14035_s11 + $0x10] sm:$0xff] }
 0x838   :  { %8328 = vmatmul.msk.bf16.vlgmr.msrb.gmra.mxu2 %vm3568_vm12, %v13756_v25  ;;  %v8753_v25 = vld [vmem:[%s14032_s9 + $0x78] sm:$0xff] }
 0x839   :  { %6824 = vmatpush.bf16.msra.mxu2 %v8753_v25  ;;  %v8769_v25 = vld [vmem:[%s14035_s11 + $0x30] sm:$0xff] }
 0x83a   :  { %6816 = vmatpush.bf16.msrb.mxu1 %v8740_v38  ;;  %6842 = vmatpush.bf16.msra.mxu3 %v8756_v39  ;;  %v6961_v39 = vld [vmem:[%s14037_s13 + $0x28] sm:$0x3] }
 0x83d   :  { %6825 = vmatpush.bf16.msra.mxu2 %v8752_v60 }
 0x83e   :  { %6817 = vmatpush.bf16.msrb.mxu1 %v8739_v27  ;;  %6843 = vmatpush.bf16.msra.mxu3 %v8755_v54  ;;  %v8763_v27 = vld [vmem:[%s14035_s11] sm:$0xff]  ;;  %v8773_v54 = vld [vmem:[%s14037_s13 + $0x18] sm:$0xff] }
 0x841   :  { %6826 = vmatpush.bf16.msra.mxu2 %v8751_v44 }
 0x842   :  { %6818 = vmatpush.bf16.msrb.mxu1 %v8738_v8  ;;  %6844 = vmatpush.bf16.msra.mxu3 %v8754_v11  ;;  %v6987_v8 = vunpack.c.l.b16 %v6961_v39 }
 0x845   :  { %6827 = vmatpush.bf16.msra.mxu2 %v8750_v10  ;;  %v8774_v10 = vld [vmem:[%s14037_s13 + $0x20] sm:$0xff] }
 0x849   :  { %6828 = vmatpush.bf16.msra.mxu2 %v8749_v59  ;;  %v8772_v59 = vld [vmem:[%s14037_s13 + $0x10] sm:$0xff] }
 0x84d   :  { %6829 = vmatpush.bf16.msra.mxu2 %v8748_v20 }
 0x851   :  { %6830 = vmatpush.bf16.msra.mxu2 %v8747_v30 }
 0x855   :  { %6831 = vmatpush.bf16.msra.mxu2 %v8746_v24  ;;  %v9344_v24 = vld [vmem:[%s14036_s12] ss:$0 sm:$0xff] }
 0x859   :  { %6857 = vmatpush.bf16.msrb.mxu2 %v8762_v34 }
 0x85d   :  { %v6052_v28 = vpop.f32.mrf.mxu0 }
 0x865   :  { %v6054_v47 = vpop.f32.mrf.mxu0 }
 0x866   :  { %v13858_v43 = vpop.f32.mrf.mxu1 }
 0x86b   :  { %v13860_v13 = vpop.f32.mrf.mxu2  ;;  %v13862_v36 = vpop.f32.mrf.mxu3 }
 0x86d   :  { %v6229_v1 = vpop.f32.mrf.mxu0 }
 0x86e   :  { %v5886_v29 = vpop.f32.mrf.mxu1 }
 0x873   :  { %v5873_v17 = vpop.f32.mrf.mxu2  ;;  %v5860_v31 = vpop.f32.mrf.mxu3 }
 0x875   :  { %v6231_v41 = vpop.f32.mrf.mxu0 }
 0x876   :  { %v13873_v16 = vpop.f32.mrf.mxu1 }
 0x877   :  { %v6014_v0 = vadd.f32 %v13873_v16, %v13862_v36 }
 0x87b   :  { %v5897_v21 = vpop.f32.mrf.mxu2  ;;  %v13884_v33 = vpop.f32.mrf.mxu3 }
 0x87c   :  { %v6053_v53 = vadd.f32 %v6052_v28, %v5897_v21  ;;  %v6040_v28 = vadd.f32 %v13884_v33, %v13858_v43  ;;  %v6879_v43 = vld [vmem:[%s14035_s11 + $0x38] sm:$0xf] }
 0x87d   :  { %v6410_v35 = vpop.f32.mrf.mxu0  ;;  %v6913_v16 = vunpack.c.l.b16 %v6879_v43 }
 0x87e   :  { %v6015_v46 = vpop.f32.mrf.mxu1  ;;  %v6236_v3 = vadd.f32 %v6229_v1, %v6053_v53  ;;  %v8766_v53 = vld [vmem:[%s14035_s11 + $0x18] sm:$0xff] }
 0x87f   :  { %v6921_v52 = vpack.c.b16 %v6913_v16, %v6913_v16 }
 0x880   :  { %v6417_v40 = vadd.f32 %v6410_v35, %v6236_v3 }
 0x881   :  { %v6934_v21 = vsel %vm605_vm3, %v6921_v52, 0 }
 0x882   :  { %6936 = vmatpush.bf16.msrb.mxu0 %v6934_v21 }
 0x883   :  { %v5899_v23 = vpop.f32.mrf.mxu2  ;;  %v6041_v15 = vpop.f32.mrf.mxu3 }
 0x884   :  { %v8767_v15 = vld [vmem:[%s14035_s11 + $0x20] sm:$0xff] }
 0x885   :  { %v6412_v6 = vpop.f32.mrf.mxu0 }
 0x886   :  { %v6190_v19 = vpop.f32.mrf.mxu1  ;;  %6937 = vmatpush.bf16.msrb.mxu0 %v8769_v25 }
 0x887   :  { %v6233_v61 = vadd.f32 %v6190_v19, %v6014_v0  ;;  %v8764_v19 = vld [vmem:[%s14035_s11 + $0x8] sm:$0xff] }
 0x88b   :  { %v6026_v50 = vpop.f32.mrf.mxu2  ;;  %v6216_v58 = vpop.f32.mrf.mxu3 }
 0x88c   :  { %v6235_v29 = vadd.f32 %v6216_v58, %v6040_v28  ;;  %v6027_v33 = vadd.f32 %v6026_v50, %v13860_v13  ;;  %v8768_v13 = vld [vmem:[%s14035_s11 + $0x28] sm:$0xff]  ;;  %v6993_v50 = vpack.c.b16 %v6987_v8, %v6987_v8 }
 0x88d   :  { %v6591_v4 = vpop.f32.mrf.mxu0  ;;  %6938 = vmatpush.bf16.msrb.mxu0 %v8768_v13 }
 0x88e   :  { %v6192_v42 = vpop.f32.mrf.mxu1  ;;  %v6598_v12 = vadd.f32 %v6591_v4, %v6417_v40  ;;  %v7003_v58 = vsel %vm3212_vm8, %v6993_v50, 0  ;;  %v9343_v4 = vld [vmem:[%s14034_s10] ss:$0 sm:$0xff] }
 0x88f   :  { %7007 = vmatpush.bf16.msra.mxu1 %v7003_v58 }
 0x890   :  { %7022 = vst.msk [vmem:[%s14033_s15 + $0x18] sm:$0xff] %vm6807_vm13, %v6598_v12  ;;  %v6602_v23 = vpack.c.bf16 %v6598_v12, %v6598_v12 }
 0x891   :  { %6939 = vmatpush.bf16.msrb.mxu0 %v8767_v15 }
 0x893   :  { %v6028_v5 = vpop.f32.mrf.mxu2  ;;  %v6218_v62 = vpop.f32.mrf.mxu3  ;;  %7008 = vmatpush.bf16.msra.mxu1 %v8774_v10 }
 0x895   :  { %v6593_v51 = vpop.f32.mrf.mxu0  ;;  %6940 = vmatpush.bf16.msrb.mxu0 %v8766_v53 }
 0x896   :  { %v6371_v63 = vpop.f32.mrf.mxu1 }
 0x897   :  { %v6414_v7 = vadd.f32 %v6371_v63, %v6233_v61  ;;  %7009 = vmatpush.bf16.msra.mxu1 %v8773_v54 }
 0x899   :  { %6941 = vmatpush.bf16.msrb.mxu0 %v8765_v57 }
 0x89b   :  { %v6203_v56 = vpop.f32.mrf.mxu2  ;;  %v6397_v22 = vpop.f32.mrf.mxu3  ;;  %7010 = vmatpush.bf16.msra.mxu1 %v8772_v59 }
 0x89c   :  { %v6416_v9 = vadd.f32 %v6397_v22, %v6235_v29  ;;  %v6234_v55 = vadd.f32 %v6203_v56, %v6027_v33  ;;  %v8771_v56 = vld [vmem:[%s14037_s13 + $0x8] sm:$0xff]  ;;  %v8770_v22 = vld [vmem:[%s14037_s13] sm:$0xff] }
 0x89d   :  { %6942 = vmatpush.bf16.msrb.mxu0 %v8764_v19 }
 0x89e   :  { %v6373_v49 = vpop.f32.mrf.mxu1 }
 0x89f   :  { %7011 = vmatpush.bf16.msra.mxu1 %v8771_v56 }
 0x8a1   :  { %6943 = vmatpush.bf16.msrb.mxu0 %v8763_v27 }
 0x8a3   :  { %v6205_v37 = vpop.f32.mrf.mxu2  ;;  %v6399_v45 = vpop.f32.mrf.mxu3  ;;  %7012 = vmatpush.bf16.msra.mxu1 %v8770_v22 }
 0x8a4   :  { %v9345_v45 = vld [vmem:[%s14038_s14] ss:$0 sm:$0xff] }
 0x8a6   :  { %v6552_v47 = vpop.f32.mrf.mxu1 }
 0x8a7   :  { %v6595_v1 = vadd.f32 %v6552_v47, %v6414_v7 }
 0x8a9   :  { %v6599_v32 = vpack.c.bf16 %v6595_v1, %v6595_v1  ;;  %7019 = vst [vmem:[%s14033_s15] sm:$0xff] %v6595_v1 }
 0x8ab   :  { %v6384_v17 = vpop.f32.mrf.mxu2  ;;  %v6578_v31 = vpop.f32.mrf.mxu3  ;;  %6819 = vmatmul.bf16.vlgmr.msrb.gmra.mxu1 %v6599_v32 }
 0x8ac   :  { %v6597_v36 = vadd.f32 %v6578_v31, %v6416_v9  ;;  %v6415_v35 = vadd.f32 %v6384_v17, %v6234_v55 }
 0x8ae   :  { %v6601_v2 = vpack.c.bf16 %v6597_v36, %v6597_v36  ;;  %7021 = vst [vmem:[%s14033_s15 + $0x10] sm:$0xff] %v6597_v36  ;;  %v6554_v41 = vpop.f32.mrf.mxu1 }
 0x8b0   :  { %6845 = vmatmul.bf16.vlgmr.msra.gmra.mxu3 %v6601_v2 }
 0x8b3   :  { %v6386_v14 = vpop.f32.mrf.mxu2  ;;  %v6580_v26 = vpop.f32.mrf.mxu3 }
 0x8bb   :  { %v6565_v46 = vpop.f32.mrf.mxu2 }
 0x8bc   :  { %v6596_v18 = vadd.f32 %v6565_v46, %v6415_v35 }
 0x8be   :  { %v6600_v48 = vpack.c.bf16 %v6596_v18, %v6596_v18  ;;  %7020 = vst [vmem:[%s14033_s15 + $0x8] sm:$0xff] %v6596_v18 }
 0x8c0   :  { %6832 = vmatmul.bf16.vlgmr.msra.gmra.mxu2 %v6600_v48 }
 0x8c3   :  { %v6567_v38 = vpop.f32.mrf.mxu2 }
 0x8d0   :  { %8431 = vmatmul.msk.bf16.vlgmr.msrb.gmra.mxu2 %vm6807_vm13, %v6602_v23 }
 0x928   :  { %v6820_v60 = vpop.f32.mrf.mxu1 }
 0x929   :  { %v6821_v12 = vadd.f32 %v9343_v4, %v6820_v60 }
 0x930   :  { %v6822_v44 = vpop.f32.mrf.mxu1 }
 0x933   :  { %v6846_v6 = vpop.f32.mrf.mxu3 }
 0x93b   :  { %v6848_v3 = vpop.f32.mrf.mxu3 }
 0x943   :  { %v6833_v40 = vpop.f32.mrf.mxu2 }
 0x944   :  { %v6834_v11 = vadd.f32 %v6833_v40, %v6821_v12 }
 0x946   :  { %v6847_v5 = vadd.f32 %v6846_v6, %v6834_v11 }
 0x94b   :  { %v6835_v42 = vpop.f32.mrf.mxu2 }
 0x953   :  { %v6859_v62 = vpop.f32.mrf.mxu2 }
 0x954   :  { %v6860_v20 = vadd.f32 %v6859_v62, %v6847_v5 }
 0x956   :  { %v6863_v51 = vmax.f32 %v6860_v20, 0.0 }
 0x958   :  { %v6864_v30 = vpack.c.bf16 %v6863_v51, %v6863_v51 }
 0x95a   :  { %8460 = vmatmul.msk.bf16.vlgmr.msrb.gmra.mxu0 %vm6929_vm14, %v6864_v30 }
 0x95b   :  { %v6861_v63 = vpop.f32.mrf.mxu2 }
 0x9d7   :  { %v6945_v49 = vpop.f32.mrf.mxu0 }
 0x9d8   :  { %v6946_v34 = vadd.f32 %v9344_v24, %v6945_v49 }
 0x9da   :  { %v6949_v0 = vmax.f32 %v6946_v34, 0.0  ;;  %7023 = vst.msk [vmem:[%s14039_s16] sm:$0xff] %vm3470_vm10, %v6946_v34 }
 0x9dc   :  { %v6950_v37 = vpack.c.bf16 %v6949_v0, %v6949_v0 }
 0x9de   :  { %8481 = vmatmul.msk.bf16.vlgmr.msra.gmra.mxu1 %vm3470_vm10, %v6950_v37 }
 0x9df   :  { %v6947_v61 = vpop.f32.mrf.mxu0 }
 0xa5b   :  { %v7014_v7 = vpop.f32.mrf.mxu1 }
 0xa5c   :  { %v7015_v28 = vadd.f32 %v9345_v45, %v7014_v7 }
 0xa5e   :  { %v7018_v47 = vmax.f32 %v7015_v28, 0.0 }
 0xa60   :  { %7025 = vst.msk [vmem:[%s14040_s17] sm:$0xff] %vm7024_vm15, %v7018_v47 }
 0xa63   :  { %v7016_v1 = vpop.f32.mrf.mxu1 }

</bundles_post_ra>
